<compile_context>
chip_gen: v6e
topology: v6e:2x2x1
jax: 0.10.0
libtpu: 0.0.40
codegen_flags: <defaults>
</compile_context>

<pallas_src>
import jax
import jax.numpy as jnp
from jax.experimental import pallas as pl
from jax.experimental.pallas import tpu as pltpu

INPUT_DIM = 2
OUTPUT_DIM = 2
HIDDEN_DIM = 32
NUM_LAYERS = 5  # first layer (in->hidden) + 4 hidden->hidden layers, then the output layer


def mlp_kernel(x_ref, w0_ref, b0_ref, wh_ref, bh_ref, wo_ref, bo_ref, o_ref):
    # Feature-major: batch rows live on the lane (last) axis.
    x = x_ref[...]                       # (INPUT_DIM, TM)
    w0 = w0_ref[...]                     # (HIDDEN_DIM, INPUT_DIM)

    # Layer 0: K=2 contraction -> broadcast FMAs on the VPU (skip the MXU).
    h = w0[:, 0:1] * x[0:1, :] + w0[:, 1:2] * x[1:2, :] + b0_ref[...]
    h = jnp.sin(h)                       # (HIDDEN_DIM, TM)

    # Hidden layers 1..4 (stacked weights), MXU matmuls with f32 accumulation.
    for i in range(NUM_LAYERS - 1):
        h = jnp.sin(jnp.dot(wh_ref[i], h, preferred_element_type=jnp.float32)
                    + bh_ref[i])

    # Output layer + tanh; (OUTPUT_DIM, TM) block is lane-dense.
    out = jnp.tanh(jnp.dot(wo_ref[...], h, preferred_element_type=jnp.float32)
                   + bo_ref[...])
    o_ref[...] = out.astype(o_ref.dtype)


def _pick_tile_m(n):
    """Largest multiple of 128 dividing n (capped at 512), preferring a grid >= 2."""
    candidates = [t for t in range(128, min(512, n) + 1, 128) if n % t == 0]
    if not candidates:
        raise ValueError("batch size must be a multiple of 128")
    good = [t for t in candidates if n // t >= 2]  # keep both v7x TCs busy if possible
    return max(good) if good else max(candidates)


def basic_network_forward(x, params, *, tile_m=None):
    """x: (N, INPUT_DIM) float32 (row-major, like the PyTorch module). Returns (N, OUTPUT_DIM)."""
    N, in_dim = x.shape
    assert in_dim == INPUT_DIM
    if tile_m is None:
        tile_m = _pick_tile_m(N)
    assert N % tile_m == 0 and tile_m % 128 == 0, "tile_m must divide N and be a multiple of 128"

    x_fm = x.T  # (INPUT_DIM, N): batch on the lane axis inside the kernel

    def full_spec(shape):
        # Whole-array block (no (8,128) constraint when block == array shape); fetched once.
        return pl.BlockSpec(shape, lambda i: tuple(0 for _ in shape))

    grid = (N // tile_m,)

    flops = 2 * N * (INPUT_DIM * HIDDEN_DIM
                     + (NUM_LAYERS - 1) * HIDDEN_DIM * HIDDEN_DIM
                     + HIDDEN_DIM * OUTPUT_DIM)
    transcendentals = N * (NUM_LAYERS * HIDDEN_DIM + OUTPUT_DIM)
    bytes_accessed = 4 * N * (INPUT_DIM + OUTPUT_DIM) + 4 * (
        HIDDEN_DIM * INPUT_DIM + HIDDEN_DIM
        + (NUM_LAYERS - 1) * (HIDDEN_DIM * HIDDEN_DIM + HIDDEN_DIM)
        + OUTPUT_DIM * HIDDEN_DIM + OUTPUT_DIM)

    out_fm = pl.pallas_call(
        mlp_kernel,
        out_shape=jax.ShapeDtypeStruct((OUTPUT_DIM, N), jnp.float32),
        grid_spec=pltpu.PrefetchScalarGridSpec(
            num_scalar_prefetch=0,
            grid=grid,
            in_specs=[
                pl.BlockSpec((INPUT_DIM, tile_m), lambda i: (0, i)),  # x tile, lane-dense
                full_spec(params["w0"].shape),     # (H, in)
                full_spec(params["b0"].shape),     # (H, 1)
                full_spec(params["wh"].shape),     # (4, H, H)
                full_spec(params["bh"].shape),     # (4, H, 1)
                full_spec(params["wout"].shape),   # (out, H)
                full_spec(params["bout"].shape),   # (out, 1)
            ],
            out_specs=pl.BlockSpec((OUTPUT_DIM, tile_m), lambda i: (0, i)),
        ),
        compiler_params=pltpu.CompilerParams(
            dimension_semantics=("parallel",)),
        cost_estimate=pl.CostEstimate(
            flops=flops,
            transcendentals=transcendentals,
            bytes_accessed=bytes_accessed),
    )(x_fm, params["w0"], params["b0"], params["wh"], params["bh"],
      params["wout"], params["bout"])

    return out_fm.T  # back to (N, OUTPUT_DIM)


def init_params(key):
    """nn.Linear-style init U(-1/sqrt(fan_in), 1/sqrt(fan_in)).
    Weights stored PyTorch-style (out_features, in_features); biases as (out, 1) columns.
    Hidden layers 1..4 are stacked: wh (4, H, H), bh (4, H, 1)."""
    keys = jax.random.split(key, NUM_LAYERS + 1)

    def linear(k, fan_in, fan_out):
        bound = 1.0 / jnp.sqrt(jnp.float32(fan_in))
        kw, kb = jax.random.split(k)
        w = jax.random.uniform(kw, (fan_out, fan_in), jnp.float32, -bound, bound)
        b = jax.random.uniform(kb, (fan_out, 1), jnp.float32, -bound, bound)
        return w, b

    params = {}
    params["w0"], params["b0"] = linear(keys[0], INPUT_DIM, HIDDEN_DIM)
    whs, bhs = [], []
    for i in range(1, NUM_LAYERS):
        w, b = linear(keys[i], HIDDEN_DIM, HIDDEN_DIM)
        whs.append(w)
        bhs.append(b)
    params["wh"] = jnp.stack(whs)  # (4, H, H)
    params["bh"] = jnp.stack(bhs)  # (4, H, 1)
    params["wout"], params["bout"] = linear(keys[NUM_LAYERS], HIDDEN_DIM, OUTPUT_DIM)
    return params


def reference_forward(x, params):
    """Pure-JAX reference, row-major: (N, INPUT_DIM) -> (N, OUTPUT_DIM)."""
    h = jnp.sin(x @ params["w0"].T + params["b0"].T)
    for i in range(NUM_LAYERS - 1):
        h = jnp.sin(h @ params["wh"][i].T + params["bh"][i].T)
    return jnp.tanh(h @ params["wout"].T + params["bout"].T)


if __name__ == "__main__":
    key = jax.random.PRNGKey(0)
    kp, kx = jax.random.split(key)
    params = init_params(kp)

    N = 512  # batch of 2-D query points; tile_m=256 -> grid of 2 (both v7x TCs get work)
    x = jax.random.uniform(kx, (N, INPUT_DIM), jnp.float32, -1.0, 1.0)

    out = basic_network_forward(x, params, tile_m=256)
    out = jax.block_until_ready(out)

    ref = reference_forward(x, params)
    assert out.shape == (N, OUTPUT_DIM)
    assert jnp.allclose(out, ref, atol=1e-5, rtol=1e-5), "mismatch vs reference"
    print("KERNEL_OK")
</pallas_src>

<mosaic_0001>
module attributes {stable_mosaic.version = 11 : i64} {
  func.func @mlp_kernel(%arg0: i32, %arg1: memref<2x256xf32, #tpu.memory_space<vmem>>, %arg2: memref<32x2xf32, #tpu.memory_space<vmem>>, %arg3: memref<32x1xf32, #tpu.memory_space<vmem>>, %arg4: memref<4x32x32xf32, #tpu.memory_space<vmem>>, %arg5: memref<4x32x1xf32, #tpu.memory_space<vmem>>, %arg6: memref<2x32xf32, #tpu.memory_space<vmem>>, %arg7: memref<2x1xf32, #tpu.memory_space<vmem>>, %arg8: memref<2x256xf32, #tpu.memory_space<vmem>>) attributes {dimension_semantics = [#tpu.dimension_semantics<parallel>], iteration_bounds = array<i64: 2>, scalar_prefetch = 0 : i64, scratch_operands = 0 : i64, tpu.core_type = #tpu.core_type<tc>, window_params = [{transform_indices = @transform_0, window_bounds = array<i64: 2, 256>}, {pipeline_mode = #tpu.pipeline_mode<synchronous>, transform_indices = @transform_1, window_bounds = array<i64: 32, 2>}, {pipeline_mode = #tpu.pipeline_mode<synchronous>, transform_indices = @transform_2, window_bounds = array<i64: 32, 1>}, {pipeline_mode = #tpu.pipeline_mode<synchronous>, transform_indices = @transform_3, window_bounds = array<i64: 4, 32, 32>}, {pipeline_mode = #tpu.pipeline_mode<synchronous>, transform_indices = @transform_4, window_bounds = array<i64: 4, 32, 1>}, {pipeline_mode = #tpu.pipeline_mode<synchronous>, transform_indices = @transform_5, window_bounds = array<i64: 2, 32>}, {pipeline_mode = #tpu.pipeline_mode<synchronous>, transform_indices = @transform_6, window_bounds = array<i64: 2, 1>}, {transform_indices = @transform_7, window_bounds = array<i64: 2, 256>}]} {
    %c0 = arith.constant 0 : index
    %c0_0 = arith.constant 0 : index
    %0 = vector.load %arg1[%c0, %c0_0] : memref<2x256xf32, #tpu.memory_space<vmem>>, vector<2x256xf32>
    %c0_1 = arith.constant 0 : index
    %c0_2 = arith.constant 0 : index
    %1 = vector.load %arg2[%c0_1, %c0_2] : memref<32x2xf32, #tpu.memory_space<vmem>>, vector<32x2xf32>
    %2 = vector.extract_strided_slice %1 {offsets = [0, 0], sizes = [32, 1], strides = [1, 1]} : vector<32x2xf32> to vector<32x1xf32>
    %3 = vector.extract_strided_slice %0 {offsets = [0, 0], sizes = [1, 256], strides = [1, 1]} : vector<2x256xf32> to vector<1x256xf32>
    %4 = vector.broadcast %2 : vector<32x1xf32> to vector<32x256xf32>
    %5 = vector.broadcast %3 : vector<1x256xf32> to vector<32x256xf32>
    %6 = arith.mulf %4, %5 : vector<32x256xf32>
    %7 = vector.extract_strided_slice %1 {offsets = [0, 1], sizes = [32, 1], strides = [1, 1]} : vector<32x2xf32> to vector<32x1xf32>
    %8 = vector.extract_strided_slice %0 {offsets = [1, 0], sizes = [1, 256], strides = [1, 1]} : vector<2x256xf32> to vector<1x256xf32>
    %9 = vector.broadcast %7 : vector<32x1xf32> to vector<32x256xf32>
    %10 = vector.broadcast %8 : vector<1x256xf32> to vector<32x256xf32>
    %11 = arith.mulf %9, %10 : vector<32x256xf32>
    %12 = arith.addf %6, %11 : vector<32x256xf32>
    %c0_3 = arith.constant 0 : index
    %c0_4 = arith.constant 0 : index
    %13 = vector.load %arg3[%c0_3, %c0_4] : memref<32x1xf32, #tpu.memory_space<vmem>>, vector<32x1xf32>
    %14 = vector.broadcast %13 : vector<32x1xf32> to vector<32x256xf32>
    %15 = arith.addf %12, %14 : vector<32x256xf32>
    %16 = math.sin %15 : vector<32x256xf32>
    %c0_5 = arith.constant 0 : index
    %c0_6 = arith.constant 0 : index
    %c0_7 = arith.constant 0 : index
    %17 = vector.load %arg4[%c0_5, %c0_6, %c0_7] : memref<4x32x32xf32, #tpu.memory_space<vmem>>, vector<1x32x32xf32>
    %18 = vector.shape_cast %17 : vector<1x32x32xf32> to vector<32x32xf32>
    %cst = arith.constant dense<0.000000e+00> : vector<32x256xf32>
    %19 = tpu.matmul %18, %16, %cst {dimension_numbers = #tpu.dot_dimension_numbers<[1], [0], [0], [1], [0, 0, 1, 1], [], []>} : vector<32x32xf32>, vector<32x256xf32>, vector<32x256xf32> -> vector<32x256xf32>
    %c0_8 = arith.constant 0 : index
    %c0_9 = arith.constant 0 : index
    %c0_10 = arith.constant 0 : index
    %20 = vector.load %arg5[%c0_8, %c0_9, %c0_10] : memref<4x32x1xf32, #tpu.memory_space<vmem>>, vector<1x32x1xf32>
    %21 = vector.shape_cast %20 : vector<1x32x1xf32> to vector<32x1xf32>
    %22 = vector.broadcast %21 : vector<32x1xf32> to vector<32x256xf32>
    %23 = arith.addf %19, %22 : vector<32x256xf32>
    %24 = math.sin %23 : vector<32x256xf32>
    %c1 = arith.constant 1 : index
    %c0_11 = arith.constant 0 : index
    %c0_12 = arith.constant 0 : index
    %25 = vector.load %arg4[%c1, %c0_11, %c0_12] : memref<4x32x32xf32, #tpu.memory_space<vmem>>, vector<1x32x32xf32>
    %26 = vector.shape_cast %25 : vector<1x32x32xf32> to vector<32x32xf32>
    %cst_13 = arith.constant dense<0.000000e+00> : vector<32x256xf32>
    %27 = tpu.matmul %26, %24, %cst_13 {dimension_numbers = #tpu.dot_dimension_numbers<[1], [0], [0], [1], [0, 0, 1, 1], [], []>} : vector<32x32xf32>, vector<32x256xf32>, vector<32x256xf32> -> vector<32x256xf32>
    %c1_14 = arith.constant 1 : index
    %c0_15 = arith.constant 0 : index
    %c0_16 = arith.constant 0 : index
    %28 = vector.load %arg5[%c1_14, %c0_15, %c0_16] : memref<4x32x1xf32, #tpu.memory_space<vmem>>, vector<1x32x1xf32>
    %29 = vector.shape_cast %28 : vector<1x32x1xf32> to vector<32x1xf32>
    %30 = vector.broadcast %29 : vector<32x1xf32> to vector<32x256xf32>
    %31 = arith.addf %27, %30 : vector<32x256xf32>
    %32 = math.sin %31 : vector<32x256xf32>
    %c2 = arith.constant 2 : index
    %c0_17 = arith.constant 0 : index
    %c0_18 = arith.constant 0 : index
    %33 = vector.load %arg4[%c2, %c0_17, %c0_18] : memref<4x32x32xf32, #tpu.memory_space<vmem>>, vector<1x32x32xf32>
    %34 = vector.shape_cast %33 : vector<1x32x32xf32> to vector<32x32xf32>
    %cst_19 = arith.constant dense<0.000000e+00> : vector<32x256xf32>
    %35 = tpu.matmul %34, %32, %cst_19 {dimension_numbers = #tpu.dot_dimension_numbers<[1], [0], [0], [1], [0, 0, 1, 1], [], []>} : vector<32x32xf32>, vector<32x256xf32>, vector<32x256xf32> -> vector<32x256xf32>
    %c2_20 = arith.constant 2 : index
    %c0_21 = arith.constant 0 : index
    %c0_22 = arith.constant 0 : index
    %36 = vector.load %arg5[%c2_20, %c0_21, %c0_22] : memref<4x32x1xf32, #tpu.memory_space<vmem>>, vector<1x32x1xf32>
    %37 = vector.shape_cast %36 : vector<1x32x1xf32> to vector<32x1xf32>
    %38 = vector.broadcast %37 : vector<32x1xf32> to vector<32x256xf32>
    %39 = arith.addf %35, %38 : vector<32x256xf32>
    %40 = math.sin %39 : vector<32x256xf32>
    %c3 = arith.constant 3 : index
    %c0_23 = arith.constant 0 : index
    %c0_24 = arith.constant 0 : index
    %41 = vector.load %arg4[%c3, %c0_23, %c0_24] : memref<4x32x32xf32, #tpu.memory_space<vmem>>, vector<1x32x32xf32>
    %42 = vector.shape_cast %41 : vector<1x32x32xf32> to vector<32x32xf32>
    %cst_25 = arith.constant dense<0.000000e+00> : vector<32x256xf32>
    %43 = tpu.matmul %42, %40, %cst_25 {dimension_numbers = #tpu.dot_dimension_numbers<[1], [0], [0], [1], [0, 0, 1, 1], [], []>} : vector<32x32xf32>, vector<32x256xf32>, vector<32x256xf32> -> vector<32x256xf32>
    %c3_26 = arith.constant 3 : index
    %c0_27 = arith.constant 0 : index
    %c0_28 = arith.constant 0 : index
    %44 = vector.load %arg5[%c3_26, %c0_27, %c0_28] : memref<4x32x1xf32, #tpu.memory_space<vmem>>, vector<1x32x1xf32>
    %45 = vector.shape_cast %44 : vector<1x32x1xf32> to vector<32x1xf32>
    %46 = vector.broadcast %45 : vector<32x1xf32> to vector<32x256xf32>
    %47 = arith.addf %43, %46 : vector<32x256xf32>
    %48 = math.sin %47 : vector<32x256xf32>
    %c0_29 = arith.constant 0 : index
    %c0_30 = arith.constant 0 : index
    %49 = vector.load %arg6[%c0_29, %c0_30] : memref<2x32xf32, #tpu.memory_space<vmem>>, vector<2x32xf32>
    %cst_31 = arith.constant dense<0.000000e+00> : vector<2x256xf32>
    %50 = tpu.matmul %49, %48, %cst_31 {dimension_numbers = #tpu.dot_dimension_numbers<[1], [0], [0], [1], [0, 0, 1, 1], [], []>} : vector<2x32xf32>, vector<32x256xf32>, vector<2x256xf32> -> vector<2x256xf32>
    %c0_32 = arith.constant 0 : index
    %c0_33 = arith.constant 0 : index
    %51 = vector.load %arg7[%c0_32, %c0_33] : memref<2x1xf32, #tpu.memory_space<vmem>>, vector<2x1xf32>
    %52 = vector.broadcast %51 : vector<2x1xf32> to vector<2x256xf32>
    %53 = arith.addf %50, %52 : vector<2x256xf32>
    %54 = math.tanh %53 : vector<2x256xf32>
    %c0_34 = arith.constant 0 : index
    %c0_35 = arith.constant 0 : index
    %55 = vector.load %arg8[%c0_34, %c0_35] : memref<2x256xf32, #tpu.memory_space<vmem>>, vector<2x256xf32>
    tpu.vector_store %arg8[%c0_34, %c0_35], %54 {strides = array<i32>} : memref<2x256xf32, #tpu.memory_space<vmem>>, vector<2x256xf32>,
    return
  }
  func.func @transform_0(%arg0: i32) -> (i32, i32) {
    %c0_i32 = arith.constant 0 : i32
    %c0_i32_0 = arith.constant 0 : i32
    return %c0_i32, %arg0 : i32, i32
  }
  func.func @transform_1(%arg0: i32) -> (i32, i32) {
    %c0_i32 = arith.constant 0 : i32
    %c0_i32_0 = arith.constant 0 : i32
    %c0_i32_1 = arith.constant 0 : i32
    return %c0_i32, %c0_i32_0 : i32, i32
  }
  func.func @transform_2(%arg0: i32) -> (i32, i32) {
    %c0_i32 = arith.constant 0 : i32
    %c0_i32_0 = arith.constant 0 : i32
    %c0_i32_1 = arith.constant 0 : i32
    return %c0_i32, %c0_i32_0 : i32, i32
  }
  func.func @transform_3(%arg0: i32) -> (i32, i32, i32) {
    %c0_i32 = arith.constant 0 : i32
    %c0_i32_0 = arith.constant 0 : i32
    %c0_i32_1 = arith.constant 0 : i32
    %c0_i32_2 = arith.constant 0 : i32
    return %c0_i32, %c0_i32_0, %c0_i32_1 : i32, i32, i32
  }
  func.func @transform_4(%arg0: i32) -> (i32, i32, i32) {
    %c0_i32 = arith.constant 0 : i32
    %c0_i32_0 = arith.constant 0 : i32
    %c0_i32_1 = arith.constant 0 : i32
    %c0_i32_2 = arith.constant 0 : i32
    return %c0_i32, %c0_i32_0, %c0_i32_1 : i32, i32, i32
  }
  func.func @transform_5(%arg0: i32) -> (i32, i32) {
    %c0_i32 = arith.constant 0 : i32
    %c0_i32_0 = arith.constant 0 : i32
    %c0_i32_1 = arith.constant 0 : i32
    return %c0_i32, %c0_i32_0 : i32, i32
  }
  func.func @transform_6(%arg0: i32) -> (i32, i32) {
    %c0_i32 = arith.constant 0 : i32
    %c0_i32_0 = arith.constant 0 : i32
    %c0_i32_1 = arith.constant 0 : i32
    return %c0_i32, %c0_i32_0 : i32, i32
  }
  func.func @transform_7(%arg0: i32) -> (i32, i32) {
    %c0_i32 = arith.constant 0 : i32
    %c0_i32_0 = arith.constant 0 : i32
    return %c0_i32, %arg0 : i32, i32
  }
}

</mosaic_0001>

<bundles_post_ra>
// kernel: tpu_custom_call.1
= control target key start
LH: loop header
LB: loop body
LE: loop exit
PB: predicated region body
PF: predicated region fallthrough
CT: control target
= control target key end

     0   :  { %12 = vsyncpa [#allocation3], 0  ;;  %s10299_s0 = inlined_call_operand.vmem [shape: f32[2,512], index: 0, kind: input, shape index: {}]   ;;  %s10300_s1 = inlined_call_operand.vmem [shape: f32[32,2], index: 1, kind: input, shape index: {}]   ;;  %s10301_s2 = inlined_call_operand.vmem [shape: f32[32,1], index: 2, kind: input, shape index: {}]   ;;  %s10302_s3 = inlined_call_operand.vmem [shape: f32[4,32,32], index: 3, kind: input, shape index: {}]   ;;  %s10303_s4 = inlined_call_operand.vmem [shape: f32[4,32,1], index: 4, kind: input, shape index: {}]   ;;  %s10304_s5 = inlined_call_operand.vmem [shape: f32[2,32], index: 5, kind: input, shape index: {}]   ;;  %s10305_s6 = inlined_call_operand.vmem [shape: f32[2,1], index: 6, kind: input, shape index: {}]   ;;  %s10306_s7 = inlined_call_operand.hbm [shape: f32[2,512], index: 7, kind: output, shape index: {}]  }
   0x1   :  { %14 = vsyncpa [#allocation3 + $0x1], 0  ;;  %s5972_s24 = smov 0   ;;  %s5974_s25 = smov 0  }
   0x2   :  { %s5976_s26 = smov 0   ;;  %s5978_s27 = smov 0  }
   0x3 LB: > { %s5993_s28 = sadd.s32 4294967295, %s5920_s27   ;;  %s5266_s29 = sadd.s32 4294967294, %s5920_s27   ;;  %s5920_s27 = sphi %s5978_s27, %s10622_s27   ;;  %s5916_s26 = sphi %s5976_s26, %s10621_s26   ;;  %s5912_s25 = sphi %s5974_s25, %s10620_s25   ;;  %s5908_s24 = sphi %s5972_s24, %s10619_s24  }
   0x4   : > { %s5997_s30 = sadd.s32 1, %s5920_s27   ;;  %s179_s8 = sadd.s32 1, %s5916_s26 }
   0x5   : > { %s176_s9 = ssub.s32 %s5920_s27, %s5997_s30  ;;  %p189_p0 = scmp.ne.s32.totalorder %s5916_s26, %s5912_s25 }
   0x6   : > { %p177_p1 = scmp.eq.s32.totalorder %s176_s9, 0  ;;  %p190_p2 = scmp.eq.s32.totalorder %s5993_s28, 1 }
   0x7   : > { %p195_p3 = scmp.ne.s32.totalorder %s5912_s25, %s5908_s24  ;;  %p196_p4 = scmp.eq.s32.totalorder %s5266_s29, 1 }
   0x8   : > { %s6008_s10 = scalar_select %p177_p1, %s5916_s26, %s179_s8  }
   0x9   : > { %p6010_p5 = por %p190_p2, %p189_p0  ;;  %p6014_p6 = por %p196_p4, %p195_p3 }
   0xa   : > { %p5269_p7 = scmp.ge.s32.totalorder %s5920_s27, 1  ;;  %p241_p8 = scmp.lt.s32.totalorder %s5920_s27, 3 }
   0xc   : > { %p242_p9 = pnand %p5269_p7, %p241_p8 }
   0xe   : > { %245 = sbr.rel (%p242_p9) target bundleno = 2238 (0x8be), region = 48 }
  0x13   : > { %v284_v0 = vld [vmem:[%s10300_s1 + $0x18] sm:$0xff]  ;;  %v283_v1 = vld [vmem:[%s10300_s1 + $0x10] sm:$0xff]  ;;  %v5922_v2 = vmov 1   ;;  %v5923_v3 = vmov 0   ;;  %v282_v4 = vld [vmem:[%s10300_s1 + $0x8] sm:$0xff]  ;;  %s5271_s21 = sshll.u32 %s5993_s28, 1  ;;  %v306_v27 = vlaneseq }
  0x14   : > { %5689 = vset.pattern.permute.xlu0 %v5922_v2  ;;  %5690 = vset.pattern.permute.xlu1 %v5923_v3  ;;  %v281_v5 = vld [vmem:[%s10300_s1] sm:$0xff]  ;;  %v385_v6 = vld [vmem:[%s10301_s2 + $0x18] sm:$0xff]  ;;  %v383_v7 = vld [vmem:[%s10301_s2 + $0x8] sm:$0xff]  ;;  %p274_p10 = scmp.lt.s32.totalorder %s5271_s21, 3  ;;  %s270_s18 = sand.u32 1, %s5912_s25  }
  0x15   : > { %345 = vperm.xlu0 %5689, %v284_v0   ;;  %297 = vperm.xlu1 %5690, %v283_v1   ;;  %v1253_v8 = vld [vmem:[%s10303_s4 + $0x18] sm:$0xff]  ;;  %v384_v9 = vld [vmem:[%s10301_s2 + $0x10] sm:$0xff]  ;;  %v1251_v10 = vld [vmem:[%s10303_s4 + $0x8] sm:$0xff]  ;;  %v307_v28 = vshrl.u32 %v306_v27, 7  ;;  %s5270_s19 = sshll.u32 %s270_s18, 2  ;;  %s5480_s20 = sshll.u32 %s5993_s28, 6 }
  0x16   : > { %v382_v11 = vld [vmem:[%s10301_s2] sm:$0xff]  ;;  %v5348_v12 = vld [vmem:[%s10303_s4 + $0x38] sm:$0xff]  ;;  %v1252_v13 = vld [vmem:[%s10303_s4 + $0x10] sm:$0xff]  ;;  %s10624_s21 = smov (!%p274_p10, %s5271_s21), 3  ;;  %s5193_s9 = scalar_lea.sflag [#allocation3], %s270_s18 }
  0x17   : > { %v5346_v14 = vld [vmem:[%s10303_s4 + $0x28] sm:$0xff]  ;;  %v1250_v15 = vld [vmem:[%s10303_s4] sm:$0xff]  ;;  %v5392_v16 = vld [vmem:[%s10303_s4 + $0x58] sm:$0xff]  ;;  %s5272_s22 = sshll.u32 %s10624_s21, 1  ;;  %v350_v29 = vsub.s32 1, %v307_v28  ;;  %v354_v30 = vsub.s32 3, %v307_v28 }
  0x18   : > { %v5347_v17 = vld [vmem:[%s10303_s4 + $0x30] sm:$0xff]  ;;  %v5390_v18 = vld [vmem:[%s10303_s4 + $0x48] sm:$0xff]  ;;  %v5345_v19 = vld [vmem:[%s10303_s4 + $0x20] sm:$0xff]  ;;  %s277_s8 = scalar_lea.vmem %s10299_s0, %s5272_s22  ;;  %v308_v34 = vsub.s32 0, %v307_v28  ;;  %v312_v35 = vsub.s32 2, %v307_v28  ;;  %s272_s21 = scalar_lea.vmem [#allocation2], %s5270_s19 }
  0x19   : > { %5691 = vset.pattern.permute.xlu1 %v5922_v2  ;;  %337 = vperm.xlu0 %5689, %v282_v4   ;;  %v5436_v20 = vld [vmem:[%s10303_s4 + $0x78] sm:$0xff]  ;;  %v5391_v21 = vld [vmem:[%s10303_s4 + $0x50] sm:$0xff]  ;;  %v5434_v22 = vld [vmem:[%s10303_s4 + $0x68] sm:$0xff]  ;;  %s5207_s22 = sshll.u32 %s272_s21, 4  ;;  %s5931_s14 = smov [#allocation2]   ;;  %s5208_s22 = int_to_ptr.vmem [resolvable:$true] %s5207_s22 }
  0x1a   : > { %341 = vperm.xlu1 %5691, %v283_v1   ;;  %v5389_v23 = vld [vmem:[%s10303_s4 + $0x40] sm:$0xff]  ;;  %v5435_v25 = vld [vmem:[%s10303_s4 + $0x70] sm:$0xff]  ;;  %s5860_s13 = scalar_lea.vmem %s5208_s22, 64  ;;  %s5864_s15 = sshll.u32 %s5931_s14, 4  ;;  %s5865_s15 = int_to_ptr.vmem [resolvable:$false] %s5864_s15 }
  0x1b   : > { %v5098_v24 = vld [vmem:[%s10305_s6] sm:$0x3]  ;;  %p5861_p11 = scmp.ne.s32.totalorder %s5208_s22, %s5860_s13  ;;  %s5866_s28 = scalar_lea.vmem %s5865_s15, 128 }
  0x1c   : > { %v5433_v26 = vld [vmem:[%s10303_s4 + $0x60] sm:$0xff]  ;;  %p5867_p0 = scmp.lt.s32.totalorder %s5208_s22, %s5865_s15  ;;  %p5868_p1 = scmp.lt.s32.totalorder %s5866_s28, %s5860_s13 }
  0x1d   : > { %5693 = vset.pattern.permute.xlu0 %v5923_v3  ;;  %v280_v31 = vld [vmem:[%s277_s8] sm:$0xf]  ;;  %s5205_s8 = scalar_lea.hbm %s10306_s7, %s5480_s20  ;;  %p5862_p12 = pnand %p5861_p11, %p6010_p5 }
  0x1e   : > { %5692 = vset.pattern.permute.xlu1 %v5923_v3  ;;  %302 = vperm.xlu0 %5693, %v284_v0   ;;  %v351_v32 = vrot.slane %v280_v31, %v350_v29  ;;  %v355_v33 = vrot.slane %v280_v31, %v354_v30  ;;  %v309_v40 = vrot.slane %v280_v31, %v308_v34  ;;  %p5869_p2 = por %p5868_p1, %p5867_p0 }
  0x1f   : > { %292 = vperm.xlu1 %5692, %v282_v4   ;;  %v313_v41 = vrot.slane %v280_v31, %v312_v35  ;;  %p5863_p13 = pneg %p5862_p12 }
  0x20   : > { %v361_v38 = vrot.slane %v351_v32, %v350_v29  ;;  %v365_v39 = vrot.slane %v355_v33, %v350_v29  ;;  %v319_v46 = vrot.slane %v309_v40, %v308_v34 }
  0x21   : > { %v323_v47 = vrot.slane %v313_v41, %v308_v34  ;;  %p5870_p3 = pnand %p5869_p2, %p5863_p13 }
  0x22   : > { %287 = vperm.xlu0 %5693, %v281_v5  }
  0x23   : > { %403 = vperm.xlu1 %5692, %v385_v6  }
  0x26   : > { %393 = vperm.xlu0 %5693, %v383_v7  }
  0x27   : > { %5694 = vset.pattern.permute.xlu1 %v5922_v2 }
  0x28   : > { %333 = vperm.xlu1 %5694, %v281_v5  }
  0x2a   : > { %1271 = vperm.xlu0 %5693, %v1253_v8  }
  0x2c   : > { %5695 = vset.pattern.permute.xlu1 %v5923_v3 }
  0x2d   : > { %398 = vperm.xlu1 %5695, %v384_v9  }
  0x2e   : > { %1261 = vperm.xlu0 %5693, %v1251_v10  }
  0x31   : > { %388 = vperm.xlu1 %5695, %v382_v11  }
  0x32   : > { %2235 = vperm.xlu0 %5693, %v5348_v12  }
  0x35   : > { %1266 = vperm.xlu1 %5695, %v1252_v13  }
  0x36   : > { %2225 = vperm.xlu0 %5693, %v5346_v14  }
  0x39   : > { %1256 = vperm.xlu1 %5695, %v1250_v15  }
  0x3a   : > { %3198 = vperm.xlu0 %5693, %v5392_v16  }
  0x3d   : > { %2230 = vperm.xlu1 %5695, %v5347_v17  }
  0x3e   : > { %3188 = vperm.xlu0 %5693, %v5390_v18  }
  0x41   : > { %2220 = vperm.xlu1 %5695, %v5345_v19  }
  0x42   : > { %4161 = vperm.xlu0 %5693, %v5436_v20  }
  0x45   : > { %3193 = vperm.xlu1 %5695, %v5391_v21  }
  0x46   : > { %4151 = vperm.xlu0 %5693, %v5434_v22  }
  0x49   : > { %3183 = vperm.xlu1 %5695, %v5389_v23  }
  0x4a   : > { %5101 = vperm.xlu0 %5693, %v5098_v24  }
  0x4d   : > { %4156 = vperm.xlu1 %5695, %v5435_v25  }
  0x51   : > { %4146 = vperm.xlu1 %5695, %v5433_v26  }
  0x90   : > { %v298_v36 = vpop.permute.xlu1 %297  ;;  %v346_v37 = vpop.permute.xlu0 %345 }
  0x91   : > { %v373_v48 = vmul.f32 %v365_v39, %v346_v37  ;;  %v372_v49 = vmul.f32 %v361_v38, %v346_v37  ;;  %v328_v13 = vmul.f32 %v319_v46, %v298_v36  ;;  %v329_v14 = vmul.f32 %v323_v47, %v298_v36 }
  0x94   : > { %v338_v42 = vpop.permute.xlu0 %337 }
  0x95   : > { %v342_v43 = vpop.permute.xlu1 %341  ;;  %v368_v44 = vmul.f32 %v361_v38, %v338_v42  ;;  %v369_v45 = vmul.f32 %v365_v39, %v338_v42 }
  0x96   : > { %v370_v5 = vmul.f32 %v361_v38, %v342_v43  ;;  %v371_v6 = vmul.f32 %v365_v39, %v342_v43 }
  0x98   : > { %v378_v21 = vadd.f32 %v370_v5, %v328_v13  ;;  %v379_v22 = vadd.f32 %v371_v6, %v329_v14 }
  0x99   : > { %v303_v50 = vpop.permute.xlu0 %302 }
  0x9a   : > { %v330_v51 = vmul.f32 %v319_v46, %v303_v50  ;;  %v331_v52 = vmul.f32 %v323_v47, %v303_v50  ;;  %v293_v53 = vpop.permute.xlu1 %292 }
  0x9b   : > { %v326_v54 = vmul.f32 %v319_v46, %v293_v53  ;;  %v327_v55 = vmul.f32 %v323_v47, %v293_v53 }
  0x9c   : > { %v381_v56 = vadd.f32 %v373_v48, %v331_v52  ;;  %v380_v58 = vadd.f32 %v372_v49, %v330_v51 }
  0x9d   : > { %v288_v57 = vpop.permute.xlu0 %287  ;;  %v376_v59 = vadd.f32 %v368_v44, %v326_v54  ;;  %v377_v60 = vadd.f32 %v369_v45, %v327_v55 }
  0x9e   : > { %v404_v61 = vpop.permute.xlu1 %403  ;;  %v324_v1 = vmul.f32 %v319_v46, %v288_v57  ;;  %v325_v2 = vmul.f32 %v323_v47, %v288_v57  ;;  %v10311_v57 = vmov 920167782  }
  0x9f   : > { %v6099_v62 = vadd.f32 %v404_v61, %v381_v56  ;;  %v6101_v63 = vadd.f32 %v404_v61, %v380_v58 }
  0xa1   : > { %v394_v0 = vpop.permute.xlu0 %393  ;;  %v1145_v7 = vand.u32 2139095040, %v6099_v62  ;;  %v1041_v15 = vand.u32 2139095040, %v6101_v63  ;;  %v10308_v41 = vand.u32 2147483647, %v6099_v62  ;;  %v10307_v55 = vand.u32 2147483647, %v6101_v63 }
  0xa2   : > { %v6103_v3 = vadd.f32 %v394_v0, %v376_v59  ;;  %v6105_v4 = vadd.f32 %v394_v0, %v377_v60  ;;  %v10316_v59 = vmov 1326507024  }
  0xa3   : > { %v334_v8 = vpop.permute.xlu1 %333  ;;  %v1146_v20 = vshrl.u32 %v1145_v7, 23  ;;  %v1042_v26 = vshrl.u32 %v1041_v15, 23  ;;  %v1149_v49 = vand.u32 8388607, %v10308_v41 }
  0xa4   : > { %v625_v9 = vand.u32 2139095040, %v6103_v3  ;;  %v729_v10 = vand.u32 2139095040, %v6105_v4  ;;  %v366_v11 = vmul.f32 %v361_v38, %v334_v8  ;;  %v367_v12 = vmul.f32 %v365_v39, %v334_v8 }
  0xa5   : > { %v5301_v31 = vadd.s32 4294967169, %v1146_v20  ;;  %v5297_v34 = vadd.s32 4294967169, %v1042_v26  ;;  %v1150_v61 = vor.u32 8388608, %v1149_v49  ;;  %v10323_v49 = vmov 683565275  }
  0xa6   : > { %v626_v16 = vshrl.u32 %v625_v9, 23  ;;  %v730_v17 = vshrl.u32 %v729_v10, 23  ;;  %v374_v18 = vadd.f32 %v366_v11, %v324_v1  ;;  %v375_v19 = vadd.f32 %v367_v12, %v325_v2 }
  0xa7   : > { %v1152_v37 = vadd.s32 1, %v5301_v31  ;;  %v1048_v42 = vadd.s32 1, %v5297_v34  ;;  %v10318_v1 = vmov 2102212464  }
  0xa8   : > { %v5281_v23 = vadd.s32 4294967169, %v626_v16  ;;  %v5285_v24 = vadd.s32 4294967169, %v730_v17  ;;  %v399_v25 = vpop.permute.xlu1 %398 }
  0xa9   : > { %v6111_v27 = vadd.f32 %v399_v25, %v378_v21  ;;  %v6113_v28 = vadd.f32 %v399_v25, %v379_v22  ;;  %vm1153_vm2 = vcmp.gt.s32.totalorder %v1152_v37, 0  ;;  %vm1049_vm3 = vcmp.gt.s32.totalorder %v1048_v42, 0 }
  0xaa   : > { %v632_v29 = vadd.s32 1, %v5281_v23  ;;  %v736_v30 = vadd.s32 1, %v5285_v24  ;;  %v1154_v51 = vsel %vm1153_vm2, %v1152_v37, 0  ;;  %v1050_v56 = vsel %vm1049_vm3, %v1048_v42, 0 }
  0xab   : > { %v833_v32 = vand.u32 2139095040, %v6111_v27  ;;  %v937_v33 = vand.u32 2139095040, %v6113_v28  ;;  %v6139_v0 = vand.u32 31, %v1154_v51  ;;  %v6157_v14 = vand.u32 31, %v1050_v56 }
  0xac   : > { %vm633_vm0 = vcmp.gt.s32.totalorder %v632_v29, 0  ;;  %vm737_vm1 = vcmp.gt.s32.totalorder %v736_v30, 0  ;;  %v389_v46 = vpop.permute.xlu1 %388  ;;  %v6168_v24 = vshll.u32 %v1150_v61, 8  ;;  %v6172_v25 = vand.u32 8388607, %v10307_v55 }
  0xad   : > { %v634_v35 = vsel %vm633_vm0, %v632_v29, 0  ;;  %v738_v36 = vsel %vm737_vm1, %v736_v30, 0  ;;  %v834_v38 = vshrl.u32 %v833_v32, 23  ;;  %v938_v39 = vshrl.u32 %v937_v33, 23 }
  0xae   : > { %v6117_v40 = vand.u32 31, %v634_v35  ;;  %v6120_v43 = vand.u32 31, %v738_v36  ;;  %v6130_v53 = vadd.f32 %v389_v46, %v374_v18  ;;  %v6132_v54 = vadd.f32 %v389_v46, %v375_v19 }
  0xaf   : > { %v5289_v44 = vadd.s32 4294967169, %v834_v38  ;;  %v5293_v45 = vadd.s32 4294967169, %v938_v39  ;;  %v6150_v10 = vshrl.u32 %v634_v35, 5  ;;  %v6161_v17 = vshrl.u32 %v738_v36, 5 }
  0xb0   : > { %v6123_v47 = vsub.s32 32, %v6117_v40  ;;  %v6128_v50 = vsub.s32 32, %v6120_v43  ;;  %10413 = vst [vmem:[#allocation5_spill] sm:$0xff] %v6130_v53  ;;  %10414 = vst [vmem:[#allocation6_spill] sm:$0xff] %v6132_v54  ;;  %v648_v2 = vshll.u32 %v10318_v1, %v6117_v40  ;;  %v651_v7 = vshll.u32 %v10311_v57, %v6117_v40 }
  0xb1   : > { %v840_v48 = vadd.s32 1, %v5289_v44  ;;  %v944_v52 = vadd.s32 1, %v5293_v45  ;;  %v417_v9 = vand.u32 2139095040, %v6130_v53  ;;  %v752_v11 = vshll.u32 %v10318_v1, %v6120_v43 }
  0xb2   : > { %v649_v58 = vshrl.u32 %v10311_v57, %v6123_v47  ;;  %v652_v60 = vshrl.u32 %v10316_v59, %v6123_v47  ;;  %v753_v5 = vshrl.u32 %v10311_v57, %v6128_v50  ;;  %v756_v6 = vshrl.u32 %v10316_v59, %v6128_v50 }
  0xb3   : > { %vm841_vm4 = vcmp.gt.s32.totalorder %v840_v48, 0  ;;  %vm945_vm5 = vcmp.gt.s32.totalorder %v944_v52, 0  ;;  %v755_v12 = vshll.u32 %v10311_v57, %v6120_v43  ;;  %v521_v13 = vand.u32 2139095040, %v6132_v54 }
  0xb4   : > { %v842_v8 = vsel %vm841_vm4, %v840_v48, 0  ;;  %v6159_v15 = vor.u32 %v649_v58, %v648_v2  ;;  %v653_v16 = vor.u32 %v652_v60, %v651_v7  ;;  %v6163_v18 = vor.u32 %v753_v5, %v752_v11 }
  0xb5   : > { %v757_v19 = vor.u32 %v756_v6, %v755_v12  ;;  %v6165_v20 = vand.u32 31, %v842_v8  ;;  %v946_v21 = vsel %vm945_vm5, %v944_v52, 0  ;;  %v1157_v22 = vsub.s32 32, %v6139_v0 }
  0xb6   : > { %10415 = vst [vmem:[#allocation7_spill] sm:$0xff] %v6159_v15  ;;  %v418_v23 = vshrl.u32 %v417_v9, 23  ;;  %v6174_v26 = vshrl.u32 %v1050_v56, 5  ;;  %v6176_v29 = vshrl.u32 %v1154_v51, 5  ;;  %vm657_vm6 = vcmp.lt.s32.totalorder %v6150_v10, 4 }
  0xb7   : > { %v522_v30 = vshrl.u32 %v521_v13, 23  ;;  %v6182_v31 = vsel %vm657_vm6, %v6159_v15, 920167782  ;;  %v6186_v32 = vsel %vm657_vm6, %v653_v16, 1326507024  ;;  %vm761_vm7 = vcmp.lt.s32.totalorder %v6161_v17, 4 }
  0xb8   : > { %v6189_v33 = vand.u32 31, %v946_v21  ;;  %v6192_v34 = vsub.s32 32, %v6157_v14  ;;  %v6197_v35 = vsel %vm761_vm7, %v6163_v18, 920167782  ;;  %v6201_v36 = vsel %vm761_vm7, %v757_v19, 1326507024 }
  0xb9   : > { %v6204_v37 = vsub.s32 32, %v6165_v20  ;;  %v6206_v38 = vshrl.u32 %v842_v8, 5  ;;  %v6208_v39 = vshrl.u32 %v946_v21, 5  ;;  %v5273_v42 = vadd.s32 4294967169, %v418_v23 }
  0xba   : > { %v10314_v44 = vmov 2475754826   ;;  %v856_v46 = vshll.u32 %v10318_v1, %v6165_v20  ;;  %v5277_v48 = vadd.s32 4294967169, %v522_v30  ;;  %v1158_v51 = vshrl.u32 %v10323_v49, %v1157_v22 }
  0xbb   : > { %v1160_v45 = vshrl.u32 %v10314_v44, %v1157_v22  ;;  %v1159_v52 = vshll.u32 %v10323_v49, %v6139_v0  ;;  %v6218_v56 = vshll.u32 %v10311_v57, %v6165_v20  ;;  %v6221_v58 = vsub.s32 32, %v6189_v33 }
  0xbc   : > { %v960_v60 = vshll.u32 %v10318_v1, %v6189_v33  ;;  %v10309_v61 = vmov 2131351028   ;;  %v857_v5 = vshrl.u32 %v10311_v57, %v6204_v37  ;;  %v1162_v6 = vshll.u32 %v10314_v44, %v6139_v0 }
  0xbd   : > { %v1163_v2 = vshrl.u32 %v10309_v61, %v1157_v22  ;;  %v1165_v7 = vshll.u32 %v10309_v61, %v6139_v0  ;;  %v1166_v8 = vshrl.u32 %v10318_v1, %v1157_v22  ;;  %v6235_v9 = vshrl.u32 %v10316_v59, %v6204_v37 }
  0xbe   : > { %v6239_v11 = vshll.u32 %v10311_v57, %v6189_v33  ;;  %v6241_v12 = vadd.s32 1, %v5273_v42  ;;  %v1161_v13 = vor.u32 %v1160_v45, %v1159_v52  ;;  %v1168_v21 = vshll.u32 %v10318_v1, %v6139_v0 }
  0xbf   : > { %v1164_v16 = vor.u32 %v1163_v2, %v1162_v6  ;;  %v1167_v19 = vor.u32 %v1166_v8, %v1165_v7  ;;  %v1169_v23 = vshrl.u32 %v10311_v57, %v1157_v22  ;;  %v961_v30 = vshrl.u32 %v10311_v57, %v6221_v58 }
  0xc0   : > { %v6248_v55 = vadd.s32 1, %v5277_v48  ;;  %v1171_v41 = vshll.u32 %v10311_v57, %v6139_v0  ;;  %v1172_v61 = vshrl.u32 %v10316_v59, %v1157_v22  ;;  %v6253_v42 = vor.u32 %v857_v5, %v856_v46 }
  0xc1   : > { %v6257_v45 = vshrl.u32 %v10316_v59, %v6221_v58  ;;  %v1170_v52 = vor.u32 %v1169_v23, %v1168_v21  ;;  %vm1174_vm8 = vcmp.lt.s32.totalorder %v6176_v29, 1  ;;  %vm1175_vm9 = vcmp.lt.s32.totalorder %v6176_v29, 2 }
  0xc2   : > { %v1173_v2 = vor.u32 %v1172_v61, %v1171_v41  ;;  %vm1176_vm10 = vcmp.lt.s32.totalorder %v6176_v29, 3  ;;  %vm1177_vm11 = vcmp.lt.s32.totalorder %v6176_v29, 4  ;;  %v1178_v48 = vsel %vm1174_vm8, %v1158_v51, %v1161_v13 }
  0xc3   : > { %v1179_v0 = vsel %vm1177_vm11, %v1167_v19, 2102212464  ;;  %v1182_v6 = vsel %vm1174_vm8, %v1161_v13, %v1164_v16  ;;  %v1183_v22 = vsel %vm1177_vm11, %v1170_v52, 920167782  ;;  %v1186_v7 = vsel %vm1174_vm8, %v1164_v16, %v1167_v19 }
  0xc4   : > { %v1180_v46 = vsel %vm1176_vm10, %v1164_v16, %v1179_v0  ;;  %v1184_v5 = vsel %vm1176_vm10, %v1167_v19, %v1183_v22  ;;  %v1187_v8 = vsel %vm1177_vm11, %v1173_v2, 1326507024  ;;  %v861_v21 = vor.u32 %v6235_v9, %v6218_v56 }
  0xc5   : > { %vm425_vm12 = vcmp.gt.s32.totalorder %v6241_v12, 0  ;;  %v1185_v41 = vsel %vm1175_vm9, %v1182_v6, %v1184_v5  ;;  %v1188_v61 = vsel %vm1176_vm10, %v1170_v52, %v1187_v8  ;;  %v6268_v23 = vor.u32 %v961_v30, %v960_v60 }
  0xc6   : > { %v1189_v51 = vsel %vm1175_vm9, %v1186_v7, %v1188_v61  ;;  %v6273_v13 = vmul.u32.u64.low %v6168_v24, %v1185_v41  ;;  %v6274_v0 = vmul.u32.u64.high %v6168_v24, %v1185_v41, %v6273_v13  ;;  %v1181_v16 = vsel %vm1175_vm9, %v1178_v48, %v1180_v46 }
  0xc7   : > { %v6280_v56 = vmul.u32.u64.low %v6168_v24, %v1189_v51  ;;  %v6281_v9 = vmul.u32.u64.high %v6168_v24, %v1189_v51, %v6280_v56  ;;  %v1055_v19 = vshll.u32 %v10323_v49, %v6157_v14  ;;  %vm529_vm13 = vcmp.gt.s32.totalorder %v6248_v55, 0 }
  0xc8   : > { %v1056_v60 = vshrl.u32 %v10314_v44, %v6192_v34  ;;  %v1058_v30 = vshll.u32 %v10314_v44, %v6157_v14  ;;  %v10416_v52 = vmov 2131351028   ;;  %v1062_v48 = vshrl.u32 %v10318_v1, %v6192_v34 }
  0xc9   : > { %v1059_v2 = vshrl.u32 %v10416_v52, %v6192_v34  ;;  %v1061_v29 = vshll.u32 %v10416_v52, %v6157_v14  ;;  %v1064_v6 = vshll.u32 %v10318_v1, %v6157_v14  ;;  %v1065_v22 = vshrl.u32 %v10311_v57, %v6192_v34 }
  0xca   : > { %v1067_v46 = vshll.u32 %v10311_v57, %v6157_v14  ;;  %v1200_v5 = vadd.s32 1, %v6274_v0  ;;  %v1057_v7 = vor.u32 %v1056_v60, %v1055_v19  ;;  %v1068_v41 = vshrl.u32 %v10316_v59, %v6192_v34 }
  0xcb   : > { %v1060_v8 = vor.u32 %v1059_v2, %v1058_v30  ;;  %vm865_vm14 = vcmp.lt.s32.totalorder %v6206_v38, 4  ;;  %v1197_v61 = vmul.u32 %v6168_v24, %v1181_v16  ;;  %vm1199_vm15 = vc.u32 %v6281_v9, %v6273_v13 }
  0xcc   : > { %v1063_v51 = vor.u32 %v1062_v48, %v1061_v29  ;;  %v1066_v56 = vor.u32 %v1065_v22, %v1064_v6  ;;  %vm969_vm0 = vcmp.lt.s32.totalorder %v6208_v39, 4  ;;  %v1201_v14 = vsel %vm1199_vm15, %v1200_v5, %v6274_v0 }
  0xcd   : > { %v1046_v57 = vor.u32 8388608, %v6172_v25  ;;  %v1054_v19 = vshrl.u32 %v10323_v49, %v6192_v34  ;;  %v1069_v60 = vor.u32 %v1068_v41, %v1067_v46  ;;  %v1202_v30 = vadd.s32 %v1201_v14, %v1197_v61 }
  0xce   : > { %vm1070_vm1 = vcmp.lt.s32.totalorder %v6174_v26, 1  ;;  %vm1072_vm2 = vcmp.lt.s32.totalorder %v6174_v26, 3  ;;  %vm1073_vm3 = vcmp.lt.s32.totalorder %v6174_v26, 4  ;;  %vm1071_vm4 = vcmp.lt.s32.totalorder %v6174_v26, 2 }
  0xcf   : > { %v1075_v24 = vsel %vm1073_vm3, %v1063_v51, 2102212464  ;;  %v1078_v16 = vsel %vm1070_vm1, %v1057_v7, %v1060_v8  ;;  %v1079_v2 = vsel %vm1073_vm3, %v1066_v56, 920167782  ;;  %v1082_v0 = vsel %vm1070_vm1, %v1060_v8, %v1063_v51 }
  0xd0   : > { %v1203_v25 = vadd.s32 536870912, %v1202_v30  ;;  %v1080_v34 = vsel %vm1072_vm2, %v1063_v51, %v1079_v2  ;;  %v1083_v29 = vsel %vm1073_vm3, %v1069_v60, 1326507024  ;;  %v426_v48 = vsel %vm425_vm12, %v6241_v12, 0 }
  0xd1   : > { %v1081_v6 = vsel %vm1071_vm4, %v1078_v16, %v1080_v34  ;;  %v1084_v22 = vsel %vm1072_vm2, %v1066_v56, %v1083_v29  ;;  %v1086_v46 = vshll.u32 %v1046_v57, 8  ;;  %v1074_v41 = vsel %vm1070_vm1, %v1054_v19, %v1057_v7 }
  0xd2   : > { %v6331_v5 = vshrl.u32 %v1203_v25, 30  ;;  %v1076_v61 = vsel %vm1072_vm2, %v1060_v8, %v1075_v24  ;;  %v1085_v51 = vsel %vm1071_vm4, %v1082_v0, %v1084_v22  ;;  %v965_v57 = vor.u32 %v6257_v45, %v6239_v11 }
  0xd3   : > { %v6339_v14 = vmul.u32.u64.low %v1086_v46, %v1085_v51  ;;  %v6340_v12 = vmul.u32.u64.high %v1086_v46, %v1085_v51, %v6339_v14  ;;  %v6342_v60 = vmul.u32.u64.low %v1086_v46, %v1081_v6  ;;  %v6343_v16 = vmul.u32.u64.high %v1086_v46, %v1081_v6, %v6342_v60 }
  0xd4   : > { %v530_v7 = vsel %vm529_vm13, %v6248_v55, 0  ;;  %v1205_v56 = vshll.u32 %v6331_v5, 30  ;;  %v10313_v8 = vand.u32 2147483647, %v6113_v28  ;;  %v6356_v19 = vsel %vm865_vm14, %v6253_v42, 920167782 }
  0xd5   : > { %v6360_v24 = vsel %vm865_vm14, %v861_v21, 1326507024  ;;  %v6362_v2 = vshrl.u32 %v426_v48, 5  ;;  %v1077_v11 = vsel %vm1071_vm4, %v1074_v41, %v1076_v61  ;;  %v975_v55 = vsel %vm969_vm0, %v6268_v23, 920167782 }
  0xd6   : > { %v6369_v45 = vand.u32 31, %v426_v48  ;;  %v6371_v0 = vsub.s32 %v1202_v30, %v1205_v56  ;;  %v955_v25 = vshrl.u32 %v10416_v52, %v6221_v58  ;;  %v6375_v34 = vand.u32 31, %v530_v7 }
  0xd7   : > { %10417 = vst [vmem:[#allocation8_spill] sm:$0xff] %v6362_v2  ;;  %vm1095_vm5 = vc.u32 %v6340_v12, %v6342_v60  ;;  %v1096_v21 = vadd.s32 1, %v6343_v16  ;;  %v952_v26 = vshrl.u32 %v10314_v44, %v6221_v58  ;;  %vm1144_vm8 = vcmp.lt.s32.totalorder %v6099_v62, 0 }
  0xd8   : > { %10418 = vst [vmem:[#allocation9_spill] sm:$0xff] %v6369_v45  ;;  %10419 = vst [vmem:[#allocation10_spill] sm:$0xff] %v6375_v34  ;;  %v1208_v29 = vsub.s32 0, %v6371_v0  ;;  %v1093_v48 = vmul.u32 %v1086_v46, %v1077_v11  ;;  %v941_v30 = vand.u32 8388607, %v10313_v8  ;;  %v954_v6 = vshll.u32 %v10314_v44, %v6189_v33 }
  0xd9   : > { %v1097_v22 = vsel %vm1095_vm5, %v1096_v21, %v6343_v16  ;;  %v951_v41 = vshll.u32 %v10323_v49, %v6189_v33  ;;  %v957_v61 = vshll.u32 %v10416_v52, %v6189_v33  ;;  %v958_v51 = vshrl.u32 %v10318_v1, %v6221_v58 }
  0xda   : > { %v979_v46 = vsel %vm969_vm0, %v965_v57, 1326507024  ;;  %v5302_v14 = vmin.u32 %v1208_v29, %v6371_v0  ;;  %v1098_v56 = vadd.s32 %v1097_v22, %v1093_v48  ;;  %v956_v11 = vor.u32 %v955_v25, %v954_v6 }
  0xdb   : > { %v6399_v8 = vsub.s32 32, %v6369_v45  ;;  %v6401_v16 = vshrl.u32 %v530_v7, 5  ;;  %v10422_v21 = vand.u32 2147483647, %v6099_v62  ;;  %v953_v33 = vor.u32 %v952_v26, %v951_v41 }
  0xdc   : > { %v959_v59 = vor.u32 %v958_v51, %v957_v61  ;;  %v6411_v57 = vshll.u32 %v10318_v1, %v6369_v45  ;;  %v6414_v29 = vsub.s32 32, %v6375_v34  ;;  %v1198_v25 = vadd.s32 %v6273_v13, %v6281_v9 }
  0xdd   : > { %10420 = vst [vmem:[#allocation11_spill] sm:$0xff] %v6399_v8  ;;  %10421 = vst [vmem:[#allocation12_spill] sm:$0xff] %v6401_v16  ;;  %vm6405_vm9 = vcmp.le.f32.partialorder %v10422_v21, 0.7853982  ;;  %v1210_v7 = vclz %v5302_v14  ;;  %v1228_v48 = vsub.s32 4, %v6331_v5  ;;  %v1099_v6 = vadd.s32 536870912, %v1098_v56 }
  0xde   : > { %10425 = vst [vmem:[#allocation13_spill] sm:$0xff] %v6411_v57  ;;  %v942_v22 = vor.u32 8388608, %v941_v30  ;;  %vm966_vm10 = vcmp.lt.s32.totalorder %v6208_v39, 1  ;;  %vm967_vm11 = vcmp.lt.s32.totalorder %v6208_v39, 2  ;;  %vm968_vm12 = vcmp.lt.s32.totalorder %v6208_v39, 3 }
  0xdf   : > { %v5303_v21 = vadd.s32 4294967294, %v1210_v7  ;;  %v978_v26 = vsel %vm966_vm10, %v956_v11, %v959_v59  ;;  %v1100_v41 = vshrl.u32 %v1099_v6, 30  ;;  %v974_v61 = vsel %vm966_vm10, %v953_v33, %v956_v11 }
  0xe0   : > { %v976_v13 = vsel %vm968_vm12, %v959_v59, %v975_v55  ;;  %v980_v9 = vsel %vm968_vm12, %v6268_v23, %v979_v46  ;;  %v950_v30 = vshrl.u32 %v10323_v49, %v6221_v58  ;;  %v971_v51 = vsel %vm969_vm0, %v959_v59, 2102212464 }
  0xe1   : > { %vm5304_vm13 = vcmp.lt.s32.totalorder %v5303_v21, 0  ;;  %v981_v14 = vsel %vm967_vm11, %v978_v26, %v980_v9  ;;  %v1229_v6 = vsel %vm1144_vm8, %v1228_v48, %v6331_v5  ;;  %v1101_v55 = vshll.u32 %v1100_v41, 30 }
  0xe2   : > { %v1213_v7 = vsel %vm5304_vm13, 0, %v5303_v21  ;;  %v982_v1 = vshll.u32 %v942_v22, 8  ;;  %v970_v23 = vsel %vm966_vm10, %v950_v30, %v953_v33  ;;  %v977_v58 = vsel %vm967_vm11, %v974_v61, %v976_v13 }
  0xe3   : > { %v1214_v53 = vsub.s32 32, %v1213_v7  ;;  %v1218_v2 = vsub.s32 4294967266, %v1213_v7  ;;  %v6444_v46 = vsub.s32 %v1098_v56, %v1101_v55  ;;  %v972_v59 = vsel %vm968_vm12, %v956_v11, %v971_v51 }
  0xe4   : > { %v6448_v21 = vmul.u32.u64.low %v982_v1, %v981_v14  ;;  %v6449_v26 = vmul.u32.u64.high %v982_v1, %v981_v14, %v6448_v21  ;;  %v1215_v5 = vshll.u32 %v6371_v0, %v1213_v7  ;;  %v1231_v9 = vsel %vm6405_vm9, 0, %v1229_v6 }
  0xe5   : > { %v1216_v48 = vshrl.u32 %v1198_v25, %v1214_v53  ;;  %v1219_v22 = vadd.s32 127, %v1218_v2  ;;  %vm1040_vm15 = vcmp.lt.s32.totalorder %v6101_v63, 0  ;;  %v1104_v33 = vsub.s32 0, %v6444_v46 }
  0xe6   : > { %v6456_v61 = vmul.u32.u64.low %v982_v1, %v977_v58  ;;  %v6457_v56 = vmul.u32.u64.high %v982_v1, %v977_v58, %v6456_v61  ;;  %v10327_v11 = vand.u32 2147483647, %v6111_v27  ;;  %v10426_v13 = vmov 2102212464  }
  0xe7   : > { %v6463_v30 = vshll.u32 %v10426_v13, %v6375_v34  ;;  %v1217_v0 = vor.u32 %v1216_v48, %v1215_v5  ;;  %v1220_v53 = vshll.u32 %v1219_v22, 23  ;;  %v973_v2 = vsel %vm967_vm11, %v970_v23, %v972_v59 }
  0xe8   : > { %v10427_v25 = vmov 920167782   ;;  %v10429_v14 = vmov 1326507024   ;;  %v5298_v55 = vmin.u32 %v1104_v33, %v6444_v46  ;;  %v1235_v21 = vadd.s32 3, %v1231_v9 }
  0xe9   : > { %v6469_v51 = vshrl.u32 %v10427_v25, %v6399_v8  ;;  %v6473_v7 = vshrl.u32 %v10429_v14, %v6399_v8  ;;  %v6477_v6 = vshll.u32 %v10427_v25, %v6375_v34  ;;  %v1221_v58 = vor.u32 4788187, %v1220_v53 }
  0xea   : > { %v1094_v39 = vadd.s32 %v6342_v60, %v6340_v12  ;;  %v1124_v23 = vsub.s32 4, %v1100_v41  ;;  %v1106_v59 = vclz %v5298_v55  ;;  %v989_v5 = vmul.u32 %v982_v1, %v973_v2 }
  0xeb   : > { %10428 = vst [vmem:[#allocation14_spill] sm:$0xff] %v6469_v51  ;;  %10430 = vst [vmem:[#allocation15_spill] sm:$0xff] %v6473_v7  ;;  %vm991_vm0 = vc.u32 %v6449_v26, %v6456_v61  ;;  %v837_v48 = vand.u32 8388607, %v10327_v11  ;;  %v1222_v22 = vand.u32 2147483647, %v1221_v58  ;;  %v1224_v49 = vcvt.s32.f32 %v1217_v0 }
  0xec   : > { %10431 = vst [vmem:[#allocation16_spill] sm:$0xff] %v6477_v6  ;;  %v992_v8 = vadd.s32 1, %v6457_v56  ;;  %v10432_v33 = vmov 2475754826   ;;  %v10433_v9 = vand.u32 2147483647, %v6101_v63  ;;  %v851_v55 = vshrl.u32 %v10416_v52, %v6204_v37 }
  0xed   : > { %v848_v53 = vshrl.u32 %v10432_v33, %v6204_v37  ;;  %v5299_v1 = vadd.s32 4294967294, %v1106_v59  ;;  %v10436_v60 = vmov 683565275   ;;  %v854_v0 = vshrl.u32 %v10426_v13, %v6204_v37 }
  0xee   : > { %vm6491_vm1 = vcmp.le.f32.partialorder %v10433_v9, 0.7853982  ;;  %v847_v2 = vshll.u32 %v10436_v60, %v6165_v20  ;;  %v1225_v58 = vmul.f32 %v1224_v49, %v1222_v22  ;;  %v993_v11 = vsel %vm991_vm0, %v992_v8, %v6457_v56 }
  0xef   : > { %v850_v34 = vshll.u32 %v10432_v33, %v6165_v20  ;;  %v853_v9 = vshll.u32 %v10416_v52, %v6165_v20  ;;  %vm5300_vm2 = vcmp.lt.s32.totalorder %v5299_v1, 0  ;;  %v1125_v59 = vsel %vm1040_vm15, %v1124_v23, %v1100_v41 }
  0xf0   : > { %v994_v7 = vadd.s32 %v993_v11, %v989_v5  ;;  %v849_v51 = vor.u32 %v848_v53, %v847_v2  ;;  %v1226_v57 = vxor.u32 2147483648, %v1225_v58  ;;  %v1109_v54 = vsel %vm5300_vm2, 0, %v5299_v1 }
  0xf1   : > { %v852_v6 = vor.u32 %v851_v55, %v850_v34  ;;  %v855_v16 = vor.u32 %v854_v0, %v853_v9  ;;  %v1110_v45 = vsub.s32 32, %v1109_v54  ;;  %v1114_v49 = vsub.s32 4294967266, %v1109_v54 }
  0xf2   : > { %v995_v22 = vadd.s32 536870912, %v994_v7  ;;  %v838_v8 = vor.u32 8388608, %v837_v48  ;;  %v1227_v56 = vsel %vm1144_vm8, %v1226_v57, %v1225_v58  ;;  %v1111_v15 = vshll.u32 %v6444_v46, %v1109_v54 }
  0xf3   : > { %vm862_vm3 = vcmp.lt.s32.totalorder %v6206_v38, 1  ;;  %vm864_vm4 = vcmp.lt.s32.totalorder %v6206_v38, 3  ;;  %v1230_v20 = vsel %vm6405_vm9, %v6099_v62, %v1227_v56  ;;  %v1112_v41 = vshrl.u32 %v1094_v39, %v1110_v45 }
  0xf4   : > { %v1115_v34 = vadd.s32 127, %v1114_v49  ;;  %v996_v11 = vshrl.u32 %v995_v22, 30  ;;  %5696 = vcosq.f32 %v1230_v20  ;;  %v870_v23 = vsel %vm862_vm3, %v849_v51, %v852_v6 }
  0xf5   : > { %v872_v57 = vsel %vm864_vm4, %v855_v16, %v6356_v19  ;;  %v874_v54 = vsel %vm862_vm3, %v852_v6, %v855_v16  ;;  %5698 = vsinq.f32 %v1230_v20  ;;  %v1113_v46 = vor.u32 %v1112_v41, %v1111_v15 }
  0xf6   : > { %v1116_v5 = vshll.u32 %v1115_v34, 23  ;;  %v997_v48 = vshll.u32 %v996_v11, 30  ;;  %v6525_v44 = vshrl.u32 %v10427_v25, %v6414_v29  ;;  %v1127_v45 = vsel %vm6491_vm1, 0, %v1125_v59 }
  0xf7   : > { %vm863_vm5 = vcmp.lt.s32.totalorder %v6206_v38, 2  ;;  %v876_v19 = vsel %vm864_vm4, %v6253_v42, %v6360_v24  ;;  %v867_v15 = vsel %vm865_vm14, %v855_v16, 2102212464  ;;  %v1236_v2 = vand.u32 3, %v1235_v21 }
  0xf8   : > { %v1117_v39 = vor.u32 4788187, %v1116_v5  ;;  %v6534_v53 = vsub.s32 %v994_v7, %v997_v48  ;;  %v877_v1 = vsel %vm863_vm5, %v874_v54, %v876_v19  ;;  %v846_v55 = vshrl.u32 %v10436_v60, %v6204_v37 }
  0xf9   : > { %v873_v0 = vsel %vm863_vm5, %v870_v23, %v872_v57  ;;  %v878_v58 = vshll.u32 %v838_v8, 8  ;;  %v1120_v59 = vcvt.s32.f32 %v1113_v46  ;;  %v1131_v42 = vadd.s32 3, %v1127_v45 }
  0xfa   : > { %v1118_v9 = vand.u32 2147483647, %v1117_v39  ;;  %v1000_v24 = vsub.s32 0, %v6534_v53  ;;  %v866_v7 = vsel %vm862_vm3, %v846_v55, %v849_v51  ;;  %v868_v16 = vsel %vm864_vm4, %v852_v6, %v867_v15 }
  0xfb   : > { %v6549_v49 = vmul.u32.u64.low %v878_v58, %v877_v1  ;;  %v6550_v21 = vmul.u32.u64.high %v878_v58, %v877_v1, %v6549_v49  ;;  %v6553_v56 = vmul.u32.u64.low %v878_v58, %v873_v0  ;;  %v6554_v20 = vmul.u32.u64.high %v878_v58, %v873_v0, %v6553_v56 }
  0xfc   : > { %v1121_v22 = vmul.f32 %v1120_v59, %v1118_v9  ;;  %v5294_v37 = vmin.u32 %v1000_v24, %v6534_v53  ;;  %v6559_v8 = vshrl.u32 %v10429_v14, %v6414_v29  ;;  %vm936_vm14 = vcmp.lt.s32.totalorder %v6113_v28, 0 }
  0xfd   : > { %v1020_v51 = vsub.s32 4, %v996_v11  ;;  %v726_v41 = vand.u32 2147483647, %v6105_v4  ;;  %vm1237_vm8 = vcmp.lt.s32.totalorder %v1236_v2, 2  ;;  %v869_v23 = vsel %vm863_vm5, %v866_v7, %v868_v16 }
  0xfe   : > { %v1122_v6 = vxor.u32 2147483648, %v1121_v22  ;;  %v1002_v34 = vclz %v5294_v37  ;;  %vm1234_vm9 = vweird.f32 %v6099_v62  ;;  %vm1238_vm10 = vcmp.eq.s32.totalorder %v1236_v2, 0 }
  0xff   : > { %vm1241_vm11 = vcmp.eq.s32.totalorder %v1236_v2, 2  ;;  %v6566_v57 = vand.u32 3, %v1131_v42  ;;  %v990_v54 = vadd.s32 %v6456_v61, %v6449_v26  ;;  %vm887_vm12 = vc.u32 %v6550_v21, %v6553_v56 }
 0x100   : > { %v1123_v46 = vsel %vm1040_vm15, %v1122_v6, %v1121_v22  ;;  %v5295_v5 = vadd.s32 4294967294, %v1002_v34  ;;  %v888_v48 = vadd.s32 1, %v6554_v20  ;;  %v6580_v45 = vsel %vm936_vm14, %v1020_v51, %v996_v11 }
 0x101   : > { %v1126_v38 = vsel %vm6491_vm1, %v6101_v63, %v1123_v46  ;;  %v885_v19 = vmul.u32 %v878_v58, %v869_v23  ;;  %v733_v26 = vand.u32 8388607, %v726_v41  ;;  %v5697_v61 = vpop.eup %5696  ;;  %v744_v15 = vshrl.u32 %v10432_v33, %v6128_v50 }
 0x102   : > { %5700 = vcosq.f32 %v1126_v38  ;;  %vm5296_vm13 = vcmp.lt.s32.totalorder %v5295_v5, 0  ;;  %v889_v39 = vsel %vm887_vm12, %v888_v48, %v6554_v20  ;;  %v5699_v1 = vpop.eup %5698  ;;  %v1242_v55 = vxor.u32 2147483648, %v5697_v61 }
 0x103   : > { %5702 = vsinq.f32 %v1126_v38  ;;  %v1005_v12 = vsel %vm5296_vm13, 0, %v5295_v5  ;;  %v890_v0 = vadd.s32 %v889_v39, %v885_v19  ;;  %v1239_v9 = vxor.u32 2147483648, %v5699_v1 }
 0x104   : > { %v1006_v11 = vsub.s32 32, %v1005_v12  ;;  %v1010_v59 = vsub.s32 4294967266, %v1005_v12  ;;  %v747_v58 = vshrl.u32 %v10416_v52, %v6128_v50  ;;  %v1243_v42 = vsel %vm1241_vm11, %v1242_v55, %v5699_v1 }
 0x105   : > { %v1007_v24 = vshll.u32 %v6534_v53, %v1005_v12  ;;  %v891_v7 = vadd.s32 536870912, %v890_v0  ;;  %v749_v16 = vshll.u32 %v10416_v52, %v6120_v43  ;;  %v1240_v49 = vsel %vm1238_vm10, %v5697_v61, %v1239_v9 }
 0x106   : > { %v1008_v22 = vshrl.u32 %v990_v54, %v1006_v11  ;;  %v1011_v37 = vadd.s32 127, %v1010_v59  ;;  %v750_v20 = vshrl.u32 %v10426_v13, %v6128_v50  ;;  %v1244_v51 = vsel %vm1237_vm8, %v1240_v49, %v1243_v42 }
 0x107   : > { %v6597_v6 = vshrl.u32 %v891_v7, 30  ;;  %v743_v34 = vshll.u32 %v10436_v60, %v6120_v43  ;;  %v746_v53 = vshll.u32 %v10432_v33, %v6120_v43  ;;  %v1245_v23 = vsel %vm1234_vm9, nan, %v1244_v51 }
 0x108   : > { %v1009_v46 = vor.u32 %v1008_v22, %v1007_v24  ;;  %v1012_v5 = vshll.u32 %v1011_v37, 23  ;;  %v751_v54 = vor.u32 %v750_v20, %v749_v16  ;;  %1311 = vmatprep.subr.mxu0 %v1245_v23  ;;  %v10437_v48 = vand.u32 2147483647, %v6113_v28 }
 0x109   : > { %v893_v38 = vshll.u32 %v6597_v6, 30  ;;  %v745_v19 = vor.u32 %v744_v15, %v743_v34  ;;  %v748_v61 = vor.u32 %v747_v58, %v746_v53  ;;  %v6614_v43 = vor.u32 %v6525_v44, %v6463_v30 }
 0x10a   : > { %vm6607_vm15 = vcmp.le.f32.partialorder %v10437_v48, 0.7853982  ;;  %v1013_v62 = vor.u32 4788187, %v1012_v5  ;;  %v734_v1 = vor.u32 8388608, %v733_v26  ;;  %vm1133_vm0 = vcmp.lt.s32.totalorder %v6566_v57, 2 }
 0x10b   : > { %v1023_v39 = vsel %vm6607_vm15, 0, %v6580_v45  ;;  %v6620_v55 = vsub.s32 %v890_v0, %v893_v38  ;;  %v742_v12 = vshrl.u32 %v10436_v60, %v6128_v50  ;;  %vm758_vm1 = vcmp.lt.s32.totalorder %v6161_v17, 1 }
 0x10c   : > { %vm759_vm2 = vcmp.lt.s32.totalorder %v6161_v17, 2  ;;  %vm1130_vm3 = vweird.f32 %v6101_v63  ;;  %v1014_v30 = vand.u32 2147483647, %v1013_v62  ;;  %v1016_v44 = vcvt.s32.f32 %v1009_v46 }
 0x10d   : > { %vm760_vm4 = vcmp.lt.s32.totalorder %v6161_v17, 3  ;;  %v763_v45 = vsel %vm761_vm7, %v751_v54, 2102212464  ;;  %v896_v26 = vsub.s32 0, %v6620_v55  ;;  %v766_v15 = vsel %vm758_vm1, %v745_v19, %v748_v61 }
 0x10e   : > { %v770_v50 = vsel %vm758_vm1, %v748_v61, %v751_v54  ;;  %v772_v0 = vsel %vm760_vm4, %v6163_v18, %v6201_v36  ;;  %v1017_v9 = vmul.f32 %v1016_v44, %v1014_v30  ;;  %v768_v11 = vsel %vm760_vm4, %v751_v54, %v6197_v35 }
 0x10f   : > { %v773_v59 = vsel %vm759_vm2, %v770_v50, %v772_v0  ;;  %v774_v58 = vshll.u32 %v734_v1, 8  ;;  %v5701_v42 = vpop.eup %5700  ;;  %vm1137_vm7 = vcmp.eq.s32.totalorder %v6566_v57, 2  ;;  %v5290_v24 = vmin.u32 %v896_v26, %v6620_v55  ;;  %v10446_v26 = vld [vmem:[#allocation16_spill] sm:$0xff] }
 0x110   : > { %v762_v7 = vsel %vm758_vm1, %v742_v12, %v745_v19  ;;  %v764_v16 = vsel %vm760_vm4, %v748_v61, %v763_v45  ;;  %v5703_v49 = vpop.eup %5702  ;;  %v1138_v22 = vxor.u32 2147483648, %v5701_v42  ;;  %v1018_v37 = vxor.u32 2147483648, %v1017_v9 }
 0x111   : > { %v6644_v18 = vmul.u32.u64.low %v774_v58, %v773_v59  ;;  %v6645_v36 = vmul.u32.u64.high %v774_v58, %v773_v59, %v6644_v18  ;;  %v1135_v35 = vxor.u32 2147483648, %v5703_v49  ;;  %v1027_v20 = vadd.s32 3, %v1023_v39 }
 0x112   : > { %v898_v51 = vclz %v5290_v24  ;;  %v769_v34 = vsel %vm759_vm2, %v766_v15, %v768_v11  ;;  %vm1134_vm5 = vcmp.eq.s32.totalorder %v6566_v57, 0  ;;  %v1139_v53 = vsel %vm1137_vm7, %v1138_v22, %v5703_v49 }
 0x113   : > { %v1019_v23 = vsel %vm936_vm14, %v1018_v37, %v1017_v9  ;;  %v765_v46 = vsel %vm759_vm2, %v762_v7, %v764_v16  ;;  %v1136_v5 = vsel %vm1134_vm5, %v5701_v42, %v1135_v35  ;;  %vm832_vm8 = vcmp.lt.s32.totalorder %v6111_v27, 0 }
 0x114   : > { %v1022_v54 = vsel %vm6607_vm15, %v6113_v28, %v1019_v23  ;;  %v5291_v48 = vadd.s32 4294967294, %v898_v51  ;;  %v622_v38 = vand.u32 2147483647, %v6103_v3  ;;  %v1140_v19 = vsel %vm1133_vm0, %v1136_v5, %v1139_v53  ;;  %v10443_v53 = vld [vmem:[#allocation7_spill] sm:$0xff] }
 0x115   : > { %5704 = vcosq.f32 %v1022_v54  ;;  %v6661_v61 = vmul.u32.u64.low %v774_v58, %v769_v34  ;;  %v6662_v62 = vmul.u32.u64.high %v774_v58, %v769_v34, %v6661_v61  ;;  %v1141_v17 = vsel %vm1130_vm3, nan, %v1140_v19 }
 0x116   : > { %5706 = vsinq.f32 %v1022_v54  ;;  %v6667_v39 = vand.u32 3, %v1027_v20  ;;  %vm5292_vm14 = vcmp.lt.s32.totalorder %v5291_v48, 0  ;;  %1312 = vmatpush1.msra.mxu0 %v1141_v17  ;;  %v886_v2 = vadd.s32 %v6553_v56, %v6550_v21 }
 0x117   : > { %v901_v1 = vsel %vm5292_vm14, 0, %v5291_v48  ;;  %v916_v57 = vsub.s32 4, %v6597_v6  ;;  %v781_v12 = vmul.u32 %v774_v58, %v765_v46  ;;  %vm783_vm9 = vc.u32 %v6645_v36, %v6661_v61 }
 0x118   : > { %v902_v30 = vsub.s32 32, %v901_v1  ;;  %v906_v44 = vsub.s32 4294967266, %v901_v1  ;;  %v629_v63 = vand.u32 8388607, %v622_v38  ;;  %v10440_v45 = vand.u32 2147483647, %v6111_v27 }
 0x119   : > { %v903_v21 = vshll.u32 %v6620_v55, %v901_v1  ;;  %v784_v56 = vadd.s32 1, %v6662_v62  ;;  %v639_v15 = vshll.u32 %v10436_v60, %v6117_v40  ;;  %v640_v50 = vshrl.u32 %v10432_v33, %v6123_v47 }
 0x11a   : > { %vm6678_vm10 = vcmp.le.f32.partialorder %v10440_v45, 0.7853982  ;;  %v904_v0 = vshrl.u32 %v886_v2, %v902_v30  ;;  %v907_v9 = vadd.s32 127, %v906_v44  ;;  %v642_v11 = vshll.u32 %v10432_v33, %v6117_v40 }
 0x11b   : > { %v643_v59 = vshrl.u32 %v10416_v52, %v6123_v47  ;;  %v785_v58 = vsel %vm783_vm9, %v784_v56, %v6662_v62  ;;  %v641_v42 = vor.u32 %v640_v50, %v639_v15  ;;  %v645_v55 = vshll.u32 %v10416_v52, %v6117_v40 }
 0x11c   : > { %v646_v24 = vshrl.u32 %v10426_v13, %v6123_v47  ;;  %v905_v7 = vor.u32 %v904_v0, %v903_v21  ;;  %v908_v16 = vshll.u32 %v907_v9, 23  ;;  %v786_v49 = vadd.s32 %v785_v58, %v781_v12 }
 0x11d   : > { %v644_v22 = vor.u32 %v643_v59, %v642_v11  ;;  %vm1033_vm11 = vcmp.eq.s32.totalorder %v6667_v39, 2  ;;  %v917_v37 = vsel %vm832_vm8, %v916_v57, %v6597_v6  ;;  %v630_v18 = vor.u32 8388608, %v629_v63 }
 0x11e   : > { %v647_v35 = vor.u32 %v646_v24, %v645_v55  ;;  %v909_v20 = vor.u32 4788187, %v908_v16  ;;  %v787_v51 = vadd.s32 536870912, %v786_v49  ;;  %vm654_vm12 = vcmp.lt.s32.totalorder %v6150_v10, 1 }
 0x11f   : > { %vm656_vm13 = vcmp.lt.s32.totalorder %v6150_v10, 3  ;;  %vm1026_vm15 = vweird.f32 %v6113_v28  ;;  %v662_v40 = vsel %vm654_vm12, %v641_v42, %v644_v22  ;;  %v912_v5 = vcvt.s32.f32 %v905_v7 }
 0x120   : > { %v664_v34 = vsel %vm656_vm13, %v647_v35, %v6182_v31  ;;  %v666_v6 = vsel %vm654_vm12, %v644_v22, %v647_v35  ;;  %v668_v23 = vsel %vm656_vm13, %v10443_v53, %v6186_v32  ;;  %v910_v46 = vand.u32 2147483647, %v909_v20  ;;  %v10447_v20 = vld [vmem:[#allocation6_spill] sm:$0xff]  ;;  %v10450_v53 = vld [vmem:[#allocation15_spill] sm:$0xff] }
 0x121   : > { %v6715_v54 = vshrl.u32 %v787_v51, 30  ;;  %vm655_vm0 = vcmp.lt.s32.totalorder %v6150_v10, 2  ;;  %v638_v48 = vshrl.u32 %v10436_v60, %v6123_v47  ;;  %v659_v31 = vsel %vm657_vm6, %v647_v35, 2102212464 }
 0x122   : > { %v669_v19 = vsel %vm655_vm0, %v666_v6, %v668_v23  ;;  %v670_v62 = vshll.u32 %v630_v18, 8  ;;  %v5705_v17 = vpop.eup %5704  ;;  %v913_v2 = vmul.f32 %v912_v5, %v910_v46  ;;  %v919_v32 = vsel %vm6678_vm10, 0, %v917_v37  ;;  %v10445_v37 = vld [vmem:[#allocation12_spill] sm:$0xff] }
 0x123   : > { %v789_v1 = vshll.u32 %v6715_v54, 30  ;;  %v665_v57 = vsel %vm655_vm0, %v662_v40, %v664_v34  ;;  %v5707_v12 = vpop.eup %5706  ;;  %v1034_v30 = vxor.u32 2147483648, %v5705_v17  ;;  %v658_v47 = vsel %vm654_vm12, %v638_v48, %v641_v42  ;;  %v10448_v40 = vld [vmem:[#allocation13_spill] sm:$0xff]  ;;  %v10449_v34 = vld [vmem:[#allocation14_spill] sm:$0xff] }
 0x124   : > { %v6731_v44 = vmul.u32.u64.low %v670_v62, %v669_v19  ;;  %v6732_v63 = vmul.u32.u64.high %v670_v62, %v669_v19, %v6731_v44  ;;  %v1031_v45 = vxor.u32 2147483648, %v5707_v12  ;;  %v914_v21 = vxor.u32 2147483648, %v913_v2 }
 0x125   : > { %v6734_v56 = vsub.s32 %v786_v49, %v789_v1  ;;  %v660_v15 = vsel %vm656_vm13, %v644_v22, %v659_v31  ;;  %vm1030_vm6 = vcmp.eq.s32.totalorder %v6667_v39, 0  ;;  %v1035_v50 = vsel %vm1033_vm11, %v1034_v30, %v5707_v12  ;;  %v10444_v49 = vld [vmem:[#allocation9_spill] sm:$0xff] }
 0x126   : > { %v6741_v0 = vmul.u32.u64.low %v670_v62, %v665_v57  ;;  %v6742_v9 = vmul.u32.u64.high %v670_v62, %v665_v57, %v6741_v0  ;;  %vm1029_vm1 = vcmp.lt.s32.totalorder %v6667_v39, 2  ;;  %v1032_v11 = vsel %vm1030_vm6, %v5705_v17, %v1031_v45 }
 0x127   : > { %v915_v59 = vsel %vm832_vm8, %v914_v21, %v913_v2  ;;  %v792_v58 = vsub.s32 0, %v6734_v56  ;;  %v1036_v42 = vsel %vm1029_vm1, %v1032_v11, %v1035_v50  ;;  %v923_v24 = vadd.s32 3, %v919_v32 }
 0x128   : > { %v918_v55 = vsel %vm6678_vm10, %v6111_v27, %v915_v59  ;;  %v661_v7 = vsel %vm655_vm0, %v658_v47, %v660_v15  ;;  %v1037_v16 = vsel %vm1026_vm15, nan, %v1036_v42  ;;  %vm679_vm2 = vc.u32 %v6732_v63, %v6741_v0 }
 0x129   : > { %5708 = vcosq.f32 %v918_v55  ;;  %v5286_v39 = vmin.u32 %v792_v58, %v6734_v56  ;;  %v6761_v22 = vshll.u32 %v10427_v25, %v10444_v49  ;;  %vm553_vm3 = vcmp.lt.s32.totalorder %v10445_v37, 4  ;;  %1313 = vmatprep.subr.mxu0 %v1037_v16  ;;  %v10452_v16 = vld [vmem:[#allocation8_spill] sm:$0xff] }
 0x12a   : > { %5710 = vsinq.f32 %v918_v55  ;;  %v680_v10 = vadd.s32 1, %v6742_v9  ;;  %v549_v28 = vor.u32 %v6559_v8, %v10446_v26  ;;  %v677_v35 = vmul.u32 %v670_v62, %v661_v7  ;;  %v10451_v62 = vld [vmem:[#allocation10_spill] sm:$0xff] }
 0x12b   : > { %v794_v18 = vclz %v5286_v39  ;;  %v518_v51 = vand.u32 2147483647, %v10447_v20  ;;  %v6770_v6 = vor.u32 %v10449_v34, %v10448_v40  ;;  %v445_v23 = vor.u32 %v10450_v53, %v6761_v22 }
 0x12c   : > { %v559_v46 = vsel %vm553_vm3, %v6614_v43, 920167782  ;;  %v681_v5 = vsel %vm679_vm2, %v680_v10, %v6742_v9  ;;  %v6778_v48 = vand.u32 3, %v923_v24  ;;  %v536_v19 = vshrl.u32 %v10432_v33, %v6414_v29 }
 0x12d   : > { %v5287_v8 = vadd.s32 4294967294, %v794_v18  ;;  %v682_v31 = vadd.s32 %v681_v5, %v677_v35  ;;  %v538_v17 = vshll.u32 %v10432_v33, %v10451_v62  ;;  %v539_v2 = vshrl.u32 %v10416_v52, %v6414_v29 }
 0x12e   : > { %v541_v32 = vshll.u32 %v10416_v52, %v10451_v62  ;;  %v542_v1 = vshrl.u32 %v10426_v13, %v6414_v29  ;;  %v563_v57 = vsel %vm553_vm3, %v549_v28, 1326507024  ;;  %v525_v30 = vand.u32 8388607, %v518_v51 }
 0x12f   : > { %vm5288_vm4 = vcmp.lt.s32.totalorder %v5287_v8, 0  ;;  %v683_v12 = vadd.s32 536870912, %v682_v31  ;;  %v535_v44 = vshll.u32 %v10436_v60, %v10451_v62  ;;  %v540_v45 = vor.u32 %v539_v2, %v538_v17 }
 0x130   : > { %v797_v47 = vsel %vm5288_vm4, 0, %v5287_v8  ;;  %v543_v21 = vor.u32 %v542_v1, %v541_v32  ;;  %vm926_vm7 = vcmp.eq.s32.totalorder %v6778_v48, 0  ;;  %v782_v15 = vadd.s32 %v6661_v61, %v6645_v36 }
 0x131   : > { %v798_v50 = vsub.s32 32, %v797_v47  ;;  %v802_v9 = vsub.s32 4294967266, %v797_v47  ;;  %v6799_v11 = vshrl.u32 %v683_v12, 30  ;;  %vm925_vm5 = vcmp.lt.s32.totalorder %v6778_v48, 2 }
 0x132   : > { %vm929_vm8 = vcmp.eq.s32.totalorder %v6778_v48, 2  ;;  %vm728_vm14 = vcmp.lt.s32.totalorder %v6105_v4, 0  ;;  %v799_v59 = vshll.u32 %v6734_v56, %v797_v47  ;;  %v537_v58 = vor.u32 %v536_v19, %v535_v44  ;;  %v10455_v48 = vld [vmem:[#allocation5_spill] sm:$0xff] }
 0x133   : > { %vm550_vm9 = vcmp.lt.s32.totalorder %v10445_v37, 1  ;;  %vm922_vm10 = vweird.f32 %v6111_v27  ;;  %v800_v42 = vshrl.u32 %v782_v15, %v798_v50  ;;  %v803_v55 = vadd.s32 127, %v802_v9 }
 0x134   : > { %v685_v36 = vshll.u32 %v6799_v11, 30  ;;  %vm552_vm11 = vcmp.lt.s32.totalorder %v10445_v37, 3  ;;  %v812_v61 = vsub.s32 4, %v6715_v54  ;;  %v526_v24 = vor.u32 8388608, %v525_v30 }
 0x135   : > { %v562_v7 = vsel %vm550_vm9, %v540_v45, %v543_v21  ;;  %v564_v56 = vsel %vm552_vm11, %v6614_v43, %v563_v57  ;;  %vm449_vm12 = vcmp.lt.s32.totalorder %v10452_v16, 4  ;;  %v801_v39 = vor.u32 %v800_v42, %v799_v59 }
 0x136   : > { %v804_v10 = vshll.u32 %v803_v55, 23  ;;  %v6816_v26 = vsub.s32 %v682_v31, %v685_v36  ;;  %v555_v28 = vsel %vm553_vm3, %v543_v21, 2102212464  ;;  %v5709_v18 = vpop.eup %5708  ;;  %v534_v35 = vshrl.u32 %v10436_v60, %v6414_v29 }
 0x137   : > { %vm551_vm13 = vcmp.lt.s32.totalorder %v10445_v37, 2  ;;  %v558_v40 = vsel %vm550_vm9, %v537_v58, %v540_v45  ;;  %v560_v43 = vsel %vm552_vm11, %v543_v21, %v559_v46  ;;  %v5711_v34 = vpop.eup %5710  ;;  %v930_v5 = vxor.u32 2147483648, %v5709_v18 }
 0x138   : > { %v805_v8 = vor.u32 4788187, %v804_v10  ;;  %v688_v31 = vsub.s32 0, %v6816_v26  ;;  %v565_v19 = vsel %vm551_vm13, %v562_v7, %v564_v56  ;;  %v927_v62 = vxor.u32 2147483648, %v5711_v34 }
 0x139   : > { %v554_v29 = vsel %vm550_vm9, %v534_v35, %v537_v58  ;;  %v556_v17 = vsel %vm552_vm11, %v540_v45, %v555_v28  ;;  %v566_v2 = vshll.u32 %v526_v24, 8  ;;  %v931_v32 = vsel %vm929_vm8, %v930_v5, %v5711_v34 }
 0x13a   : > { %v806_v46 = vand.u32 2147483647, %v805_v8  ;;  %v808_v1 = vcvt.s32.f32 %v801_v39  ;;  %v5282_v57 = vmin.u32 %v688_v31, %v6816_v26  ;;  %v928_v12 = vsel %vm926_vm7, %v5709_v18, %v927_v62  ;;  %v10456_v18 = vld [vmem:[#allocation11_spill] sm:$0xff] }
 0x13b   : > { %v561_v30 = vsel %vm551_vm13, %v558_v40, %v560_v43  ;;  %v6841_v47 = vmul.u32.u64.low %v566_v2, %v565_v19  ;;  %v6842_v44 = vmul.u32.u64.high %v566_v2, %v565_v19, %v6841_v47  ;;  %v932_v45 = vsel %vm925_vm5, %v928_v12, %v931_v32 }
 0x13c   : > { %v809_v21 = vmul.f32 %v808_v1, %v806_v46  ;;  %v813_v15 = vsel %vm728_vm14, %v812_v61, %v6715_v54  ;;  %v690_v50 = vclz %v5282_v57  ;;  %v933_v9 = vsel %vm922_vm10, nan, %v932_v45 }
 0x13d   : > { %vm6853_vm15 = vcmp.le.f32.partialorder %v726_v41, 0.7853982  ;;  %v557_v58 = vsel %vm551_vm13, %v554_v29, %v556_v17  ;;  %v414_v42 = vand.u32 2147483647, %v10455_v48  ;;  %1314 = vmatpush1.msra.mxu0 %v933_v9  ;;  %v455_v27 = vsel %vm449_vm12, %v6770_v6, 920167782 }
 0x13e   : > { %v810_v55 = vxor.u32 2147483648, %v809_v21  ;;  %v5283_v36 = vadd.s32 4294967294, %v690_v50  ;;  %v6860_v24 = vmul.u32.u64.low %v566_v2, %v561_v30  ;;  %v6861_v54 = vmul.u32.u64.high %v566_v2, %v561_v30, %v6860_v24 }
 0x13f   : > { %v459_v41 = vsel %vm449_vm12, %v445_v23, 1326507024  ;;  %v815_v37 = vsel %vm6853_vm15, 0, %v813_v15  ;;  %v678_v7 = vadd.s32 %v6741_v0, %v6732_v63  ;;  %v573_v56 = vmul.u32 %v566_v2, %v557_v58 }
 0x140   : > { %v811_v61 = vsel %vm728_vm14, %v810_v55, %v809_v21  ;;  %vm5284_vm0 = vcmp.lt.s32.totalorder %v5283_v36, 0  ;;  %vm575_vm6 = vc.u32 %v6842_v44, %v6860_v24  ;;  %v421_v22 = vand.u32 8388607, %v414_v42 }
 0x141   : > { %v814_v39 = vsel %vm6853_vm15, %v6105_v4, %v811_v61  ;;  %v693_v10 = vsel %vm5284_vm0, 0, %v5283_v36  ;;  %v431_v28 = vshll.u32 %v10436_v60, %v10444_v49  ;;  %v576_v0 = vadd.s32 1, %v6861_v54 }
 0x142   : > { %5712 = vcosq.f32 %v814_v39  ;;  %v694_v53 = vsub.s32 32, %v693_v10  ;;  %v698_v23 = vsub.s32 4294967266, %v693_v10  ;;  %v695_v63 = vshll.u32 %v6816_v26, %v693_v10 }
 0x143   : > { %5714 = vsinq.f32 %v814_v39  ;;  %v432_v35 = vshrl.u32 %v10432_v33, %v10456_v18  ;;  %v434_v34 = vshll.u32 %v10432_v33, %v10444_v49  ;;  %v435_v5 = vshrl.u32 %v10416_v52, %v10456_v18 }
 0x144   : > { %v696_v40 = vshrl.u32 %v678_v7, %v694_v53  ;;  %v699_v43 = vadd.s32 127, %v698_v23  ;;  %v577_v8 = vsel %vm575_vm6, %v576_v0, %v6861_v54  ;;  %v437_v19 = vshll.u32 %v10416_v52, %v10444_v49 }
 0x145   : > { %v433_v31 = vor.u32 %v432_v35, %v431_v28  ;;  %v438_v26 = vshrl.u32 %v10426_v13, %v10456_v18  ;;  %v578_v17 = vadd.s32 %v577_v8, %v573_v56  ;;  %v436_v2 = vor.u32 %v435_v5, %v434_v34 }
 0x146   : > { %v697_v62 = vor.u32 %v696_v40, %v695_v63  ;;  %v700_v29 = vshll.u32 %v699_v43, 23  ;;  %v819_v32 = vadd.s32 3, %v815_v37  ;;  %v422_v46 = vor.u32 8388608, %v421_v22 }
 0x147   : > { %v439_v1 = vor.u32 %v438_v26, %v437_v19  ;;  %vm446_vm1 = vcmp.lt.s32.totalorder %v10452_v16, 1  ;;  %v579_v12 = vadd.s32 536870912, %v578_v17  ;;  %vm448_vm2 = vcmp.lt.s32.totalorder %v10452_v16, 3 }
 0x148   : > { %v701_v57 = vor.u32 4788187, %v700_v29  ;;  %v454_v30 = vsel %vm446_vm1, %v433_v31, %v436_v2  ;;  %vm447_vm3 = vcmp.lt.s32.totalorder %v10452_v16, 2  ;;  %v460_v45 = vsel %vm448_vm2, %v6770_v6, %v459_v41 }
 0x149   : > { %v456_v49 = vsel %vm448_vm2, %v439_v1, %v455_v27  ;;  %v458_v47 = vsel %vm446_vm1, %v436_v2, %v439_v1  ;;  %v704_v15 = vcvt.s32.f32 %v697_v62  ;;  %v6912_v50 = vshrl.u32 %v579_v12, 30 }
 0x14a   : > { %v702_v21 = vand.u32 2147483647, %v701_v57  ;;  %v457_v9 = vsel %vm447_vm3, %v454_v30, %v456_v49  ;;  %v820_v59 = vand.u32 3, %v819_v32  ;;  %v451_v58 = vsel %vm449_vm12, %v439_v1, 2102212464 }
 0x14b   : > { %v461_v55 = vsel %vm447_vm3, %v458_v47, %v460_v45  ;;  %v462_v36 = vshll.u32 %v422_v46, 8  ;;  %v581_v27 = vshll.u32 %v6912_v50, 30  ;;  %v430_v6 = vshrl.u32 %v10436_v60, %v10456_v18 }
 0x14c   : > { %v705_v54 = vmul.f32 %v704_v15, %v702_v21  ;;  %v10337_v56 = vmov 0.0   ;;  %v452_v53 = vsel %vm448_vm2, %v436_v2, %v451_v58  ;;  %vm821_vm4 = vcmp.lt.s32.totalorder %v820_v59, 2 }
 0x14d   : > { %v6923_v41 = vmul.u32.u64.low %v462_v36, %v461_v55  ;;  %v6924_v37 = vmul.u32.u64.high %v462_v36, %v461_v55, %v6923_v41  ;;  %v6926_v61 = vmul.u32.u64.low %v462_v36, %v457_v9  ;;  %v6927_v7 = vmul.u32.u64.high %v462_v36, %v457_v9, %v6926_v61  ;;  %1351 = vmatprep.mubr.f32.mxu0 %v10337_v56  ;;  %2314 = vmatprep.mubr.f32.mxu1 %v10337_v56 }
 0x14e   : > { %v706_v39 = vxor.u32 2147483648, %v705_v54  ;;  %v582_v10 = vsub.s32 %v578_v17, %v581_v27  ;;  %v450_v22 = vsel %vm446_vm1, %v430_v6, %v433_v31  ;;  %vm6938_vm7 = vcmp.le.f32.partialorder %v622_v38, 0.7853982 }
 0x14f   : > { %v5713_v23 = vpop.eup %5712  ;;  %vm624_vm5 = vcmp.lt.s32.totalorder %v6103_v3, 0  ;;  %v708_v63 = vsub.s32 4, %v6799_v11  ;;  %vm822_vm8 = vcmp.eq.s32.totalorder %v820_v59, 0  ;;  %vm825_vm14 = vcmp.eq.s32.totalorder %v820_v59, 2 }
 0x150   : > { %v5715_v0 = vpop.eup %5714  ;;  %v826_v18 = vxor.u32 2147483648, %v5713_v23  ;;  %v707_v35 = vsel %vm624_vm5, %v706_v39, %v705_v54  ;;  %v584_v40 = vsub.s32 0, %v582_v10  ;;  %v453_v34 = vsel %vm447_vm3, %v450_v22, %v452_v53 }
 0x151   : > { %v823_v43 = vxor.u32 2147483648, %v5715_v0  ;;  %v710_v38 = vsel %vm6938_vm7, %v6103_v3, %v707_v35  ;;  %vm471_vm9 = vc.u32 %v6924_v37, %v6926_v61  ;;  %v709_v19 = vsel %vm624_vm5, %v708_v63, %v6799_v11 }
 0x152   : > { %v827_v5 = vsel %vm825_vm14, %v826_v18, %v5715_v0  ;;  %5716 = vcosq.f32 %v710_v38  ;;  %v5278_v8 = vmin.u32 %v584_v40, %v582_v10  ;;  %v472_v26 = vadd.s32 1, %v6927_v7 }
 0x153   : > { %v824_v31 = vsel %vm822_vm8, %v5713_v23, %v823_v43  ;;  %5718 = vsinq.f32 %v710_v38  ;;  %vm818_vm10 = vweird.f32 %v6105_v4  ;;  %v469_v29 = vmul.u32 %v462_v36, %v453_v34 }
 0x154   : > { %v828_v62 = vsel %vm821_vm4, %v824_v31, %v827_v5  ;;  %v586_v16 = vclz %v5278_v8  ;;  %v473_v2 = vsel %vm471_vm9, %v472_v26, %v6927_v7  ;;  %v711_v32 = vsel %vm6938_vm7, 0, %v709_v19 }
 0x155   : > { %v829_v17 = vsel %vm818_vm10, nan, %v828_v62  ;;  %v474_v1 = vadd.s32 %v473_v2, %v469_v29  ;;  %v715_v57 = vadd.s32 3, %v711_v32  ;;  %v574_v4 = vadd.s32 %v6860_v24, %v6842_v44 }
 0x156   : > { %1315 = vmatprep.subr.mxu0 %v829_v17  ;;  %v5279_v46 = vadd.s32 4294967294, %v586_v16  ;;  %vm714_vm0 = vweird.f32 %v6103_v3  ;;  %vm520_vm6 = vcmp.lt.s32.totalorder %v10447_v20, 0  ;;  %v604_v40 = vsub.s32 4, %v6912_v50 }
 0x157   : > { %v475_v11 = vadd.s32 536870912, %v474_v1  ;;  %v716_v59 = vand.u32 3, %v715_v57  ;;  %vm6972_vm1 = vcmp.le.f32.partialorder %v518_v51, 0.7853982  ;;  %v470_v5 = vadd.s32 %v6926_v61, %v6924_v37 }
 0x158   : > { %vm5280_vm11 = vcmp.lt.s32.totalorder %v5279_v46, 0  ;;  %v605_v19 = vsel %vm520_vm6, %v604_v40, %v6912_v50  ;;  %vm416_vm3 = vcmp.lt.s32.totalorder %v10455_v48, 0  ;;  %vm6988_vm4 = vcmp.le.f32.partialorder %v414_v42, 0.7853982  ;;  %v7027_v40 = vpop.permute.xlu0 %1271 }
 0x159   : > { %v589_v12 = vsel %vm5280_vm11, 0, %v5279_v46  ;;  %v6964_v47 = vshrl.u32 %v475_v11, 30  ;;  %vm718_vm12 = vcmp.eq.s32.totalorder %v716_v59, 0  ;;  %vm721_vm13 = vcmp.eq.s32.totalorder %v716_v59, 2 }
 0x15a   : > { %v590_v30 = vsub.s32 32, %v589_v12  ;;  %v594_v49 = vsub.s32 4294967266, %v589_v12  ;;  %v591_v45 = vshll.u32 %v582_v10, %v589_v12  ;;  %vm717_vm15 = vcmp.lt.s32.totalorder %v716_v59, 2 }
 0x15b   : > { %v477_v9 = vshll.u32 %v6964_v47, 30  ;;  %v607_v16 = vsel %vm6972_vm1, 0, %v605_v19  ;;  %v500_v50 = vsub.s32 4, %v6964_v47  ;;  %vm610_vm14 = vweird.f32 %v10447_v20 }
 0x15c   : > { %v592_v21 = vshrl.u32 %v574_v4, %v590_v30  ;;  %v595_v15 = vadd.s32 127, %v594_v49  ;;  %v611_v32 = vadd.s32 3, %v607_v16 }
 0x15d   : > { %v478_v36 = vsub.s32 %v474_v1, %v477_v9  ;;  %v501_v59 = vsel %vm416_vm3, %v500_v50, %v6964_v47 }
 0x15e   : > { %v593_v58 = vor.u32 %v592_v21, %v591_v45  ;;  %v596_v55 = vshll.u32 %v595_v15, 23  ;;  %v612_v57 = vand.u32 3, %v611_v32 }
 0x15f   : > { %v5717_v54 = vpop.eup %5716  ;;  %v480_v7 = vsub.s32 0, %v478_v36 }
 0x160   : > { %v5719_v27 = vpop.eup %5718  ;;  %v722_v6 = vxor.u32 2147483648, %v5717_v54  ;;  %v597_v41 = vor.u32 4788187, %v596_v55  ;;  %v600_v22 = vcvt.s32.f32 %v593_v58  ;;  %vm617_vm7 = vcmp.eq.s32.totalorder %v612_v57, 2 }
 0x161   : > { %v719_v44 = vxor.u32 2147483648, %v5719_v27  ;;  %v5274_v10 = vmin.u32 %v480_v7, %v478_v36  ;;  %vm614_vm5 = vcmp.eq.s32.totalorder %v612_v57, 0  ;;  %vm613_vm8 = vcmp.lt.s32.totalorder %v612_v57, 2 }
 0x162   : > { %v723_v24 = vsel %vm721_vm13, %v722_v6, %v5719_v27  ;;  %v598_v39 = vand.u32 2147483647, %v597_v41  ;;  %v503_v55 = vsel %vm6988_vm4, 0, %v501_v59  ;;  %vm1274_vm13 = vcmask 261120  }
 0x163   : > { %v720_v53 = vsel %vm718_vm12, %v5717_v54, %v719_v44  ;;  %v482_v63 = vclz %v5274_v10  ;;  %vm506_vm12 = vweird.f32 %v10455_v48  ;;  %v1249_v10 = vld [vmem:[%s10302_s3 + $0x18] sm:$0xff] }
 0x164   : > { %v724_v23 = vsel %vm717_vm15, %v720_v53, %v723_v24  ;;  %v601_v28 = vmul.f32 %v600_v22, %v598_v39  ;;  %v1246_v24 = vld [vmem:[%s10302_s3] sm:$0xff]  ;;  %v1247_v22 = vld [vmem:[%s10302_s3 + $0x8] sm:$0xff]  ;;  %v7020_v53 = vpop.permute.xlu1 %1266 }
 0x165   : > { %v725_v0 = vsel %vm714_vm0, nan, %v724_v23  ;;  %v5275_v35 = vadd.s32 4294967294, %v482_v63 }
 0x166   : > { %1316 = vmatpush1.msra.mxu0 %v725_v0  ;;  %v602_v18 = vxor.u32 2147483648, %v601_v28 }
 0x167   : > { %vm5276_vm2 = vcmp.lt.s32.totalorder %v5275_v35, 0 }
 0x168   : > { %v603_v38 = vsel %vm520_vm6, %v602_v18, %v601_v28  ;;  %v485_v34 = vsel %vm5276_vm2, 0, %v5275_v35  ;;  %v1257_v23 = vpop.permute.xlu1 %1256 }
 0x169   : > { %v606_v3 = vsel %vm6972_vm1, %v10447_v20, %v603_v38  ;;  %v486_v8 = vsub.s32 32, %v485_v34  ;;  %v490_v31 = vsub.s32 4294967266, %v485_v34  ;;  %v487_v51 = vshll.u32 %v478_v36, %v485_v34 }
 0x16a   : > { %5720 = vcosq.f32 %v606_v3  ;;  %v507_v36 = vadd.s32 3, %v503_v55 }
 0x16b   : > { %5722 = vsinq.f32 %v606_v3  ;;  %v488_v26 = vshrl.u32 %v470_v5, %v486_v8  ;;  %v491_v62 = vadd.s32 127, %v490_v31  ;;  %v7030_v31 = vpop.permute.xlu0 %1261 }
 0x16c   : > { %v508_v54 = vand.u32 3, %v507_v36 }
 0x16d   : > { %v489_v29 = vor.u32 %v488_v26, %v487_v51  ;;  %v492_v17 = vshll.u32 %v491_v62, 23 }
 0x16e   : > { %vm513_vm9 = vcmp.eq.s32.totalorder %v508_v54, 2  ;;  %vm510_vm10 = vcmp.eq.s32.totalorder %v508_v54, 0  ;;  %vm509_vm11 = vcmp.lt.s32.totalorder %v508_v54, 2 }
 0x16f   : > { %v493_v2 = vor.u32 4788187, %v492_v17  ;;  %v496_v1 = vcvt.s32.f32 %v489_v29 }
 0x171   : > { %v494_v46 = vand.u32 2147483647, %v493_v2 }
 0x173   : > { %v497_v11 = vmul.f32 %v496_v1, %v494_v46 }
 0x175   : > { %v498_v37 = vxor.u32 2147483648, %v497_v11 }
 0x177   : > { %v5721_v61 = vpop.eup %5720  ;;  %v499_v49 = vsel %vm416_vm3, %v498_v37, %v497_v11 }
 0x178   : > { %v5723_v12 = vpop.eup %5722  ;;  %v618_v4 = vxor.u32 2147483648, %v5721_v61  ;;  %v502_v21 = vsel %vm6988_vm4, %v10455_v48, %v499_v49  ;;  %v1248_v48 = vld [vmem:[%s10302_s3 + $0x10] sm:$0xff] }
 0x179   : > { %v615_v45 = vxor.u32 2147483648, %v5723_v12  ;;  %5724 = vcosq.f32 %v502_v21 }
 0x17a   : > { %v619_v15 = vsel %vm617_vm7, %v618_v4, %v5723_v12  ;;  %5726 = vsinq.f32 %v502_v21 }
 0x17b   : > { %v616_v9 = vsel %vm614_vm5, %v5721_v61, %v615_v45 }
 0x17c   : > { %v620_v42 = vsel %vm613_vm8, %v616_v9, %v619_v15 }
 0x17d   : > { %v621_v58 = vsel %vm610_vm14, nan, %v620_v42 }
 0x17e   : > { %1317 = vmatprep.subr.mxu0 %v621_v58 }
 0x186   : > { %v5725_v27 = vpop.eup %5724 }
 0x187   : > { %v5727_v6 = vpop.eup %5726  ;;  %v514_v41 = vxor.u32 2147483648, %v5725_v27 }
 0x188   : > { %v511_v7 = vxor.u32 2147483648, %v5727_v6 }
 0x189   : > { %v515_v44 = vsel %vm513_vm9, %v514_v41, %v5727_v6 }
 0x18a   : > { %v512_v47 = vsel %vm510_vm10, %v5725_v27, %v511_v7 }
 0x18b   : > { %v516_v20 = vsel %vm509_vm11, %v512_v47, %v515_v44 }
 0x18c   : > { %v517_v39 = vsel %vm506_vm12, nan, %v516_v20 }
 0x18d   : > { %1318 = vmatpush1.msra.mxu0 %v517_v39 }
 0x18e   : > { %5305 = vmatmul.mubr.msk.f32.vlgmr.msra.gmra.mxu0 %vm1274_vm13, %v1246_v24 }
 0x18f   : > { %1357 = vmatprep.mubr.f32.mxu0 %v10337_v56 }
 0x192   : > { %5306 = vmatmul.mubr.msk.f32.gmra.mxu0 %vm1274_vm13, %v1247_v22 }
 0x193   : > { %1363 = vmatprep.mubr.f32.mxu0 %v10337_v56 }
 0x196   : > { %5307 = vmatmul.mubr.msk.f32.gmra.mxu0 %vm1274_vm13, %v1248_v48 }
 0x197   : > { %1369 = vmatprep.mubr.f32.mxu0 %v10337_v56 }
 0x19a   : > { %5308 = vmatmul.mubr.msk.f32.gmra.mxu0 %vm1274_vm13, %v1249_v10 }
 0x19b   : > { %3277 = vmatprep.mubr.f32.mxu0 %v10337_v56 }
 0x24e   : > { %v1353_v28 = vpop.f32.mrf.mxu0 }
 0x24f   : > { %v7022_v63 = vadd.f32 %v1353_v28, %v1257_v23 }
 0x250   : > { %v1355_v0 = vpop.f32.mrf.mxu0 }
 0x251   : > { %v1379_v18 = vand.u32 2139095040, %v7022_v63  ;;  %v7025_v35 = vadd.f32 %v1355_v0, %v1257_v23  ;;  %v10339_v51 = vand.u32 2147483647, %v7022_v63 }
 0x252   : > { %v1359_v5 = vpop.f32.mrf.mxu0 }
 0x253   : > { %10463 = vst [vmem:[#allocation7_spill] sm:$0xff] %v7025_v35  ;;  %v1380_v43 = vshrl.u32 %v1379_v18, 23  ;;  %v1483_v38 = vand.u32 2139095040, %v7025_v35  ;;  %v7034_v26 = vadd.f32 %v1359_v5, %v7030_v31  ;;  %v1383_v17 = vand.u32 8388607, %v10339_v51 }
 0x255   : > { %v5309_v3 = vadd.s32 4294967169, %v1380_v43  ;;  %v1484_v34 = vshrl.u32 %v1483_v38, 23  ;;  %v1587_v32 = vand.u32 2139095040, %v7034_v26  ;;  %v1384_v58 = vor.u32 8388608, %v1383_v17 }
 0x257   : > { %v1386_v8 = vadd.s32 1, %v5309_v3  ;;  %v5313_v19 = vadd.s32 4294967169, %v1484_v34  ;;  %v1588_v36 = vshrl.u32 %v1587_v32, 23  ;;  %v1424_v24 = vshll.u32 %v1384_v58, 8  ;;  %v1361_v32 = vpop.f32.mrf.mxu0 }
 0x258   : > { %v10340_v3 = vand.u32 2147483647, %v7025_v35 }
 0x259   : > { %vm1387_vm15 = vcmp.gt.s32.totalorder %v1386_v8, 0  ;;  %v1490_v16 = vadd.s32 1, %v5313_v19  ;;  %v5317_v39 = vadd.s32 4294967169, %v1588_v36 }
 0x25a   : > { %v1388_v62 = vsel %vm1387_vm15, %v1386_v8, 0 }
 0x25b   : > { %v1390_v29 = vand.u32 31, %v1388_v62  ;;  %v7039_v46 = vshrl.u32 %v1388_v62, 5  ;;  %vm1491_vm0 = vcmp.gt.s32.totalorder %v1490_v16, 0  ;;  %v1594_v18 = vadd.s32 1, %v5317_v39 }
 0x25c   : > { %v1492_v42 = vsel %vm1491_vm0, %v1490_v16, 0 }
 0x25d   : > { %v1391_v2 = vsub.s32 32, %v1390_v29  ;;  %v1393_v1 = vshll.u32 %v10436_v60, %v1390_v29  ;;  %v1396_v11 = vshll.u32 %v10432_v33, %v1390_v29  ;;  %v1399_v61 = vshll.u32 %v10416_v52, %v1390_v29 }
 0x25e   : > { %v1402_v12 = vshll.u32 %v10426_v13, %v1390_v29  ;;  %v1405_v30 = vshll.u32 %v10427_v25, %v1390_v29  ;;  %vm1408_vm6 = vcmp.lt.s32.totalorder %v7039_v46, 1  ;;  %vm1411_vm1 = vcmp.lt.s32.totalorder %v7039_v46, 4 }
 0x25f   : > { %v1394_v57 = vshrl.u32 %v10432_v33, %v1391_v2  ;;  %v1397_v37 = vshrl.u32 %v10416_v52, %v1391_v2  ;;  %v1400_v50 = vshrl.u32 %v10426_v13, %v1391_v2  ;;  %v1403_v4 = vshrl.u32 %v10427_v25, %v1391_v2 }
 0x260   : > { %v1406_v49 = vshrl.u32 %v10429_v14, %v1391_v2  ;;  %vm1410_vm2 = vcmp.lt.s32.totalorder %v7039_v46, 3  ;;  %vm1409_vm3 = vcmp.lt.s32.totalorder %v7039_v46, 2  ;;  %v1494_v44 = vand.u32 31, %v1492_v42 }
 0x261   : > { %v1395_v45 = vor.u32 %v1394_v57, %v1393_v1  ;;  %v1398_v21 = vor.u32 %v1397_v37, %v1396_v11  ;;  %v1401_v15 = vor.u32 %v1400_v50, %v1399_v61  ;;  %v1404_v9 = vor.u32 %v1403_v4, %v1402_v12 }
 0x262   : > { %v1407_v59 = vor.u32 %v1406_v49, %v1405_v30  ;;  %v7075_v10 = vsub.s32 32, %v1494_v44  ;;  %v1392_v43 = vshrl.u32 %v10436_v60, %v1391_v2  ;;  %v7086_v34 = vshrl.u32 %v1492_v42, 5 }
 0x263   : > { %v1416_v55 = vsel %vm1408_vm6, %v1395_v45, %v1398_v21  ;;  %v1417_v54 = vsel %vm1411_vm1, %v1404_v9, 920167782  ;;  %v1420_v27 = vsel %vm1408_vm6, %v1398_v21, %v1401_v15  ;;  %v1413_v0 = vsel %vm1411_vm1, %v1401_v15, 2102212464 }
 0x264   : > { %v1421_v6 = vsel %vm1411_vm1, %v1407_v59, 1326507024  ;;  %v1418_v41 = vsel %vm1410_vm2, %v1401_v15, %v1417_v54  ;;  %v1507_v38 = vshrl.u32 %v10427_v25, %v7075_v10  ;;  %v1510_v5 = vshrl.u32 %v10429_v14, %v7075_v10 }
 0x265   : > { %v1422_v7 = vsel %vm1410_vm2, %v1404_v9, %v1421_v6  ;;  %v1419_v47 = vsel %vm1409_vm3, %v1416_v55, %v1418_v41  ;;  %v1412_v8 = vsel %vm1408_vm6, %v1392_v43, %v1395_v45  ;;  %v1414_v19 = vsel %vm1410_vm2, %v1398_v21, %v1413_v0 }
 0x266   : > { %v1423_v20 = vsel %vm1409_vm3, %v1420_v27, %v1422_v7  ;;  %v7071_v22 = vmul.u32.u64.low %v1424_v24, %v1419_v47  ;;  %v7072_v48 = vmul.u32.u64.high %v1424_v24, %v1419_v47, %v7071_v22  ;;  %v1498_v62 = vshrl.u32 %v10432_v33, %v7075_v10 }
 0x267   : > { %v7077_v23 = vmul.u32.u64.low %v1424_v24, %v1423_v20  ;;  %v7078_v28 = vmul.u32.u64.high %v1424_v24, %v1423_v20, %v7077_v23  ;;  %v1506_v16 = vshll.u32 %v10426_v13, %v1494_v44  ;;  %v1501_v29 = vshrl.u32 %v10416_v52, %v7075_v10 }
 0x268   : > { %v1504_v17 = vshrl.u32 %v10426_v13, %v7075_v10  ;;  %v1509_v2 = vshll.u32 %v10427_v25, %v1494_v44  ;;  %vm1595_vm4 = vcmp.gt.s32.totalorder %v1594_v18, 0  ;;  %v1434_v1 = vadd.s32 1, %v7072_v48 }
 0x269   : > { %v1497_v11 = vshll.u32 %v10436_v60, %v1494_v44  ;;  %v1508_v57 = vor.u32 %v1507_v38, %v1506_v16  ;;  %vm1433_vm7 = vc.u32 %v7078_v28, %v7071_v22  ;;  %v1500_v37 = vshll.u32 %v10432_v33, %v1494_v44 }
 0x26a   : > { %v1503_v61 = vshll.u32 %v10416_v52, %v1494_v44  ;;  %v1511_v50 = vor.u32 %v1510_v5, %v1509_v2  ;;  %v1415_v12 = vsel %vm1409_vm3, %v1412_v8, %v1414_v19  ;;  %v1487_v4 = vand.u32 8388607, %v10340_v3 }
 0x26b   : > { %v1596_v30 = vsel %vm1595_vm4, %v1594_v18, 0  ;;  %v7113_v49 = vadd.f32 %v1361_v32, %v7030_v31  ;;  %v1499_v45 = vor.u32 %v1498_v62, %v1497_v11  ;;  %v1502_v21 = vor.u32 %v1501_v29, %v1500_v37 }
 0x26c   : > { %v1505_v15 = vor.u32 %v1504_v17, %v1503_v61  ;;  %vm1515_vm5 = vcmp.lt.s32.totalorder %v7086_v34, 4  ;;  %v1435_v9 = vsel %vm1433_vm7, %v1434_v1, %v7072_v48  ;;  %v1431_v42 = vmul.u32 %v1424_v24, %v1415_v12 }
 0x26d   : > { %v1521_v59 = vsel %vm1515_vm5, %v1508_v57, 920167782  ;;  %v1525_v46 = vsel %vm1515_vm5, %v1511_v50, 1326507024  ;;  %v1598_v58 = vand.u32 31, %v1596_v30  ;;  %vm1512_vm8 = vcmp.lt.s32.totalorder %v7086_v34, 1 }
 0x26e   : > { %vm1514_vm14 = vcmp.lt.s32.totalorder %v7086_v34, 3  ;;  %v1691_v31 = vand.u32 2139095040, %v7113_v49  ;;  %v1436_v55 = vadd.s32 %v1435_v9, %v1431_v42  ;;  %v1488_v36 = vor.u32 8388608, %v1487_v4 }
 0x26f   : > { %v1520_v54 = vsel %vm1512_vm8, %v1499_v45, %v1502_v21  ;;  %v1522_v27 = vsel %vm1514_vm14, %v1505_v15, %v1521_v59  ;;  %v1524_v6 = vsel %vm1512_vm8, %v1502_v21, %v1505_v15  ;;  %v1526_v41 = vsel %vm1514_vm14, %v1508_v57, %v1525_v46 }
 0x270   : > { %vm1513_vm9 = vcmp.lt.s32.totalorder %v7086_v34, 2  ;;  %v10341_v7 = vand.u32 2147483647, %v7034_v26  ;;  %v7134_v44 = vsub.s32 32, %v1598_v58  ;;  %v1692_v20 = vshrl.u32 %v1691_v31, 23  ;;  %v1365_v31 = vpop.f32.mrf.mxu0 }
 0x271   : > { %v1523_v47 = vsel %vm1513_vm9, %v1520_v54, %v1522_v27  ;;  %v1437_v24 = vadd.s32 536870912, %v1436_v55  ;;  %v1527_v39 = vsel %vm1513_vm9, %v1524_v6, %v1526_v41  ;;  %v1528_v48 = vshll.u32 %v1488_v36, 8 }
 0x272   : > { %v10342_v23 = vand.u32 2147483647, %v7113_v49  ;;  %v1591_v43 = vand.u32 8388607, %v10341_v7  ;;  %v1611_v38 = vshrl.u32 %v10427_v25, %v7134_v44  ;;  %v1614_v19 = vshrl.u32 %v10429_v14, %v7134_v44 }
 0x273   : > { %v7141_v0 = vmul.u32.u64.low %v1528_v48, %v1523_v47  ;;  %v7142_v18 = vmul.u32.u64.high %v1528_v48, %v1523_v47, %v7141_v0  ;;  %v7149_v5 = vmul.u32.u64.low %v1528_v48, %v1527_v39  ;;  %v7150_v8 = vmul.u32.u64.high %v1528_v48, %v1527_v39, %v7149_v5 }
 0x274   : > { %v5321_v62 = vadd.s32 4294967169, %v1692_v20  ;;  %v7154_v16 = vshrl.u32 %v1437_v24, 30  ;;  %v1517_v29 = vsel %vm1515_vm5, %v1505_v15, 2102212464  ;;  %v1602_v17 = vshrl.u32 %v10432_v33, %v7134_v44 }
 0x275   : > { %v1610_v2 = vshll.u32 %v10426_v13, %v1598_v58  ;;  %v7161_v32 = vshrl.u32 %v1596_v30, 5  ;;  %v1605_v1 = vshrl.u32 %v10416_v52, %v7134_v44  ;;  %v1608_v11 = vshrl.u32 %v10426_v13, %v7134_v44 }
 0x276   : > { %10464 = vst [vmem:[#allocation9_spill] sm:$0xff] %v7154_v16  ;;  %v1613_v57 = vshll.u32 %v10427_v25, %v1598_v58  ;;  %v1496_v37 = vshrl.u32 %v10436_v60, %v7075_v10  ;;  %v1601_v61 = vshll.u32 %v10436_v60, %v1598_v58  ;;  %v1695_v12 = vand.u32 8388607, %v10342_v23 }
 0x277   : > { %v1612_v50 = vor.u32 %v1611_v38, %v1610_v2  ;;  %v1604_v4 = vshll.u32 %v10432_v33, %v1598_v58  ;;  %v1607_v30 = vshll.u32 %v10416_v52, %v1598_v58  ;;  %v1698_v9 = vadd.s32 1, %v5321_v62 }
 0x278   : > { %v1615_v15 = vor.u32 %v1614_v19, %v1613_v57  ;;  %v1439_v59 = vshll.u32 %v7154_v16, 30  ;;  %v1516_v42 = vsel %vm1512_vm8, %v1496_v37, %v1499_v45  ;;  %v1518_v10 = vsel %vm1514_vm14, %v1502_v21, %v1517_v29 }
 0x279   : > { %v7180_v46 = vor.u32 %v1602_v17, %v1601_v61  ;;  %v7182_v36 = vor.u32 %v1605_v1, %v1604_v4  ;;  %v1609_v54 = vor.u32 %v1608_v11, %v1607_v30  ;;  %vm1619_vm10 = vcmp.lt.s32.totalorder %v7161_v32, 4 }
 0x27a   : > { %vm1699_vm11 = vcmp.gt.s32.totalorder %v1698_v9, 0  ;;  %v1538_v58 = vadd.s32 1, %v7142_v18  ;;  %v1592_v27 = vor.u32 8388608, %v1591_v43  ;;  %v1625_v6 = vsel %vm1619_vm10, %v1612_v50, 920167782 }
 0x27b   : > { %v1700_v41 = vsel %vm1699_vm11, %v1698_v9, 0  ;;  %vm1537_vm12 = vc.u32 %v7150_v8, %v7141_v0  ;;  %v1629_v45 = vsel %vm1619_vm10, %v1615_v15, 1326507024  ;;  %v7193_v47 = vadd.f32 %v1365_v31, %v7020_v53 }
 0x27c   : > { %v1702_v21 = vand.u32 31, %v1700_v41  ;;  %v7195_v20 = vsub.s32 %v1436_v55, %v1439_v59  ;;  %v1519_v24 = vsel %vm1513_vm9, %v1516_v42, %v1518_v10  ;;  %vm1616_vm15 = vcmp.lt.s32.totalorder %v7161_v32, 1 }
 0x27d   : > { %vm1618_vm0 = vcmp.lt.s32.totalorder %v7161_v32, 3  ;;  %v1624_v39 = vsel %vm1616_vm15, %v7180_v46, %v7182_v36  ;;  %v1539_v55 = vsel %vm1537_vm12, %v1538_v58, %v7142_v18  ;;  %v1628_v34 = vsel %vm1616_vm15, %v7182_v36, %v1609_v54 }
 0x27e   : > { %v1626_v43 = vsel %vm1618_vm0, %v1609_v54, %v1625_v6  ;;  %v7207_v38 = vsub.s32 32, %v1702_v21  ;;  %v1630_v5 = vsel %vm1618_vm0, %v1612_v50, %v1629_v45  ;;  %v1535_v19 = vmul.u32 %v1528_v48, %v1519_v24 }
 0x27f   : > { %vm1617_vm6 = vcmp.lt.s32.totalorder %v7161_v32, 2  ;;  %v7216_v62 = vshll.u32 %v1592_v27, 8  ;;  %v1696_v29 = vor.u32 8388608, %v1695_v12  ;;  %v1442_v17 = vsub.s32 0, %v7195_v20 }
 0x280   : > { %v1627_v2 = vsel %vm1617_vm6, %v1624_v39, %v1626_v43  ;;  %v1706_v18 = vshrl.u32 %v10432_v33, %v7207_v38  ;;  %v1795_v1 = vand.u32 2139095040, %v7193_v47  ;;  %v7224_v11 = vadd.s32 %v1539_v55, %v1535_v19 }
 0x281   : > { %v1631_v48 = vsel %vm1617_vm6, %v1628_v34, %v1630_v5  ;;  %v1709_v57 = vshrl.u32 %v10416_v52, %v7207_v38  ;;  %v1712_v37 = vshrl.u32 %v10426_v13, %v7207_v38  ;;  %v1705_v61 = vshll.u32 %v10436_v60, %v1702_v21 }
 0x282   : > { %v1708_v50 = vshll.u32 %v10432_v33, %v1702_v21  ;;  %v1714_v12 = vshll.u32 %v10426_v13, %v1702_v21  ;;  %v1715_v4 = vshrl.u32 %v10427_v25, %v7207_v38  ;;  %v7242_v9 = vshrl.u32 %v1700_v41, 5 }
 0x283   : > { %v7238_v30 = vmul.u32.u64.low %v7216_v62, %v1627_v2  ;;  %v7239_v15 = vmul.u32.u64.high %v7216_v62, %v1627_v2, %v7238_v30  ;;  %v1711_v59 = vshll.u32 %v10416_v52, %v1702_v21  ;;  %v1707_v42 = vor.u32 %v1706_v18, %v1705_v61 }
 0x284   : > { %v1710_v10 = vor.u32 %v1709_v57, %v1708_v50  ;;  %v1716_v31 = vor.u32 %v1715_v4, %v1714_v12  ;;  %v1796_v58 = vshrl.u32 %v1795_v1, 23  ;;  %v1717_v6 = vshll.u32 %v10427_v25, %v1702_v21 }
 0x285   : > { %v1713_v27 = vor.u32 %v1712_v37, %v1711_v59  ;;  %v1718_v45 = vshrl.u32 %v10429_v14, %v7207_v38  ;;  %v5310_v24 = vmin.u32 %v1442_v17, %v7195_v20  ;;  %v7253_v41 = vshll.u32 %v1696_v29, 8 }
 0x286   : > { %v7250_v39 = vmul.u32.u64.low %v7216_v62, %v1631_v48  ;;  %v7251_v43 = vmul.u32.u64.high %v7216_v62, %v1631_v48, %v7250_v39  ;;  %v1541_v55 = vadd.s32 536870912, %v7224_v11  ;;  %vm1720_vm1 = vcmp.lt.s32.totalorder %v7242_v9, 1 }
 0x287   : > { %v1719_v34 = vor.u32 %v1718_v45, %v1717_v6  ;;  %vm1723_vm2 = vcmp.lt.s32.totalorder %v7242_v9, 4  ;;  %vm1722_vm3 = vcmp.lt.s32.totalorder %v7242_v9, 3  ;;  %v1728_v21 = vsel %vm1720_vm1, %v1707_v42, %v1710_v10 }
 0x288   : > { %v1729_v5 = vsel %vm1723_vm2, %v1716_v31, 920167782  ;;  %v5325_v19 = vadd.s32 4294967169, %v1796_v58  ;;  %v1621_v29 = vsel %vm1619_vm10, %v1609_v54, 2102212464  ;;  %vm1721_vm4 = vcmp.lt.s32.totalorder %v7242_v9, 2 }
 0x289   : > { %v1730_v17 = vsel %vm1722_vm3, %v1713_v27, %v1729_v5  ;;  %v1732_v2 = vsel %vm1720_vm1, %v1710_v10, %v1713_v27  ;;  %v1600_v18 = vshrl.u32 %v10436_v60, %v7134_v44  ;;  %v1733_v48 = vsel %vm1723_vm2, %v1719_v34, 1326507024 }
 0x28a   : > { %v1731_v1 = vsel %vm1721_vm4, %v1728_v21, %v1730_v17  ;;  %v7276_v57 = vshrl.u32 %v1541_v55, 30  ;;  %v1734_v54 = vsel %vm1722_vm3, %v1716_v31, %v1733_v48  ;;  %v1622_v50 = vsel %vm1618_vm0, %v7182_v36, %v1621_v29  ;;  %v1367_v21 = vpop.f32.mrf.mxu0 }
 0x28b   : > { %v7281_v37 = vmul.u32.u64.low %v7253_v41, %v1731_v1  ;;  %v7282_v61 = vmul.u32.u64.high %v7253_v41, %v1731_v1, %v7281_v37  ;;  %v1620_v44 = vsel %vm1616_vm15, %v1600_v18, %v7180_v46  ;;  %v1735_v12 = vsel %vm1721_vm4, %v1732_v2, %v1734_v54 }
 0x28c   : > { %10465 = vst [vmem:[#allocation12_spill] sm:$0xff] %v7276_v57  ;;  %v1802_v4 = vadd.s32 1, %v5325_v19  ;;  %v1444_v59 = vclz %v5310_v24  ;;  %v1642_v31 = vadd.s32 1, %v7239_v15  ;;  %vm1641_vm7 = vc.u32 %v7251_v43, %v7238_v30 }
 0x28d   : > { %v7295_v58 = vmul.u32.u64.low %v7253_v41, %v1735_v12  ;;  %v7296_v6 = vmul.u32.u64.high %v7253_v41, %v1735_v12, %v7295_v58  ;;  %v1725_v46 = vsel %vm1723_vm2, %v1713_v27, 2102212464  ;;  %v10343_v45 = vand.u32 2147483647, %v7193_v47 }
 0x28e   : > { %vm1803_vm5 = vcmp.gt.s32.totalorder %v1802_v4, 0  ;;  %v1543_v36 = vshll.u32 %v7276_v57, 30  ;;  %v1623_v24 = vsel %vm1617_vm6, %v1620_v44, %v1622_v50  ;;  %v1704_v39 = vshrl.u32 %v10436_v60, %v7207_v38 }
 0x28f   : > { %v1804_v55 = vsel %vm1803_vm5, %v1802_v4, 0  ;;  %v5311_v5 = vadd.s32 4294967294, %v1444_v59  ;;  %v1643_v19 = vsel %vm1641_vm7, %v1642_v31, %v7239_v15  ;;  %v1726_v29 = vsel %vm1722_vm3, %v1710_v10, %v1725_v46 }
 0x290   : > { %v1806_v34 = vand.u32 31, %v1804_v55  ;;  %v1724_v27 = vsel %vm1720_vm1, %v1704_v39, %v1707_v42  ;;  %v1639_v17 = vmul.u32 %v7216_v62, %v1623_v24  ;;  %v1746_v32 = vadd.s32 1, %v7282_v61 }
 0x291   : > { %v7316_v18 = vsub.s32 %v7224_v11, %v1543_v36  ;;  %vm1745_vm8 = vc.u32 %v7296_v6, %v7281_v37  ;;  %v1799_v38 = vand.u32 8388607, %v10343_v45  ;;  %v7323_v15 = vadd.f32 %v1367_v21, %v7020_v53 }
 0x292   : > { %v1807_v2 = vsub.s32 32, %v1806_v34  ;;  %v7325_v42 = vadd.s32 %v1643_v19, %v1639_v17  ;;  %v1727_v62 = vsel %vm1721_vm4, %v1724_v27, %v1726_v29  ;;  %vm5312_vm14 = vcmp.lt.s32.totalorder %v5311_v5, 0 }
 0x293   : > { %v1809_v11 = vshll.u32 %v10436_v60, %v1806_v34  ;;  %v1812_v48 = vshll.u32 %v10432_v33, %v1806_v34  ;;  %v1815_v54 = vshll.u32 %v10416_v52, %v1806_v34  ;;  %v1747_v53 = vsel %vm1745_vm8, %v1746_v32, %v7282_v61 }
 0x294   : > { %v1810_v10 = vshrl.u32 %v10432_v33, %v1807_v2  ;;  %v1813_v1 = vshrl.u32 %v10416_v52, %v1807_v2  ;;  %v1816_v44 = vshrl.u32 %v10426_v13, %v1807_v2  ;;  %v1805_v50 = vshrl.u32 %v1804_v55, 5 }
 0x295   : > { %v1818_v12 = vshll.u32 %v10426_v13, %v1806_v34  ;;  %v1819_v9 = vshrl.u32 %v10427_v25, %v1807_v2  ;;  %v1743_v4 = vmul.u32 %v7253_v41, %v1727_v62  ;;  %v1800_v46 = vor.u32 8388608, %v1799_v38 }
 0x296   : > { %v1811_v59 = vor.u32 %v1810_v10, %v1809_v11  ;;  %v1814_v31 = vor.u32 %v1813_v1, %v1812_v48  ;;  %v1817_v58 = vor.u32 %v1816_v44, %v1815_v54  ;;  %v1821_v24 = vshll.u32 %v10427_v25, %v1806_v34 }
 0x297   : > { %v1820_v36 = vor.u32 %v1819_v9, %v1818_v12  ;;  %v1822_v39 = vshrl.u32 %v10429_v14, %v1807_v2  ;;  %v1546_v21 = vsub.s32 0, %v7316_v18  ;;  %v1645_v61 = vadd.s32 536870912, %v7325_v42  ;;  %v1371_v12 = vpop.f32.mrf.mxu0 }
 0x298   : > { %v1748_v55 = vadd.s32 %v1747_v53, %v1743_v4  ;;  %v1899_v19 = vand.u32 2139095040, %v7323_v15  ;;  %v1808_v27 = vshrl.u32 %v10436_v60, %v1807_v2  ;;  %vm1824_vm9 = vcmp.lt.s32.totalorder %v1805_v50, 1 }
 0x299   : > { %v1823_v29 = vor.u32 %v1822_v39, %v1821_v24  ;;  %vm1827_vm10 = vcmp.lt.s32.totalorder %v1805_v50, 4  ;;  %vm1826_vm11 = vcmp.lt.s32.totalorder %v1805_v50, 3  ;;  %v1832_v17 = vsel %vm1824_vm9, %v1811_v59, %v1814_v31 }
 0x29a   : > { %v1829_v41 = vsel %vm1827_vm10, %v1817_v58, 2102212464  ;;  %v1833_v32 = vsel %vm1827_vm10, %v1820_v36, 920167782  ;;  %vm1825_vm12 = vcmp.lt.s32.totalorder %v1805_v50, 2  ;;  %v1836_v38 = vsel %vm1824_vm9, %v1814_v31, %v1817_v58 }
 0x29b   : > { %v1834_v34 = vsel %vm1826_vm11, %v1817_v58, %v1833_v32  ;;  %v1840_v62 = vshll.u32 %v1800_v46, 8  ;;  %v1749_v10 = vadd.s32 536870912, %v1748_v55  ;;  %v1828_v1 = vsel %vm1824_vm9, %v1808_v27, %v1811_v59 }
 0x29c   : > { %v1835_v11 = vsel %vm1825_vm12, %v1832_v17, %v1834_v34  ;;  %v1837_v48 = vsel %vm1827_vm10, %v1823_v29, 1326507024  ;;  %v1830_v54 = vsel %vm1826_vm11, %v1814_v31, %v1829_v41  ;;  %v5314_v9 = vmin.u32 %v1546_v21, %v7316_v18  ;;  %v1373_v41 = vpop.f32.mrf.mxu0 }
 0x29d   : > { %v1838_v44 = vsel %vm1826_vm11, %v1820_v36, %v1837_v48  ;;  %v7346_v53 = vmul.u32.u64.low %v1840_v62, %v1835_v11  ;;  %v7347_v2 = vmul.u32.u64.high %v1840_v62, %v1835_v11, %v7346_v53  ;;  %v1900_v24 = vshrl.u32 %v1899_v19, 23 }
 0x29e   : > { %v1839_v4 = vsel %vm1825_vm12, %v1836_v38, %v1838_v44  ;;  %v7353_v58 = vsel %vm5312_vm14, 0, %v5311_v5  ;;  %v7355_v46 = vshrl.u32 %v1645_v61, 30  ;;  %v7360_v31 = vshrl.u32 %v1749_v10, 30 }
 0x29f   : > { %v7357_v59 = vmul.u32.u64.low %v1840_v62, %v1839_v4  ;;  %v7358_v39 = vmul.u32.u64.high %v1840_v62, %v1839_v4, %v7357_v59  ;;  %v1831_v36 = vsel %vm1825_vm12, %v1828_v1, %v1830_v54  ;;  %v5329_v27 = vadd.s32 4294967169, %v1900_v24 }
 0x2a0   : > { %10466 = vst [vmem:[#allocation16_spill] sm:$0xff] %v7355_v46  ;;  %10467 = vst [vmem:[#allocation6_spill] sm:$0xff] %v7360_v31  ;;  %v1850_v29 = vadd.s32 1, %v7347_v2  ;;  %v7365_v21 = vadd.f32 %v1371_v12, %v7027_v40  ;;  %v1452_v19 = vsub.s32 4294967266, %v7353_v58  ;;  %v1548_v5 = vclz %v5314_v9 }
 0x2a1   : > { %v1906_v17 = vadd.s32 1, %v5329_v27  ;;  %v1647_v61 = vshll.u32 %v7355_v46, 30  ;;  %v1847_v32 = vmul.u32 %v1840_v62, %v1831_v36  ;;  %vm1849_vm15 = vc.u32 %v7358_v39, %v7346_v53 }
 0x2a2   : > { %v10344_v50 = vand.u32 2147483647, %v7323_v15  ;;  %v1751_v34 = vshll.u32 %v7360_v31, 30  ;;  %v1851_v38 = vsel %vm1849_vm15, %v1850_v29, %v7347_v2  ;;  %v7375_v10 = vadd.f32 %v1373_v41, %v7027_v40 }
 0x2a3   : > { %vm1907_vm0 = vcmp.gt.s32.totalorder %v1906_v17, 0  ;;  %v1852_v1 = vadd.s32 %v1851_v38, %v1847_v32  ;;  %v2003_v48 = vand.u32 2139095040, %v7365_v21  ;;  %v1432_v62 = vadd.s32 %v7071_v22, %v7078_v28 }
 0x2a4   : > { %10468 = vst [vmem:[#allocation13_spill] sm:$0xff] %v7375_v10  ;;  %v1908_v11 = vsel %vm1907_vm0, %v1906_v17, 0  ;;  %v1448_v54 = vsub.s32 32, %v7353_v58  ;;  %v7381_v12 = vadd.s32 127, %v1452_v19  ;;  %v5315_v9 = vadd.s32 4294967294, %v1548_v5 }
 0x2a5   : > { %v1910_v44 = vand.u32 31, %v1908_v11  ;;  %v7384_v4 = vsub.s32 %v7325_v42, %v1647_v61  ;;  %v1853_v2 = vadd.s32 536870912, %v1852_v1  ;;  %v7386_v24 = vsub.s32 %v1748_v55, %v1751_v34 }
 0x2a6   : > { %v1903_v40 = vand.u32 8388607, %v10344_v50  ;;  %v2107_v36 = vand.u32 2139095040, %v7375_v10  ;;  %v2004_v29 = vshrl.u32 %v2003_v48, 23  ;;  %v1909_v17 = vshrl.u32 %v1908_v11, 5 }
 0x2a7   : > { %v1911_v59 = vsub.s32 32, %v1910_v44  ;;  %v7391_v27 = vshrl.u32 %v1853_v2, 30  ;;  %v1913_v22 = vshll.u32 %v10436_v60, %v1910_v44  ;;  %v1916_v28 = vshll.u32 %v10432_v33, %v1910_v44 }
 0x2a8   : > { %v1919_v55 = vshll.u32 %v10416_v52, %v1910_v44  ;;  %v1922_v61 = vshll.u32 %v10426_v13, %v1910_v44  ;;  %vm5316_vm6 = vcmp.lt.s32.totalorder %v5315_v9, 0  ;;  %v1650_v48 = vsub.s32 0, %v7384_v4 }
 0x2a9   : > { %10469 = vst [vmem:[#allocation14_spill] sm:$0xff] %v7391_v27  ;;  %v1914_v41 = vshrl.u32 %v10432_v33, %v1911_v59  ;;  %v1917_v42 = vshrl.u32 %v10416_v52, %v1911_v59  ;;  %v1920_v19 = vshrl.u32 %v10426_v13, %v1911_v59  ;;  %v1855_v5 = vshll.u32 %v7391_v27, 30 }
 0x2aa   : > { %v1923_v32 = vshrl.u32 %v10427_v25, %v1911_v59  ;;  %v1754_v56 = vsub.s32 0, %v7386_v24  ;;  %v1904_v51 = vor.u32 8388608, %v1903_v40  ;;  %v1925_v7 = vshll.u32 %v10427_v25, %v1910_v44 }
 0x2ab   : > { %v1915_v34 = vor.u32 %v1914_v41, %v1913_v22  ;;  %v1918_v38 = vor.u32 %v1917_v42, %v1916_v28  ;;  %v1921_v2 = vor.u32 %v1920_v19, %v1919_v55  ;;  %v1926_v23 = vshrl.u32 %v10429_v14, %v1911_v59 }
 0x2ac   : > { %v1924_v3 = vor.u32 %v1923_v32, %v1922_v61  ;;  %v5333_v45 = vadd.s32 4294967169, %v2004_v29  ;;  %v2108_v11 = vshrl.u32 %v2107_v36, 23  ;;  %v7406_v50 = vsub.s32 %v1852_v1, %v1855_v5 }
 0x2ad   : > { %vm1928_vm1 = vcmp.lt.s32.totalorder %v1909_v17, 1  ;;  %vm1930_vm2 = vcmp.lt.s32.totalorder %v1909_v17, 3  ;;  %vm1931_vm3 = vcmp.lt.s32.totalorder %v1909_v17, 4  ;;  %v1927_v22 = vor.u32 %v1926_v23, %v1925_v7 }
 0x2ae   : > { %v1933_v28 = vsel %vm1931_vm3, %v1921_v2, 2102212464  ;;  %v1936_v41 = vsel %vm1928_vm1, %v1915_v34, %v1918_v38  ;;  %v1937_v42 = vsel %vm1931_vm3, %v1924_v3, 920167782  ;;  %v1912_v55 = vshrl.u32 %v10436_v60, %v1911_v59 }
 0x2af   : > { %vm1929_vm4 = vcmp.lt.s32.totalorder %v1909_v17, 2  ;;  %v1938_v40 = vsel %vm1930_vm2, %v1921_v2, %v1937_v42  ;;  %v1944_v44 = vshll.u32 %v1904_v51, 8  ;;  %v1940_v36 = vsel %vm1928_vm1, %v1918_v38, %v1921_v2 }
 0x2b0   : > { %v1939_v19 = vsel %vm1929_vm4, %v1936_v41, %v1938_v40  ;;  %v1941_v1 = vsel %vm1931_vm3, %v1927_v22, 1326507024  ;;  %v5337_v29 = vadd.s32 4294967169, %v2108_v11  ;;  %v1858_v5 = vsub.s32 0, %v7406_v50 }
 0x2b1   : > { %v1932_v7 = vsel %vm1928_vm1, %v1912_v55, %v1915_v34  ;;  %v1934_v23 = vsel %vm1930_vm2, %v1918_v38, %v1933_v28  ;;  %v1942_v61 = vsel %vm1930_vm2, %v1924_v3, %v1941_v1  ;;  %v2010_v51 = vadd.s32 1, %v5333_v45 }
 0x2b2   : > { %v1943_v59 = vsel %vm1929_vm4, %v1940_v36, %v1942_v61  ;;  %v7418_v32 = vmul.u32.u64.low %v1944_v44, %v1939_v19  ;;  %v7419_v16 = vmul.u32.u64.high %v1944_v44, %v1939_v19, %v7418_v32  ;;  %v1454_v41 = vshll.u32 %v7381_v12, 23 }
 0x2b3   : > { %v7423_v2 = vmul.u32.u64.low %v1944_v44, %v1943_v59  ;;  %v7424_v22 = vmul.u32.u64.high %v1944_v44, %v1943_v59, %v7423_v2  ;;  %v1450_v11 = vshrl.u32 %v1432_v62, %v1448_v54  ;;  %v7427_v42 = vsel %vm5316_vm6, 0, %v5315_v9 }
 0x2b4   : > { %v5318_v34 = vmin.u32 %v1650_v48, %v7384_v4  ;;  %vm2011_vm7 = vcmp.gt.s32.totalorder %v2010_v51, 0  ;;  %v5322_v3 = vmin.u32 %v1754_v56, %v7386_v24  ;;  %v5326_v38 = vmin.u32 %v1858_v5, %v7406_v50 }
 0x2b5   : > { %v1935_v28 = vsel %vm1929_vm4, %v1932_v7, %v1934_v23  ;;  %v2012_v55 = vsel %vm2011_vm7, %v2010_v51, 0  ;;  %v1954_v45 = vadd.s32 1, %v7419_v16  ;;  %v2114_v40 = vadd.s32 1, %v5337_v29 }
 0x2b6   : > { %v7434_v12 = vand.u32 31, %v2012_v55  ;;  %v1449_v62 = vshll.u32 %v7195_v20, %v7353_v58  ;;  %v7438_v54 = vor.u32 4788187, %v1454_v41  ;;  %v7442_v9 = vadd.s32 %v7141_v0, %v7150_v8 }
 0x2b7   : > { %v10347_v56 = vand.u32 2147483647, %v7375_v10  ;;  %v1556_v17 = vsub.s32 4294967266, %v7427_v42  ;;  %v1652_v48 = vclz %v5318_v34  ;;  %v1951_v19 = vmul.u32 %v1944_v44, %v1935_v28 }
 0x2b8   : > { %vm1953_vm5 = vc.u32 %v7424_v22, %v7418_v32  ;;  %v7448_v36 = vor.u32 %v1450_v11, %v1449_v62  ;;  %v1756_v1 = vclz %v5322_v3  ;;  %v1860_v29 = vclz %v5326_v38 }
 0x2b9   : > { %v1955_v20 = vsel %vm1953_vm5, %v1954_v45, %v7419_v16  ;;  %v7453_v58 = vadd.s32 %v7238_v30, %v7251_v43  ;;  %v7456_v8 = vsub.s32 32, %v7434_v12  ;;  %vm2115_vm8 = vcmp.gt.s32.totalorder %v2114_v40, 0 }
 0x2ba   : > { %v1956_v0 = vadd.s32 %v1955_v20, %v1951_v19  ;;  %v2116_v7 = vsel %vm2115_vm8, %v2114_v40, 0  ;;  %v2111_v23 = vand.u32 8388607, %v10347_v56  ;;  %v7464_v61 = vadd.s32 127, %v1556_v17 }
 0x2bb   : > { %v7466_v30 = vadd.s32 4294967294, %v1652_v48  ;;  %v7468_v59 = vadd.s32 4294967294, %v1756_v1  ;;  %v7470_v51 = vadd.s32 4294967294, %v1860_v29  ;;  %v2118_v41 = vand.u32 31, %v2116_v7 }
 0x2bc   : > { %v1957_v43 = vadd.s32 536870912, %v1956_v0  ;;  %v7475_v34 = vshrl.u32 %v2012_v55, 5  ;;  %v2026_v3 = vshll.u32 %v10426_v13, %v7434_v12  ;;  %v2027_v38 = vshrl.u32 %v10427_v25, %v7456_v8 }
 0x2bd   : > { %v7483_v28 = vshrl.u32 %v10429_v14, %v7456_v8  ;;  %v2117_v45 = vshrl.u32 %v2116_v7, 5  ;;  %v2119_v40 = vsub.s32 32, %v2118_v41  ;;  %v2112_v62 = vor.u32 8388608, %v2111_v23 }
 0x2be   : > { %v7473_v11 = vshrl.u32 %v1957_v43, 30  ;;  %v2130_v48 = vshll.u32 %v10426_v13, %v2118_v41  ;;  %v2133_v55 = vshll.u32 %v10427_v25, %v2118_v41  ;;  %v2121_v19 = vshll.u32 %v10436_v60, %v2118_v41 }
 0x2bf   : > { %v2131_v1 = vshrl.u32 %v10427_v25, %v2119_v40  ;;  %v2134_v29 = vshrl.u32 %v10429_v14, %v2119_v40  ;;  %v2124_v20 = vshll.u32 %v10432_v33, %v2118_v41  ;;  %v2127_v43 = vshll.u32 %v10416_v52, %v2118_v41 }
 0x2c0   : > { %v1959_v17 = vshll.u32 %v7473_v11, 30  ;;  %v2122_v7 = vshrl.u32 %v10432_v33, %v2119_v40  ;;  %v2125_v23 = vshrl.u32 %v10416_v52, %v2119_v40  ;;  %v2128_v44 = vshrl.u32 %v10426_v13, %v2119_v40 }
 0x2c1   : > { %vm5320_vm14 = vcmp.lt.s32.totalorder %v7466_v30, 0  ;;  %vm5328_vm9 = vcmp.lt.s32.totalorder %v7470_v51, 0  ;;  %v2132_v16 = vor.u32 %v2131_v1, %v2130_v48  ;;  %v2135_v5 = vor.u32 %v2134_v29, %v2133_v55 }
 0x2c2   : > { %v7493_v56 = vsub.s32 %v1956_v0, %v1959_v17  ;;  %vm2139_vm10 = vcmp.lt.s32.totalorder %v2117_v45, 4  ;;  %v2152_v2 = vshll.u32 %v2112_v62, 8  ;;  %v2123_v57 = vor.u32 %v2122_v7, %v2121_v19 }
 0x2c3   : > { %v2126_v41 = vor.u32 %v2125_v23, %v2124_v20  ;;  %v2129_v0 = vor.u32 %v2128_v44, %v2127_v43  ;;  %v2145_v17 = vsel %vm2139_vm10, %v2132_v16, 920167782  ;;  %v2149_v46 = vsel %vm2139_vm10, %v2135_v5, 1326507024 }
 0x2c4   : > { %v1962_v14 = vsub.s32 0, %v7493_v56  ;;  %v2120_v31 = vshrl.u32 %v10436_v60, %v2119_v40  ;;  %vm2136_vm11 = vcmp.lt.s32.totalorder %v2117_v45, 1  ;;  %vm2137_vm12 = vcmp.lt.s32.totalorder %v2117_v45, 2 }
 0x2c5   : > { %vm2138_vm15 = vcmp.lt.s32.totalorder %v2117_v45, 3  ;;  %v2141_v27 = vsel %vm2139_vm10, %v2129_v0, 2102212464  ;;  %v2144_v48 = vsel %vm2136_vm11, %v2123_v57, %v2126_v41  ;;  %v2148_v1 = vsel %vm2136_vm11, %v2126_v41, %v2129_v0 }
 0x2c6   : > { %v5330_v35 = vmin.u32 %v1962_v14, %v7493_v56  ;;  %v2140_v10 = vsel %vm2136_vm11, %v2120_v31, %v2123_v57  ;;  %v2146_v55 = vsel %vm2138_vm15, %v2129_v0, %v2145_v17  ;;  %v2142_v29 = vsel %vm2138_vm15, %v2126_v41, %v2141_v27 }
 0x2c7   : > { %v2147_v19 = vsel %vm2137_vm12, %v2144_v48, %v2146_v55  ;;  %v2150_v20 = vsel %vm2138_vm15, %v2132_v16, %v2149_v46  ;;  %v2029_v44 = vshll.u32 %v10427_v25, %v7434_v12  ;;  %v2028_v7 = vor.u32 %v2027_v38, %v2026_v3 }
 0x2c8   : > { %v1964_v62 = vclz %v5330_v35  ;;  %v2151_v5 = vsel %vm2137_vm12, %v2148_v1, %v2150_v20  ;;  %v7507_v40 = vmul.u32.u64.low %v2152_v2, %v2147_v19  ;;  %v7508_v43 = vmul.u32.u64.high %v2152_v2, %v2147_v19, %v7507_v40 }
 0x2c9   : > { %v7511_v31 = vmul.u32.u64.low %v2152_v2, %v2151_v5  ;;  %v7512_v57 = vmul.u32.u64.high %v2152_v2, %v2151_v5, %v7511_v31  ;;  %v2031_v35 = vor.u32 %v7483_v28, %v2029_v44  ;;  %v2143_v27 = vsel %vm2137_vm12, %v2140_v10, %v2142_v29 }
 0x2ca   : > { %v5331_v14 = vadd.s32 4294967294, %v1964_v62  ;;  %v10470_v46 = vand.u32 2147483647, %v7365_v21  ;;  %v2018_v23 = vshrl.u32 %v10432_v33, %v7456_v8  ;;  %v2017_v41 = vshll.u32 %v10436_v60, %v7434_v12 }
 0x2cb   : > { %v2020_v3 = vshll.u32 %v10432_v33, %v7434_v12  ;;  %v2021_v38 = vshrl.u32 %v10416_v52, %v7456_v8  ;;  %v2162_v10 = vadd.s32 1, %v7508_v43  ;;  %v2023_v28 = vshll.u32 %v10416_v52, %v7434_v12 }
 0x2cc   : > { %v2007_v16 = vand.u32 8388607, %v10470_v46  ;;  %vm5332_vm0 = vcmp.lt.s32.totalorder %v5331_v14, 0  ;;  %v2024_v45 = vshrl.u32 %v10426_v13, %v7456_v8  ;;  %v7536_v17 = vsel %vm5320_vm14, 0, %v7466_v30 }
 0x2cd   : > { %v7526_v0 = vsel %vm5332_vm0, 0, %v5331_v14  ;;  %v7541_v48 = vsel %vm5328_vm9, 0, %v7470_v51  ;;  %vm2035_vm6 = vcmp.lt.s32.totalorder %v7475_v34, 4  ;;  %v2019_v55 = vor.u32 %v2018_v23, %v2017_v41 }
 0x2ce   : > { %v2159_v1 = vmul.u32 %v2152_v2, %v2143_v27  ;;  %vm2161_vm1 = vc.u32 %v7512_v57, %v7507_v40  ;;  %v2022_v12 = vor.u32 %v2021_v38, %v2020_v3  ;;  %v2025_v62 = vor.u32 %v2024_v45, %v2023_v28 }
 0x2cf   : > { %vm5324_vm2 = vcmp.lt.s32.totalorder %v7468_v59, 0  ;;  %v1972_v29 = vsub.s32 4294967266, %v7526_v0  ;;  %v2041_v30 = vsel %vm2035_vm6, %v2028_v7, 920167782  ;;  %v2163_v19 = vsel %vm2161_vm1, %v2162_v10, %v7508_v43 }
 0x2d0   : > { %v2045_v51 = vsel %vm2035_vm6, %v2031_v35, 1326507024  ;;  %v2164_v20 = vadd.s32 %v2163_v19, %v2159_v1  ;;  %v2008_v44 = vor.u32 8388608, %v2007_v16  ;;  %vm2032_vm3 = vcmp.lt.s32.totalorder %v7475_v34, 1 }
 0x2d1   : > { %v1660_v2 = vsub.s32 4294967266, %v7536_v17  ;;  %v1868_v5 = vsub.s32 4294967266, %v7541_v48  ;;  %vm2034_vm4 = vcmp.lt.s32.totalorder %v7475_v34, 3  ;;  %v2040_v14 = vsel %vm2032_vm3, %v2019_v55, %v2022_v12 }
 0x2d2   : > { %v7560_v31 = vsel %vm5324_vm2, 0, %v7468_v59  ;;  %v2165_v43 = vadd.s32 536870912, %v2164_v20  ;;  %v2042_v35 = vsel %vm2034_vm4, %v2025_v62, %v2041_v30  ;;  %v2044_v27 = vsel %vm2032_vm3, %v2022_v12, %v2025_v62 }
 0x2d3   : > { %v1973_v46 = vadd.s32 127, %v1972_v29  ;;  %vm2033_vm7 = vcmp.lt.s32.totalorder %v7475_v34, 2  ;;  %v2037_v16 = vsel %vm2035_vm6, %v2025_v62, 2102212464  ;;  %v2046_v23 = vsel %vm2034_vm4, %v2028_v7, %v2045_v51 }
 0x2d4   : > { %v7571_v41 = vshrl.u32 %v2165_v43, 30  ;;  %v2043_v59 = vsel %vm2033_vm7, %v2040_v14, %v2042_v35  ;;  %v2047_v3 = vsel %vm2033_vm7, %v2044_v27, %v2046_v23  ;;  %v2048_v38 = vshll.u32 %v2008_v44, 8 }
 0x2d5   : > { %v1764_v10 = vsub.s32 4294967266, %v7560_v31  ;;  %v1864_v28 = vsub.s32 32, %v7541_v48  ;;  %v1869_v45 = vadd.s32 127, %v1868_v5  ;;  %v2016_v1 = vshrl.u32 %v10436_v60, %v7456_v8 }
 0x2d6   : > { %v1968_v62 = vsub.s32 32, %v7526_v0  ;;  %v2167_v7 = vshll.u32 %v7571_v41, 30  ;;  %v7583_v29 = vmul.u32.u64.low %v2048_v38, %v2047_v3  ;;  %v7584_v30 = vmul.u32.u64.high %v2048_v38, %v2047_v3, %v7583_v29 }
 0x2d7   : > { %v2036_v19 = vsel %vm2032_vm3, %v2016_v1, %v2019_v55  ;;  %v2038_v51 = vsel %vm2034_vm4, %v2022_v12, %v2037_v16  ;;  %v7590_v44 = vmul.u32.u64.low %v2048_v38, %v2043_v59  ;;  %v7591_v14 = vmul.u32.u64.high %v2048_v38, %v2043_v59, %v7590_v44 }
 0x2d8   : > { %v1661_v5 = vadd.s32 127, %v1660_v2  ;;  %v1952_v8 = vadd.s32 %v7418_v32, %v7424_v22  ;;  %v1974_v43 = vshll.u32 %v1973_v46, 23  ;;  %v7596_v35 = vsub.s32 %v2164_v20, %v2167_v7 }
 0x2d9   : > { %v10471_v27 = vsub.s32 32, %v7427_v42  ;;  %v1558_v55 = vshll.u32 %v7464_v61, 23  ;;  %v1848_v12 = vadd.s32 %v7346_v53, %v7358_v39  ;;  %v1870_v16 = vshll.u32 %v1869_v45, 23 }
 0x2da   : > { %v1970_v59 = vshrl.u32 %v1952_v8, %v1968_v62  ;;  %v2170_v3 = vsub.s32 0, %v7596_v35  ;;  %v2039_v2 = vsel %vm2033_vm7, %v2036_v19, %v2038_v51  ;;  %vm2057_vm5 = vc.u32 %v7584_v30, %v7590_v44 }
 0x2db   : > { %v1554_v23 = vshrl.u32 %v7442_v9, %v10471_v27  ;;  %v1656_v32 = vsub.s32 32, %v7536_v17  ;;  %v1765_v22 = vadd.s32 127, %v1764_v10  ;;  %v1866_v20 = vshrl.u32 %v1848_v12, %v1864_v28 }
 0x2dc   : > { %v2058_v9 = vadd.s32 1, %v7591_v14  ;;  %v1662_v61 = vshll.u32 %v1661_v5, 23  ;;  %v1969_v53 = vshll.u32 %v7493_v56, %v7526_v0  ;;  %v1975_v39 = vor.u32 4788187, %v1974_v43 }
 0x2dd   : > { %v5338_v46 = vmin.u32 %v2170_v3, %v7596_v35  ;;  %v1760_v45 = vsub.s32 32, %v7560_v31  ;;  %v1865_v34 = vshll.u32 %v7406_v50, %v7541_v48  ;;  %v2055_v1 = vmul.u32 %v2048_v38, %v2039_v2 }
 0x2de   : > { %v2059_v62 = vsel %vm2057_vm5, %v2058_v9, %v7591_v14  ;;  %v10472_v10 = vshll.u32 %v7316_v18, %v7427_v42  ;;  %v1871_v7 = vor.u32 4788187, %v1870_v16  ;;  %v1971_v29 = vor.u32 %v1970_v59, %v1969_v53 }
 0x2df   : > { %v2172_v19 = vclz %v5338_v46  ;;  %v1744_v56 = vadd.s32 %v7281_v37, %v7296_v6  ;;  %v1766_v0 = vshll.u32 %v1765_v22, 23  ;;  %v1867_v51 = vor.u32 %v1866_v20, %v1865_v34 }
 0x2e0   : > { %v1555_v28 = vor.u32 %v1554_v23, %v10472_v10  ;;  %v2060_v5 = vadd.s32 %v2059_v62, %v2055_v1  ;;  %v1559_v8 = vor.u32 4788187, %v1558_v55  ;;  %v1657_v50 = vshll.u32 %v7384_v4, %v7536_v17 }
 0x2e1   : > { %v1976_v48 = vand.u32 2147483647, %v1975_v39  ;;  %v5339_v38 = vadd.s32 4294967294, %v2172_v19  ;;  %v1658_v14 = vshrl.u32 %v7453_v58, %v1656_v32  ;;  %v1663_v43 = vor.u32 4788187, %v1662_v61 }
 0x2e2   : > { %v1762_v18 = vshrl.u32 %v1744_v56, %v1760_v45  ;;  %v2061_v42 = vadd.s32 536870912, %v2060_v5  ;;  %v1761_v27 = vshll.u32 %v7386_v24, %v7560_v31  ;;  %v1872_v23 = vand.u32 2147483647, %v1871_v7 }
 0x2e3   : > { %v1978_v12 = vcvt.s32.f32 %v1971_v29  ;;  %vm5340_vm8 = vcmp.lt.s32.totalorder %v5339_v38, 0  ;;  %v1767_v37 = vor.u32 4788187, %v1766_v0  ;;  %v1874_v6 = vcvt.s32.f32 %v1867_v51 }
 0x2e4   : > { %v2175_v16 = vsel %vm5340_vm8, 0, %v5339_v38  ;;  %v7628_v55 = vshrl.u32 %v2061_v42, 30  ;;  %v2160_v4 = vadd.s32 %v7507_v40, %v7512_v57  ;;  %v1560_v3 = vand.u32 2147483647, %v1559_v8 }
 0x2e5   : > { %v1979_v59 = vmul.f32 %v1978_v12, %v1976_v48  ;;  %v2176_v17 = vsub.s32 32, %v2175_v16  ;;  %v2180_v58 = vsub.s32 4294967266, %v2175_v16  ;;  %v1659_v2 = vor.u32 %v1658_v14, %v1657_v50  ;;  %v10477_v12 = vld [vmem:[#allocation13_spill] sm:$0xff] }
 0x2e6   : > { %v1763_v32 = vor.u32 %v1762_v18, %v1761_v27  ;;  %v2063_v22 = vshll.u32 %v7628_v55, 30  ;;  %v1875_v24 = vmul.f32 %v1874_v6, %v1872_v23  ;;  %v2177_v31 = vshll.u32 %v7596_v35, %v2175_v16 }
 0x2e7   : > { %v2178_v20 = vshrl.u32 %v2160_v4, %v2176_v17  ;;  %v2181_v9 = vadd.s32 127, %v2180_v58  ;;  %v1458_v61 = vcvt.s32.f32 %v7448_v36  ;;  %v1562_v53 = vcvt.s32.f32 %v1555_v28 }
 0x2e8   : > { %v1664_v39 = vand.u32 2147483647, %v1663_v43  ;;  %v7635_v46 = vsub.s32 %v2060_v5, %v2063_v22  ;;  %v1768_v45 = vand.u32 2147483647, %v1767_v37  ;;  %v1980_v40 = vxor.u32 2147483648, %v1979_v59 }
 0x2e9   : > { %v2179_v57 = vor.u32 %v2178_v20, %v2177_v31  ;;  %v2182_v34 = vshll.u32 %v2181_v9, 23  ;;  %v10473_v1 = vand.u32 2147483647, %v7438_v54  ;;  %v1666_v10 = vcvt.s32.f32 %v1659_v2 }
 0x2ea   : > { %v2066_v7 = vsub.s32 0, %v7635_v46  ;;  %v1563_v35 = vmul.f32 %v1562_v53, %v1560_v3  ;;  %v1770_v29 = vcvt.s32.f32 %v1763_v32  ;;  %v1876_v19 = vxor.u32 2147483648, %v1875_v24 }
 0x2eb   : > { %v7639_v62 = vmul.f32 %v1458_v61, %v10473_v1  ;;  %v2183_v56 = vor.u32 4788187, %v2182_v34  ;;  %v1667_v36 = vmul.f32 %v1666_v10, %v1664_v39  ;;  %vm1690_vm14 = vcmp.lt.s32.totalorder %v7113_v49, 0  ;;  %v10484_v39 = vld [vmem:[#allocation14_spill] sm:$0xff] }
 0x2ec   : > { %vm1794_vm9 = vcmp.lt.s32.totalorder %v7193_v47, 0  ;;  %vm1898_vm10 = vcmp.lt.s32.totalorder %v7323_v15, 0  ;;  %v5334_v28 = vmin.u32 %v2066_v7, %v7635_v46  ;;  %v1771_v0 = vmul.f32 %v1770_v29, %v1768_v45 }
 0x2ed   : > { %v1981_v54 = vsel %vm1898_vm10, %v1980_v40, %v1979_v59  ;;  %v2184_v51 = vand.u32 2147483647, %v2183_v56  ;;  %v2186_v5 = vcvt.s32.f32 %v2179_v57  ;;  %v1460_v8 = vxor.u32 2147483648, %v7639_v62  ;;  %v10485_v57 = vld [vmem:[#allocation7_spill] sm:$0xff] }
 0x2ee   : > { %vm1586_vm11 = vcmp.lt.s32.totalorder %v7034_v26, 0  ;;  %v2190_v50 = vsub.s32 4, %v7571_v41  ;;  %v2068_v48 = vclz %v5334_v28  ;;  %v1982_v38 = vsub.s32 4, %v7473_v11 }
 0x2ef   : > { %v1564_v14 = vxor.u32 2147483648, %v1563_v35  ;;  %v1877_v43 = vsel %vm1794_vm9, %v1876_v19, %v1875_v24  ;;  %v2187_v18 = vmul.f32 %v2186_v5, %v2184_v51  ;;  %v10474_v42 = vand.u32 2147483647, %v7323_v15  ;;  %v10489_v51 = vld [vmem:[#allocation6_spill] sm:$0xff] }
 0x2f0   : > { %vm1378_vm15 = vcmp.lt.s32.totalorder %v7022_v63, 0  ;;  %v1668_v23 = vxor.u32 2147483648, %v1667_v36  ;;  %vm2106_vm0 = vcmp.lt.s32.totalorder %v10477_v12, 0  ;;  %v5335_v37 = vadd.s32 4294967294, %v2068_v48 }
 0x2f1   : > { %vm7656_vm12 = vcmp.le.f32.partialorder %v10474_v42, 0.7853982  ;;  %v1772_v16 = vxor.u32 2147483648, %v1771_v0  ;;  %v10478_v59 = vand.u32 2147483647, %v10477_v12  ;;  %v2188_v17 = vxor.u32 2147483648, %v2187_v18 }
 0x2f2   : > { %v1984_v6 = vsel %vm7656_vm12, %v7323_v15, %v1981_v54  ;;  %v10481_v58 = vand.u32 2147483647, %v7193_v47  ;;  %v2191_v2 = vsel %vm2106_vm0, %v2190_v50, %v7571_v41  ;;  %vm5336_vm2 = vcmp.lt.s32.totalorder %v5335_v37, 0 }
 0x2f3   : > { %vm7667_vm6 = vcmp.le.f32.partialorder %v10478_v59, 0.7853982  ;;  %v1983_v32 = vsel %vm1898_vm10, %v1982_v38, %v7473_v11  ;;  %v2189_v24 = vsel %vm2106_vm0, %v2188_v17, %v2187_v18  ;;  %v2056_v31 = vadd.s32 %v7590_v44, %v7584_v30 }
 0x2f4   : > { %vm7673_vm1 = vcmp.le.f32.partialorder %v10481_v58, 0.7853982  ;;  %v2071_v20 = vsel %vm5336_vm2, 0, %v5335_v37  ;;  %5728 = vcosq.f32 %v1984_v6  ;;  %v2192_v9 = vsel %vm7667_vm6, %v10477_v12, %v2189_v24  ;;  %v10502_v24 = vld [vmem:[#allocation16_spill] sm:$0xff] }
 0x2f5   : > { %v1880_v22 = vsel %vm7673_vm1, %v7193_v47, %v1877_v43  ;;  %v2072_v41 = vsub.s32 32, %v2071_v20  ;;  %v2076_v61 = vsub.s32 4294967266, %v2071_v20  ;;  %5730 = vsinq.f32 %v1984_v6 }
 0x2f6   : > { %v1773_v11 = vsel %vm1690_vm14, %v1772_v16, %v1771_v0  ;;  %v2193_v53 = vsel %vm7667_vm6, 0, %v2191_v2  ;;  %5732 = vcosq.f32 %v2192_v9  ;;  %v1878_v45 = vsub.s32 4, %v10484_v39 }
 0x2f7   : > { %5734 = vsinq.f32 %v2192_v9  ;;  %v2073_v30 = vshll.u32 %v7635_v46, %v2071_v20  ;;  %v2074_v44 = vshrl.u32 %v2056_v31, %v2072_v41  ;;  %v2077_v40 = vadd.s32 127, %v2076_v61 }
 0x2f8   : > { %vm1482_vm3 = vcmp.lt.s32.totalorder %v10485_v57, 0  ;;  %v1669_v34 = vsel %vm1586_vm11, %v1668_v23, %v1667_v36  ;;  %v1985_v1 = vsel %vm7656_vm12, 0, %v1983_v32  ;;  %5736 = vcosq.f32 %v1880_v22 }
 0x2f9   : > { %v2075_v10 = vor.u32 %v2074_v44, %v2073_v30  ;;  %v2078_v7 = vshll.u32 %v2077_v40, 23  ;;  %5738 = vsinq.f32 %v1880_v22  ;;  %v10486_v29 = vand.u32 2147483647, %v7113_v49  ;;  %v10504_v40 = vld [vmem:[#allocation9_spill] sm:$0xff] }
 0x2fa   : > { %v1461_v46 = vsel %vm1378_vm15, %v1460_v8, %v7639_v62  ;;  %v1565_v56 = vsel %vm1482_vm3, %v1564_v14, %v1563_v35  ;;  %v2197_v36 = vadd.s32 3, %v2193_v53  ;;  %v1879_v54 = vsel %vm1794_vm9, %v1878_v45, %v10484_v39  ;;  %v10503_v53 = vld [vmem:[#allocation12_spill] sm:$0xff] }
 0x2fb   : > { %vm7702_vm4 = vcmp.le.f32.partialorder %v10486_v29, 0.7853982  ;;  %v2079_v0 = vor.u32 4788187, %v2078_v7  ;;  %v1774_v5 = vsub.s32 4, %v10489_v51  ;;  %vm2002_vm5 = vcmp.lt.s32.totalorder %v7365_v21, 0 }
 0x2fc   : > { %v1776_v28 = vsel %vm7702_vm4, %v7113_v49, %v1773_v11  ;;  %v10490_v50 = vand.u32 2147483647, %v7034_v26  ;;  %v2086_v62 = vsub.s32 4, %v7628_v55  ;;  %v1989_v35 = vadd.s32 3, %v1985_v1 }
 0x2fd   : > { %v2080_v38 = vand.u32 2147483647, %v2079_v0  ;;  %v2082_v14 = vcvt.s32.f32 %v2075_v10  ;;  %5740 = vcosq.f32 %v1776_v28  ;;  %v10493_v43 = vand.u32 2147483647, %v10485_v57 }
 0x2fe   : > { %vm7720_vm7 = vcmp.le.f32.partialorder %v10490_v50, 0.7853982  ;;  %v2198_v42 = vand.u32 3, %v2197_v36  ;;  %v1881_v27 = vsel %vm7673_vm1, 0, %v1879_v54  ;;  %5742 = vsinq.f32 %v1776_v28 }
 0x2ff   : > { %v1672_v8 = vsel %vm7720_vm7, %v7034_v26, %v1669_v34  ;;  %vm7731_vm8 = vcmp.le.f32.partialorder %v10493_v43, 0.7853982  ;;  %v2083_v37 = vmul.f32 %v2082_v14, %v2080_v38  ;;  %v1775_v6 = vsel %vm1690_vm14, %v1774_v5, %v10489_v51 }
 0x300   : > { %v1568_v23 = vsel %vm7731_vm8, %v10485_v57, %v1565_v56  ;;  %5744 = vcosq.f32 %v1672_v8  ;;  %v10496_v16 = vand.u32 2147483647, %v7022_v63  ;;  %vm2196_vm10 = vweird.f32 %v10477_v12 }
 0x301   : > { %v10499_v4 = vand.u32 2147483647, %v7365_v21  ;;  %v2087_v58 = vsel %vm2002_vm5, %v2086_v62, %v7628_v55  ;;  %5746 = vsinq.f32 %v1672_v8  ;;  %v5729_v2 = vpop.eup %5728  ;;  %v2084_v32 = vxor.u32 2147483648, %v2083_v37 }
 0x302   : > { %vm7745_vm9 = vcmp.le.f32.partialorder %v10496_v16, 0.7853982  ;;  %v7762_v22 = vand.u32 3, %v1989_v35  ;;  %v1670_v31 = vsub.s32 4, %v10502_v24  ;;  %5748 = vcosq.f32 %v1568_v23  ;;  %v5731_v20 = vpop.eup %5730 }
 0x303   : > { %vm7752_vm12 = vcmp.le.f32.partialorder %v10499_v4, 0.7853982  ;;  %v1464_v3 = vsel %vm7745_vm9, %v7022_v63, %v1461_v46  ;;  %vm2199_vm14 = vcmp.lt.s32.totalorder %v2198_v42, 2  ;;  %v1885_v9 = vadd.s32 3, %v1881_v27  ;;  %v5733_v55 = vpop.eup %5732 }
 0x304   : > { %v1777_v41 = vsel %vm7702_vm4, 0, %v1775_v6  ;;  %5750 = vsinq.f32 %v1568_v23  ;;  %v2085_v61 = vsel %vm2002_vm5, %v2084_v32, %v2083_v37  ;;  %v2089_v11 = vsel %vm7752_vm12, 0, %v2087_v58  ;;  %v5735_v45 = vpop.eup %5734 }
 0x305   : > { %v1566_v39 = vsub.s32 4, %v10503_v53  ;;  %5752 = vcosq.f32 %v1464_v3  ;;  %v2204_v30 = vxor.u32 2147483648, %v5733_v55  ;;  %v2088_v44 = vsel %vm7752_vm12, %v7365_v21, %v2085_v61  ;;  %v5737_v1 = vpop.eup %5736 }
 0x306   : > { %v1462_v34 = vsub.s32 4, %v10504_v40  ;;  %5754 = vsinq.f32 %v1464_v3  ;;  %v2201_v10 = vxor.u32 2147483648, %v5735_v45  ;;  %vm2203_vm0 = vcmp.eq.s32.totalorder %v2198_v42, 2  ;;  %v5739_v29 = vpop.eup %5738 }
 0x307   : > { %5756 = vcosq.f32 %v2088_v44  ;;  %v1671_v7 = vsel %vm1586_vm11, %v1670_v31, %v10502_v24  ;;  %vm2200_vm6 = vcmp.eq.s32.totalorder %v2198_v42, 0  ;;  %v2205_v19 = vsel %vm2203_vm0, %v2204_v30, %v5735_v45 }
 0x308   : > { %5758 = vsinq.f32 %v2088_v44  ;;  %v1886_v46 = vand.u32 3, %v1885_v9  ;;  %v2202_v56 = vsel %vm2200_vm6, %v5733_v55, %v2201_v10  ;;  %v2093_v36 = vadd.s32 3, %v2089_v11 }
 0x309   : > { %v1996_v28 = vxor.u32 2147483648, %v5729_v2  ;;  %v1781_v0 = vadd.s32 3, %v1777_v41  ;;  %v2206_v54 = vsel %vm2199_vm14, %v2202_v56, %v2205_v19  ;;  %v1673_v51 = vsel %vm7720_vm7, 0, %v1671_v7 }
 0x30a   : > { %v1567_v5 = vsel %vm1482_vm3, %v1566_v39, %v10503_v53  ;;  %v1463_v50 = vsel %vm1378_vm15, %v1462_v34, %v10504_v40  ;;  %v2207_v62 = vsel %vm2196_vm10, nan, %v2206_v54  ;;  %v1993_v35 = vxor.u32 2147483648, %v5731_v20  ;;  %v5741_v14 = vpop.eup %5740 }
 0x30b   : > { %v1889_v8 = vxor.u32 2147483648, %v5739_v29  ;;  %v1892_v38 = vxor.u32 2147483648, %v5737_v1  ;;  %2274 = vmatprep.subr.mxu1 %v2207_v62  ;;  %vm1991_vm11 = vcmp.lt.s32.totalorder %v7762_v22, 2  ;;  %vm1992_vm1 = vcmp.eq.s32.totalorder %v7762_v22, 0  ;;  %v5743_v48 = vpop.eup %5742 }
 0x30c   : > { %v1782_v43 = vand.u32 3, %v1781_v0  ;;  %v1677_v42 = vadd.s32 3, %v1673_v51  ;;  %v1569_v27 = vsel %vm7731_vm8, 0, %v1567_v5  ;;  %v1465_v23 = vsel %vm7745_vm9, 0, %v1463_v50 }
 0x30d   : > { %v5745_v12 = vpop.eup %5744  ;;  %v2094_v37 = vand.u32 3, %v2093_v36  ;;  %vm1995_vm15 = vcmp.eq.s32.totalorder %v7762_v22, 2  ;;  %vm1888_vm2 = vcmp.eq.s32.totalorder %v1886_v46, 0  ;;  %vm1891_vm3 = vcmp.eq.s32.totalorder %v1886_v46, 2 }
 0x30e   : > { %v5747_v6 = vpop.eup %5746  ;;  %v1994_v16 = vsel %vm1992_vm1, %v5729_v2, %v1993_v35  ;;  %v1997_v4 = vsel %vm1995_vm15, %v1996_v28, %v5731_v20  ;;  %v1890_v17 = vsel %vm1888_vm2, %v5737_v1, %v1889_v8  ;;  %v1893_v58 = vsel %vm1891_vm3, %v1892_v38, %v5739_v29 }
 0x30f   : > { %v5749_v3 = vpop.eup %5748  ;;  %v1785_v32 = vxor.u32 2147483648, %v5743_v48  ;;  %v1788_v24 = vxor.u32 2147483648, %v5741_v14  ;;  %v1573_v31 = vadd.s32 3, %v1569_v27  ;;  %v1469_v18 = vadd.s32 3, %v1465_v23  ;;  %v7834_v27 = vpop.permute.xlu1 %2230 }
 0x310   : > { %vm2092_vm4 = vweird.f32 %v7365_v21  ;;  %vm1887_vm7 = vcmp.lt.s32.totalorder %v1886_v46, 2  ;;  %vm1783_vm5 = vcmp.lt.s32.totalorder %v1782_v43, 2  ;;  %vm1784_vm8 = vcmp.eq.s32.totalorder %v1782_v43, 0 }
 0x311   : > { %v5751_v9 = vpop.eup %5750  ;;  %v1678_v59 = vand.u32 3, %v1677_v42  ;;  %vm2095_vm9 = vcmp.lt.s32.totalorder %v2094_v37, 2  ;;  %vm2096_vm10 = vcmp.eq.s32.totalorder %v2094_v37, 0  ;;  %vm2099_vm12 = vcmp.eq.s32.totalorder %v2094_v37, 2 }
 0x312   : > { %v5753_v41 = vpop.eup %5752  ;;  %vm1988_vm14 = vweird.f32 %v7323_v15  ;;  %vm1787_vm0 = vcmp.eq.s32.totalorder %v1782_v43, 2  ;;  %v1998_v20 = vsel %vm1991_vm11, %v1994_v16, %v1997_v4  ;;  %v1894_v55 = vsel %vm1887_vm7, %v1890_v17, %v1893_v58 }
 0x313   : > { %v5755_v2 = vpop.eup %5754  ;;  %v1681_v61 = vxor.u32 2147483648, %v5747_v6  ;;  %v1684_v11 = vxor.u32 2147483648, %v5745_v12  ;;  %v1786_v39 = vsel %vm1784_vm8, %v5741_v14, %v1785_v32  ;;  %v1789_v45 = vsel %vm1787_vm0, %v1788_v24, %v5743_v48  ;;  %v2221_v23 = vpop.permute.xlu1 %2220 }
 0x314   : > { %v5757_v53 = vpop.eup %5756  ;;  %v1574_v30 = vand.u32 3, %v1573_v31  ;;  %v1470_v44 = vand.u32 3, %v1469_v18  ;;  %vm1680_vm6 = vcmp.eq.s32.totalorder %v1678_v59, 0  ;;  %v1577_v1 = vxor.u32 2147483648, %v5751_v9  ;;  %v7842_v32 = vpop.permute.xlu0 %2235 }
 0x315   : > { %v5759_v40 = vpop.eup %5758  ;;  %v2100_v34 = vxor.u32 2147483648, %v5757_v53  ;;  %v1580_v10 = vxor.u32 2147483648, %v5749_v3  ;;  %vm1683_vm1 = vcmp.eq.s32.totalorder %v1678_v59, 2  ;;  %v1473_v29 = vxor.u32 2147483648, %v5755_v2 }
 0x316   : > { %v2097_v7 = vxor.u32 2147483648, %v5759_v40  ;;  %v1476_v19 = vxor.u32 2147483648, %v5753_v41  ;;  %v1790_v46 = vsel %vm1783_vm5, %v1786_v39, %v1789_v45  ;;  %v1682_v56 = vsel %vm1680_vm6, %v5745_v12, %v1681_v61 }
 0x317   : > { %v2101_v22 = vsel %vm2099_vm12, %v2100_v34, %v5759_v40  ;;  %v1685_v36 = vsel %vm1683_vm1, %v1684_v11, %v5747_v6  ;;  %vm1576_vm11 = vcmp.eq.s32.totalorder %v1574_v30, 0  ;;  %vm1579_vm15 = vcmp.eq.s32.totalorder %v1574_v30, 2 }
 0x318   : > { %v2098_v28 = vsel %vm2096_vm10, %v5757_v53, %v2097_v7  ;;  %vm1472_vm2 = vcmp.eq.s32.totalorder %v1470_v44, 0  ;;  %v1578_v54 = vsel %vm1576_vm11, %v5749_v3, %v1577_v1  ;;  %v1581_v51 = vsel %vm1579_vm15, %v1580_v10, %v5751_v9 }
 0x319   : > { %v2102_v0 = vsel %vm2095_vm9, %v2098_v28, %v2101_v22  ;;  %vm1475_vm3 = vcmp.eq.s32.totalorder %v1470_v44, 2  ;;  %vm1679_vm7 = vcmp.lt.s32.totalorder %v1678_v59, 2  ;;  %v1474_v50 = vsel %vm1472_vm2, %v5753_v41, %v1473_v29 }
 0x31a   : > { %v2103_v5 = vsel %vm2092_vm4, nan, %v2102_v0  ;;  %v1477_v62 = vsel %vm1475_vm3, %v1476_v19, %v5755_v2  ;;  %v1999_v35 = vsel %vm1988_vm14, nan, %v1998_v20  ;;  %vm1884_vm5 = vweird.f32 %v7193_v47  ;;  %v5341_v47 = vld [vmem:[%s10302_s3 + $0x20] sm:$0xff] }
 0x31b   : > { %2275 = vmatpush1.msra.mxu1 %v2103_v5  ;;  %v1686_v8 = vsel %vm1679_vm7, %v1682_v56, %v1685_v36  ;;  %vm1575_vm8 = vcmp.lt.s32.totalorder %v1574_v30, 2  ;;  %v1895_v38 = vsel %vm1884_vm5, nan, %v1894_v55  ;;  %vm1780_vm9 = vweird.f32 %v7113_v49  ;;  %v2226_v55 = vpop.permute.xlu0 %2225 }
 0x31c   : > { %2276 = vmatprep.subr.mxu1 %v1999_v35  ;;  %v1582_v14 = vsel %vm1575_vm8, %v1578_v54, %v1581_v51  ;;  %vm1471_vm10 = vcmp.lt.s32.totalorder %v1470_v44, 2  ;;  %v1791_v21 = vsel %vm1780_vm9, nan, %v1790_v46  ;;  %vm1676_vm4 = vweird.f32 %v7034_v26  ;;  %v5342_v26 = vld [vmem:[%s10302_s3 + $0x28] sm:$0xff] }
 0x31d   : > { %2277 = vmatpush1.msra.mxu1 %v1895_v38  ;;  %v1478_v48 = vsel %vm1471_vm10, %v1474_v50, %v1477_v62  ;;  %v1687_v43 = vsel %vm1676_vm4, nan, %v1686_v8  ;;  %vm1572_vm12 = vweird.f32 %v10485_v57  ;;  %vm1468_vm14 = vweird.f32 %v7022_v63  ;;  %v5343_v63 = vld [vmem:[%s10302_s3 + $0x30] sm:$0xff]  ;;  %v5344_v57 = vld [vmem:[%s10302_s3 + $0x38] sm:$0xff] }
 0x31e   : > { %2278 = vmatprep.subr.mxu1 %v1791_v21  ;;  %v1583_v15 = vsel %vm1572_vm12, nan, %v1582_v14  ;;  %v1479_v49 = vsel %vm1468_vm14, nan, %v1478_v48  ;;  %v10505_v42 = vmov 0.0   ;;  %v10506_v19 = vmov 1326507024  }
 0x31f   : > { %2279 = vmatpush1.msra.mxu1 %v1687_v43 }
 0x320   : > { %2280 = vmatprep.subr.mxu1 %v1583_v15 }
 0x321   : > { %2281 = vmatpush1.msra.mxu1 %v1479_v49 }
 0x322   : > { %5349 = vmatmul.mubr.msk.f32.vlgmr.msra.gmra.mxu1 %vm1274_vm13, %v5341_v47 }
 0x323   : > { %2320 = vmatprep.mubr.f32.mxu1 %v10505_v42 }
 0x326   : > { %5350 = vmatmul.mubr.msk.f32.gmra.mxu1 %vm1274_vm13, %v5342_v26 }
 0x327   : > { %2326 = vmatprep.mubr.f32.mxu1 %v10505_v42 }
 0x32a   : > { %5351 = vmatmul.mubr.msk.f32.gmra.mxu1 %vm1274_vm13, %v5343_v63 }
 0x32b   : > { %2332 = vmatprep.mubr.f32.mxu1 %v10505_v42 }
 0x32e   : > { %5352 = vmatmul.mubr.msk.f32.gmra.mxu1 %vm1274_vm13, %v5344_v57 }
 0x32f   : > { %4240 = vmatprep.mubr.f32.mxu1 %v10505_v42 }
 0x3e2   : > { %v2316_v12 = vpop.f32.mrf.mxu1 }
 0x3e3   : > { %v7836_v37 = vadd.f32 %v2316_v12, %v2221_v23 }
 0x3e4   : > { %v2318_v6 = vpop.f32.mrf.mxu1 }
 0x3e5   : > { %v2342_v16 = vand.u32 2139095040, %v7836_v37  ;;  %v7839_v4 = vadd.f32 %v2318_v6, %v2221_v23  ;;  %v10366_v9 = vand.u32 2147483647, %v7836_v37 }
 0x3e6   : > { %v2322_v2 = vpop.f32.mrf.mxu1 }
 0x3e7   : > { %v2343_v17 = vshrl.u32 %v2342_v16, 23  ;;  %v2446_v58 = vand.u32 2139095040, %v7839_v4  ;;  %v2346_v61 = vand.u32 8388607, %v10366_v9  ;;  %v7847_v53 = vadd.f32 %v2322_v2, %v2226_v55 }
 0x3e8   : > { %v2324_v12 = vpop.f32.mrf.mxu1  ;;  %v10361_v6 = vand.u32 2147483647, %v7839_v4 }
 0x3e9   : > { %v5353_v3 = vadd.s32 4294967169, %v2343_v17  ;;  %v2447_v24 = vshrl.u32 %v2446_v58, 23  ;;  %v2347_v0 = vor.u32 8388608, %v2346_v61  ;;  %v2550_v50 = vand.u32 2139095040, %v7847_v53 }
 0x3eb   : > { %v2349_v31 = vadd.s32 1, %v5353_v3  ;;  %v5357_v18 = vadd.s32 4294967169, %v2447_v24  ;;  %v2387_v15 = vshll.u32 %v2347_v0, 8  ;;  %v2551_v47 = vshrl.u32 %v2550_v50, 23 }
 0x3ed   : > { %vm2350_vm0 = vcmp.gt.s32.totalorder %v2349_v31, 0  ;;  %v2453_v41 = vadd.s32 1, %v5357_v18  ;;  %v5361_v16 = vadd.s32 4294967169, %v2551_v47  ;;  %v7901_v18 = vadd.f32 %v2324_v12, %v2226_v55 }
 0x3ee   : > { %v2351_v59 = vsel %vm2350_vm0, %v2349_v31, 0  ;;  %v10364_v12 = vand.u32 2147483647, %v7847_v53 }
 0x3ef   : > { %v2353_v20 = vand.u32 31, %v2351_v59  ;;  %v7849_v39 = vshrl.u32 %v2351_v59, 5  ;;  %vm2454_vm6 = vcmp.gt.s32.totalorder %v2453_v41, 0 }
 0x3f0   : > { %v2455_v28 = vsel %vm2454_vm6, %v2453_v41, 0 }
 0x3f1   : > { %v2354_v11 = vsub.s32 32, %v2353_v20  ;;  %v2356_v45 = vshll.u32 %v10436_v60, %v2353_v20  ;;  %v2359_v30 = vshll.u32 %v10432_v33, %v2353_v20  ;;  %v2362_v34 = vshll.u32 %v10416_v52, %v2353_v20 }
 0x3f2   : > { %v2365_v10 = vshll.u32 %v10426_v13, %v2353_v20  ;;  %v2368_v29 = vshll.u32 %v10427_v25, %v2353_v20  ;;  %vm2371_vm1 = vcmp.lt.s32.totalorder %v7849_v39, 1  ;;  %vm2373_vm11 = vcmp.lt.s32.totalorder %v7849_v39, 3 }
 0x3f3   : > { %v2357_v44 = vshrl.u32 %v10432_v33, %v2354_v11  ;;  %v2360_v40 = vshrl.u32 %v10416_v52, %v2354_v11  ;;  %v2363_v1 = vshrl.u32 %v10426_v13, %v2354_v11  ;;  %v2366_v7 = vshrl.u32 %v10427_v25, %v2354_v11 }
 0x3f4   : > { %v2369_v22 = vshrl.u32 %v10506_v19, %v2354_v11  ;;  %vm2374_vm15 = vcmp.lt.s32.totalorder %v7849_v39, 4  ;;  %v2457_v38 = vand.u32 31, %v2455_v28  ;;  %vm2372_vm2 = vcmp.lt.s32.totalorder %v7849_v39, 2 }
 0x3f5   : > { %v2358_v46 = vor.u32 %v2357_v44, %v2356_v45  ;;  %v2361_v56 = vor.u32 %v2360_v40, %v2359_v30  ;;  %v2364_v36 = vor.u32 %v2363_v1, %v2362_v34  ;;  %v2367_v54 = vor.u32 %v2366_v7, %v2365_v10 }
 0x3f6   : > { %v2370_v51 = vor.u32 %v2369_v22, %v2368_v29  ;;  %v7882_v49 = vsub.s32 32, %v2457_v38  ;;  %v2355_v17 = vshrl.u32 %v10436_v60, %v2354_v11  ;;  %v7899_v31 = vshrl.u32 %v2455_v28, 5 }
 0x3f7   : > { %v2379_v5 = vsel %vm2371_vm1, %v2358_v46, %v2361_v56  ;;  %v2380_v62 = vsel %vm2374_vm15, %v2367_v54, 920167782  ;;  %v2383_v35 = vsel %vm2371_vm1, %v2361_v56, %v2364_v36  ;;  %v2376_v58 = vsel %vm2374_vm15, %v2364_v36, 2102212464 }
 0x3f8   : > { %v2384_v8 = vsel %vm2374_vm15, %v2370_v51, 1326507024  ;;  %v2381_v14 = vsel %vm2373_vm11, %v2364_v36, %v2380_v62  ;;  %v2470_v3 = vshrl.u32 %v10427_v25, %v7882_v49  ;;  %v2473_v24 = vshrl.u32 %v10506_v19, %v7882_v49 }
 0x3f9   : > { %v2385_v21 = vsel %vm2373_vm11, %v2367_v54, %v2384_v8  ;;  %v2382_v48 = vsel %vm2372_vm2, %v2379_v5, %v2381_v14  ;;  %v2375_v59 = vsel %vm2371_vm1, %v2355_v17, %v2358_v46  ;;  %v2461_v41 = vshrl.u32 %v10432_v33, %v7882_v49 }
 0x3fa   : > { %v2386_v43 = vsel %vm2372_vm2, %v2383_v35, %v2385_v21  ;;  %v7884_v26 = vmul.u32.u64.low %v2387_v15, %v2382_v48  ;;  %v7885_v63 = vmul.u32.u64.high %v2387_v15, %v2382_v48, %v7884_v26  ;;  %v2469_v2 = vshll.u32 %v10426_v13, %v2457_v38 }
 0x3fb   : > { %v7888_v57 = vmul.u32.u64.low %v2387_v15, %v2386_v43  ;;  %v7889_v23 = vmul.u32.u64.high %v2387_v15, %v2386_v43, %v7888_v57  ;;  %v2472_v20 = vshll.u32 %v10427_v25, %v2457_v38  ;;  %v2377_v61 = vsel %vm2373_vm11, %v2361_v56, %v2376_v58 }
 0x3fc   : > { %v2464_v11 = vshrl.u32 %v10416_v52, %v7882_v49  ;;  %v2467_v55 = vshrl.u32 %v10426_v13, %v7882_v49  ;;  %v2557_v45 = vadd.s32 1, %v5361_v16  ;;  %v2450_v30 = vand.u32 8388607, %v10361_v6 }
 0x3fd   : > { %v2460_v44 = vshll.u32 %v10436_v60, %v2457_v38  ;;  %v2471_v40 = vor.u32 %v2470_v3, %v2469_v2  ;;  %v2474_v34 = vor.u32 %v2473_v24, %v2472_v20  ;;  %v2397_v1 = vadd.s32 1, %v7885_v63 }
 0x3fe   : > { %v2463_v10 = vshll.u32 %v10432_v33, %v2457_v38  ;;  %v2466_v7 = vshll.u32 %v10416_v52, %v2457_v38  ;;  %v2654_v29 = vand.u32 2139095040, %v7901_v18  ;;  %v2378_v22 = vsel %vm2372_vm2, %v2375_v59, %v2377_v61 }
 0x3ff   : > { %vm2396_vm3 = vc.u32 %v7889_v23, %v7884_v26  ;;  %v2462_v46 = vor.u32 %v2461_v41, %v2460_v44  ;;  %vm2558_vm7 = vcmp.gt.s32.totalorder %v2557_v45, 0  ;;  %vm2478_vm5 = vcmp.lt.s32.totalorder %v7899_v31, 4 }
 0x400   : > { %v2465_v56 = vor.u32 %v2464_v11, %v2463_v10  ;;  %v2468_v36 = vor.u32 %v2467_v55, %v2466_v7  ;;  %v2559_v28 = vsel %vm2558_vm7, %v2557_v45, 0  ;;  %v2484_v0 = vsel %vm2478_vm5, %v2471_v40, 920167782 }
 0x401   : > { %v2488_v54 = vsel %vm2478_vm5, %v2474_v34, 1326507024  ;;  %v2561_v51 = vand.u32 31, %v2559_v28  ;;  %v2398_v39 = vsel %vm2396_vm3, %v2397_v1, %v7885_v63  ;;  %v2451_v5 = vor.u32 8388608, %v2450_v30 }
 0x402   : > { %v2394_v50 = vmul.u32 %v2387_v15, %v2378_v22  ;;  %vm2475_vm8 = vcmp.lt.s32.totalorder %v7899_v31, 1  ;;  %vm2477_vm9 = vcmp.lt.s32.totalorder %v7899_v31, 3  ;;  %v2655_v62 = vshrl.u32 %v2654_v29, 23 }
 0x403   : > { %v2483_v35 = vsel %vm2475_vm8, %v2462_v46, %v2465_v56  ;;  %v2485_v8 = vsel %vm2477_vm9, %v2468_v36, %v2484_v0  ;;  %v2487_v38 = vsel %vm2475_vm8, %v2465_v56, %v2468_v36  ;;  %v2489_v14 = vsel %vm2477_vm9, %v2471_v40, %v2488_v54 }
 0x404   : > { %v2399_v21 = vadd.s32 %v2398_v39, %v2394_v50  ;;  %v7942_v48 = vsub.s32 32, %v2561_v51  ;;  %vm2476_vm10 = vcmp.lt.s32.totalorder %v7899_v31, 2  ;;  %v2491_v47 = vshll.u32 %v2451_v5, 8 }
 0x405   : > { %v2486_v43 = vsel %vm2476_vm10, %v2483_v35, %v2485_v8  ;;  %v2490_v15 = vsel %vm2476_vm10, %v2487_v38, %v2489_v14  ;;  %v5365_v63 = vadd.s32 4294967169, %v2655_v62  ;;  %v2459_v59 = vshrl.u32 %v10436_v60, %v7882_v49 }
 0x406   : > { %v2400_v57 = vadd.s32 536870912, %v2399_v21  ;;  %v2574_v16 = vshrl.u32 %v10427_v25, %v7942_v48  ;;  %v7952_v17 = vmul.u32.u64.low %v2491_v47, %v2490_v15  ;;  %v7953_v58 = vmul.u32.u64.high %v2491_v47, %v2490_v15, %v7952_v17 }
 0x407   : > { %v7955_v3 = vmul.u32.u64.low %v2491_v47, %v2486_v43  ;;  %v7956_v24 = vmul.u32.u64.high %v2491_v47, %v2486_v43, %v7955_v3  ;;  %v2565_v41 = vshrl.u32 %v10432_v33, %v7942_v48  ;;  %v2568_v2 = vshrl.u32 %v10416_v52, %v7942_v48 }
 0x408   : > { %v2573_v20 = vshll.u32 %v10426_v13, %v2561_v51  ;;  %v7966_v61 = vshrl.u32 %v2559_v28, 5  ;;  %v2571_v11 = vshrl.u32 %v10426_v13, %v7942_v48  ;;  %v2577_v55 = vshrl.u32 %v10506_v19, %v7942_v48 }
 0x409   : > { %v2661_v45 = vadd.s32 1, %v5365_v63  ;;  %v7972_v30 = vshrl.u32 %v2400_v57, 30  ;;  %v2564_v49 = vshll.u32 %v10436_v60, %v2561_v51  ;;  %v2567_v44 = vshll.u32 %v10432_v33, %v2561_v51 }
 0x40a   : > { %v2575_v40 = vor.u32 %v2574_v16, %v2573_v20  ;;  %v2480_v34 = vsel %vm2478_vm5, %v2468_v36, 2102212464  ;;  %v2570_v1 = vshll.u32 %v10416_v52, %v2561_v51  ;;  %v2576_v10 = vshll.u32 %v10427_v25, %v2561_v51 }
 0x40b   : > { %10507 = vst [vmem:[#allocation15_spill] sm:$0xff] %v7972_v30  ;;  %v2479_v7 = vsel %vm2475_vm8, %v2459_v59, %v2462_v46  ;;  %v2554_v29 = vand.u32 8388607, %v10364_v12  ;;  %v7984_v22 = vor.u32 %v2565_v41, %v2564_v49  ;;  %v7986_v28 = vor.u32 %v2568_v2, %v2567_v44 }
 0x40c   : > { %v2572_v0 = vor.u32 %v2571_v11, %v2570_v1  ;;  %v2578_v54 = vor.u32 %v2577_v55, %v2576_v10  ;;  %vm2582_vm4 = vcmp.lt.s32.totalorder %v7966_v61, 4  ;;  %vm2662_vm12 = vcmp.gt.s32.totalorder %v2661_v45, 0 }
 0x40d   : > { %v2402_v36 = vshll.u32 %v7972_v30, 30  ;;  %v2481_v51 = vsel %vm2477_vm9, %v2465_v56, %v2480_v34  ;;  %v2588_v46 = vsel %vm2582_vm4, %v2575_v40, 920167782  ;;  %v2663_v39 = vsel %vm2662_vm12, %v2661_v45, 0 }
 0x40e   : > { %v2501_v5 = vadd.s32 1, %v7956_v24  ;;  %v2665_v50 = vand.u32 31, %v2663_v39  ;;  %vm2500_vm14 = vc.u32 %v7953_v58, %v7955_v3  ;;  %v2555_v62 = vor.u32 8388608, %v2554_v29 }
 0x40f   : > { %vm2579_vm0 = vcmp.lt.s32.totalorder %v7966_v61, 1  ;;  %vm2581_vm6 = vcmp.lt.s32.totalorder %v7966_v61, 3  ;;  %v2482_v35 = vsel %vm2476_vm10, %v2479_v7, %v2481_v51  ;;  %v2592_v38 = vsel %vm2582_vm4, %v2578_v54, 1326507024 }
 0x410   : > { %v2587_v56 = vsel %vm2579_vm0, %v7984_v22, %v7986_v28  ;;  %v2589_v8 = vsel %vm2581_vm6, %v2572_v0, %v2588_v46  ;;  %v8009_v14 = vsub.s32 %v2399_v21, %v2402_v36  ;;  %v10362_v43 = vand.u32 2147483647, %v7901_v18 }
 0x411   : > { %v2502_v15 = vsel %vm2500_vm14, %v2501_v5, %v7956_v24  ;;  %vm2580_vm1 = vcmp.lt.s32.totalorder %v7966_v61, 2  ;;  %v8014_v31 = vsub.s32 32, %v2665_v50  ;;  %v2498_v63 = vmul.u32 %v2491_v47, %v2482_v35  ;;  %v2328_v47 = vpop.f32.mrf.mxu1 }
 0x412   : > { %v2590_v57 = vsel %vm2580_vm1, %v2587_v56, %v2589_v8  ;;  %v2591_v16 = vsel %vm2579_vm0, %v7986_v28, %v2572_v0  ;;  %v2593_v21 = vsel %vm2581_vm6, %v2575_v40, %v2592_v38  ;;  %v8023_v17 = vshll.u32 %v2555_v62, 8 }
 0x413   : > { %v2405_v59 = vsub.s32 0, %v8009_v14  ;;  %v8026_v24 = vadd.s32 %v2502_v15, %v2498_v63  ;;  %v2658_v41 = vand.u32 8388607, %v10362_v43  ;;  %v2594_v2 = vsel %vm2580_vm1, %v2591_v16, %v2593_v21 }
 0x414   : > { %v8033_v20 = vmul.u32.u64.low %v8023_v17, %v2590_v57  ;;  %v8034_v11 = vmul.u32.u64.high %v8023_v17, %v2590_v57, %v8033_v20  ;;  %v2669_v55 = vshrl.u32 %v10432_v33, %v8014_v31  ;;  %v2672_v45 = vshrl.u32 %v10416_v52, %v8014_v31 }
 0x415   : > { %v2675_v49 = vshrl.u32 %v10426_v13, %v8014_v31  ;;  %v2677_v44 = vshll.u32 %v10426_v13, %v2665_v50  ;;  %v2678_v40 = vshrl.u32 %v10427_v25, %v8014_v31  ;;  %v8046_v34 = vshrl.u32 %v2663_v39, 5 }
 0x416   : > { %v2668_v1 = vshll.u32 %v10436_v60, %v2665_v50  ;;  %v2681_v10 = vshrl.u32 %v10506_v19, %v8014_v31  ;;  %v8052_v7 = vadd.f32 %v2328_v47, %v7834_v27  ;;  %v2671_v29 = vshll.u32 %v10432_v33, %v2665_v50 }
 0x417   : > { %v2674_v54 = vshll.u32 %v10416_v52, %v2665_v50  ;;  %v2679_v36 = vor.u32 %v2678_v40, %v2677_v44  ;;  %v2680_v51 = vshll.u32 %v10427_v25, %v2665_v50  ;;  %v5354_v46 = vmin.u32 %v2405_v59, %v8009_v14  ;;  %v2330_v40 = vpop.f32.mrf.mxu1 }
 0x418   : > { %v2504_v39 = vadd.s32 536870912, %v8026_v24  ;;  %v8060_v5 = vmul.u32.u64.low %v8023_v17, %v2594_v2  ;;  %v8061_v62 = vmul.u32.u64.high %v8023_v17, %v2594_v2, %v8060_v5  ;;  %v2670_v35 = vor.u32 %v2669_v55, %v2668_v1 }
 0x419   : > { %v2673_v56 = vor.u32 %v2672_v45, %v2671_v29  ;;  %v2676_v8 = vor.u32 %v2675_v49, %v2674_v54  ;;  %v2682_v38 = vor.u32 %v2681_v10, %v2680_v51  ;;  %vm2686_vm11 = vcmp.lt.s32.totalorder %v8046_v34, 4 }
 0x41a   : > { %v2584_v15 = vsel %vm2582_vm4, %v2572_v0, 2102212464  ;;  %v2659_v63 = vor.u32 8388608, %v2658_v41  ;;  %v2692_v50 = vsel %vm2686_vm11, %v2679_v36, 920167782  ;;  %v2758_v57 = vand.u32 2139095040, %v8052_v7 }
 0x41b   : > { %v2407_v16 = vclz %v5354_v46  ;;  %v2563_v21 = vshrl.u32 %v10436_v60, %v7942_v48  ;;  %vm2683_vm15 = vcmp.lt.s32.totalorder %v8046_v34, 1  ;;  %vm2685_vm2 = vcmp.lt.s32.totalorder %v8046_v34, 3 }
 0x41c   : > { %v8073_v59 = vshrl.u32 %v2504_v39, 30  ;;  %v2691_v47 = vsel %vm2683_vm15, %v2670_v35, %v2673_v56  ;;  %v2693_v0 = vsel %vm2685_vm2, %v2676_v8, %v2692_v50  ;;  %v2696_v41 = vsel %vm2686_vm11, %v2682_v38, 1326507024 }
 0x41d   : > { %v2583_v2 = vsel %vm2579_vm0, %v2563_v21, %v7984_v22  ;;  %v2585_v48 = vsel %vm2581_vm6, %v7986_v28, %v2584_v15  ;;  %v2695_v55 = vsel %vm2683_vm15, %v2673_v56, %v2676_v8  ;;  %v2697_v45 = vsel %vm2685_vm2, %v2679_v36, %v2696_v41 }
 0x41e   : > { %10508 = vst [vmem:[#allocation10_spill] sm:$0xff] %v8073_v59  ;;  %v2605_v49 = vadd.s32 1, %v8034_v11  ;;  %vm2684_vm3 = vcmp.lt.s32.totalorder %v8046_v34, 2  ;;  %v2759_v44 = vshrl.u32 %v2758_v57, 23  ;;  %v5355_v1 = vadd.s32 4294967294, %v2407_v16 }
 0x41f   : > { %vm2604_vm7 = vc.u32 %v8061_v62, %v8033_v20  ;;  %v2694_v22 = vsel %vm2684_vm3, %v2691_v47, %v2693_v0  ;;  %v2586_v28 = vsel %vm2580_vm1, %v2583_v2, %v2585_v48  ;;  %v2698_v10 = vsel %vm2684_vm3, %v2695_v55, %v2697_v45 }
 0x420   : > { %v8101_v29 = vshll.u32 %v2659_v63, 8  ;;  %v5369_v54 = vadd.s32 4294967169, %v2759_v44  ;;  %v2506_v36 = vshll.u32 %v8073_v59, 30  ;;  %v8105_v51 = vadd.f32 %v2330_v40, %v7834_v27 }
 0x421   : > { %v2606_v46 = vsel %vm2604_vm7, %v2605_v49, %v8034_v11  ;;  %vm5356_vm5 = vcmp.lt.s32.totalorder %v5355_v1, 0  ;;  %v2602_v38 = vmul.u32 %v8023_v17, %v2586_v28  ;;  %v2688_v50 = vsel %vm2686_vm11, %v2676_v8, 2102212464 }
 0x422   : > { %v8109_v39 = vmul.u32.u64.low %v8101_v29, %v2694_v22  ;;  %v8110_v5 = vmul.u32.u64.high %v8101_v29, %v2694_v22, %v8109_v39  ;;  %v2765_v61 = vadd.s32 1, %v5369_v54  ;;  %v8121_v27 = vsub.s32 %v8026_v24, %v2506_v36 }
 0x423   : > { %v8115_v15 = vmul.u32.u64.low %v8101_v29, %v2698_v10  ;;  %v8116_v63 = vmul.u32.u64.high %v8101_v29, %v2698_v10, %v8115_v15  ;;  %v8123_v11 = vadd.s32 %v2606_v46, %v2602_v38  ;;  %v2667_v57 = vshrl.u32 %v10436_v60, %v8014_v31 }
 0x424   : > { %vm2766_vm8 = vcmp.gt.s32.totalorder %v2765_v61, 0  ;;  %v2862_v16 = vand.u32 2139095040, %v8105_v51  ;;  %v8128_v21 = vsel %vm5356_vm5, 0, %v5355_v1  ;;  %v10365_v17 = vand.u32 2147483647, %v8052_v7 }
 0x425   : > { %v2767_v47 = vsel %vm2766_vm8, %v2765_v61, 0  ;;  %v2687_v0 = vsel %vm2683_vm15, %v2667_v57, %v2670_v35  ;;  %v2689_v8 = vsel %vm2685_vm2, %v2673_v56, %v2688_v50  ;;  %v2415_v41 = vsub.s32 4294967266, %v8128_v21 }
 0x426   : > { %v2769_v24 = vand.u32 31, %v2767_v47  ;;  %v2509_v2 = vsub.s32 0, %v8121_v27  ;;  %v2608_v31 = vadd.s32 536870912, %v8123_v11  ;;  %v2863_v48 = vshrl.u32 %v2862_v16, 23 }
 0x427   : > { %v2690_v55 = vsel %vm2684_vm3, %v2687_v0, %v2689_v8  ;;  %v2709_v45 = vadd.s32 1, %v8110_v5  ;;  %v2762_v49 = vand.u32 8388607, %v10365_v17  ;;  %vm2708_vm9 = vc.u32 %v8116_v63, %v8109_v39 }
 0x428   : > { %v2770_v35 = vsub.s32 32, %v2769_v24  ;;  %v2768_v56 = vshrl.u32 %v2767_v47, 5  ;;  %v2772_v44 = vshll.u32 %v10436_v60, %v2769_v24  ;;  %v2775_v40 = vshll.u32 %v10432_v33, %v2769_v24 }
 0x429   : > { %v2778_v34 = vshll.u32 %v10416_v52, %v2769_v24  ;;  %v2781_v10 = vshll.u32 %v10426_v13, %v2769_v24  ;;  %v2784_v36 = vshll.u32 %v10427_v25, %v2769_v24  ;;  %v5373_v46 = vadd.s32 4294967169, %v2863_v48 }
 0x42a   : > { %v2773_v1 = vshrl.u32 %v10432_v33, %v2770_v35  ;;  %v2776_v22 = vshrl.u32 %v10416_v52, %v2770_v35  ;;  %v2779_v28 = vshrl.u32 %v10426_v13, %v2770_v35  ;;  %v2782_v54 = vshrl.u32 %v10427_v25, %v2770_v35 }
 0x42b   : > { %v2785_v50 = vshrl.u32 %v10506_v19, %v2770_v35  ;;  %v8155_v57 = vshrl.u32 %v2608_v31, 30  ;;  %v2706_v16 = vmul.u32 %v8101_v29, %v2690_v55  ;;  %v2763_v47 = vor.u32 8388608, %v2762_v49 }
 0x42c   : > { %v2774_v61 = vor.u32 %v2773_v1, %v2772_v44  ;;  %v2777_v38 = vor.u32 %v2776_v22, %v2775_v40  ;;  %v2780_v15 = vor.u32 %v2779_v28, %v2778_v34  ;;  %v2783_v0 = vor.u32 %v2782_v54, %v2781_v10 }
 0x42d   : > { %v2710_v8 = vsel %vm2708_vm9, %v2709_v45, %v8110_v5  ;;  %v2786_v6 = vor.u32 %v2785_v50, %v2784_v36  ;;  %vm2787_vm10 = vcmp.lt.s32.totalorder %v2768_v56, 1  ;;  %v10363_v24 = vand.u32 2147483647, %v8105_v51 }
 0x42e   : > { %vm2789_vm4 = vcmp.lt.s32.totalorder %v2768_v56, 3  ;;  %vm2790_vm12 = vcmp.lt.s32.totalorder %v2768_v56, 4  ;;  %v2795_v48 = vsel %vm2787_vm10, %v2774_v61, %v2777_v38  ;;  %v2869_v44 = vadd.s32 1, %v5373_v46 }
 0x42f   : > { %v2792_v31 = vsel %vm2790_vm12, %v2780_v15, 2102212464  ;;  %v2796_v40 = vsel %vm2790_vm12, %v2783_v0, 920167782  ;;  %v2799_v29 = vsel %vm2787_vm10, %v2777_v38, %v2780_v15  ;;  %v2800_v55 = vsel %vm2790_vm12, %v2786_v6, 1326507024 }
 0x430   : > { %v8165_v49 = vadd.s32 %v2710_v8, %v2706_v16  ;;  %v2771_v1 = vshrl.u32 %v10436_v60, %v2770_v35  ;;  %vm2788_vm14 = vcmp.lt.s32.totalorder %v2768_v56, 2  ;;  %v2797_v5 = vsel %vm2789_vm4, %v2780_v15, %v2796_v40 }
 0x431   : > { %v5358_v45 = vmin.u32 %v2509_v2, %v8121_v27  ;;  %v2798_v22 = vsel %vm2788_vm14, %v2795_v48, %v2797_v5  ;;  %v2801_v34 = vsel %vm2789_vm4, %v2783_v0, %v2800_v55  ;;  %v2803_v28 = vshll.u32 %v2763_v47, 8 }
 0x432   : > { %v2791_v10 = vsel %vm2787_vm10, %v2771_v1, %v2774_v61  ;;  %v2793_v54 = vsel %vm2789_vm4, %v2777_v38, %v2792_v31  ;;  %v2802_v6 = vsel %vm2788_vm14, %v2799_v29, %v2801_v34  ;;  %vm2870_vm0 = vcmp.gt.s32.totalorder %v2869_v44, 0 }
 0x433   : > { %v2610_v36 = vshll.u32 %v8155_v57, 30  ;;  %v8176_v35 = vmul.u32.u64.low %v2803_v28, %v2802_v6  ;;  %v8177_v46 = vmul.u32.u64.high %v2803_v28, %v2802_v6, %v8176_v35  ;;  %v2871_v15 = vsel %vm2870_vm0, %v2869_v44, 0 }
 0x434   : > { %v2712_v2 = vadd.s32 536870912, %v8165_v49  ;;  %v8180_v50 = vmul.u32.u64.low %v2803_v28, %v2798_v22  ;;  %v8181_v16 = vmul.u32.u64.high %v2803_v28, %v2798_v22, %v8180_v50  ;;  %v2866_v61 = vand.u32 8388607, %v10363_v24 }
 0x435   : > { %v2794_v38 = vsel %vm2788_vm14, %v2791_v10, %v2793_v54  ;;  %v2873_v47 = vand.u32 31, %v2871_v15  ;;  %v8189_v0 = vadd.s32 %v7884_v26, %v7889_v23  ;;  %v8192_v48 = vadd.s32 127, %v2415_v41  ;;  %v2334_v10 = vpop.f32.mrf.mxu1 }
 0x436   : > { %v2511_v44 = vclz %v5358_v45  ;;  %v8195_v31 = vsub.s32 %v8123_v11, %v2610_v36  ;;  %vm2812_vm6 = vc.u32 %v8177_v46, %v8180_v50  ;;  %v8199_v29 = vshrl.u32 %v2712_v2, 30 }
 0x437   : > { %v2874_v40 = vsub.s32 32, %v2873_v47  ;;  %v2810_v56 = vmul.u32 %v2803_v28, %v2794_v38  ;;  %v2813_v55 = vadd.s32 1, %v8181_v16  ;;  %v2867_v1 = vor.u32 8388608, %v2866_v61 }
 0x438   : > { %v2872_v26 = vshrl.u32 %v2871_v15, 5  ;;  %v2876_v23 = vshll.u32 %v10436_v60, %v2873_v47  ;;  %v2879_v45 = vshll.u32 %v10432_v33, %v2873_v47  ;;  %v2882_v22 = vshll.u32 %v10416_v52, %v2873_v47 }
 0x439   : > { %v2877_v41 = vshrl.u32 %v10432_v33, %v2874_v40  ;;  %v2880_v5 = vshrl.u32 %v10416_v52, %v2874_v40  ;;  %v2814_v11 = vsel %vm2812_vm6, %v2813_v55, %v8181_v16  ;;  %v2883_v34 = vshrl.u32 %v10426_v13, %v2874_v40 }
 0x43a   : > { %v5359_v28 = vadd.s32 4294967294, %v2511_v44  ;;  %v2613_v54 = vsub.s32 0, %v8195_v31  ;;  %v2815_v6 = vadd.s32 %v2814_v11, %v2810_v56  ;;  %v2885_v2 = vshll.u32 %v10426_v13, %v2873_v47  ;;  %v2336_v11 = vpop.f32.mrf.mxu1 }
 0x43b   : > { %v2878_v36 = vor.u32 %v2877_v41, %v2876_v23  ;;  %v2881_v35 = vor.u32 %v2880_v5, %v2879_v45  ;;  %v2884_v15 = vor.u32 %v2883_v34, %v2882_v22  ;;  %v2886_v61 = vshrl.u32 %v10427_v25, %v2874_v40 }
 0x43c   : > { %v2816_v38 = vadd.s32 536870912, %v2815_v6  ;;  %v2888_v16 = vshll.u32 %v10427_v25, %v2873_v47  ;;  %v2889_v55 = vshrl.u32 %v10506_v19, %v2874_v40  ;;  %v8215_v43 = vadd.f32 %v2334_v10, %v7842_v32 }
 0x43d   : > { %v2714_v44 = vshll.u32 %v8199_v29, 30  ;;  %v2887_v24 = vor.u32 %v2886_v61, %v2885_v2  ;;  %vm2891_vm1 = vcmp.lt.s32.totalorder %v2872_v26, 1  ;;  %v2907_v56 = vshll.u32 %v2867_v1, 8 }
 0x43e   : > { %v8218_v23 = vshrl.u32 %v2816_v38, 30  ;;  %v2875_v41 = vshrl.u32 %v10436_v60, %v2874_v40  ;;  %v2890_v5 = vor.u32 %v2889_v55, %v2888_v16  ;;  %vm2894_vm11 = vcmp.lt.s32.totalorder %v2872_v26, 4 }
 0x43f   : > { %vm2893_vm15 = vcmp.lt.s32.totalorder %v2872_v26, 3  ;;  %v2896_v45 = vsel %vm2894_vm11, %v2884_v15, 2102212464  ;;  %v2899_v47 = vsel %vm2891_vm1, %v2878_v36, %v2881_v35  ;;  %v2900_v22 = vsel %vm2894_vm11, %v2887_v24, 920167782 }
 0x440   : > { %v2818_v34 = vshll.u32 %v8218_v23, 30  ;;  %vm2892_vm2 = vcmp.lt.s32.totalorder %v2872_v26, 2  ;;  %v2901_v10 = vsel %vm2893_vm15, %v2884_v15, %v2900_v22  ;;  %v2903_v12 = vsel %vm2891_vm1, %v2881_v35, %v2884_v15 }
 0x441   : > { %v2895_v17 = vsel %vm2891_vm1, %v2875_v41, %v2878_v36  ;;  %v2902_v2 = vsel %vm2892_vm2, %v2899_v47, %v2901_v10  ;;  %v2904_v1 = vsel %vm2894_vm11, %v2890_v5, 1326507024  ;;  %v8224_v61 = vadd.f32 %v2336_v11, %v7842_v32 }
 0x442   : > { %v2897_v40 = vsel %vm2893_vm15, %v2881_v35, %v2896_v45  ;;  %v2905_v38 = vsel %vm2893_vm15, %v2887_v24, %v2904_v1  ;;  %v8226_v16 = vmul.u32.u64.low %v2907_v56, %v2902_v2  ;;  %v8227_v55 = vmul.u32.u64.high %v2907_v56, %v2902_v2, %v8226_v16 }
 0x443   : > { %v8231_v9 = vsub.s32 %v8165_v49, %v2714_v44  ;;  %v8233_v8 = vsub.s32 %v2815_v6, %v2818_v34  ;;  %v2906_v15 = vsel %vm2892_vm2, %v2903_v12, %v2905_v38  ;;  %v2966_v36 = vand.u32 2139095040, %v8215_v43 }
 0x444   : > { %v8237_v41 = vmul.u32.u64.low %v2907_v56, %v2906_v15  ;;  %v8238_v5 = vmul.u32.u64.high %v2907_v56, %v2906_v15, %v8237_v41  ;;  %v10509_v32 = vsub.s32 32, %v8128_v21  ;;  %v2898_v35 = vsel %vm2892_vm2, %v2895_v17, %v2897_v40 }
 0x445   : > { %v2967_v11 = vshrl.u32 %v2966_v36, 23  ;;  %v3070_v45 = vand.u32 2139095040, %v8224_v61  ;;  %v2412_v49 = vshll.u32 %v8009_v14, %v8128_v21  ;;  %v2417_v6 = vshll.u32 %v8192_v48, 23 }
 0x446   : > { %v2413_v24 = vshrl.u32 %v8189_v0, %v10509_v32  ;;  %v5362_v12 = vmin.u32 %v2613_v54, %v8195_v31  ;;  %v2917_v44 = vadd.s32 1, %v8227_v55  ;;  %vm5360_vm3 = vcmp.lt.s32.totalorder %v5359_v28, 0 }
 0x447   : > { %v2717_v47 = vsub.s32 0, %v8231_v9  ;;  %v2821_v22 = vsub.s32 0, %v8233_v8  ;;  %v5377_v0 = vadd.s32 4294967169, %v2967_v11  ;;  %v2914_v26 = vmul.u32 %v2907_v56, %v2898_v35 }
 0x448   : > { %vm2916_vm7 = vc.u32 %v8238_v5, %v8226_v16  ;;  %v3071_v17 = vshrl.u32 %v3070_v45, 23  ;;  %v8254_v34 = vor.u32 %v2413_v24, %v2412_v49  ;;  %v8257_v48 = vor.u32 4788187, %v2417_v6 }
 0x449   : > { %v2918_v14 = vsel %vm2916_vm7, %v2917_v44, %v8227_v55  ;;  %v2973_v21 = vadd.s32 1, %v5377_v0  ;;  %v8259_v54 = vsel %vm5360_vm3, 0, %v5359_v28  ;;  %v2615_v10 = vclz %v5362_v12 }
 0x44a   : > { %v2919_v2 = vadd.s32 %v2918_v14, %v2914_v26  ;;  %v5366_v1 = vmin.u32 %v2717_v47, %v8231_v9  ;;  %v5370_v40 = vmin.u32 %v2821_v22, %v8233_v8  ;;  %v10367_v56 = vand.u32 2147483647, %v8215_v43 }
 0x44b   : > { %vm2974_vm5 = vcmp.gt.s32.totalorder %v2973_v21, 0  ;;  %v5381_v36 = vadd.s32 4294967169, %v3071_v17  ;;  %v8267_v55 = vadd.s32 %v7955_v3, %v7953_v58  ;;  %v8271_v35 = vadd.s32 4294967294, %v2615_v10 }
 0x44c   : > { %v2920_v38 = vadd.s32 536870912, %v2919_v2  ;;  %v2975_v15 = vsel %vm2974_vm5, %v2973_v21, 0  ;;  %v2719_v45 = vclz %v5366_v1  ;;  %v2823_v49 = vclz %v5370_v40 }
 0x44d   : > { %v2977_v28 = vand.u32 31, %v2975_v15  ;;  %v2970_v6 = vand.u32 8388607, %v10367_v56  ;;  %v3077_v47 = vadd.s32 1, %v5381_v36  ;;  %v2976_v21 = vshrl.u32 %v2975_v15, 5 }
 0x44e   : > { %v8273_v11 = vshrl.u32 %v2920_v38, 30  ;;  %v5367_v40 = vadd.s32 4294967294, %v2719_v45  ;;  %v10373_v42 = vand.u32 2147483647, %v8224_v61  ;;  %v5371_v30 = vadd.s32 4294967294, %v2823_v49 }
 0x44f   : > { %v2978_v12 = vsub.s32 32, %v2977_v28  ;;  %v2980_v58 = vshll.u32 %v10436_v60, %v2977_v28  ;;  %v2983_v3 = vshll.u32 %v10432_v33, %v2977_v28  ;;  %v2986_v26 = vshll.u32 %v10416_v52, %v2977_v28 }
 0x450   : > { %v2922_v44 = vshll.u32 %v8273_v11, 30  ;;  %v2989_v10 = vshll.u32 %v10426_v13, %v2977_v28  ;;  %v2971_v41 = vor.u32 8388608, %v2970_v6  ;;  %v2992_v59 = vshll.u32 %v10427_v25, %v2977_v28 }
 0x451   : > { %v2981_v22 = vshrl.u32 %v10432_v33, %v2978_v12  ;;  %v2984_v0 = vshrl.u32 %v10416_v52, %v2978_v12  ;;  %v2987_v17 = vshrl.u32 %v10426_v13, %v2978_v12  ;;  %v2990_v1 = vshrl.u32 %v10427_v25, %v2978_v12 }
 0x452   : > { %v8284_v14 = vsub.s32 %v2919_v2, %v2922_v44  ;;  %v2993_v2 = vshrl.u32 %v10506_v19, %v2978_v12  ;;  %vm3078_vm8 = vcmp.gt.s32.totalorder %v3077_v47, 0  ;;  %vm2995_vm9 = vcmp.lt.s32.totalorder %v2976_v21, 1 }
 0x453   : > { %v2982_v38 = vor.u32 %v2981_v22, %v2980_v58  ;;  %v2985_v56 = vor.u32 %v2984_v0, %v2983_v3  ;;  %v2988_v24 = vor.u32 %v2987_v17, %v2986_v26  ;;  %v2991_v32 = vor.u32 %v2990_v1, %v2989_v10 }
 0x454   : > { %v2925_v36 = vsub.s32 0, %v8284_v14  ;;  %vm2997_vm10 = vcmp.lt.s32.totalorder %v2976_v21, 3  ;;  %vm2998_vm4 = vcmp.lt.s32.totalorder %v2976_v21, 4  ;;  %v2994_v45 = vor.u32 %v2993_v2, %v2992_v59 }
 0x455   : > { %v3000_v44 = vsel %vm2998_vm4, %v2988_v24, 2102212464  ;;  %v3003_v58 = vsel %vm2995_vm9, %v2982_v38, %v2985_v56  ;;  %v3004_v3 = vsel %vm2998_vm4, %v2991_v32, 920167782  ;;  %v2979_v22 = vshrl.u32 %v10436_v60, %v2978_v12 }
 0x456   : > { %v5374_v15 = vmin.u32 %v2925_v36, %v8284_v14  ;;  %vm2996_vm12 = vcmp.lt.s32.totalorder %v2976_v21, 2  ;;  %v3005_v49 = vsel %vm2997_vm10, %v2988_v24, %v3004_v3  ;;  %v3007_v0 = vsel %vm2995_vm9, %v2985_v56, %v2988_v24 }
 0x457   : > { %v3006_v28 = vsel %vm2996_vm12, %v3003_v58, %v3005_v49  ;;  %v3008_v26 = vsel %vm2998_vm4, %v2994_v45, 1326507024  ;;  %v3011_v17 = vshll.u32 %v2971_v41, 8  ;;  %vm5372_vm14 = vcmp.lt.s32.totalorder %v5371_v30, 0 }
 0x458   : > { %v2927_v6 = vclz %v5374_v15  ;;  %v2999_v10 = vsel %vm2995_vm9, %v2979_v22, %v2982_v38  ;;  %v3001_v59 = vsel %vm2997_vm10, %v2985_v56, %v3000_v44  ;;  %v3009_v1 = vsel %vm2997_vm10, %v2991_v32, %v3008_v26 }
 0x459   : > { %v3010_v36 = vsel %vm2996_vm12, %v3007_v0, %v3009_v1  ;;  %v8302_v2 = vmul.u32.u64.low %v3011_v17, %v3006_v28  ;;  %v8303_v12 = vmul.u32.u64.high %v3011_v17, %v3006_v28, %v8302_v2  ;;  %v3079_v15 = vsel %vm3078_vm8, %v3077_v47, 0 }
 0x45a   : > { %vm5364_vm0 = vcmp.lt.s32.totalorder %v8271_v35, 0  ;;  %v5375_v24 = vadd.s32 4294967294, %v2927_v6  ;;  %v8308_v45 = vmul.u32.u64.low %v3011_v17, %v3010_v36  ;;  %v8309_v41 = vmul.u32.u64.high %v3011_v17, %v3010_v36, %v8308_v45 }
 0x45b   : > { %vm5368_vm6 = vcmp.lt.s32.totalorder %v5367_v40, 0  ;;  %v3002_v38 = vsel %vm2996_vm12, %v2999_v10, %v3001_v59  ;;  %v3074_v56 = vand.u32 8388607, %v10373_v42  ;;  %v3081_v32 = vand.u32 31, %v3079_v15 }
 0x45c   : > { %v10510_v44 = vand.u32 2147483647, %v8257_v48  ;;  %v10511_v58 = vcvt.s32.f32 %v8254_v34  ;;  %v8323_v6 = vadd.s32 %v8033_v20, %v8061_v62  ;;  %v8326_v22 = vsel %vm5372_vm14, 0, %v5371_v30 }
 0x45d   : > { %v10512_v21 = vsub.s32 4294967266, %v8259_v54  ;;  %v8333_v28 = vsel %vm5364_vm0, 0, %v8271_v35  ;;  %v3021_v34 = vadd.s32 1, %v8303_v12  ;;  %v3082_v48 = vsub.s32 32, %v3081_v32 }
 0x45e   : > { %v8318_v3 = vmul.f32 %v10511_v58, %v10510_v44  ;;  %v8336_v0 = vsel %vm5368_vm6, 0, %v5367_v40  ;;  %vm5376_vm1 = vcmp.lt.s32.totalorder %v5375_v24, 0  ;;  %v3018_v26 = vmul.u32 %v3011_v17, %v3002_v38 }
 0x45f   : > { %v8330_v49 = vadd.s32 127, %v10512_v21  ;;  %vm3020_vm11 = vc.u32 %v8309_v41, %v8302_v2  ;;  %v2831_v30 = vsub.s32 4294967266, %v8326_v22  ;;  %v3075_v62 = vor.u32 8388608, %v3074_v56 }
 0x460   : > { %v3022_v20 = vsel %vm3020_vm11, %v3021_v34, %v8303_v12  ;;  %v3085_v10 = vshrl.u32 %v10432_v33, %v3082_v48  ;;  %v3084_v35 = vshll.u32 %v10436_v60, %v3081_v32  ;;  %v3087_v1 = vshll.u32 %v10432_v33, %v3081_v32 }
 0x461   : > { %v3023_v59 = vadd.s32 %v3022_v20, %v3018_v26  ;;  %v3088_v40 = vshrl.u32 %v10416_v52, %v3082_v48  ;;  %v8346_v36 = vsel %vm5376_vm1, 0, %v5375_v24  ;;  %v3080_v17 = vshrl.u32 %v3079_v15, 5 }
 0x462   : > { %v3090_v45 = vshll.u32 %v10416_v52, %v3081_v32  ;;  %v3091_v38 = vshrl.u32 %v10426_v13, %v3082_v48  ;;  %v3086_v58 = vor.u32 %v3085_v10, %v3084_v35  ;;  %v3093_v56 = vshll.u32 %v10426_v13, %v3081_v32 }
 0x463   : > { %v3024_v44 = vadd.s32 536870912, %v3023_v59  ;;  %v3089_v12 = vor.u32 %v3088_v40, %v3087_v1  ;;  %v3094_v34 = vshrl.u32 %v10427_v25, %v3082_v48  ;;  %v3096_v26 = vshll.u32 %v10427_v25, %v3081_v32 }
 0x464   : > { %v3092_v21 = vor.u32 %v3091_v38, %v3090_v45  ;;  %v3097_v20 = vshrl.u32 %v10506_v19, %v3082_v48  ;;  %v2727_v24 = vsub.s32 4294967266, %v8336_v0  ;;  %v2811_v15 = vadd.s32 %v8180_v50, %v8177_v46 }
 0x465   : > { %v8357_v42 = vshrl.u32 %v3024_v44, 30  ;;  %v3115_v47 = vshll.u32 %v3075_v62, 8  ;;  %v2832_v52 = vadd.s32 127, %v2831_v30  ;;  %v2935_v10 = vsub.s32 4294967266, %v8346_v36 }
 0x466   : > { %v3095_v35 = vor.u32 %v3094_v34, %v3093_v56  ;;  %v3098_v1 = vor.u32 %v3097_v20, %v3096_v26  ;;  %v3083_v45 = vshrl.u32 %v10436_v60, %v3082_v48  ;;  %vm3099_vm15 = vcmp.lt.s32.totalorder %v3080_v17, 1 }
 0x467   : > { %v3026_v40 = vshll.u32 %v8357_v42, 30  ;;  %vm3102_vm2 = vcmp.lt.s32.totalorder %v3080_v17, 4  ;;  %vm3101_vm3 = vcmp.lt.s32.totalorder %v3080_v17, 3  ;;  %v3107_v38 = vsel %vm3099_vm15, %v3086_v58, %v3089_v12 }
 0x468   : > { %v3104_v32 = vsel %vm3102_vm2, %v3092_v21, 2102212464  ;;  %v3108_v19 = vsel %vm3102_vm2, %v3095_v35, 920167782  ;;  %vm3100_vm7 = vcmp.lt.s32.totalorder %v3080_v17, 2  ;;  %v3111_v50 = vsel %vm3099_vm15, %v3089_v12, %v3092_v21 }
 0x469   : > { %v8362_v25 = vsub.s32 %v3023_v59, %v3026_v40  ;;  %v3109_v46 = vsel %vm3101_vm3, %v3092_v21, %v3108_v19  ;;  %v2827_v30 = vsub.s32 32, %v8326_v22  ;;  %v2833_v62 = vshll.u32 %v2832_v52, 23 }
 0x46a   : > { %v3110_v44 = vsel %vm3100_vm7, %v3107_v38, %v3109_v46  ;;  %v3112_v56 = vsel %vm3102_vm2, %v3098_v1, 1326507024  ;;  %v3103_v48 = vsel %vm3099_vm15, %v3083_v45, %v3086_v58  ;;  %v3105_v26 = vsel %vm3101_vm3, %v3089_v12, %v3104_v32 }
 0x46b   : > { %v3029_v34 = vsub.s32 0, %v8362_v25  ;;  %v3113_v20 = vsel %vm3101_vm3, %v3095_v35, %v3112_v56  ;;  %v2936_v13 = vadd.s32 127, %v2935_v10  ;;  %v2623_v19 = vsub.s32 4294967266, %v8333_v28 }
 0x46c   : > { %v3114_v33 = vsel %vm3100_vm7, %v3111_v50, %v3113_v20  ;;  %v8368_v60 = vmul.u32.u64.low %v3115_v47, %v3110_v44  ;;  %v8369_v59 = vmul.u32.u64.high %v3115_v47, %v3110_v44, %v8368_v60  ;;  %v2521_v1 = vshll.u32 %v8330_v49, 23 }
 0x46d   : > { %v5378_v21 = vmin.u32 %v3029_v34, %v8362_v25  ;;  %v8374_v52 = vmul.u32.u64.low %v3115_v47, %v3114_v33  ;;  %v8375_v40 = vmul.u32.u64.high %v3115_v47, %v3114_v33, %v8374_v52  ;;  %v2829_v38 = vshrl.u32 %v2811_v15, %v2827_v30 }
 0x46e   : > { %v2931_v58 = vsub.s32 32, %v8346_v36  ;;  %v3106_v12 = vsel %vm3100_vm7, %v3103_v48, %v3105_v26  ;;  %v2707_v10 = vadd.s32 %v8109_v39, %v8116_v63  ;;  %v2728_v35 = vadd.s32 127, %v2727_v24 }
 0x46f   : > { %v2915_v45 = vadd.s32 %v8226_v16, %v8238_v5  ;;  %v3031_v32 = vclz %v5378_v21  ;;  %v2828_v46 = vshll.u32 %v8233_v8, %v8326_v22  ;;  %v2834_v33 = vor.u32 4788187, %v2833_v62 }
 0x470   : > { %v2937_v50 = vshll.u32 %v2936_v13, 23  ;;  %v3125_v44 = vadd.s32 1, %v8369_v59  ;;  %v2624_v15 = vadd.s32 127, %v2623_v19  ;;  %v3122_v56 = vmul.u32 %v3115_v47, %v3106_v12 }
 0x471   : > { %v5379_v30 = vadd.s32 4294967294, %v3031_v32  ;;  %vm3124_vm5 = vc.u32 %v8375_v40, %v8368_v60  ;;  %v2723_v39 = vsub.s32 32, %v8336_v0  ;;  %v2830_v63 = vor.u32 %v2829_v38, %v2828_v46 }
 0x472   : > { %v2933_v17 = vshrl.u32 %v2915_v45, %v2931_v58  ;;  %v3126_v16 = vsel %vm3124_vm5, %v3125_v44, %v8369_v59  ;;  %v2619_v5 = vsub.s32 32, %v8333_v28  ;;  %v2729_v24 = vshll.u32 %v2728_v35, 23 }
 0x473   : > { %vm5380_vm8 = vcmp.lt.s32.totalorder %v5379_v30, 0  ;;  %v3127_v8 = vadd.s32 %v3126_v16, %v3122_v56  ;;  %v2835_v13 = vand.u32 2147483647, %v2834_v33  ;;  %v2932_v22 = vshll.u32 %v8284_v14, %v8346_v36 }
 0x474   : > { %v2938_v62 = vor.u32 4788187, %v2937_v50  ;;  %v3034_v47 = vsel %vm5380_vm8, 0, %v5379_v30  ;;  %vm2341_vm9 = vcmp.lt.s32.totalorder %v7836_v37, 0  ;;  %v2625_v34 = vshll.u32 %v2624_v15, 23 }
 0x475   : > { %v3035_v48 = vsub.s32 32, %v3034_v47  ;;  %v3039_v26 = vsub.s32 4294967266, %v3034_v47  ;;  %v3128_v20 = vadd.s32 536870912, %v3127_v8  ;;  %v2725_v19 = vshrl.u32 %v2707_v10, %v2723_v39 }
 0x476   : > { %v2837_v21 = vcvt.s32.f32 %v2830_v63  ;;  %v2934_v59 = vor.u32 %v2933_v17, %v2932_v22  ;;  %v3019_v52 = vadd.s32 %v8302_v2, %v8309_v41  ;;  %v2621_v38 = vshrl.u32 %v8323_v6, %v2619_v5 }
 0x477   : > { %v2724_v58 = vshll.u32 %v8231_v9, %v8336_v0  ;;  %v3040_v14 = vadd.s32 127, %v3039_v26  ;;  %v8400_v36 = vshrl.u32 %v3128_v20, 30  ;;  %v2730_v12 = vor.u32 4788187, %v2729_v24 }
 0x478   : > { %v2838_v35 = vmul.f32 %v2837_v21, %v2835_v13  ;;  %v2939_v45 = vand.u32 2147483647, %v2938_v62  ;;  %v3037_v32 = vshrl.u32 %v3019_v52, %v3035_v48  ;;  %v2620_v10 = vshll.u32 %v8195_v31, %v8333_v28 }
 0x479   : > { %v2626_v46 = vor.u32 4788187, %v2625_v34  ;;  %v3041_v33 = vshll.u32 %v3040_v14, 23  ;;  %v3130_v50 = vshll.u32 %v8400_v36, 30  ;;  %v2423_v2 = vxor.u32 2147483648, %v8318_v3 }
 0x47a   : > { %v2726_v41 = vor.u32 %v2725_v19, %v2724_v58  ;;  %v2941_v6 = vcvt.s32.f32 %v2934_v59  ;;  %v3036_v9 = vshll.u32 %v8362_v25, %v3034_v47  ;;  %v10513_v0 = vsub.s32 32, %v8259_v54 }
 0x47b   : > { %v2622_v15 = vor.u32 %v2621_v38, %v2620_v10  ;;  %v3042_v30 = vor.u32 4788187, %v3041_v33  ;;  %v8410_v56 = vsub.s32 %v3127_v8, %v3130_v50  ;;  %v2731_v39 = vand.u32 2147483647, %v2730_v12 }
 0x47c   : > { %v2517_v44 = vshrl.u32 %v8267_v55, %v10513_v0  ;;  %v2839_v31 = vxor.u32 2147483648, %v2838_v35  ;;  %v2942_v28 = vmul.f32 %v2941_v6, %v2939_v45  ;;  %v3038_v63 = vor.u32 %v3037_v32, %v3036_v9 }
 0x47d   : > { %v2516_v17 = vshll.u32 %v8121_v27, %v8259_v54  ;;  %v2522_v16 = vor.u32 4788187, %v2521_v1  ;;  %v2627_v5 = vand.u32 2147483647, %v2626_v46  ;;  %v3133_v25 = vsub.s32 0, %v8410_v56 }
 0x47e   : > { %v10514_v24 = vand.u32 2147483647, %v7836_v37  ;;  %v2424_v8 = vsel %vm2341_vm9, %v2423_v2, %v8318_v3  ;;  %v2733_v13 = vcvt.s32.f32 %v2726_v41  ;;  %v3043_v22 = vand.u32 2147483647, %v3042_v30 }
 0x47f   : > { %v2518_v62 = vor.u32 %v2517_v44, %v2516_v17  ;;  %v2629_v27 = vcvt.s32.f32 %v2622_v15  ;;  %vm2757_vm4 = vcmp.lt.s32.totalorder %v8052_v7, 0  ;;  %v5382_v54 = vmin.u32 %v3133_v25, %v8410_v56 }
 0x480   : > { %vm8419_vm10 = vcmp.le.f32.partialorder %v10514_v24, 0.7853982  ;;  %v2734_v49 = vmul.f32 %v2733_v13, %v2731_v39  ;;  %v2840_v1 = vsel %vm2757_vm4, %v2839_v31, %v2838_v35  ;;  %v2943_v47 = vxor.u32 2147483648, %v2942_v28 }
 0x481   : > { %v3045_v34 = vcvt.s32.f32 %v3038_v63  ;;  %v2427_v48 = vsel %vm8419_vm10, %v7836_v37, %v2424_v8  ;;  %v2523_v26 = vand.u32 2147483647, %v2522_v16  ;;  %v2630_v3 = vmul.f32 %v2629_v27, %v2627_v5 }
 0x482   : > { %v3135_v20 = vclz %v5382_v54  ;;  %vm2549_vm12 = vcmp.lt.s32.totalorder %v7847_v53, 0  ;;  %v10517_v19 = vand.u32 2147483647, %v8052_v7  ;;  %v2525_v52 = vcvt.s32.f32 %v2518_v62 }
 0x483   : > { %v3046_v59 = vmul.f32 %v3045_v34, %v3043_v22  ;;  %vm2861_vm0 = vcmp.lt.s32.totalorder %v8105_v51, 0  ;;  %5760 = vcosq.f32 %v2427_v48  ;;  %vm2653_vm6 = vcmp.lt.s32.totalorder %v7901_v18, 0 }
 0x484   : > { %vm8436_vm14 = vcmp.le.f32.partialorder %v10517_v19, 0.7853982  ;;  %v5383_v58 = vadd.s32 4294967294, %v3135_v20  ;;  %v2735_v14 = vxor.u32 2147483648, %v2734_v49  ;;  %v2944_v12 = vsel %vm2861_vm0, %v2943_v47, %v2942_v28 }
 0x485   : > { %v2843_v38 = vsel %vm8436_vm14, %v8052_v7, %v2840_v1  ;;  %vm2445_vm1 = vcmp.lt.s32.totalorder %v7839_v4, 0  ;;  %v2526_v35 = vmul.f32 %v2525_v52, %v2523_v26  ;;  %v10520_v45 = vand.u32 2147483647, %v7847_v53 }
 0x486   : > { %v2631_v10 = vxor.u32 2147483648, %v2630_v3  ;;  %vm2965_vm15 = vcmp.lt.s32.totalorder %v8215_v43, 0  ;;  %vm5384_vm2 = vcmp.lt.s32.totalorder %v5383_v58, 0  ;;  %5762 = vcosq.f32 %v2843_v38 }
 0x487   : > { %vm8450_vm11 = vcmp.le.f32.partialorder %v10520_v45, 0.7853982  ;;  %v3047_v46 = vxor.u32 2147483648, %v3046_v59  ;;  %v3138_v33 = vsel %vm5384_vm2, 0, %v5383_v58  ;;  %v10523_v50 = vand.u32 2147483647, %v8105_v51 }
 0x488   : > { %v3123_v41 = vadd.s32 %v8368_v60, %v8375_v40  ;;  %v3139_v6 = vsub.s32 32, %v3138_v33  ;;  %v3143_v9 = vsub.s32 4294967266, %v3138_v33  ;;  %v2736_v44 = vsel %vm2653_vm6, %v2735_v14, %v2734_v49 }
 0x489   : > { %vm8457_vm3 = vcmp.le.f32.partialorder %v10523_v50, 0.7853982  ;;  %5764 = vsinq.f32 %v2843_v38  ;;  %v3049_v15 = vsub.s32 4, %v8357_v42  ;;  %v2841_v30 = vsub.s32 4, %v8218_v23 }
 0x48a   : > { %v2947_v0 = vsel %vm8457_vm3, %v8105_v51, %v2944_v12  ;;  %v3140_v39 = vshll.u32 %v8410_v56, %v3138_v33  ;;  %v3141_v31 = vshrl.u32 %v3123_v41, %v3139_v6  ;;  %v3144_v28 = vadd.s32 127, %v3143_v9 }
 0x48b   : > { %v2945_v60 = vsub.s32 4, %v8273_v11  ;;  %v2527_v40 = vxor.u32 2147483648, %v2526_v35  ;;  %v2632_v63 = vsel %vm2549_vm12, %v2631_v10, %v2630_v3  ;;  %v3048_v17 = vsel %vm2965_vm15, %v3047_v46, %v3046_v59 }
 0x48c   : > { %5766 = vcosq.f32 %v2947_v0  ;;  %v3142_v16 = vor.u32 %v3141_v31, %v3140_v39  ;;  %v3145_v5 = vshll.u32 %v3144_v28, 23  ;;  %v10526_v25 = vand.u32 2147483647, %v7901_v18  ;;  %v10539_v39 = vld [vmem:[#allocation15_spill] sm:$0xff] }
 0x48d   : > { %5768 = vsinq.f32 %v2947_v0  ;;  %v10529_v56 = vand.u32 2147483647, %v8215_v43  ;;  %v3050_v13 = vsel %vm2965_vm15, %v3049_v15, %v8357_v42  ;;  %v2946_v54 = vsel %vm2861_vm0, %v2945_v60, %v8273_v11  ;;  %v10538_v0 = vld [vmem:[#allocation10_spill] sm:$0xff] }
 0x48e   : > { %vm8478_vm7 = vcmp.le.f32.partialorder %v10526_v25, 0.7853982  ;;  %5770 = vsinq.f32 %v2427_v48  ;;  %v3146_v27 = vor.u32 4788187, %v3145_v5  ;;  %v2842_v49 = vsel %vm2757_vm4, %v2841_v30, %v8218_v23 }
 0x48f   : > { %vm8484_vm5 = vcmp.le.f32.partialorder %v10529_v56, 0.7853982  ;;  %v2739_v22 = vsel %vm8478_vm7, %v7901_v18, %v2736_v44  ;;  %v2528_v42 = vsel %vm2445_vm1, %v2527_v40, %v2526_v35  ;;  %v2635_v1 = vsel %vm8450_vm11, %v7847_v53, %v2632_v63 }
 0x490   : > { %v3051_v62 = vsel %vm8484_vm5, %v8215_v43, %v3048_v17  ;;  %vm3069_vm8 = vcmp.lt.s32.totalorder %v8224_v61, 0  ;;  %v3153_v47 = vsub.s32 4, %v8400_v36  ;;  %v3147_v34 = vand.u32 2147483647, %v3146_v27  ;;  %v8517_v20 = vpop.eup %5760 }
 0x491   : > { %v3149_v48 = vcvt.s32.f32 %v3142_v16  ;;  %v3052_v11 = vsel %vm8484_vm5, 0, %v3050_v13  ;;  %5772 = vcosq.f32 %v2739_v22  ;;  %v2948_v23 = vsel %vm8457_vm3, 0, %v2946_v54 }
 0x492   : > { %5774 = vcosq.f32 %v3051_v62  ;;  %v2844_v26 = vsel %vm8436_vm14, 0, %v2842_v49  ;;  %v2737_v3 = vsub.s32 4, %v8199_v29  ;;  %v2633_v59 = vsub.s32 4, %v8155_v57 }
 0x493   : > { %5776 = vsinq.f32 %v3051_v62  ;;  %v3150_v19 = vmul.f32 %v3149_v48, %v3147_v34  ;;  %v10532_v52 = vand.u32 2147483647, %v7839_v4  ;;  %v3154_v21 = vsel %vm3069_vm8, %v3153_v47, %v8400_v36  ;;  %v5763_v14 = vpop.eup %5762 }
 0x494   : > { %5778 = vsinq.f32 %v2635_v1  ;;  %v10535_v35 = vand.u32 2147483647, %v8224_v61  ;;  %v3056_v10 = vadd.s32 3, %v3052_v11  ;;  %v2952_v46 = vadd.s32 3, %v2948_v23 }
 0x495   : > { %vm8522_vm4 = vcmp.le.f32.partialorder %v10532_v52, 0.7853982  ;;  %5780 = vcosq.f32 %v2635_v1  ;;  %v3151_v12 = vxor.u32 2147483648, %v3150_v19  ;;  %v2848_v33 = vadd.s32 3, %v2844_v26 }
 0x496   : > { %v2531_v58 = vsel %vm8522_vm4, %v7839_v4, %v2528_v42  ;;  %vm8534_vm14 = vcmp.le.f32.partialorder %v10535_v35, 0.7853982  ;;  %v2738_v36 = vsel %vm2653_vm6, %v2737_v3, %v8199_v29  ;;  %5782 = vsinq.f32 %v2739_v22  ;;  %v5765_v50 = vpop.eup %5764 }
 0x497   : > { %v3152_v2 = vsel %vm3069_vm8, %v3151_v12, %v3150_v19  ;;  %v3156_v41 = vsel %vm8534_vm14, 0, %v3154_v21  ;;  %v2634_v6 = vsel %vm2549_vm12, %v2633_v59, %v8155_v57  ;;  %5784 = vcosq.f32 %v2531_v58 }
 0x498   : > { %v3155_v9 = vsel %vm8534_vm14, %v8224_v61, %v3152_v2  ;;  %v2529_v44 = vsub.s32 4, %v10538_v0  ;;  %5786 = vsinq.f32 %v2531_v58  ;;  %v8552_v15 = vand.u32 3, %v3056_v10 }
 0x499   : > { %v5767_v29 = vpop.eup %5766  ;;  %5788 = vcosq.f32 %v3155_v9  ;;  %v2740_v30 = vsel %vm8478_vm7, 0, %v2738_v36  ;;  %v2425_v31 = vsub.s32 4, %v10539_v39  ;;  %v3160_v57 = vadd.s32 3, %v3156_v41 }
 0x49a   : > { %v5769_v28 = vpop.eup %5768  ;;  %5790 = vsinq.f32 %v3155_v9  ;;  %v2849_v60 = vand.u32 3, %v2848_v33  ;;  %v2636_v40 = vsel %vm8450_vm11, 0, %v2634_v6  ;;  %v2953_v17 = vand.u32 3, %v2952_v46 }
 0x49b   : > { %v8559_v63 = vpop.eup %5770  ;;  %v2852_v16 = vxor.u32 2147483648, %v5765_v50  ;;  %v2855_v5 = vxor.u32 2147483648, %v5763_v14  ;;  %v2744_v25 = vadd.s32 3, %v2740_v30  ;;  %v2530_v24 = vsel %vm2445_vm1, %v2529_v44, %v10538_v0 }
 0x49c   : > { %v2956_v56 = vxor.u32 2147483648, %v5769_v28  ;;  %v2959_v8 = vxor.u32 2147483648, %v5767_v29  ;;  %v2640_v13 = vadd.s32 3, %v2636_v40  ;;  %v2426_v22 = vsel %vm2341_vm9, %v2425_v31, %v10539_v39 }
 0x49d   : > { %v8569_v32 = vand.u32 3, %v3160_v57  ;;  %vm3059_vm12 = vcmp.eq.s32.totalorder %v8552_v15, 0  ;;  %vm3062_vm0 = vcmp.eq.s32.totalorder %v8552_v15, 2  ;;  %vm2851_vm6 = vcmp.eq.s32.totalorder %v2849_v60, 0 }
 0x49e   : > { %v8567_v62 = vpop.eup %5772  ;;  %vm2854_vm11 = vcmp.eq.s32.totalorder %v2849_v60, 2  ;;  %vm2954_vm15 = vcmp.lt.s32.totalorder %v2953_v17, 2  ;;  %v2853_v54 = vsel %vm2851_vm6, %v5763_v14, %v2852_v16  ;;  %v2532_v42 = vsel %vm8522_vm4, 0, %v2530_v24 }
 0x49f   : > { %v5775_v27 = vpop.eup %5774  ;;  %v2856_v49 = vsel %vm2854_vm11, %v2855_v5, %v5765_v50  ;;  %vm2955_vm1 = vcmp.eq.s32.totalorder %v2953_v17, 0  ;;  %vm2958_vm9 = vcmp.eq.s32.totalorder %v2953_v17, 2  ;;  %v8575_v47 = vand.u32 3, %v2744_v25 }
 0x4a0   : > { %v5777_v1 = vpop.eup %5776  ;;  %v2428_v34 = vsel %vm8419_vm10, 0, %v2426_v22  ;;  %vm3058_vm2 = vcmp.lt.s32.totalorder %v8552_v15, 2  ;;  %v2957_v11 = vsel %vm2955_vm1, %v5767_v29, %v2956_v56  ;;  %v2960_v23 = vsel %vm2958_vm9, %v2959_v8, %v5769_v28 }
 0x4a1   : > { %v5779_v48 = vpop.eup %5778  ;;  %vm2850_vm3 = vcmp.lt.s32.totalorder %v2849_v60, 2  ;;  %v8580_v26 = vand.u32 3, %v2640_v13  ;;  %vm3162_vm7 = vcmp.lt.s32.totalorder %v8569_v32, 2  ;;  %v2751_v59 = vxor.u32 2147483648, %v8567_v62 }
 0x4a2   : > { %v5781_v3 = vpop.eup %5780  ;;  %v2857_v19 = vsel %vm2850_vm3, %v2853_v54, %v2856_v49  ;;  %v2536_v52 = vadd.s32 3, %v2532_v42  ;;  %vm3159_vm5 = vweird.f32 %v8224_v61  ;;  %vm3163_vm10 = vcmp.eq.s32.totalorder %v8569_v32, 0  ;;  %v8650_v49 = vpop.permute.xlu1 %3193 }
 0x4a3   : > { %v5783_v38 = vpop.eup %5782  ;;  %v3060_v55 = vxor.u32 2147483648, %v5777_v1  ;;  %v3063_v21 = vxor.u32 2147483648, %v5775_v27  ;;  %v2432_v58 = vadd.s32 3, %v2428_v34  ;;  %vm3166_vm8 = vcmp.eq.s32.totalorder %v8569_v32, 2 }
 0x4a4   : > { %v5785_v14 = vpop.eup %5784  ;;  %vm3055_vm4 = vweird.f32 %v8215_v43  ;;  %v2961_v12 = vsel %vm2954_vm15, %v2957_v11, %v2960_v23  ;;  %vm2746_vm14 = vcmp.lt.s32.totalorder %v8575_v47, 2  ;;  %v2644_v35 = vxor.u32 2147483648, %v5779_v48 }
 0x4a5   : > { %v5787_v45 = vpop.eup %5786  ;;  %vm2951_vm6 = vweird.f32 %v8105_v51  ;;  %vm2747_vm11 = vcmp.eq.s32.totalorder %v8575_v47, 0  ;;  %vm2750_vm1 = vcmp.eq.s32.totalorder %v8575_v47, 2  ;;  %vm2642_vm9 = vcmp.lt.s32.totalorder %v8580_v26, 2 }
 0x4a6   : > { %v2647_v10 = vxor.u32 2147483648, %v5781_v3  ;;  %v5789_v46 = vpop.eup %5788  ;;  %v2748_v33 = vxor.u32 2147483648, %v5783_v38  ;;  %v2752_v36 = vsel %vm2750_vm1, %v2751_v59, %v5783_v38  ;;  %vm2643_vm3 = vcmp.eq.s32.totalorder %v8580_v26, 0  ;;  %v3184_v42 = vpop.permute.xlu1 %3183 }
 0x4a7   : > { %v2537_v50 = vand.u32 3, %v2536_v52  ;;  %v5791_v2 = vpop.eup %5790  ;;  %v3167_v41 = vxor.u32 2147483648, %v5789_v46  ;;  %v3061_v6 = vsel %vm3059_vm12, %v5775_v27, %v3060_v55  ;;  %v3064_v9 = vsel %vm3062_vm0, %v3063_v21, %v5777_v1  ;;  %v5385_v27 = vld [vmem:[%s10302_s3 + $0x40] sm:$0xff] }
 0x4a8   : > { %v2433_v0 = vand.u32 3, %v2432_v58  ;;  %v3164_v44 = vxor.u32 2147483648, %v5791_v2  ;;  %v2645_v29 = vsel %vm2643_vm3, %v5781_v3, %v2644_v35  ;;  %v2540_v30 = vxor.u32 2147483648, %v5787_v45 }
 0x4a9   : > { %v2543_v39 = vxor.u32 2147483648, %v5785_v14  ;;  %v3168_v31 = vsel %vm3166_vm8, %v3167_v41, %v5791_v2  ;;  %vm2646_vm15 = vcmp.eq.s32.totalorder %v8580_v26, 2  ;;  %v2436_v28 = vxor.u32 2147483648, %v8559_v63 }
 0x4aa   : > { %v2439_v57 = vxor.u32 2147483648, %v8517_v20  ;;  %v3165_v60 = vsel %vm3163_vm10, %v5789_v46, %v3164_v44  ;;  %v3065_v40 = vsel %vm3058_vm2, %v3061_v6, %v3064_v9  ;;  %v2749_v17 = vsel %vm2747_vm11, %v8567_v62, %v2748_v33 }
 0x4ab   : > { %v2648_v16 = vsel %vm2646_vm15, %v2647_v10, %v5779_v48  ;;  %v3169_v5 = vsel %vm3162_vm7, %v3165_v60, %v3168_v31  ;;  %vm2539_vm12 = vcmp.eq.s32.totalorder %v2537_v50, 0  ;;  %vm2542_vm0 = vcmp.eq.s32.totalorder %v2537_v50, 2 }
 0x4ac   : > { %vm2435_vm8 = vcmp.eq.s32.totalorder %v2433_v0, 0  ;;  %v3170_v25 = vsel %vm3159_vm5, nan, %v3169_v5  ;;  %v2541_v24 = vsel %vm2539_vm12, %v5785_v14, %v2540_v30  ;;  %v2544_v56 = vsel %vm2542_vm0, %v2543_v39, %v5787_v45 }
 0x4ad   : > { %vm2438_vm10 = vcmp.eq.s32.totalorder %v2433_v0, 2  ;;  %3237 = vmatprep.subr.mxu0 %v3170_v25  ;;  %v3066_v15 = vsel %vm3055_vm4, nan, %v3065_v40  ;;  %v2753_v8 = vsel %vm2746_vm14, %v2749_v17, %v2752_v36  ;;  %v2437_v13 = vsel %vm2435_vm8, %v8517_v20, %v2436_v28 }
 0x4ae   : > { %v2440_v22 = vsel %vm2438_vm10, %v2439_v57, %v8559_v63  ;;  %3238 = vmatpush1.msra.mxu0 %v3066_v15  ;;  %v2962_v62 = vsel %vm2951_vm6, nan, %v2961_v12  ;;  %vm2847_vm2 = vweird.f32 %v8052_v7  ;;  %v2649_v61 = vsel %vm2642_vm9, %v2645_v29, %v2648_v16 }
 0x4af   : > { %vm2538_vm7 = vcmp.lt.s32.totalorder %v2537_v50, 2  ;;  %3239 = vmatprep.subr.mxu0 %v2962_v62  ;;  %v2858_v43 = vsel %vm2847_vm2, nan, %v2857_v19  ;;  %vm2743_vm5 = vweird.f32 %v7901_v18  ;;  %vm2434_vm4 = vcmp.lt.s32.totalorder %v2433_v0, 2  ;;  %v8658_v19 = vpop.permute.xlu0 %3198 }
 0x4b0   : > { %v2545_v32 = vsel %vm2538_vm7, %v2541_v24, %v2544_v56  ;;  %3240 = vmatpush1.msra.mxu0 %v2858_v43  ;;  %v2754_v20 = vsel %vm2743_vm5, nan, %v2753_v8  ;;  %vm2639_vm14 = vweird.f32 %v7847_v53  ;;  %v2441_v63 = vsel %vm2434_vm4, %v2437_v13, %v2440_v22  ;;  %v5386_v53 = vld [vmem:[%s10302_s3 + $0x48] sm:$0xff] }
 0x4b1   : > { %3241 = vmatprep.subr.mxu0 %v2754_v20  ;;  %v2650_v51 = vsel %vm2639_vm14, nan, %v2649_v61  ;;  %vm2535_vm6 = vweird.f32 %v7839_v4  ;;  %vm2431_vm11 = vweird.f32 %v7836_v37  ;;  %v10540_v54 = vmov 0.0   ;;  %v5387_v37 = vld [vmem:[%s10302_s3 + $0x50] sm:$0xff]  ;;  %v5388_v4 = vld [vmem:[%s10302_s3 + $0x58] sm:$0xff] }
 0x4b2   : > { %3242 = vmatpush1.msra.mxu0 %v2650_v51  ;;  %v2546_v7 = vsel %vm2535_vm6, nan, %v2545_v32  ;;  %v2442_v18 = vsel %vm2431_vm11, nan, %v2441_v63  ;;  %v10541_v36 = vmov 683565275   ;;  %v10542_v2 = vmov 2475754826  }
 0x4b3   : > { %3243 = vmatprep.subr.mxu0 %v2546_v7  ;;  %v3189_v35 = vpop.permute.xlu0 %3188  ;;  %v10543_v9 = vmov 2131351028   ;;  %v10544_v29 = vmov 2102212464   ;;  %v10545_v31 = vmov 920167782  }
 0x4b4   : > { %3244 = vmatpush1.msra.mxu0 %v2442_v18  ;;  %v10546_v60 = vmov 1326507024  }
 0x4b5   : > { %5393 = vmatmul.mubr.msk.f32.vlgmr.msra.gmra.mxu0 %vm1274_vm13, %v5385_v27 }
 0x4b6   : > { %3283 = vmatprep.mubr.f32.mxu0 %v10540_v54 }
 0x4b9   : > { %5394 = vmatmul.mubr.msk.f32.gmra.mxu0 %vm1274_vm13, %v5386_v53 }
 0x4ba   : > { %3289 = vmatprep.mubr.f32.mxu0 %v10540_v54 }
 0x4bd   : > { %5395 = vmatmul.mubr.msk.f32.gmra.mxu0 %vm1274_vm13, %v5387_v37 }
 0x4be   : > { %3295 = vmatprep.mubr.f32.mxu0 %v10540_v54 }
 0x4c1   : > { %5396 = vmatmul.mubr.msk.f32.gmra.mxu0 %vm1274_vm13, %v5388_v4 }
 0x4c2   : > { %5171 = vmatprep.mubr.f32.mxu0 %v10540_v54 }
 0x575   : > { %v3279_v1 = vpop.f32.mrf.mxu0 }
 0x576   : > { %v8652_v47 = vadd.f32 %v3279_v1, %v3184_v42 }
 0x577   : > { %v3281_v34 = vpop.f32.mrf.mxu0 }
 0x578   : > { %v3305_v48 = vand.u32 2139095040, %v8652_v47  ;;  %v8655_v11 = vadd.f32 %v3281_v34, %v3184_v42  ;;  %v10385_v55 = vand.u32 2147483647, %v8652_v47 }
 0x579   : > { %v3285_v14 = vpop.f32.mrf.mxu0 }
 0x57a   : > { %v3306_v23 = vshrl.u32 %v3305_v48, 23  ;;  %v3409_v26 = vand.u32 2139095040, %v8655_v11  ;;  %v3309_v45 = vand.u32 8388607, %v10385_v55  ;;  %v8663_v46 = vadd.f32 %v3285_v14, %v3189_v35 }
 0x57b   : > { %v3287_v1 = vpop.f32.mrf.mxu0  ;;  %v10380_v34 = vand.u32 2147483647, %v8655_v11 }
 0x57c   : > { %v5397_v3 = vadd.s32 4294967169, %v3306_v23  ;;  %v3410_v59 = vshrl.u32 %v3409_v26, 23  ;;  %v3310_v24 = vor.u32 8388608, %v3309_v45  ;;  %v3513_v13 = vand.u32 2139095040, %v8663_v46 }
 0x57e   : > { %v3312_v52 = vadd.s32 1, %v5397_v3  ;;  %v5401_v38 = vadd.s32 4294967169, %v3410_v59  ;;  %v3350_v7 = vshll.u32 %v3310_v24, 8  ;;  %v3514_v27 = vshrl.u32 %v3513_v13, 23 }
 0x580   : > { %vm3313_vm1 = vcmp.gt.s32.totalorder %v3312_v52, 0  ;;  %v3416_v58 = vadd.s32 1, %v5401_v38  ;;  %v5405_v48 = vadd.s32 4294967169, %v3514_v27  ;;  %v8717_v38 = vadd.f32 %v3287_v1, %v3189_v35 }
 0x581   : > { %v3314_v21 = vsel %vm3313_vm1, %v3312_v52, 0  ;;  %v10383_v1 = vand.u32 2147483647, %v8663_v46 }
 0x582   : > { %v3316_v12 = vand.u32 31, %v3314_v21  ;;  %v8665_v33 = vshrl.u32 %v3314_v21, 5  ;;  %vm3417_vm9 = vcmp.gt.s32.totalorder %v3416_v58, 0 }
 0x583   : > { %v3418_v25 = vsel %vm3417_vm9, %v3416_v58, 0 }
 0x584   : > { %v3317_v10 = vsub.s32 32, %v3316_v12  ;;  %v3319_v50 = vshll.u32 %v10541_v36, %v3316_v12  ;;  %v3322_v41 = vshll.u32 %v10542_v2, %v3316_v12  ;;  %v3325_v44 = vshll.u32 %v10543_v9, %v3316_v12 }
 0x585   : > { %v3328_v39 = vshll.u32 %v10544_v29, %v3316_v12  ;;  %v3331_v57 = vshll.u32 %v10545_v31, %v3316_v12  ;;  %vm3334_vm3 = vcmp.lt.s32.totalorder %v8665_v33, 1  ;;  %vm3336_vm15 = vcmp.lt.s32.totalorder %v8665_v33, 3 }
 0x586   : > { %v3320_v6 = vshrl.u32 %v10542_v2, %v3317_v10  ;;  %v3323_v0 = vshrl.u32 %v10543_v9, %v3317_v10  ;;  %v3326_v30 = vshrl.u32 %v10544_v29, %v3317_v10  ;;  %v3329_v28 = vshrl.u32 %v10545_v31, %v3317_v10 }
 0x587   : > { %v3332_v40 = vshrl.u32 %v10546_v60, %v3317_v10  ;;  %vm3337_vm12 = vcmp.lt.s32.totalorder %v8665_v33, 4  ;;  %v3420_v43 = vand.u32 31, %v3418_v25  ;;  %vm3335_vm0 = vcmp.lt.s32.totalorder %v8665_v33, 2 }
 0x588   : > { %v3321_v17 = vor.u32 %v3320_v6, %v3319_v50  ;;  %v3324_v16 = vor.u32 %v3323_v0, %v3322_v41  ;;  %v3327_v5 = vor.u32 %v3326_v30, %v3325_v44  ;;  %v3330_v56 = vor.u32 %v3329_v28, %v3328_v39 }
 0x589   : > { %v3333_v15 = vor.u32 %v3332_v40, %v3331_v57  ;;  %v8698_v18 = vsub.s32 32, %v3420_v43  ;;  %v3318_v23 = vshrl.u32 %v10541_v36, %v3317_v10  ;;  %v8715_v52 = vshrl.u32 %v3418_v25, 5 }
 0x58a   : > { %v3342_v8 = vsel %vm3334_vm3, %v3321_v17, %v3324_v16  ;;  %v3343_v22 = vsel %vm3337_vm12, %v3330_v56, 920167782  ;;  %v3346_v62 = vsel %vm3334_vm3, %v3324_v16, %v3327_v5  ;;  %v3339_v26 = vsel %vm3337_vm12, %v3327_v5, 2102212464 }
 0x58b   : > { %v3347_v61 = vsel %vm3337_vm12, %v3333_v15, 1326507024  ;;  %v3344_v32 = vsel %vm3336_vm15, %v3327_v5, %v3343_v22  ;;  %v3433_v3 = vshrl.u32 %v10545_v31, %v8698_v18  ;;  %v3436_v59 = vshrl.u32 %v10546_v60, %v8698_v18 }
 0x58c   : > { %v3348_v20 = vsel %vm3336_vm15, %v3330_v56, %v3347_v61  ;;  %v3345_v63 = vsel %vm3335_vm0, %v3342_v8, %v3344_v32  ;;  %v3338_v21 = vsel %vm3334_vm3, %v3318_v23, %v3321_v17  ;;  %v3424_v58 = vshrl.u32 %v10542_v2, %v8698_v18 }
 0x58d   : > { %v3349_v51 = vsel %vm3335_vm0, %v3346_v62, %v3348_v20  ;;  %v8700_v53 = vmul.u32.u64.low %v3350_v7, %v3345_v63  ;;  %v8701_v37 = vmul.u32.u64.high %v3350_v7, %v3345_v63, %v8700_v53  ;;  %v3432_v14 = vshll.u32 %v10544_v29, %v3420_v43 }
 0x58e   : > { %v8704_v4 = vmul.u32.u64.low %v3350_v7, %v3349_v51  ;;  %v8705_v42 = vmul.u32.u64.high %v3350_v7, %v3349_v51, %v8704_v4  ;;  %v3435_v12 = vshll.u32 %v10545_v31, %v3420_v43  ;;  %v3340_v45 = vsel %vm3336_vm15, %v3324_v16, %v3339_v26 }
 0x58f   : > { %v3427_v10 = vshrl.u32 %v10543_v9, %v8698_v18  ;;  %v3430_v35 = vshrl.u32 %v10544_v29, %v8698_v18  ;;  %v3520_v50 = vadd.s32 1, %v5405_v48  ;;  %v3413_v41 = vand.u32 8388607, %v10380_v34 }
 0x590   : > { %v3423_v6 = vshll.u32 %v10541_v36, %v3420_v43  ;;  %v3434_v0 = vor.u32 %v3433_v3, %v3432_v14  ;;  %v3437_v44 = vor.u32 %v3436_v59, %v3435_v12  ;;  %v3360_v30 = vadd.s32 1, %v8701_v37 }
 0x591   : > { %v3426_v39 = vshll.u32 %v10542_v2, %v3420_v43  ;;  %v3429_v28 = vshll.u32 %v10543_v9, %v3420_v43  ;;  %v3617_v57 = vand.u32 2139095040, %v8717_v38  ;;  %v3341_v40 = vsel %vm3335_vm0, %v3338_v21, %v3340_v45 }
 0x592   : > { %vm3359_vm8 = vc.u32 %v8705_v42, %v8700_v53  ;;  %v3425_v17 = vor.u32 %v3424_v58, %v3423_v6  ;;  %vm3521_vm10 = vcmp.gt.s32.totalorder %v3520_v50, 0  ;;  %vm3441_vm2 = vcmp.lt.s32.totalorder %v8715_v52, 4 }
 0x593   : > { %v3428_v16 = vor.u32 %v3427_v10, %v3426_v39  ;;  %v3431_v5 = vor.u32 %v3430_v35, %v3429_v28  ;;  %v3522_v25 = vsel %vm3521_vm10, %v3520_v50, 0  ;;  %v3447_v24 = vsel %vm3441_vm2, %v3434_v0, 920167782 }
 0x594   : > { %v3451_v56 = vsel %vm3441_vm2, %v3437_v44, 1326507024  ;;  %v3524_v15 = vand.u32 31, %v3522_v25  ;;  %v3361_v33 = vsel %vm3359_vm8, %v3360_v30, %v8701_v37  ;;  %v3414_v8 = vor.u32 8388608, %v3413_v41 }
 0x595   : > { %v3357_v13 = vmul.u32 %v3350_v7, %v3341_v40  ;;  %vm3438_vm7 = vcmp.lt.s32.totalorder %v8715_v52, 1  ;;  %vm3440_vm5 = vcmp.lt.s32.totalorder %v8715_v52, 3  ;;  %v3618_v22 = vshrl.u32 %v3617_v57, 23 }
 0x596   : > { %v3446_v62 = vsel %vm3438_vm7, %v3425_v17, %v3428_v16  ;;  %v3448_v61 = vsel %vm3440_vm5, %v3431_v5, %v3447_v24  ;;  %v3450_v43 = vsel %vm3438_vm7, %v3428_v16, %v3431_v5  ;;  %v3452_v32 = vsel %vm3440_vm5, %v3434_v0, %v3451_v56 }
 0x597   : > { %v3362_v20 = vadd.s32 %v3361_v33, %v3357_v13  ;;  %v8758_v63 = vsub.s32 32, %v3524_v15  ;;  %vm3439_vm4 = vcmp.lt.s32.totalorder %v8715_v52, 2  ;;  %v3454_v27 = vshll.u32 %v3414_v8, 8 }
 0x598   : > { %v3449_v51 = vsel %vm3439_vm4, %v3446_v62, %v3448_v61  ;;  %v3453_v7 = vsel %vm3439_vm4, %v3450_v43, %v3452_v32  ;;  %v5409_v37 = vadd.s32 4294967169, %v3618_v22  ;;  %v3422_v21 = vshrl.u32 %v10541_v36, %v8698_v18 }
 0x599   : > { %v3363_v4 = vadd.s32 536870912, %v3362_v20  ;;  %v3537_v48 = vshrl.u32 %v10545_v31, %v8758_v63  ;;  %v8768_v23 = vmul.u32.u64.low %v3454_v27, %v3453_v7  ;;  %v8769_v26 = vmul.u32.u64.high %v3454_v27, %v3453_v7, %v8768_v23 }
 0x59a   : > { %v8771_v3 = vmul.u32.u64.low %v3454_v27, %v3449_v51  ;;  %v8772_v59 = vmul.u32.u64.high %v3454_v27, %v3449_v51, %v8771_v3  ;;  %v3528_v58 = vshrl.u32 %v10542_v2, %v8758_v63  ;;  %v3531_v14 = vshrl.u32 %v10543_v9, %v8758_v63 }
 0x59b   : > { %v3536_v12 = vshll.u32 %v10544_v29, %v3524_v15  ;;  %v8782_v45 = vshrl.u32 %v3522_v25, 5  ;;  %v3534_v10 = vshrl.u32 %v10544_v29, %v8758_v63  ;;  %v3540_v35 = vshrl.u32 %v10546_v60, %v8758_v63 }
 0x59c   : > { %v3624_v50 = vadd.s32 1, %v5409_v37  ;;  %v8788_v41 = vshrl.u32 %v3363_v4, 30  ;;  %v3527_v18 = vshll.u32 %v10541_v36, %v3524_v15  ;;  %v3530_v6 = vshll.u32 %v10542_v2, %v3524_v15 }
 0x59d   : > { %v3538_v0 = vor.u32 %v3537_v48, %v3536_v12  ;;  %v3443_v44 = vsel %vm3441_vm2, %v3431_v5, 2102212464  ;;  %v3533_v30 = vshll.u32 %v10543_v9, %v3524_v15  ;;  %v3539_v39 = vshll.u32 %v10545_v31, %v3524_v15 }
 0x59e   : > { %10547 = vst [vmem:[#allocation8_spill] sm:$0xff] %v8788_v41  ;;  %v3442_v28 = vsel %vm3438_vm7, %v3422_v21, %v3425_v17  ;;  %v3517_v57 = vand.u32 8388607, %v10383_v1  ;;  %v8800_v40 = vor.u32 %v3528_v58, %v3527_v18  ;;  %v8802_v25 = vor.u32 %v3531_v14, %v3530_v6 }
 0x59f   : > { %v3535_v24 = vor.u32 %v3534_v10, %v3533_v30  ;;  %v3541_v56 = vor.u32 %v3540_v35, %v3539_v39  ;;  %vm3545_vm14 = vcmp.lt.s32.totalorder %v8782_v45, 4  ;;  %vm3625_vm6 = vcmp.gt.s32.totalorder %v3624_v50, 0 }
 0x5a0   : > { %v3365_v5 = vshll.u32 %v8788_v41, 30  ;;  %v3444_v15 = vsel %vm3440_vm5, %v3428_v16, %v3443_v44  ;;  %v3551_v17 = vsel %vm3545_vm14, %v3538_v0, 920167782  ;;  %v3626_v33 = vsel %vm3625_vm6, %v3624_v50, 0 }
 0x5a1   : > { %v3464_v8 = vadd.s32 1, %v8772_v59  ;;  %v3628_v13 = vand.u32 31, %v3626_v33  ;;  %vm3463_vm11 = vc.u32 %v8769_v26, %v8771_v3  ;;  %v3518_v22 = vor.u32 8388608, %v3517_v57 }
 0x5a2   : > { %vm3542_vm1 = vcmp.lt.s32.totalorder %v8782_v45, 1  ;;  %vm3544_vm9 = vcmp.lt.s32.totalorder %v8782_v45, 3  ;;  %v3445_v62 = vsel %vm3439_vm4, %v3442_v28, %v3444_v15  ;;  %v3555_v43 = vsel %vm3545_vm14, %v3541_v56, 1326507024 }
 0x5a3   : > { %v3550_v16 = vsel %vm3542_vm1, %v8800_v40, %v8802_v25  ;;  %v3552_v61 = vsel %vm3544_vm9, %v3535_v24, %v3551_v17  ;;  %v8825_v32 = vsub.s32 %v3362_v20, %v3365_v5  ;;  %v10381_v51 = vand.u32 2147483647, %v8717_v38 }
 0x5a4   : > { %v3465_v7 = vsel %vm3463_vm11, %v3464_v8, %v8772_v59  ;;  %vm3543_vm3 = vcmp.lt.s32.totalorder %v8782_v45, 2  ;;  %v8830_v52 = vsub.s32 32, %v3628_v13  ;;  %v3461_v37 = vmul.u32 %v3454_v27, %v3445_v62  ;;  %v3291_v27 = vpop.f32.mrf.mxu0 }
 0x5a5   : > { %v3553_v4 = vsel %vm3543_vm3, %v3550_v16, %v3552_v61  ;;  %v3554_v48 = vsel %vm3542_vm1, %v8802_v25, %v3535_v24  ;;  %v3556_v20 = vsel %vm3544_vm9, %v3538_v0, %v3555_v43  ;;  %v8839_v23 = vshll.u32 %v3518_v22, 8 }
 0x5a6   : > { %v3368_v21 = vsub.s32 0, %v8825_v32  ;;  %v8842_v59 = vadd.s32 %v3465_v7, %v3461_v37  ;;  %v3621_v58 = vand.u32 8388607, %v10381_v51  ;;  %v3557_v14 = vsel %vm3543_vm3, %v3554_v48, %v3556_v20 }
 0x5a7   : > { %v8849_v12 = vmul.u32.u64.low %v8839_v23, %v3553_v4  ;;  %v8850_v10 = vmul.u32.u64.high %v8839_v23, %v3553_v4, %v8849_v12  ;;  %v3632_v35 = vshrl.u32 %v10542_v2, %v8830_v52  ;;  %v3635_v50 = vshrl.u32 %v10543_v9, %v8830_v52 }
 0x5a8   : > { %v3638_v18 = vshrl.u32 %v10544_v29, %v8830_v52  ;;  %v3640_v6 = vshll.u32 %v10544_v29, %v3628_v13  ;;  %v3641_v0 = vshrl.u32 %v10545_v31, %v8830_v52  ;;  %v8862_v44 = vshrl.u32 %v3626_v33, 5 }
 0x5a9   : > { %v3631_v30 = vshll.u32 %v10541_v36, %v3628_v13  ;;  %v3644_v39 = vshrl.u32 %v10546_v60, %v8830_v52  ;;  %v8868_v28 = vadd.f32 %v3291_v27, %v8650_v49  ;;  %v3634_v57 = vshll.u32 %v10542_v2, %v3628_v13 }
 0x5aa   : > { %v3637_v56 = vshll.u32 %v10543_v9, %v3628_v13  ;;  %v3642_v5 = vor.u32 %v3641_v0, %v3640_v6  ;;  %v3643_v15 = vshll.u32 %v10545_v31, %v3628_v13  ;;  %v5398_v17 = vmin.u32 %v3368_v21, %v8825_v32  ;;  %v3293_v0 = vpop.f32.mrf.mxu0 }
 0x5ab   : > { %v3467_v33 = vadd.s32 536870912, %v8842_v59  ;;  %v8876_v8 = vmul.u32.u64.low %v8839_v23, %v3557_v14  ;;  %v8877_v22 = vmul.u32.u64.high %v8839_v23, %v3557_v14, %v8876_v8  ;;  %v3633_v62 = vor.u32 %v3632_v35, %v3631_v30 }
 0x5ac   : > { %v3636_v16 = vor.u32 %v3635_v50, %v3634_v57  ;;  %v3639_v61 = vor.u32 %v3638_v18, %v3637_v56  ;;  %v3645_v43 = vor.u32 %v3644_v39, %v3643_v15  ;;  %vm3649_vm15 = vcmp.lt.s32.totalorder %v8862_v44, 4 }
 0x5ad   : > { %v3547_v7 = vsel %vm3545_vm14, %v3535_v24, 2102212464  ;;  %v3622_v37 = vor.u32 8388608, %v3621_v58  ;;  %v3655_v13 = vsel %vm3649_vm15, %v3642_v5, 920167782  ;;  %v3721_v4 = vand.u32 2139095040, %v8868_v28 }
 0x5ae   : > { %v3370_v48 = vclz %v5398_v17  ;;  %v3526_v20 = vshrl.u32 %v10541_v36, %v8758_v63  ;;  %vm3646_vm12 = vcmp.lt.s32.totalorder %v8862_v44, 1  ;;  %vm3648_vm0 = vcmp.lt.s32.totalorder %v8862_v44, 3 }
 0x5af   : > { %v8889_v21 = vshrl.u32 %v3467_v33, 30  ;;  %v3654_v27 = vsel %vm3646_vm12, %v3633_v62, %v3636_v16  ;;  %v3656_v24 = vsel %vm3648_vm0, %v3639_v61, %v3655_v13  ;;  %v3659_v58 = vsel %vm3649_vm15, %v3645_v43, 1326507024 }
 0x5b0   : > { %v3546_v14 = vsel %vm3542_vm1, %v3526_v20, %v8800_v40  ;;  %v3548_v63 = vsel %vm3544_vm9, %v8802_v25, %v3547_v7  ;;  %v3658_v35 = vsel %vm3646_vm12, %v3636_v16, %v3639_v61  ;;  %v3660_v50 = vsel %vm3648_vm0, %v3642_v5, %v3659_v58 }
 0x5b1   : > { %10548 = vst [vmem:[#allocation5_spill] sm:$0xff] %v8889_v21  ;;  %v3568_v18 = vadd.s32 1, %v8850_v10  ;;  %vm3647_vm8 = vcmp.lt.s32.totalorder %v8862_v44, 2  ;;  %v3722_v6 = vshrl.u32 %v3721_v4, 23  ;;  %v5399_v30 = vadd.s32 4294967294, %v3370_v48 }
 0x5b2   : > { %vm3567_vm10 = vc.u32 %v8877_v22, %v8849_v12  ;;  %v3657_v40 = vsel %vm3647_vm8, %v3654_v27, %v3656_v24  ;;  %v3549_v25 = vsel %vm3543_vm3, %v3546_v14, %v3548_v63  ;;  %v3661_v39 = vsel %vm3647_vm8, %v3658_v35, %v3660_v50 }
 0x5b3   : > { %v8917_v57 = vshll.u32 %v3622_v37, 8  ;;  %v5413_v56 = vadd.s32 4294967169, %v3722_v6  ;;  %v3469_v5 = vshll.u32 %v8889_v21, 30  ;;  %v8921_v15 = vadd.f32 %v3293_v0, %v8650_v49 }
 0x5b4   : > { %v3569_v17 = vsel %vm3567_vm10, %v3568_v18, %v8850_v10  ;;  %vm5400_vm2 = vcmp.lt.s32.totalorder %v5399_v30, 0  ;;  %v3565_v43 = vmul.u32 %v8839_v23, %v3549_v25  ;;  %v3651_v13 = vsel %vm3649_vm15, %v3639_v61, 2102212464 }
 0x5b5   : > { %v8925_v33 = vmul.u32.u64.low %v8917_v57, %v3657_v40  ;;  %v8926_v8 = vmul.u32.u64.high %v8917_v57, %v3657_v40, %v8925_v33  ;;  %v3728_v45 = vadd.s32 1, %v5413_v56  ;;  %v8937_v49 = vsub.s32 %v8842_v59, %v3469_v5 }
 0x5b6   : > { %v8931_v7 = vmul.u32.u64.low %v8917_v57, %v3661_v39  ;;  %v8932_v37 = vmul.u32.u64.high %v8917_v57, %v3661_v39, %v8931_v7  ;;  %v8939_v10 = vadd.s32 %v3569_v17, %v3565_v43  ;;  %v3630_v4 = vshrl.u32 %v10541_v36, %v8830_v52 }
 0x5b7   : > { %vm3729_vm7 = vcmp.gt.s32.totalorder %v3728_v45, 0  ;;  %v3825_v48 = vand.u32 2139095040, %v8921_v15  ;;  %v8944_v20 = vsel %vm5400_vm2, 0, %v5399_v30  ;;  %v10384_v23 = vand.u32 2147483647, %v8868_v28 }
 0x5b8   : > { %v3730_v27 = vsel %vm3729_vm7, %v3728_v45, 0  ;;  %v3650_v24 = vsel %vm3646_vm12, %v3630_v4, %v3633_v62  ;;  %v3652_v61 = vsel %vm3648_vm0, %v3636_v16, %v3651_v13  ;;  %v3378_v58 = vsub.s32 4294967266, %v8944_v20 }
 0x5b9   : > { %v3732_v59 = vand.u32 31, %v3730_v27  ;;  %v3472_v14 = vsub.s32 0, %v8937_v49  ;;  %v3571_v52 = vadd.s32 536870912, %v8939_v10  ;;  %v3826_v63 = vshrl.u32 %v3825_v48, 23 }
 0x5ba   : > { %v3653_v35 = vsel %vm3647_vm8, %v3650_v24, %v3652_v61  ;;  %v3672_v50 = vadd.s32 1, %v8926_v8  ;;  %v3725_v18 = vand.u32 8388607, %v10384_v23  ;;  %vm3671_vm5 = vc.u32 %v8932_v37, %v8925_v33 }
 0x5bb   : > { %v3733_v62 = vsub.s32 32, %v3732_v59  ;;  %v3731_v16 = vshrl.u32 %v3730_v27, 5  ;;  %v3735_v6 = vshll.u32 %v10541_v36, %v3732_v59  ;;  %v3738_v0 = vshll.u32 %v10542_v2, %v3732_v59 }
 0x5bc   : > { %v3741_v44 = vshll.u32 %v10543_v9, %v3732_v59  ;;  %v3744_v39 = vshll.u32 %v10544_v29, %v3732_v59  ;;  %v3747_v5 = vshll.u32 %v10545_v31, %v3732_v59  ;;  %v5417_v17 = vadd.s32 4294967169, %v3826_v63 }
 0x5bd   : > { %v3736_v30 = vshrl.u32 %v10542_v2, %v3733_v62  ;;  %v3739_v40 = vshrl.u32 %v10543_v9, %v3733_v62  ;;  %v3742_v25 = vshrl.u32 %v10544_v29, %v3733_v62  ;;  %v3745_v56 = vshrl.u32 %v10545_v31, %v3733_v62 }
 0x5be   : > { %v3748_v13 = vshrl.u32 %v10546_v60, %v3733_v62  ;;  %v8971_v4 = vshrl.u32 %v3571_v52, 30  ;;  %v3669_v48 = vmul.u32 %v8917_v57, %v3653_v35  ;;  %v3726_v27 = vor.u32 8388608, %v3725_v18 }
 0x5bf   : > { %v3737_v45 = vor.u32 %v3736_v30, %v3735_v6  ;;  %v3740_v43 = vor.u32 %v3739_v40, %v3738_v0  ;;  %v3743_v7 = vor.u32 %v3742_v25, %v3741_v44  ;;  %v3746_v24 = vor.u32 %v3745_v56, %v3744_v39 }
 0x5c0   : > { %v3673_v61 = vsel %vm3671_vm5, %v3672_v50, %v8926_v8  ;;  %v3749_v34 = vor.u32 %v3748_v13, %v3747_v5  ;;  %vm3750_vm4 = vcmp.lt.s32.totalorder %v3731_v16, 1  ;;  %v10382_v59 = vand.u32 2147483647, %v8921_v15 }
 0x5c1   : > { %vm3752_vm14 = vcmp.lt.s32.totalorder %v3731_v16, 3  ;;  %vm3753_vm6 = vcmp.lt.s32.totalorder %v3731_v16, 4  ;;  %v3758_v63 = vsel %vm3750_vm4, %v3737_v45, %v3740_v43  ;;  %v3832_v6 = vadd.s32 1, %v5417_v17 }
 0x5c2   : > { %v3755_v52 = vsel %vm3753_vm6, %v3743_v7, 2102212464  ;;  %v3759_v0 = vsel %vm3753_vm6, %v3746_v24, 920167782  ;;  %v3762_v57 = vsel %vm3750_vm4, %v3740_v43, %v3743_v7  ;;  %v3763_v35 = vsel %vm3753_vm6, %v3749_v34, 1326507024 }
 0x5c3   : > { %v8981_v18 = vadd.s32 %v3673_v61, %v3669_v48  ;;  %v3734_v30 = vshrl.u32 %v10541_v36, %v3733_v62  ;;  %vm3751_vm11 = vcmp.lt.s32.totalorder %v3731_v16, 2  ;;  %v3760_v8 = vsel %vm3752_vm14, %v3743_v7, %v3759_v0 }
 0x5c4   : > { %v5402_v50 = vmin.u32 %v3472_v14, %v8937_v49  ;;  %v3761_v40 = vsel %vm3751_vm11, %v3758_v63, %v3760_v8  ;;  %v3764_v44 = vsel %vm3752_vm14, %v3746_v24, %v3763_v35  ;;  %v3766_v25 = vshll.u32 %v3726_v27, 8 }
 0x5c5   : > { %v3754_v39 = vsel %vm3750_vm4, %v3734_v30, %v3737_v45  ;;  %v3756_v56 = vsel %vm3752_vm14, %v3740_v43, %v3755_v52  ;;  %v3765_v34 = vsel %vm3751_vm11, %v3762_v57, %v3764_v44  ;;  %vm3833_vm1 = vcmp.gt.s32.totalorder %v3832_v6, 0 }
 0x5c6   : > { %v3573_v5 = vshll.u32 %v8971_v4, 30  ;;  %v8992_v62 = vmul.u32.u64.low %v3766_v25, %v3765_v34  ;;  %v8993_v17 = vmul.u32.u64.high %v3766_v25, %v3765_v34, %v8992_v62  ;;  %v3834_v7 = vsel %vm3833_vm1, %v3832_v6, 0 }
 0x5c7   : > { %v3675_v14 = vadd.s32 536870912, %v8981_v18  ;;  %v8996_v13 = vmul.u32.u64.low %v3766_v25, %v3761_v40  ;;  %v8997_v48 = vmul.u32.u64.high %v3766_v25, %v3761_v40, %v8996_v13  ;;  %v3829_v45 = vand.u32 8388607, %v10382_v59 }
 0x5c8   : > { %v3757_v43 = vsel %vm3751_vm11, %v3754_v39, %v3756_v56  ;;  %v3836_v27 = vand.u32 31, %v3834_v7  ;;  %v9005_v24 = vadd.s32 %v8700_v53, %v8705_v42  ;;  %v9008_v63 = vadd.s32 127, %v3378_v58  ;;  %v3297_v39 = vpop.f32.mrf.mxu0 }
 0x5c9   : > { %v3474_v6 = vclz %v5402_v50  ;;  %v9011_v52 = vsub.s32 %v8939_v10, %v3573_v5  ;;  %vm3775_vm9 = vc.u32 %v8993_v17, %v8996_v13  ;;  %v9015_v57 = vshrl.u32 %v3675_v14, 30 }
 0x5ca   : > { %v3837_v0 = vsub.s32 32, %v3836_v27  ;;  %v3773_v16 = vmul.u32 %v3766_v25, %v3757_v43  ;;  %v3776_v35 = vadd.s32 1, %v8997_v48  ;;  %v3830_v30 = vor.u32 8388608, %v3829_v45 }
 0x5cb   : > { %v3835_v53 = vshrl.u32 %v3834_v7, 5  ;;  %v3839_v42 = vshll.u32 %v10541_v36, %v3836_v27  ;;  %v3842_v50 = vshll.u32 %v10542_v2, %v3836_v27  ;;  %v3845_v40 = vshll.u32 %v10543_v9, %v3836_v27 }
 0x5cc   : > { %v3840_v58 = vshrl.u32 %v10542_v2, %v3837_v0  ;;  %v3843_v8 = vshrl.u32 %v10543_v9, %v3837_v0  ;;  %v3777_v10 = vsel %vm3775_vm9, %v3776_v35, %v8997_v48  ;;  %v3846_v44 = vshrl.u32 %v10544_v29, %v3837_v0 }
 0x5cd   : > { %v5403_v25 = vadd.s32 4294967294, %v3474_v6  ;;  %v3576_v56 = vsub.s32 0, %v9011_v52  ;;  %v3778_v34 = vadd.s32 %v3777_v10, %v3773_v16  ;;  %v3848_v14 = vshll.u32 %v10544_v29, %v3836_v27  ;;  %v3299_v10 = vpop.f32.mrf.mxu0 }
 0x5ce   : > { %v3841_v5 = vor.u32 %v3840_v58, %v3839_v42  ;;  %v3844_v62 = vor.u32 %v3843_v8, %v3842_v50  ;;  %v3847_v7 = vor.u32 %v3846_v44, %v3845_v40  ;;  %v3849_v45 = vshrl.u32 %v10545_v31, %v3837_v0 }
 0x5cf   : > { %v3779_v43 = vadd.s32 536870912, %v3778_v34  ;;  %v3851_v48 = vshll.u32 %v10545_v31, %v3836_v27  ;;  %v3852_v35 = vshrl.u32 %v10546_v60, %v3837_v0  ;;  %v9031_v51 = vadd.f32 %v3297_v39, %v8658_v19 }
 0x5d0   : > { %v3677_v6 = vshll.u32 %v9015_v57, 30  ;;  %v3850_v59 = vor.u32 %v3849_v45, %v3848_v14  ;;  %vm3854_vm3 = vcmp.lt.s32.totalorder %v3835_v53, 1  ;;  %v3870_v16 = vshll.u32 %v3830_v30, 8 }
 0x5d1   : > { %v9034_v42 = vshrl.u32 %v3779_v43, 30  ;;  %v3838_v58 = vshrl.u32 %v10541_v36, %v3837_v0  ;;  %v3853_v8 = vor.u32 %v3852_v35, %v3851_v48  ;;  %vm3857_vm15 = vcmp.lt.s32.totalorder %v3835_v53, 4 }
 0x5d2   : > { %vm3856_vm12 = vcmp.lt.s32.totalorder %v3835_v53, 3  ;;  %v3859_v50 = vsel %vm3857_vm15, %v3847_v7, 2102212464  ;;  %v3862_v27 = vsel %vm3854_vm3, %v3841_v5, %v3844_v62  ;;  %v3863_v40 = vsel %vm3857_vm15, %v3850_v59, 920167782 }
 0x5d3   : > { %v3781_v44 = vshll.u32 %v9034_v42, 30  ;;  %vm3855_vm0 = vcmp.lt.s32.totalorder %v3835_v53, 2  ;;  %v3864_v39 = vsel %vm3856_vm12, %v3847_v7, %v3863_v40  ;;  %v3866_v1 = vsel %vm3854_vm3, %v3844_v62, %v3847_v7 }
 0x5d4   : > { %v3858_v23 = vsel %vm3854_vm3, %v3838_v58, %v3841_v5  ;;  %v3865_v14 = vsel %vm3855_vm0, %v3862_v27, %v3864_v39  ;;  %v3867_v30 = vsel %vm3857_vm15, %v3853_v8, 1326507024  ;;  %v9040_v45 = vadd.f32 %v3299_v10, %v8658_v19 }
 0x5d5   : > { %v3860_v0 = vsel %vm3856_vm12, %v3844_v62, %v3859_v50  ;;  %v3868_v43 = vsel %vm3856_vm12, %v3850_v59, %v3867_v30  ;;  %v9042_v48 = vmul.u32.u64.low %v3870_v16, %v3865_v14  ;;  %v9043_v35 = vmul.u32.u64.high %v3870_v16, %v3865_v14, %v9042_v48 }
 0x5d6   : > { %v9047_v55 = vsub.s32 %v8981_v18, %v3677_v6  ;;  %v9049_v61 = vsub.s32 %v3778_v34, %v3781_v44  ;;  %v3869_v7 = vsel %vm3855_vm0, %v3866_v1, %v3868_v43  ;;  %v3929_v5 = vand.u32 2139095040, %v9031_v51 }
 0x5d7   : > { %v9053_v58 = vmul.u32.u64.low %v3870_v16, %v3869_v7  ;;  %v9054_v8 = vmul.u32.u64.high %v3870_v16, %v3869_v7, %v9053_v58  ;;  %v10549_v19 = vsub.s32 32, %v8944_v20  ;;  %v3861_v62 = vsel %vm3855_vm0, %v3858_v23, %v3860_v0 }
 0x5d8   : > { %v3930_v10 = vshrl.u32 %v3929_v5, 23  ;;  %v4033_v50 = vand.u32 2139095040, %v9040_v45  ;;  %v3375_v18 = vshll.u32 %v8825_v32, %v8944_v20  ;;  %v3380_v34 = vshll.u32 %v9008_v63, 23 }
 0x5d9   : > { %v3376_v59 = vshrl.u32 %v9005_v24, %v10549_v19  ;;  %v5406_v1 = vmin.u32 %v3576_v56, %v9011_v52  ;;  %v3880_v6 = vadd.s32 1, %v9043_v35  ;;  %vm5404_vm8 = vcmp.lt.s32.totalorder %v5403_v25, 0 }
 0x5da   : > { %v3680_v27 = vsub.s32 0, %v9047_v55  ;;  %v3784_v40 = vsub.s32 0, %v9049_v61  ;;  %v5421_v24 = vadd.s32 4294967169, %v3930_v10  ;;  %v3877_v53 = vmul.u32 %v3870_v16, %v3861_v62 }
 0x5db   : > { %vm3879_vm10 = vc.u32 %v9054_v8, %v9042_v48  ;;  %v4034_v23 = vshrl.u32 %v4033_v50, 23  ;;  %v9070_v44 = vor.u32 %v3376_v59, %v3375_v18  ;;  %v9073_v63 = vor.u32 4788187, %v3380_v34 }
 0x5dc   : > { %v3881_v32 = vsel %vm3879_vm10, %v3880_v6, %v9043_v35  ;;  %v3936_v20 = vadd.s32 1, %v5421_v24  ;;  %v9075_v56 = vsel %vm5404_vm8, 0, %v5403_v25  ;;  %v3578_v39 = vclz %v5406_v1 }
 0x5dd   : > { %v3882_v14 = vadd.s32 %v3881_v32, %v3877_v53  ;;  %v5410_v30 = vmin.u32 %v3680_v27, %v9047_v55  ;;  %v5414_v0 = vmin.u32 %v3784_v40, %v9049_v61  ;;  %v10386_v16 = vand.u32 2147483647, %v9031_v51 }
 0x5de   : > { %vm3937_vm2 = vcmp.gt.s32.totalorder %v3936_v20, 0  ;;  %v5425_v5 = vadd.s32 4294967169, %v4034_v23  ;;  %v9083_v35 = vadd.s32 %v8771_v3, %v8769_v26  ;;  %v9087_v62 = vadd.s32 4294967294, %v3578_v39 }
 0x5df   : > { %v3883_v43 = vadd.s32 536870912, %v3882_v14  ;;  %v3938_v7 = vsel %vm3937_vm2, %v3936_v20, 0  ;;  %v3682_v50 = vclz %v5410_v30  ;;  %v3786_v18 = vclz %v5414_v0 }
 0x5e0   : > { %v3940_v25 = vand.u32 31, %v3938_v7  ;;  %v3933_v34 = vand.u32 8388607, %v10386_v16  ;;  %v4040_v27 = vadd.s32 1, %v5425_v5  ;;  %v3939_v20 = vshrl.u32 %v3938_v7, 5 }
 0x5e1   : > { %v9089_v10 = vshrl.u32 %v3883_v43, 30  ;;  %v5411_v0 = vadd.s32 4294967294, %v3682_v50  ;;  %v10392_v54 = vand.u32 2147483647, %v9040_v45  ;;  %v5415_v41 = vadd.s32 4294967294, %v3786_v18 }
 0x5e2   : > { %v3941_v1 = vsub.s32 32, %v3940_v25  ;;  %v3943_v26 = vshll.u32 %v10541_v36, %v3940_v25  ;;  %v3946_v3 = vshll.u32 %v10542_v2, %v3940_v25  ;;  %v3949_v53 = vshll.u32 %v10543_v9, %v3940_v25 }
 0x5e3   : > { %v3885_v6 = vshll.u32 %v9089_v10, 30  ;;  %v3952_v39 = vshll.u32 %v10544_v29, %v3940_v25  ;;  %v3934_v58 = vor.u32 8388608, %v3933_v34  ;;  %v3955_v21 = vshll.u32 %v10545_v31, %v3940_v25 }
 0x5e4   : > { %v3944_v40 = vshrl.u32 %v10542_v2, %v3941_v1  ;;  %v3947_v24 = vshrl.u32 %v10543_v9, %v3941_v1  ;;  %v3950_v23 = vshrl.u32 %v10544_v29, %v3941_v1  ;;  %v3953_v30 = vshrl.u32 %v10545_v31, %v3941_v1 }
 0x5e5   : > { %v9100_v32 = vsub.s32 %v3882_v14, %v3885_v6  ;;  %v3956_v14 = vshrl.u32 %v10546_v60, %v3941_v1  ;;  %vm4041_vm7 = vcmp.gt.s32.totalorder %v4040_v27, 0  ;;  %vm3958_vm5 = vcmp.lt.s32.totalorder %v3939_v20, 1 }
 0x5e6   : > { %v3945_v43 = vor.u32 %v3944_v40, %v3943_v26  ;;  %v3948_v16 = vor.u32 %v3947_v24, %v3946_v3  ;;  %v3951_v59 = vor.u32 %v3950_v23, %v3949_v53  ;;  %v3954_v19 = vor.u32 %v3953_v30, %v3952_v39 }
 0x5e7   : > { %v3888_v5 = vsub.s32 0, %v9100_v32  ;;  %vm3960_vm4 = vcmp.lt.s32.totalorder %v3939_v20, 3  ;;  %vm3961_vm14 = vcmp.lt.s32.totalorder %v3939_v20, 4  ;;  %v3957_v50 = vor.u32 %v3956_v14, %v3955_v21 }
 0x5e8   : > { %v3963_v6 = vsel %vm3961_vm14, %v3951_v59, 2102212464  ;;  %v3966_v26 = vsel %vm3958_vm5, %v3945_v43, %v3948_v16  ;;  %v3967_v3 = vsel %vm3961_vm14, %v3954_v19, 920167782  ;;  %v3942_v40 = vshrl.u32 %v10541_v36, %v3941_v1 }
 0x5e9   : > { %v5418_v7 = vmin.u32 %v3888_v5, %v9100_v32  ;;  %vm3959_vm6 = vcmp.lt.s32.totalorder %v3939_v20, 2  ;;  %v3968_v18 = vsel %vm3960_vm4, %v3951_v59, %v3967_v3  ;;  %v3970_v24 = vsel %vm3958_vm5, %v3948_v16, %v3951_v59 }
 0x5ea   : > { %v3969_v25 = vsel %vm3959_vm6, %v3966_v26, %v3968_v18  ;;  %v3971_v53 = vsel %vm3961_vm14, %v3957_v50, 1326507024  ;;  %v3974_v23 = vshll.u32 %v3934_v58, 8  ;;  %vm5416_vm11 = vcmp.lt.s32.totalorder %v5415_v41, 0 }
 0x5eb   : > { %v3890_v34 = vclz %v5418_v7  ;;  %v3962_v39 = vsel %vm3958_vm5, %v3942_v40, %v3945_v43  ;;  %v3964_v21 = vsel %vm3960_vm4, %v3948_v16, %v3963_v6  ;;  %v3972_v30 = vsel %vm3960_vm4, %v3954_v19, %v3971_v53 }
 0x5ec   : > { %v3973_v5 = vsel %vm3959_vm6, %v3970_v24, %v3972_v30  ;;  %v9118_v14 = vmul.u32.u64.low %v3974_v23, %v3969_v25  ;;  %v9119_v1 = vmul.u32.u64.high %v3974_v23, %v3969_v25, %v9118_v14  ;;  %v4042_v7 = vsel %vm4041_vm7, %v4040_v27, 0 }
 0x5ed   : > { %vm5408_vm1 = vcmp.lt.s32.totalorder %v9087_v62, 0  ;;  %v5419_v59 = vadd.s32 4294967294, %v3890_v34  ;;  %v9124_v50 = vmul.u32.u64.low %v3974_v23, %v3973_v5  ;;  %v9125_v58 = vmul.u32.u64.high %v3974_v23, %v3973_v5, %v9124_v50 }
 0x5ee   : > { %vm5412_vm9 = vcmp.lt.s32.totalorder %v5411_v0, 0  ;;  %v3965_v43 = vsel %vm3959_vm6, %v3962_v39, %v3964_v21  ;;  %v4037_v16 = vand.u32 8388607, %v10392_v54  ;;  %v4044_v19 = vand.u32 31, %v4042_v7 }
 0x5ef   : > { %v10550_v6 = vand.u32 2147483647, %v9073_v63  ;;  %v10551_v26 = vcvt.s32.f32 %v9070_v44  ;;  %v9139_v34 = vadd.s32 %v8849_v12, %v8877_v22  ;;  %v9142_v40 = vsel %vm5416_vm11, 0, %v5415_v41 }
 0x5f0   : > { %v10552_v20 = vsub.s32 4294967266, %v9075_v56  ;;  %v9149_v25 = vsel %vm5408_vm1, 0, %v9087_v62  ;;  %v3984_v44 = vadd.s32 1, %v9119_v1  ;;  %v4045_v63 = vsub.s32 32, %v4044_v19 }
 0x5f1   : > { %v9134_v3 = vmul.f32 %v10551_v26, %v10550_v6  ;;  %v9152_v24 = vsel %vm5412_vm9, 0, %v5411_v0  ;;  %vm5420_vm3 = vcmp.lt.s32.totalorder %v5419_v59, 0  ;;  %v3981_v53 = vmul.u32 %v3974_v23, %v3965_v43 }
 0x5f2   : > { %v9146_v18 = vadd.s32 127, %v10552_v20  ;;  %vm3983_vm15 = vc.u32 %v9125_v58, %v9118_v14  ;;  %v3794_v41 = vsub.s32 4294967266, %v9142_v40  ;;  %v4038_v22 = vor.u32 8388608, %v4037_v16 }
 0x5f3   : > { %v3985_v12 = vsel %vm3983_vm15, %v3984_v44, %v9119_v1  ;;  %v4048_v39 = vshrl.u32 %v10542_v2, %v4045_v63  ;;  %v4047_v62 = vshll.u32 %v10541_v36, %v4044_v19  ;;  %v4050_v30 = vshll.u32 %v10542_v2, %v4044_v19 }
 0x5f4   : > { %v3986_v21 = vadd.s32 %v3985_v12, %v3981_v53  ;;  %v4051_v0 = vshrl.u32 %v10543_v9, %v4045_v63  ;;  %v9162_v5 = vsel %vm5420_vm3, 0, %v5419_v59  ;;  %v4043_v23 = vshrl.u32 %v4042_v7, 5 }
 0x5f5   : > { %v4053_v50 = vshll.u32 %v10543_v9, %v4044_v19  ;;  %v4054_v43 = vshrl.u32 %v10544_v29, %v4045_v63  ;;  %v4049_v26 = vor.u32 %v4048_v39, %v4047_v62  ;;  %v4056_v16 = vshll.u32 %v10544_v29, %v4044_v19 }
 0x5f6   : > { %v3987_v6 = vadd.s32 536870912, %v3986_v21  ;;  %v4052_v1 = vor.u32 %v4051_v0, %v4050_v30  ;;  %v4057_v44 = vshrl.u32 %v10545_v31, %v4045_v63  ;;  %v4059_v53 = vshll.u32 %v10545_v31, %v4044_v19 }
 0x5f7   : > { %v4055_v20 = vor.u32 %v4054_v43, %v4053_v50  ;;  %v4060_v12 = vshrl.u32 %v10546_v60, %v4045_v63  ;;  %v3690_v59 = vsub.s32 4294967266, %v9152_v24  ;;  %v3774_v7 = vadd.s32 %v8996_v13, %v8993_v17 }
 0x5f8   : > { %v9173_v54 = vshrl.u32 %v3987_v6, 30  ;;  %v4078_v27 = vshll.u32 %v4038_v22, 8  ;;  %v3795_v9 = vadd.s32 127, %v3794_v41  ;;  %v3898_v39 = vsub.s32 4294967266, %v9162_v5 }
 0x5f9   : > { %v4058_v62 = vor.u32 %v4057_v44, %v4056_v16  ;;  %v4061_v30 = vor.u32 %v4060_v12, %v4059_v53  ;;  %v4046_v50 = vshrl.u32 %v10541_v36, %v4045_v63  ;;  %vm4062_vm12 = vcmp.lt.s32.totalorder %v4043_v23, 1 }
 0x5fa   : > { %v3989_v0 = vshll.u32 %v9173_v54, 30  ;;  %vm4065_vm0 = vcmp.lt.s32.totalorder %v4043_v23, 4  ;;  %vm4064_vm8 = vcmp.lt.s32.totalorder %v4043_v23, 3  ;;  %v4070_v43 = vsel %vm4062_vm12, %v4049_v26, %v4052_v1 }
 0x5fb   : > { %v4067_v19 = vsel %vm4065_vm0, %v4055_v20, 2102212464  ;;  %v4071_v60 = vsel %vm4065_vm0, %v4058_v62, 920167782  ;;  %vm4063_vm10 = vcmp.lt.s32.totalorder %v4043_v23, 2  ;;  %v4074_v13 = vsel %vm4062_vm12, %v4052_v1, %v4055_v20 }
 0x5fc   : > { %v9178_v31 = vsub.s32 %v3986_v21, %v3989_v0  ;;  %v4072_v17 = vsel %vm4064_vm8, %v4055_v20, %v4071_v60  ;;  %v3790_v41 = vsub.s32 32, %v9142_v40  ;;  %v3796_v22 = vshll.u32 %v3795_v9, 23 }
 0x5fd   : > { %v4073_v6 = vsel %vm4063_vm10, %v4070_v43, %v4072_v17  ;;  %v4075_v16 = vsel %vm4065_vm0, %v4061_v30, 1326507024  ;;  %v4066_v63 = vsel %vm4062_vm12, %v4046_v50, %v4049_v26  ;;  %v4068_v53 = vsel %vm4064_vm8, %v4052_v1, %v4067_v19 }
 0x5fe   : > { %v3992_v44 = vsub.s32 0, %v9178_v31  ;;  %v4076_v12 = vsel %vm4064_vm8, %v4058_v62, %v4075_v16  ;;  %v3899_v29 = vadd.s32 127, %v3898_v39  ;;  %v3586_v60 = vsub.s32 4294967266, %v9149_v25 }
 0x5ff   : > { %v4077_v2 = vsel %vm4063_vm10, %v4074_v13, %v4076_v12  ;;  %v9184_v36 = vmul.u32.u64.low %v4078_v27, %v4073_v6  ;;  %v9185_v21 = vmul.u32.u64.high %v4078_v27, %v4073_v6, %v9184_v36  ;;  %v3484_v30 = vshll.u32 %v9146_v18, 23 }
 0x600   : > { %v5422_v20 = vmin.u32 %v3992_v44, %v9178_v31  ;;  %v9190_v9 = vmul.u32.u64.low %v4078_v27, %v4077_v2  ;;  %v9191_v0 = vmul.u32.u64.high %v4078_v27, %v4077_v2, %v9190_v9  ;;  %v3792_v43 = vshrl.u32 %v3774_v7, %v3790_v41 }
 0x601   : > { %v3894_v26 = vsub.s32 32, %v9162_v5  ;;  %v4069_v1 = vsel %vm4063_vm10, %v4066_v63, %v4068_v53  ;;  %v3670_v39 = vadd.s32 %v8925_v33, %v8932_v37  ;;  %v3691_v62 = vadd.s32 127, %v3690_v59 }
 0x602   : > { %v3878_v50 = vadd.s32 %v9042_v48, %v9054_v8  ;;  %v3994_v19 = vclz %v5422_v20  ;;  %v3791_v17 = vshll.u32 %v9049_v61, %v9142_v40  ;;  %v3797_v2 = vor.u32 4788187, %v3796_v22 }
 0x603   : > { %v3900_v13 = vshll.u32 %v3899_v29, 23  ;;  %v4088_v6 = vadd.s32 1, %v9185_v21  ;;  %v3587_v7 = vadd.s32 127, %v3586_v60  ;;  %v4085_v16 = vmul.u32 %v4078_v27, %v4069_v1 }
 0x604   : > { %v5423_v41 = vadd.s32 4294967294, %v3994_v19  ;;  %vm4087_vm2 = vc.u32 %v9191_v0, %v9184_v36  ;;  %v3686_v33 = vsub.s32 32, %v9152_v24  ;;  %v3793_v37 = vor.u32 %v3792_v43, %v3791_v17 }
 0x605   : > { %v3896_v23 = vshrl.u32 %v3878_v50, %v3894_v26  ;;  %v4089_v48 = vsel %vm4087_vm2, %v4088_v6, %v9185_v21  ;;  %v3582_v8 = vsub.s32 32, %v9149_v25  ;;  %v3692_v59 = vshll.u32 %v3691_v62, 23 }
 0x606   : > { %vm5424_vm7 = vcmp.lt.s32.totalorder %v5423_v41, 0  ;;  %v4090_v61 = vadd.s32 %v4089_v48, %v4085_v16  ;;  %v3798_v29 = vand.u32 2147483647, %v3797_v2  ;;  %v3895_v40 = vshll.u32 %v9100_v32, %v9162_v5 }
 0x607   : > { %v3901_v22 = vor.u32 4788187, %v3900_v13  ;;  %v3997_v27 = vsel %vm5424_vm7, 0, %v5423_v41  ;;  %vm3304_vm5 = vcmp.lt.s32.totalorder %v8652_v47, 0  ;;  %v3588_v44 = vshll.u32 %v3587_v7, 23 }
 0x608   : > { %v3998_v63 = vsub.s32 32, %v3997_v27  ;;  %v4002_v53 = vsub.s32 4294967266, %v3997_v27  ;;  %v4091_v12 = vadd.s32 536870912, %v4090_v61  ;;  %v3688_v60 = vshrl.u32 %v3670_v39, %v3686_v33 }
 0x609   : > { %v3800_v20 = vcvt.s32.f32 %v3793_v37  ;;  %v3897_v21 = vor.u32 %v3896_v23, %v3895_v40  ;;  %v3982_v9 = vadd.s32 %v9118_v14, %v9125_v58  ;;  %v3584_v43 = vshrl.u32 %v9139_v34, %v3582_v8 }
 0x60a   : > { %v3687_v26 = vshll.u32 %v9047_v55, %v9152_v24  ;;  %v4003_v32 = vadd.s32 127, %v4002_v53  ;;  %v9216_v5 = vshrl.u32 %v4091_v12, 30  ;;  %v3693_v1 = vor.u32 4788187, %v3692_v59 }
 0x60b   : > { %v3801_v62 = vmul.f32 %v3800_v20, %v3798_v29  ;;  %v3902_v50 = vand.u32 2147483647, %v3901_v22  ;;  %v4000_v19 = vshrl.u32 %v3982_v9, %v3998_v63  ;;  %v3583_v39 = vshll.u32 %v9011_v52, %v9149_v25 }
 0x60c   : > { %v3589_v17 = vor.u32 4788187, %v3588_v44  ;;  %v4004_v2 = vshll.u32 %v4003_v32, 23  ;;  %v4093_v13 = vshll.u32 %v9216_v5, 30  ;;  %v3386_v14 = vxor.u32 2147483648, %v9134_v3 }
 0x60d   : > { %v3689_v58 = vor.u32 %v3688_v60, %v3687_v26  ;;  %v3904_v34 = vcvt.s32.f32 %v3897_v21  ;;  %v3999_v55 = vshll.u32 %v9178_v31, %v3997_v27  ;;  %v10553_v24 = vsub.s32 32, %v9075_v56 }
 0x60e   : > { %v3585_v7 = vor.u32 %v3584_v43, %v3583_v39  ;;  %v4005_v41 = vor.u32 4788187, %v4004_v2  ;;  %v9226_v16 = vsub.s32 %v4090_v61, %v4093_v13  ;;  %v3694_v33 = vand.u32 2147483647, %v3693_v1 }
 0x60f   : > { %v3480_v6 = vshrl.u32 %v9083_v35, %v10553_v24  ;;  %v3802_v52 = vxor.u32 2147483648, %v3801_v62  ;;  %v3905_v25 = vmul.f32 %v3904_v34, %v3902_v50  ;;  %v4001_v37 = vor.u32 %v4000_v19, %v3999_v55 }
 0x610   : > { %v3479_v23 = vshll.u32 %v8937_v49, %v9075_v56  ;;  %v3485_v48 = vor.u32 4788187, %v3484_v30  ;;  %v3590_v8 = vand.u32 2147483647, %v3589_v17  ;;  %v4096_v31 = vsub.s32 0, %v9226_v16 }
 0x611   : > { %v10554_v59 = vand.u32 2147483647, %v8652_v47  ;;  %v3387_v61 = vsel %vm3304_vm5, %v3386_v14, %v9134_v3  ;;  %v3696_v29 = vcvt.s32.f32 %v3689_v58  ;;  %v4006_v40 = vand.u32 2147483647, %v4005_v41 }
 0x612   : > { %v3481_v22 = vor.u32 %v3480_v6, %v3479_v23  ;;  %v3592_v49 = vcvt.s32.f32 %v3585_v7  ;;  %vm3720_vm14 = vcmp.lt.s32.totalorder %v8868_v28, 0  ;;  %v5426_v56 = vmin.u32 %v4096_v31, %v9226_v16 }
 0x613   : > { %vm9235_vm4 = vcmp.le.f32.partialorder %v10554_v59, 0.7853982  ;;  %v3697_v18 = vmul.f32 %v3696_v29, %v3694_v33  ;;  %v3803_v30 = vsel %vm3720_vm14, %v3802_v52, %v3801_v62  ;;  %v3906_v27 = vxor.u32 2147483648, %v3905_v25 }
 0x614   : > { %v4008_v44 = vcvt.s32.f32 %v4001_v37  ;;  %v3390_v63 = vsel %vm9235_vm4, %v8652_v47, %v3387_v61  ;;  %v3486_v53 = vand.u32 2147483647, %v3485_v48  ;;  %v3593_v3 = vmul.f32 %v3592_v49, %v3590_v8 }
 0x615   : > { %v4098_v12 = vclz %v5426_v56  ;;  %vm3512_vm6 = vcmp.lt.s32.totalorder %v8663_v46, 0  ;;  %v10557_v60 = vand.u32 2147483647, %v8868_v28  ;;  %v3488_v9 = vcvt.s32.f32 %v3481_v22 }
 0x616   : > { %v4009_v21 = vmul.f32 %v4008_v44, %v4006_v40  ;;  %vm3824_vm1 = vcmp.lt.s32.totalorder %v8921_v15, 0  ;;  %5792 = vcosq.f32 %v3390_v63  ;;  %vm3616_vm9 = vcmp.lt.s32.totalorder %v8717_v38, 0 }
 0x617   : > { %vm9252_vm11 = vcmp.le.f32.partialorder %v10557_v60, 0.7853982  ;;  %v5427_v26 = vadd.s32 4294967294, %v4098_v12  ;;  %v3698_v32 = vxor.u32 2147483648, %v3697_v18  ;;  %v3907_v1 = vsel %vm3824_vm1, %v3906_v27, %v3905_v25 }
 0x618   : > { %v3806_v43 = vsel %vm9252_vm11, %v8868_v28, %v3803_v30  ;;  %vm3408_vm3 = vcmp.lt.s32.totalorder %v8655_v11, 0  ;;  %v3489_v62 = vmul.f32 %v3488_v9, %v3486_v53  ;;  %v10560_v50 = vand.u32 2147483647, %v8663_v46 }
 0x619   : > { %v3594_v39 = vxor.u32 2147483648, %v3593_v3  ;;  %vm3928_vm12 = vcmp.lt.s32.totalorder %v9031_v51, 0  ;;  %vm5428_vm0 = vcmp.lt.s32.totalorder %v5427_v26, 0  ;;  %5794 = vcosq.f32 %v3806_v43 }
 0x61a   : > { %vm9266_vm15 = vcmp.le.f32.partialorder %v10560_v50, 0.7853982  ;;  %v4010_v17 = vxor.u32 2147483648, %v4009_v21  ;;  %v4101_v2 = vsel %vm5428_vm0, 0, %v5427_v26  ;;  %v10563_v13 = vand.u32 2147483647, %v8921_v15 }
 0x61b   : > { %v4086_v58 = vadd.s32 %v9184_v36, %v9191_v0  ;;  %v4102_v34 = vsub.s32 32, %v4101_v2  ;;  %v4106_v55 = vsub.s32 4294967266, %v4101_v2  ;;  %v3699_v6 = vsel %vm3616_vm9, %v3698_v32, %v3697_v18 }
 0x61c   : > { %vm9273_vm8 = vcmp.le.f32.partialorder %v10563_v13, 0.7853982  ;;  %5796 = vsinq.f32 %v3806_v43  ;;  %v4012_v7 = vsub.s32 4, %v9173_v54  ;;  %v3804_v41 = vsub.s32 4, %v9034_v42 }
 0x61d   : > { %v3910_v24 = vsel %vm9273_vm8, %v8921_v15, %v3907_v1  ;;  %v4103_v33 = vshll.u32 %v9226_v16, %v4101_v2  ;;  %v4104_v52 = vshrl.u32 %v4086_v58, %v4102_v34  ;;  %v4107_v25 = vadd.s32 127, %v4106_v55 }
 0x61e   : > { %v3908_v36 = vsub.s32 4, %v9089_v10  ;;  %v3490_v0 = vxor.u32 2147483648, %v3489_v62  ;;  %v3595_v37 = vsel %vm3512_vm6, %v3594_v39, %v3593_v3  ;;  %v4011_v23 = vsel %vm3928_vm12, %v4010_v17, %v4009_v21 }
 0x61f   : > { %5798 = vcosq.f32 %v3910_v24  ;;  %v4105_v48 = vor.u32 %v4104_v52, %v4103_v33  ;;  %v4108_v8 = vshll.u32 %v4107_v25, 23  ;;  %v10566_v31 = vand.u32 2147483647, %v8717_v38  ;;  %v10579_v33 = vld [vmem:[#allocation8_spill] sm:$0xff] }
 0x620   : > { %5800 = vsinq.f32 %v3910_v24  ;;  %v10569_v16 = vand.u32 2147483647, %v9031_v51  ;;  %v4013_v29 = vsel %vm3928_vm12, %v4012_v7, %v9173_v54  ;;  %v3909_v56 = vsel %vm3824_vm1, %v3908_v36, %v9089_v10  ;;  %v10578_v24 = vld [vmem:[#allocation5_spill] sm:$0xff] }
 0x621   : > { %vm9294_vm10 = vcmp.le.f32.partialorder %v10566_v31, 0.7853982  ;;  %5802 = vsinq.f32 %v3390_v63  ;;  %v4109_v49 = vor.u32 4788187, %v4108_v8  ;;  %v3805_v18 = vsel %vm3720_vm14, %v3804_v41, %v9034_v42 }
 0x622   : > { %vm9300_vm2 = vcmp.le.f32.partialorder %v10569_v16, 0.7853982  ;;  %v3702_v40 = vsel %vm9294_vm10, %v8717_v38, %v3699_v6  ;;  %v3491_v54 = vsel %vm3408_vm3, %v3490_v0, %v3489_v62  ;;  %v3598_v30 = vsel %vm9266_vm15, %v8663_v46, %v3595_v37 }
 0x623   : > { %v4014_v22 = vsel %vm9300_vm2, %v9031_v51, %v4011_v23  ;;  %vm4032_vm7 = vcmp.lt.s32.totalorder %v9040_v45, 0  ;;  %v4116_v27 = vsub.s32 4, %v9216_v5  ;;  %v4110_v44 = vand.u32 2147483647, %v4109_v49  ;;  %v9333_v12 = vpop.eup %5792 }
 0x624   : > { %v4112_v63 = vcvt.s32.f32 %v4105_v48  ;;  %v4015_v10 = vsel %vm9300_vm2, 0, %v4013_v29  ;;  %5804 = vcosq.f32 %v3702_v40  ;;  %v3911_v42 = vsel %vm9273_vm8, 0, %v3909_v56 }
 0x625   : > { %5806 = vcosq.f32 %v4014_v22  ;;  %v3807_v53 = vsel %vm9252_vm11, 0, %v3805_v18  ;;  %v3700_v3 = vsub.s32 4, %v9015_v57  ;;  %v3596_v21 = vsub.s32 4, %v8971_v4 }
 0x626   : > { %5808 = vsinq.f32 %v4014_v22  ;;  %v4113_v60 = vmul.f32 %v4112_v63, %v4110_v44  ;;  %v10572_v9 = vand.u32 2147483647, %v8655_v11  ;;  %v4117_v20 = vsel %vm4032_vm7, %v4116_v27, %v9216_v5  ;;  %v5795_v32 = vpop.eup %5794 }
 0x627   : > { %5810 = vsinq.f32 %v3598_v30  ;;  %v10575_v62 = vand.u32 2147483647, %v9040_v45  ;;  %v4019_v39 = vadd.s32 3, %v4015_v10  ;;  %v3915_v17 = vadd.s32 3, %v3911_v42 }
 0x628   : > { %vm9338_vm14 = vcmp.le.f32.partialorder %v10572_v9, 0.7853982  ;;  %5812 = vcosq.f32 %v3598_v30  ;;  %v4114_v1 = vxor.u32 2147483648, %v4113_v60  ;;  %v3811_v2 = vadd.s32 3, %v3807_v53 }
 0x629   : > { %v3494_v26 = vsel %vm9338_vm14, %v8655_v11, %v3491_v54  ;;  %vm9350_vm11 = vcmp.le.f32.partialorder %v10575_v62, 0.7853982  ;;  %v3701_v5 = vsel %vm3616_vm9, %v3700_v3, %v9015_v57  ;;  %5814 = vsinq.f32 %v3702_v40  ;;  %v5797_v13 = vpop.eup %5796 }
 0x62a   : > { %v4115_v14 = vsel %vm4032_vm7, %v4114_v1, %v4113_v60  ;;  %v4119_v58 = vsel %vm9350_vm11, 0, %v4117_v20  ;;  %v3597_v34 = vsel %vm3512_vm6, %v3596_v21, %v8971_v4  ;;  %5816 = vcosq.f32 %v3494_v26 }
 0x62b   : > { %v4118_v55 = vsel %vm9350_vm11, %v9040_v45, %v4115_v14  ;;  %v3492_v6 = vsub.s32 4, %v10578_v24  ;;  %5818 = vsinq.f32 %v3494_v26  ;;  %v9368_v7 = vand.u32 3, %v4019_v39 }
 0x62c   : > { %v5799_v57 = vpop.eup %5798  ;;  %5820 = vcosq.f32 %v4118_v55  ;;  %v3703_v41 = vsel %vm9294_vm10, 0, %v3701_v5  ;;  %v3388_v52 = vsub.s32 4, %v10579_v33  ;;  %v4123_v4 = vadd.s32 3, %v4119_v58 }
 0x62d   : > { %v5801_v25 = vpop.eup %5800  ;;  %5822 = vsinq.f32 %v4118_v55  ;;  %v3812_v36 = vand.u32 3, %v3811_v2  ;;  %v3599_v0 = vsel %vm9266_vm15, 0, %v3597_v34  ;;  %v3916_v23 = vand.u32 3, %v3915_v17 }
 0x62e   : > { %v9375_v37 = vpop.eup %5802  ;;  %v3815_v48 = vxor.u32 2147483648, %v5797_v13  ;;  %v3818_v8 = vxor.u32 2147483648, %v5795_v32  ;;  %v3707_v31 = vadd.s32 3, %v3703_v41  ;;  %v3493_v59 = vsel %vm3408_vm3, %v3492_v6, %v10578_v24 }
 0x62f   : > { %v3919_v16 = vxor.u32 2147483648, %v5801_v25  ;;  %v3922_v61 = vxor.u32 2147483648, %v5799_v57  ;;  %v3603_v29 = vadd.s32 3, %v3599_v0  ;;  %v3389_v40 = vsel %vm3304_vm5, %v3388_v52, %v10579_v33 }
 0x630   : > { %v9385_v19 = vand.u32 3, %v4123_v4  ;;  %vm4022_vm6 = vcmp.eq.s32.totalorder %v9368_v7, 0  ;;  %vm4025_vm1 = vcmp.eq.s32.totalorder %v9368_v7, 2  ;;  %vm3814_vm9 = vcmp.eq.s32.totalorder %v3812_v36, 0 }
 0x631   : > { %v9383_v22 = vpop.eup %5804  ;;  %vm3817_vm15 = vcmp.eq.s32.totalorder %v3812_v36, 2  ;;  %vm3917_vm12 = vcmp.lt.s32.totalorder %v3916_v23, 2  ;;  %v3816_v56 = vsel %vm3814_vm9, %v5795_v32, %v3815_v48  ;;  %v3495_v54 = vsel %vm9338_vm14, 0, %v3493_v59 }
 0x632   : > { %v5807_v49 = vpop.eup %5806  ;;  %v3819_v18 = vsel %vm3817_vm15, %v3818_v8, %v5797_v13  ;;  %vm3918_vm3 = vcmp.eq.s32.totalorder %v3916_v23, 0  ;;  %vm3921_vm5 = vcmp.eq.s32.totalorder %v3916_v23, 2  ;;  %v9391_v27 = vand.u32 3, %v3707_v31 }
 0x633   : > { %v5809_v30 = vpop.eup %5808  ;;  %v3391_v44 = vsel %vm9235_vm4, 0, %v3389_v40  ;;  %vm4021_vm0 = vcmp.lt.s32.totalorder %v9368_v7, 2  ;;  %v3920_v10 = vsel %vm3918_vm3, %v5799_v57, %v3919_v16  ;;  %v3923_v42 = vsel %vm3921_vm5, %v3922_v61, %v5801_v25 }
 0x634   : > { %v5811_v63 = vpop.eup %5810  ;;  %vm3813_vm8 = vcmp.lt.s32.totalorder %v3812_v36, 2  ;;  %v9396_v53 = vand.u32 3, %v3603_v29  ;;  %vm4125_vm10 = vcmp.lt.s32.totalorder %v9385_v19, 2  ;;  %v3714_v21 = vxor.u32 2147483648, %v9383_v22 }
 0x635   : > { %v5813_v3 = vpop.eup %5812  ;;  %v3820_v60 = vsel %vm3813_vm8, %v3816_v56, %v3819_v18  ;;  %v3499_v9 = vadd.s32 3, %v3495_v54  ;;  %vm4122_vm2 = vweird.f32 %v9040_v45  ;;  %vm4126_vm4 = vcmp.eq.s32.totalorder %v9385_v19, 0  ;;  %v9465_v18 = vpop.permute.xlu1 %4156 }
 0x636   : > { %v5815_v43 = vpop.eup %5814  ;;  %v4023_v35 = vxor.u32 2147483648, %v5809_v30  ;;  %v4026_v20 = vxor.u32 2147483648, %v5807_v49  ;;  %v3395_v26 = vadd.s32 3, %v3391_v44  ;;  %vm4129_vm7 = vcmp.eq.s32.totalorder %v9385_v19, 2 }
 0x637   : > { %v5817_v32 = vpop.eup %5816  ;;  %vm4018_vm14 = vweird.f32 %v9031_v51  ;;  %v3924_v1 = vsel %vm3917_vm12, %v3920_v10, %v3923_v42  ;;  %vm3709_vm11 = vcmp.lt.s32.totalorder %v9391_v27, 2  ;;  %v3607_v62 = vxor.u32 2147483648, %v5811_v63 }
 0x638   : > { %v5819_v50 = vpop.eup %5818  ;;  %vm3914_vm9 = vweird.f32 %v8921_v15  ;;  %vm3710_vm15 = vcmp.eq.s32.totalorder %v9391_v27, 0  ;;  %vm3713_vm3 = vcmp.eq.s32.totalorder %v9391_v27, 2  ;;  %vm3605_vm5 = vcmp.lt.s32.totalorder %v9396_v53, 2 }
 0x639   : > { %v3610_v39 = vxor.u32 2147483648, %v5813_v3  ;;  %v5821_v17 = vpop.eup %5820  ;;  %v3711_v2 = vxor.u32 2147483648, %v5815_v43  ;;  %v3715_v5 = vsel %vm3713_vm3, %v3714_v21, %v5815_v43  ;;  %vm3606_vm8 = vcmp.eq.s32.totalorder %v9396_v53, 0  ;;  %v4147_v54 = vpop.permute.xlu1 %4146 }
 0x63a   : > { %v3500_v13 = vand.u32 3, %v3499_v9  ;;  %v5823_v14 = vpop.eup %5822  ;;  %v4130_v58 = vxor.u32 2147483648, %v5821_v17  ;;  %v4024_v34 = vsel %vm4022_vm6, %v5807_v49, %v4023_v35  ;;  %v4027_v55 = vsel %vm4025_vm1, %v4026_v20, %v5809_v30  ;;  %v5429_v49 = vld [vmem:[%s10302_s3 + $0x60] sm:$0xff] }
 0x63b   : > { %v3396_v24 = vand.u32 3, %v3395_v26  ;;  %v4127_v6 = vxor.u32 2147483648, %v5823_v14  ;;  %v3608_v57 = vsel %vm3606_vm8, %v5813_v3, %v3607_v62  ;;  %v3503_v41 = vxor.u32 2147483648, %v5819_v50 }
 0x63c   : > { %v3506_v33 = vxor.u32 2147483648, %v5817_v32  ;;  %v4131_v52 = vsel %vm4129_vm7, %v4130_v58, %v5823_v14  ;;  %vm3609_vm12 = vcmp.eq.s32.totalorder %v9396_v53, 2  ;;  %v3399_v25 = vxor.u32 2147483648, %v9375_v37 }
 0x63d   : > { %v3402_v4 = vxor.u32 2147483648, %v9333_v12  ;;  %v4128_v36 = vsel %vm4126_vm4, %v5821_v17, %v4127_v6  ;;  %v4028_v0 = vsel %vm4021_vm0, %v4024_v34, %v4027_v55  ;;  %v3712_v23 = vsel %vm3710_vm15, %v9383_v22, %v3711_v2 }
 0x63e   : > { %v3611_v48 = vsel %vm3609_vm12, %v3610_v39, %v5811_v63  ;;  %v4132_v8 = vsel %vm4125_vm10, %v4128_v36, %v4131_v52  ;;  %vm3502_vm6 = vcmp.eq.s32.totalorder %v3500_v13, 0  ;;  %vm3505_vm1 = vcmp.eq.s32.totalorder %v3500_v13, 2 }
 0x63f   : > { %vm3398_vm7 = vcmp.eq.s32.totalorder %v3396_v24, 0  ;;  %v4133_v31 = vsel %vm4122_vm2, nan, %v4132_v8  ;;  %v3504_v59 = vsel %vm3502_vm6, %v5817_v32, %v3503_v41  ;;  %v3507_v16 = vsel %vm3505_vm1, %v3506_v33, %v5819_v50 }
 0x640   : > { %vm3401_vm4 = vcmp.eq.s32.totalorder %v3396_v24, 2  ;;  %4200 = vmatprep.subr.mxu1 %v4133_v31  ;;  %v4029_v7 = vsel %vm4018_vm14, nan, %v4028_v0  ;;  %v3716_v61 = vsel %vm3709_vm11, %v3712_v23, %v3715_v5  ;;  %v3400_v29 = vsel %vm3398_vm7, %v9333_v12, %v3399_v25 }
 0x641   : > { %v3403_v40 = vsel %vm3401_vm4, %v3402_v4, %v9375_v37  ;;  %4201 = vmatpush1.msra.mxu1 %v4029_v7  ;;  %v3925_v22 = vsel %vm3914_vm9, nan, %v3924_v1  ;;  %vm3810_vm0 = vweird.f32 %v8868_v28  ;;  %v3612_v45 = vsel %vm3605_vm5, %v3608_v57, %v3611_v48 }
 0x642   : > { %vm3501_vm10 = vcmp.lt.s32.totalorder %v3500_v13, 2  ;;  %4202 = vmatprep.subr.mxu1 %v3925_v22  ;;  %v3821_v51 = vsel %vm3810_vm0, nan, %v3820_v60  ;;  %vm3706_vm2 = vweird.f32 %v8717_v38  ;;  %vm3397_vm14 = vcmp.lt.s32.totalorder %v3396_v24, 2  ;;  %v9473_v60 = vpop.permute.xlu0 %4161 }
 0x643   : > { %v3508_v19 = vsel %vm3501_vm10, %v3504_v59, %v3507_v16  ;;  %4203 = vmatpush1.msra.mxu1 %v3821_v51  ;;  %v3717_v12 = vsel %vm3706_vm2, nan, %v3716_v61  ;;  %vm3602_vm11 = vweird.f32 %v8663_v46  ;;  %v3404_v37 = vsel %vm3397_vm14, %v3400_v29, %v3403_v40  ;;  %v5430_v46 = vld [vmem:[%s10302_s3 + $0x68] sm:$0xff] }
 0x644   : > { %4204 = vmatprep.subr.mxu1 %v3717_v12  ;;  %v3613_v15 = vsel %vm3602_vm11, nan, %v3612_v45  ;;  %vm3498_vm9 = vweird.f32 %v8655_v11  ;;  %vm3394_vm15 = vweird.f32 %v8652_v47  ;;  %v10580_v56 = vmov 0.0   ;;  %v5431_v47 = vld [vmem:[%s10302_s3 + $0x70] sm:$0xff]  ;;  %v5432_v11 = vld [vmem:[%s10302_s3 + $0x78] sm:$0xff] }
 0x645   : > { %4205 = vmatpush1.msra.mxu1 %v3613_v15  ;;  %v3509_v28 = vsel %vm3498_vm9, nan, %v3508_v19  ;;  %v3405_v38 = vsel %vm3394_vm15, nan, %v3404_v37  ;;  %v10581_v5 = vmov 683565275   ;;  %v10582_v14 = vmov 2475754826  }
 0x646   : > { %4206 = vmatprep.subr.mxu1 %v3509_v28  ;;  %v4152_v62 = vpop.permute.xlu0 %4151  ;;  %v10583_v55 = vmov 2131351028   ;;  %v10584_v57 = vmov 2102212464   ;;  %v10585_v52 = vmov 920167782  }
 0x647   : > { %4207 = vmatpush1.msra.mxu1 %v3405_v38  ;;  %v10586_v36 = vmov 1326507024  }
 0x648   : > { %5437 = vmatmul.mubr.msk.f32.vlgmr.msra.gmra.mxu1 %vm1274_vm13, %v5429_v49 }
 0x649   : > { %4246 = vmatprep.mubr.f32.mxu1 %v10580_v56 }
 0x64c   : > { %5438 = vmatmul.mubr.msk.f32.gmra.mxu1 %vm1274_vm13, %v5430_v46 }
 0x64d   : > { %4252 = vmatprep.mubr.f32.mxu1 %v10580_v56 }
 0x650   : > { %5439 = vmatmul.mubr.msk.f32.gmra.mxu1 %vm1274_vm13, %v5431_v47 }
 0x651   : > { %4258 = vmatprep.mubr.f32.mxu1 %v10580_v56 }
 0x654   : > { %5440 = vmatmul.mubr.msk.f32.gmra.mxu1 %vm1274_vm13, %v5432_v11 }
 0x708   : > { %v4242_v30 = vpop.f32.mrf.mxu1 }
 0x709   : > { %v9467_v27 = vadd.f32 %v4242_v30, %v4147_v54 }
 0x70a   : > { %v4244_v44 = vpop.f32.mrf.mxu1 }
 0x70b   : > { %v4268_v63 = vand.u32 2139095040, %v9467_v27  ;;  %v9470_v10 = vadd.f32 %v4244_v44, %v4147_v54  ;;  %v10404_v35 = vand.u32 2147483647, %v9467_v27 }
 0x70c   : > { %v4248_v32 = vpop.f32.mrf.mxu1 }
 0x70d   : > { %v4269_v42 = vshrl.u32 %v4268_v63, 23  ;;  %v4372_v53 = vand.u32 2139095040, %v9470_v10  ;;  %v4272_v50 = vand.u32 8388607, %v10404_v35  ;;  %v9478_v17 = vadd.f32 %v4248_v32, %v4152_v62 }
 0x70e   : > { %v4250_v54 = vpop.f32.mrf.mxu1  ;;  %v10399_v30 = vand.u32 2147483647, %v9470_v10 }
 0x70f   : > { %v5441_v3 = vadd.s32 4294967169, %v4269_v42  ;;  %v4373_v21 = vshrl.u32 %v4372_v53, 23  ;;  %v4273_v59 = vor.u32 8388608, %v4272_v50  ;;  %v4476_v29 = vand.u32 2139095040, %v9478_v17 }
 0x711   : > { %v4275_v9 = vadd.s32 1, %v5441_v3  ;;  %v5445_v43 = vadd.s32 4294967169, %v4373_v21  ;;  %v4313_v28 = vshll.u32 %v4273_v59, 8  ;;  %v4477_v49 = vshrl.u32 %v4476_v29, 23 }
 0x713   : > { %vm4276_vm3 = vcmp.gt.s32.totalorder %v4275_v9, 0  ;;  %v4379_v26 = vadd.s32 1, %v5445_v43  ;;  %v5449_v44 = vadd.s32 4294967169, %v4477_v49 }
 0x714   : > { %v4277_v20 = vsel %vm4276_vm3, %v4275_v9, 0  ;;  %v9532_v9 = vadd.f32 %v4250_v54, %v4152_v62 }
 0x715   : > { %v4279_v1 = vand.u32 31, %v4277_v20  ;;  %v9480_v2 = vshrl.u32 %v4277_v20, 5  ;;  %vm4380_vm5 = vcmp.gt.s32.totalorder %v4379_v26, 0 }
 0x716   : > { %v4381_v31 = vsel %vm4380_vm5, %v4379_v26, 0 }
 0x717   : > { %v4280_v39 = vsub.s32 32, %v4279_v1  ;;  %v4282_v13 = vshll.u32 %v10581_v5, %v4279_v1  ;;  %v4285_v58 = vshll.u32 %v10582_v14, %v4279_v1  ;;  %v4288_v6 = vshll.u32 %v10583_v55, %v4279_v1 }
 0x718   : > { %v4291_v33 = vshll.u32 %v10584_v57, %v4279_v1  ;;  %v4294_v4 = vshll.u32 %v10585_v52, %v4279_v1  ;;  %vm4297_vm8 = vcmp.lt.s32.totalorder %v9480_v2, 1  ;;  %vm4299_vm12 = vcmp.lt.s32.totalorder %v9480_v2, 3 }
 0x719   : > { %v4283_v34 = vshrl.u32 %v10582_v14, %v4280_v39  ;;  %v4286_v24 = vshrl.u32 %v10583_v55, %v4280_v39  ;;  %v4289_v41 = vshrl.u32 %v10584_v57, %v4280_v39  ;;  %v4292_v25 = vshrl.u32 %v10585_v52, %v4280_v39 }
 0x71a   : > { %v4295_v0 = vshrl.u32 %v10586_v36, %v4280_v39  ;;  %vm4300_vm6 = vcmp.lt.s32.totalorder %v9480_v2, 4  ;;  %v4383_v51 = vand.u32 31, %v4381_v31  ;;  %vm4298_vm1 = vcmp.lt.s32.totalorder %v9480_v2, 2 }
 0x71b   : > { %v4284_v23 = vor.u32 %v4283_v34, %v4282_v13  ;;  %v4287_v48 = vor.u32 %v4286_v24, %v4285_v58  ;;  %v4290_v8 = vor.u32 %v4289_v41, %v4288_v6  ;;  %v4293_v16 = vor.u32 %v4292_v25, %v4291_v33 }
 0x71c   : > { %v4296_v7 = vor.u32 %v4295_v0, %v4294_v4  ;;  %v9513_v38 = vsub.s32 32, %v4383_v51  ;;  %v4281_v63 = vshrl.u32 %v10581_v5, %v4280_v39  ;;  %v9530_v21 = vshrl.u32 %v4381_v31, 5 }
 0x71d   : > { %v4305_v61 = vsel %vm4297_vm8, %v4284_v23, %v4287_v48  ;;  %v4306_v40 = vsel %vm4300_vm6, %v4293_v16, 920167782  ;;  %v4309_v22 = vsel %vm4297_vm8, %v4287_v48, %v4290_v8  ;;  %v4302_v42 = vsel %vm4300_vm6, %v4290_v8, 2102212464 }
 0x71e   : > { %v4310_v45 = vsel %vm4300_vm6, %v4296_v7, 1326507024  ;;  %v4307_v19 = vsel %vm4299_vm12, %v4290_v8, %v4306_v40  ;;  %v4396_v53 = vshrl.u32 %v10585_v52, %v9513_v38  ;;  %v4399_v3 = vshrl.u32 %v10586_v36, %v9513_v38 }
 0x71f   : > { %v4311_v12 = vsel %vm4299_vm12, %v4293_v16, %v4310_v45  ;;  %v4308_v37 = vsel %vm4298_vm1, %v4305_v61, %v4307_v19  ;;  %v4301_v43 = vsel %vm4297_vm8, %v4281_v63, %v4284_v23  ;;  %v4387_v20 = vshrl.u32 %v10582_v14, %v9513_v38 }
 0x720   : > { %v4312_v15 = vsel %vm4298_vm1, %v4309_v22, %v4311_v12  ;;  %v9515_v56 = vmul.u32.u64.low %v4313_v28, %v4308_v37  ;;  %v9516_v46 = vmul.u32.u64.high %v4313_v28, %v4308_v37, %v9515_v56  ;;  %v4395_v26 = vshll.u32 %v10584_v57, %v4383_v51 }
 0x721   : > { %v9519_v47 = vmul.u32.u64.low %v4313_v28, %v4312_v15  ;;  %v9520_v11 = vmul.u32.u64.high %v4313_v28, %v4312_v15, %v9519_v47  ;;  %v4398_v32 = vshll.u32 %v10585_v52, %v4383_v51  ;;  %v4303_v1 = vsel %vm4299_vm12, %v4287_v48, %v4302_v42 }
 0x722   : > { %v4390_v50 = vshrl.u32 %v10583_v55, %v9513_v38  ;;  %v4393_v62 = vshrl.u32 %v10584_v57, %v9513_v38  ;;  %v4483_v39 = vadd.s32 1, %v5449_v44  ;;  %v4376_v13 = vand.u32 8388607, %v10399_v30 }
 0x723   : > { %v4386_v58 = vshll.u32 %v10581_v5, %v4383_v51  ;;  %v4397_v34 = vor.u32 %v4396_v53, %v4395_v26  ;;  %v4400_v24 = vor.u32 %v4399_v3, %v4398_v32  ;;  %v4323_v6 = vadd.s32 1, %v9516_v46 }
 0x724   : > { %v4389_v41 = vshll.u32 %v10582_v14, %v4383_v51  ;;  %v4392_v33 = vshll.u32 %v10583_v55, %v4383_v51  ;;  %v4580_v25 = vand.u32 2139095040, %v9532_v9  ;;  %v4304_v4 = vsel %vm4298_vm1, %v4301_v43, %v4303_v1 }
 0x725   : > { %vm4322_vm7 = vc.u32 %v9520_v11, %v9515_v56  ;;  %v4388_v0 = vor.u32 %v4387_v20, %v4386_v58  ;;  %vm4484_vm4 = vcmp.gt.s32.totalorder %v4483_v39, 0  ;;  %vm4404_vm0 = vcmp.lt.s32.totalorder %v9530_v21, 4 }
 0x726   : > { %v4391_v23 = vor.u32 %v4390_v50, %v4389_v41  ;;  %v4394_v48 = vor.u32 %v4393_v62, %v4392_v33  ;;  %v4485_v8 = vsel %vm4484_vm4, %v4483_v39, 0  ;;  %v4410_v31 = vsel %vm4404_vm0, %v4397_v34, 920167782 }
 0x727   : > { %v4414_v59 = vsel %vm4404_vm0, %v4400_v24, 1326507024  ;;  %v4487_v16 = vand.u32 31, %v4485_v8  ;;  %v4324_v2 = vsel %vm4322_vm7, %v4323_v6, %v9516_v46  ;;  %v4377_v7 = vor.u32 8388608, %v4376_v13 }
 0x728   : > { %v4320_v61 = vmul.u32 %v4313_v28, %v4304_v4  ;;  %vm4401_vm10 = vcmp.lt.s32.totalorder %v9530_v21, 1  ;;  %vm4403_vm2 = vcmp.lt.s32.totalorder %v9530_v21, 3  ;;  %v4581_v29 = vshrl.u32 %v4580_v25, 23 }
 0x729   : > { %v4409_v40 = vsel %vm4401_vm10, %v4388_v0, %v4391_v23  ;;  %v4411_v22 = vsel %vm4403_vm2, %v4394_v48, %v4410_v31  ;;  %v4413_v45 = vsel %vm4401_vm10, %v4391_v23, %v4394_v48  ;;  %v4415_v51 = vsel %vm4403_vm2, %v4397_v34, %v4414_v59 }
 0x72a   : > { %v4325_v19 = vadd.s32 %v4324_v2, %v4320_v61  ;;  %v9573_v12 = vsub.s32 32, %v4487_v16  ;;  %vm4402_vm14 = vcmp.lt.s32.totalorder %v9530_v21, 2  ;;  %v4417_v28 = vshll.u32 %v4377_v7, 8 }
 0x72b   : > { %v4412_v37 = vsel %vm4402_vm14, %v4409_v40, %v4411_v22  ;;  %v4416_v15 = vsel %vm4402_vm14, %v4413_v45, %v4415_v51  ;;  %v5453_v49 = vadd.s32 4294967169, %v4581_v29  ;;  %v10402_v47 = vand.u32 2147483647, %v9478_v17 }
 0x72c   : > { %v4326_v46 = vadd.s32 536870912, %v4325_v19  ;;  %v4500_v54 = vshrl.u32 %v10585_v52, %v9573_v12  ;;  %v9583_v44 = vmul.u32.u64.low %v4417_v28, %v4416_v15  ;;  %v9584_v63 = vmul.u32.u64.high %v4417_v28, %v4416_v15, %v9583_v44 }
 0x72d   : > { %v9586_v42 = vmul.u32.u64.low %v4417_v28, %v4412_v37  ;;  %v9587_v53 = vmul.u32.u64.high %v4417_v28, %v4412_v37, %v9586_v42  ;;  %v4385_v3 = vshrl.u32 %v10581_v5, %v9513_v38  ;;  %v4491_v43 = vshrl.u32 %v10582_v14, %v9573_v12 }
 0x72e   : > { %v4494_v20 = vshrl.u32 %v10583_v55, %v9573_v12  ;;  %v4499_v26 = vshll.u32 %v10584_v57, %v4487_v16  ;;  %v9597_v32 = vshrl.u32 %v4485_v8, 5  ;;  %v4497_v1 = vshrl.u32 %v10584_v57, %v9573_v12 }
 0x72f   : > { %v4503_v50 = vshrl.u32 %v10586_v36, %v9573_v12  ;;  %v4587_v62 = vadd.s32 1, %v5453_v49  ;;  %v9603_v39 = vshrl.u32 %v4326_v46, 30  ;;  %v4490_v38 = vshll.u32 %v10581_v5, %v4487_v16 }
 0x730   : > { %v4493_v13 = vshll.u32 %v10582_v14, %v4487_v16  ;;  %v4501_v58 = vor.u32 %v4500_v54, %v4499_v26  ;;  %v4406_v34 = vsel %vm4404_vm0, %v4394_v48, 2102212464  ;;  %v4496_v24 = vshll.u32 %v10583_v55, %v4487_v16 }
 0x731   : > { %10587 = vst [vmem:[#allocation11_spill] sm:$0xff] %v9603_v39  ;;  %v4502_v6 = vshll.u32 %v10585_v52, %v4487_v16  ;;  %v4405_v41 = vsel %vm4401_vm10, %v4385_v3, %v4388_v0  ;;  %v4480_v33 = vand.u32 8388607, %v10402_v47  ;;  %v9615_v25 = vor.u32 %v4491_v43, %v4490_v38 }
 0x732   : > { %v9617_v4 = vor.u32 %v4494_v20, %v4493_v13  ;;  %v4498_v8 = vor.u32 %v4497_v1, %v4496_v24  ;;  %vm4508_vm11 = vcmp.lt.s32.totalorder %v9597_v32, 4  ;;  %vm4588_vm9 = vcmp.gt.s32.totalorder %v4587_v62, 0 }
 0x733   : > { %v4504_v31 = vor.u32 %v4503_v50, %v4502_v6  ;;  %v4328_v48 = vshll.u32 %v9603_v39, 30  ;;  %v4407_v59 = vsel %vm4403_vm2, %v4391_v23, %v4406_v34  ;;  %v4514_v0 = vsel %vm4508_vm11, %v4501_v58, 920167782 }
 0x734   : > { %v4589_v16 = vsel %vm4588_vm9, %v4587_v62, 0  ;;  %v4427_v2 = vadd.s32 1, %v9587_v53  ;;  %vm4426_vm15 = vc.u32 %v9584_v63, %v9586_v42  ;;  %v4481_v61 = vor.u32 8388608, %v4480_v33 }
 0x735   : > { %v4591_v7 = vand.u32 31, %v4589_v16  ;;  %vm4505_vm3 = vcmp.lt.s32.totalorder %v9597_v32, 1  ;;  %vm4507_vm5 = vcmp.lt.s32.totalorder %v9597_v32, 3  ;;  %v4408_v29 = vsel %vm4402_vm14, %v4405_v41, %v4407_v59 }
 0x736   : > { %v4513_v23 = vsel %vm4505_vm3, %v9615_v25, %v9617_v4  ;;  %v4515_v40 = vsel %vm4507_vm5, %v4498_v8, %v4514_v0  ;;  %v4518_v22 = vsel %vm4508_vm11, %v4504_v31, 1326507024  ;;  %v9640_v45 = vsub.s32 %v4325_v19, %v4328_v48 }
 0x737   : > { %v10400_v51 = vand.u32 2147483647, %v9532_v9  ;;  %v4428_v37 = vsel %vm4426_vm15, %v4427_v2, %v9587_v53  ;;  %vm4506_vm8 = vcmp.lt.s32.totalorder %v9597_v32, 2  ;;  %v9645_v21 = vsub.s32 32, %v4591_v7 }
 0x738   : > { %v4424_v15 = vmul.u32 %v4417_v28, %v4408_v29  ;;  %v4516_v49 = vsel %vm4506_vm8, %v4513_v23, %v4515_v40  ;;  %v4517_v46 = vsel %vm4505_vm3, %v9617_v4, %v4498_v8  ;;  %v4519_v19 = vsel %vm4507_vm5, %v4501_v58, %v4518_v22  ;;  %v4254_v28 = vpop.f32.mrf.mxu1 }
 0x739   : > { %v9654_v54 = vshll.u32 %v4481_v61, 8  ;;  %v4331_v44 = vsub.s32 0, %v9640_v45  ;;  %v4584_v3 = vand.u32 8388607, %v10400_v51  ;;  %v4520_v43 = vsel %vm4506_vm8, %v4517_v46, %v4519_v19 }
 0x73a   : > { %v9657_v53 = vadd.s32 %v4428_v37, %v4424_v15  ;;  %v4595_v1 = vshrl.u32 %v10582_v14, %v9645_v21  ;;  %v4598_v50 = vshrl.u32 %v10583_v55, %v9645_v21  ;;  %v4601_v62 = vshrl.u32 %v10584_v57, %v9645_v21 }
 0x73b   : > { %v9664_v20 = vmul.u32.u64.low %v9654_v54, %v4516_v49  ;;  %v9665_v26 = vmul.u32.u64.high %v9654_v54, %v4516_v49, %v9664_v20  ;;  %v4603_v38 = vshll.u32 %v10584_v57, %v4591_v7  ;;  %v4604_v13 = vshrl.u32 %v10585_v52, %v9645_v21 }
 0x73c   : > { %v9677_v58 = vshrl.u32 %v4589_v16, 5  ;;  %v4594_v34 = vshll.u32 %v10581_v5, %v4591_v7  ;;  %v4607_v24 = vshrl.u32 %v10586_v36, %v9645_v21  ;;  %v9683_v6 = vadd.f32 %v4254_v28, %v9465_v18 }
 0x73d   : > { %v4597_v41 = vshll.u32 %v10582_v14, %v4591_v7  ;;  %v4600_v33 = vshll.u32 %v10583_v55, %v4591_v7  ;;  %v4605_v31 = vor.u32 %v4604_v13, %v4603_v38  ;;  %v4606_v48 = vshll.u32 %v10585_v52, %v4591_v7  ;;  %v4256_v38 = vpop.f32.mrf.mxu1 }
 0x73e   : > { %v5442_v59 = vmin.u32 %v4331_v44, %v9640_v45  ;;  %v4430_v0 = vadd.s32 536870912, %v9657_v53  ;;  %v9691_v16 = vmul.u32.u64.low %v9654_v54, %v4520_v43  ;;  %v9692_v2 = vmul.u32.u64.high %v9654_v54, %v4520_v43, %v9691_v16 }
 0x73f   : > { %v4596_v61 = vor.u32 %v4595_v1, %v4594_v34  ;;  %v4599_v29 = vor.u32 %v4598_v50, %v4597_v41  ;;  %v4602_v23 = vor.u32 %v4601_v62, %v4600_v33  ;;  %v4608_v40 = vor.u32 %v4607_v24, %v4606_v48 }
 0x740   : > { %vm4612_vm12 = vcmp.lt.s32.totalorder %v9677_v58, 4  ;;  %v4510_v22 = vsel %vm4508_vm11, %v4498_v8, 2102212464  ;;  %v4585_v37 = vor.u32 8388608, %v4584_v3  ;;  %v4684_v15 = vand.u32 2139095040, %v9683_v6 }
 0x741   : > { %v4618_v7 = vsel %vm4612_vm12, %v4605_v31, 920167782  ;;  %v4333_v49 = vclz %v5442_v59  ;;  %v4489_v46 = vshrl.u32 %v10581_v5, %v9573_v12  ;;  %vm4609_vm6 = vcmp.lt.s32.totalorder %v9677_v58, 1 }
 0x742   : > { %vm4611_vm1 = vcmp.lt.s32.totalorder %v9677_v58, 3  ;;  %v9704_v19 = vshrl.u32 %v4430_v0, 30  ;;  %v4617_v44 = vsel %vm4609_vm6, %v4596_v61, %v4599_v29  ;;  %v4622_v3 = vsel %vm4612_vm12, %v4608_v40, 1326507024 }
 0x743   : > { %v4619_v8 = vsel %vm4611_vm1, %v4602_v23, %v4618_v7  ;;  %v4509_v28 = vsel %vm4505_vm3, %v4489_v46, %v9615_v25  ;;  %v4511_v12 = vsel %vm4507_vm5, %v9617_v4, %v4510_v22  ;;  %v4621_v43 = vsel %vm4609_vm6, %v4599_v29, %v4602_v23 }
 0x744   : > { %10588 = vst [vmem:[#allocation13_spill] sm:$0xff] %v9704_v19  ;;  %v4623_v1 = vsel %vm4611_vm1, %v4605_v31, %v4622_v3  ;;  %v4531_v50 = vadd.s32 1, %v9665_v26  ;;  %vm4610_vm7 = vcmp.lt.s32.totalorder %v9677_v58, 2  ;;  %v4685_v62 = vshrl.u32 %v4684_v15, 23 }
 0x745   : > { %v5443_v13 = vadd.s32 4294967294, %v4333_v49  ;;  %vm4530_vm4 = vc.u32 %v9692_v2, %v9664_v20  ;;  %v4620_v25 = vsel %vm4610_vm7, %v4617_v44, %v4619_v8  ;;  %v4512_v4 = vsel %vm4506_vm8, %v4509_v28, %v4511_v12 }
 0x746   : > { %v4624_v34 = vsel %vm4610_vm7, %v4621_v43, %v4623_v1  ;;  %v9732_v24 = vshll.u32 %v4585_v37, 8  ;;  %v5457_v41 = vadd.s32 4294967169, %v4685_v62  ;;  %v4432_v33 = vshll.u32 %v9704_v19, 30 }
 0x747   : > { %v9736_v31 = vadd.f32 %v4256_v38, %v9465_v18  ;;  %v4532_v48 = vsel %vm4530_vm4, %v4531_v50, %v9665_v26  ;;  %vm5444_vm0 = vcmp.lt.s32.totalorder %v5443_v13, 0  ;;  %v4528_v16 = vmul.u32 %v9654_v54, %v4512_v4 }
 0x748   : > { %v9740_v59 = vmul.u32.u64.low %v9732_v24, %v4620_v25  ;;  %v9741_v0 = vmul.u32.u64.high %v9732_v24, %v4620_v25, %v9740_v59  ;;  %v4691_v32 = vadd.s32 1, %v5457_v41  ;;  %v4614_v37 = vsel %vm4612_vm12, %v4602_v23, 2102212464 }
 0x749   : > { %v9746_v40 = vmul.u32.u64.low %v9732_v24, %v4624_v34  ;;  %v9747_v22 = vmul.u32.u64.high %v9732_v24, %v4624_v34, %v9746_v40  ;;  %v9752_v18 = vsub.s32 %v9657_v53, %v4432_v33  ;;  %v9754_v26 = vadd.s32 %v4532_v48, %v4528_v16 }
 0x74a   : > { %vm4692_vm10 = vcmp.gt.s32.totalorder %v4691_v32, 0  ;;  %v4593_v7 = vshrl.u32 %v10581_v5, %v9645_v21  ;;  %v4788_v15 = vand.u32 2139095040, %v9736_v31  ;;  %v9759_v49 = vsel %vm5444_vm0, 0, %v5443_v13 }
 0x74b   : > { %v10403_v54 = vand.u32 2147483647, %v9683_v6  ;;  %v4693_v46 = vsel %vm4692_vm10, %v4691_v32, 0  ;;  %v4615_v23 = vsel %vm4611_vm1, %v4599_v29, %v4614_v37  ;;  %v4341_v8 = vsub.s32 4294967266, %v9759_v49 }
 0x74c   : > { %v4613_v44 = vsel %vm4609_vm6, %v4593_v7, %v4596_v61  ;;  %v4695_v53 = vand.u32 31, %v4693_v46  ;;  %v4435_v3 = vsub.s32 0, %v9752_v18  ;;  %v4534_v21 = vadd.s32 536870912, %v9754_v26 }
 0x74d   : > { %v4789_v28 = vshrl.u32 %v4788_v15, 23  ;;  %v4616_v12 = vsel %vm4610_vm7, %v4613_v44, %v4615_v23  ;;  %v4635_v43 = vadd.s32 1, %v9741_v0  ;;  %v4688_v1 = vand.u32 8388607, %v10403_v54 }
 0x74e   : > { %v4696_v61 = vsub.s32 32, %v4695_v53  ;;  %vm4634_vm2 = vc.u32 %v9747_v22, %v9740_v59  ;;  %v4694_v29 = vshrl.u32 %v4693_v46, 5  ;;  %v4698_v50 = vshll.u32 %v10581_v5, %v4695_v53 }
 0x74f   : > { %v4701_v62 = vshll.u32 %v10582_v14, %v4695_v53  ;;  %v4704_v58 = vshll.u32 %v10583_v55, %v4695_v53  ;;  %v4707_v4 = vshll.u32 %v10584_v57, %v4695_v53  ;;  %v4710_v41 = vshll.u32 %v10585_v52, %v4695_v53 }
 0x750   : > { %v4699_v38 = vshrl.u32 %v10582_v14, %v4696_v61  ;;  %v4702_v13 = vshrl.u32 %v10583_v55, %v4696_v61  ;;  %v4705_v25 = vshrl.u32 %v10584_v57, %v4696_v61  ;;  %v4708_v34 = vshrl.u32 %v10585_v52, %v4696_v61 }
 0x751   : > { %v5461_v33 = vadd.s32 4294967169, %v4789_v28  ;;  %v4711_v40 = vshrl.u32 %v10586_v36, %v4696_v61  ;;  %v9786_v37 = vshrl.u32 %v4534_v21, 30  ;;  %v4632_v7 = vmul.u32 %v9732_v24, %v4616_v12 }
 0x752   : > { %v4700_v48 = vor.u32 %v4699_v38, %v4698_v50  ;;  %v4703_v32 = vor.u32 %v4702_v13, %v4701_v62  ;;  %v4706_v16 = vor.u32 %v4705_v25, %v4704_v58  ;;  %v4689_v15 = vor.u32 8388608, %v4688_v1 }
 0x753   : > { %v4709_v46 = vor.u32 %v4708_v34, %v4707_v4  ;;  %v4636_v44 = vsel %vm4634_vm2, %v4635_v43, %v9741_v0  ;;  %v4712_v23 = vor.u32 %v4711_v40, %v4710_v41  ;;  %vm4713_vm14 = vcmp.lt.s32.totalorder %v4694_v29, 1 }
 0x754   : > { %v10401_v53 = vand.u32 2147483647, %v9736_v31  ;;  %vm4715_vm11 = vcmp.lt.s32.totalorder %v4694_v29, 3  ;;  %vm4716_vm9 = vcmp.lt.s32.totalorder %v4694_v29, 4  ;;  %v4721_v28 = vsel %vm4713_vm14, %v4700_v48, %v4703_v32 }
 0x755   : > { %v4795_v50 = vadd.s32 1, %v5461_v33  ;;  %v4718_v21 = vsel %vm4716_vm9, %v4706_v16, 2102212464  ;;  %v4722_v62 = vsel %vm4716_vm9, %v4709_v46, 920167782  ;;  %v4725_v24 = vsel %vm4713_vm14, %v4703_v32, %v4706_v16 }
 0x756   : > { %v4726_v12 = vsel %vm4716_vm9, %v4712_v23, 1326507024  ;;  %v9796_v1 = vadd.s32 %v4636_v44, %v4632_v7  ;;  %v4697_v38 = vshrl.u32 %v10581_v5, %v4696_v61  ;;  %vm4714_vm15 = vcmp.lt.s32.totalorder %v4694_v29, 2 }
 0x757   : > { %v4723_v0 = vsel %vm4715_vm11, %v4706_v16, %v4722_v62  ;;  %v5446_v43 = vmin.u32 %v4435_v3, %v9752_v18  ;;  %v4727_v58 = vsel %vm4715_vm11, %v4709_v46, %v4726_v12  ;;  %v4729_v25 = vshll.u32 %v4689_v15, 8 }
 0x758   : > { %v4724_v13 = vsel %vm4714_vm15, %v4721_v28, %v4723_v0  ;;  %v4717_v4 = vsel %vm4713_vm14, %v4697_v38, %v4700_v48  ;;  %v4719_v34 = vsel %vm4715_vm11, %v4703_v32, %v4718_v21  ;;  %v4728_v41 = vsel %vm4714_vm15, %v4725_v24, %v4727_v58 }
 0x759   : > { %vm4796_vm3 = vcmp.gt.s32.totalorder %v4795_v50, 0  ;;  %v4536_v33 = vshll.u32 %v9786_v37, 30  ;;  %v9807_v61 = vmul.u32.u64.low %v4729_v25, %v4728_v41  ;;  %v9808_v40 = vmul.u32.u64.high %v4729_v25, %v4728_v41, %v9807_v61 }
 0x75a   : > { %v4797_v16 = vsel %vm4796_vm3, %v4795_v50, 0  ;;  %v4638_v3 = vadd.s32 536870912, %v9796_v1  ;;  %v9811_v7 = vmul.u32.u64.low %v4729_v25, %v4724_v13  ;;  %v9812_v44 = vmul.u32.u64.high %v4729_v25, %v4724_v13, %v9811_v7 }
 0x75b   : > { %v4792_v48 = vand.u32 8388607, %v10401_v53  ;;  %v4720_v32 = vsel %vm4714_vm15, %v4717_v4, %v4719_v34  ;;  %v4799_v15 = vand.u32 31, %v4797_v16  ;;  %v9820_v46 = vadd.s32 %v9515_v56, %v9520_v11  ;;  %v4260_v4 = vpop.f32.mrf.mxu1 }
 0x75c   : > { %v4337_v23 = vsub.s32 32, %v9759_v49  ;;  %v9823_v28 = vadd.s32 127, %v4341_v8  ;;  %v4437_v50 = vclz %v5446_v43  ;;  %v9826_v21 = vsub.s32 %v9754_v26, %v4536_v33 }
 0x75d   : > { %vm4738_vm5 = vc.u32 %v9808_v40, %v9811_v7  ;;  %v4800_v62 = vsub.s32 32, %v4799_v15  ;;  %v9830_v24 = vshrl.u32 %v4638_v3, 30  ;;  %v4736_v29 = vmul.u32 %v4729_v25, %v4720_v32 }
 0x75e   : > { %v4739_v12 = vadd.s32 1, %v9812_v44  ;;  %v4793_v38 = vor.u32 8388608, %v4792_v48  ;;  %v4798_v56 = vshrl.u32 %v4797_v16, 5  ;;  %v4802_v11 = vshll.u32 %v10581_v5, %v4799_v15 }
 0x75f   : > { %v4803_v8 = vshrl.u32 %v10582_v14, %v4800_v62  ;;  %v4806_v0 = vshrl.u32 %v10583_v55, %v4800_v62  ;;  %v4805_v43 = vshll.u32 %v10582_v14, %v4799_v15  ;;  %v4808_v13 = vshll.u32 %v10583_v55, %v4799_v15 }
 0x760   : > { %v4740_v26 = vsel %vm4738_vm5, %v4739_v12, %v9812_v44  ;;  %v4809_v58 = vshrl.u32 %v10584_v57, %v4800_v62  ;;  %v5447_v25 = vadd.s32 4294967294, %v4437_v50  ;;  %v4539_v34 = vsub.s32 0, %v9826_v21 }
 0x761   : > { %v4741_v41 = vadd.s32 %v4740_v26, %v4736_v29  ;;  %v4804_v33 = vor.u32 %v4803_v8, %v4802_v11  ;;  %v4807_v61 = vor.u32 %v4806_v0, %v4805_v43  ;;  %v4811_v3 = vshll.u32 %v10584_v57, %v4799_v15  ;;  %v4262_v26 = vpop.f32.mrf.mxu1 }
 0x762   : > { %v4810_v16 = vor.u32 %v4809_v58, %v4808_v13  ;;  %v4812_v48 = vshrl.u32 %v10585_v52, %v4800_v62  ;;  %v4814_v44 = vshll.u32 %v10585_v52, %v4799_v15  ;;  %v4815_v12 = vshrl.u32 %v10586_v36, %v4800_v62 }
 0x763   : > { %v4742_v32 = vadd.s32 536870912, %v4741_v41  ;;  %v9846_v30 = vadd.f32 %v4260_v4, %v9473_v60  ;;  %v4640_v50 = vshll.u32 %v9830_v24, 30  ;;  %vm4817_vm8 = vcmp.lt.s32.totalorder %v4798_v56, 1 }
 0x764   : > { %v4813_v51 = vor.u32 %v4812_v48, %v4811_v3  ;;  %v4833_v29 = vshll.u32 %v4793_v38, 8  ;;  %v4801_v8 = vshrl.u32 %v10581_v5, %v4800_v62  ;;  %v4816_v0 = vor.u32 %v4815_v12, %v4814_v44 }
 0x765   : > { %v9849_v11 = vshrl.u32 %v4742_v32, 30  ;;  %vm4820_vm12 = vcmp.lt.s32.totalorder %v4798_v56, 4  ;;  %vm4819_vm6 = vcmp.lt.s32.totalorder %v4798_v56, 3  ;;  %v4825_v15 = vsel %vm4817_vm8, %v4804_v33, %v4807_v61 }
 0x766   : > { %v4822_v43 = vsel %vm4820_vm12, %v4810_v16, 2102212464  ;;  %v4826_v13 = vsel %vm4820_vm12, %v4813_v51, 920167782  ;;  %vm4818_vm1 = vcmp.lt.s32.totalorder %v4798_v56, 2  ;;  %v4829_v53 = vsel %vm4817_vm8, %v4807_v61, %v4810_v16 }
 0x767   : > { %v4744_v58 = vshll.u32 %v9849_v11, 30  ;;  %v4827_v4 = vsel %vm4819_vm6, %v4810_v16, %v4826_v13  ;;  %v4821_v47 = vsel %vm4817_vm8, %v4801_v8, %v4804_v33  ;;  %v4830_v38 = vsel %vm4820_vm12, %v4816_v0, 1326507024 }
 0x768   : > { %v4828_v3 = vsel %vm4818_vm1, %v4825_v15, %v4827_v4  ;;  %v9855_v48 = vadd.f32 %v4262_v26, %v9473_v60  ;;  %v4823_v62 = vsel %vm4819_vm6, %v4807_v61, %v4822_v43  ;;  %v4831_v32 = vsel %vm4819_vm6, %v4813_v51, %v4830_v38 }
 0x769   : > { %v9857_v44 = vmul.u32.u64.low %v4833_v29, %v4828_v3  ;;  %v9858_v12 = vmul.u32.u64.high %v4833_v29, %v4828_v3, %v9857_v44  ;;  %v9862_v54 = vsub.s32 %v9796_v1, %v4640_v50  ;;  %v9864_v35 = vsub.s32 %v4741_v41, %v4744_v58 }
 0x76a   : > { %v4832_v16 = vsel %vm4818_vm1, %v4829_v53, %v4831_v32  ;;  %v4892_v33 = vand.u32 2139095040, %v9846_v30  ;;  %v4339_v60 = vshrl.u32 %v9820_v46, %v4337_v23  ;;  %v4824_v51 = vsel %vm4818_vm1, %v4821_v47, %v4823_v62 }
 0x76b   : > { %v9868_v8 = vmul.u32.u64.low %v4833_v29, %v4832_v16  ;;  %v9869_v0 = vmul.u32.u64.high %v4833_v29, %v4832_v16, %v9868_v8  ;;  %v4996_v26 = vand.u32 2139095040, %v9855_v48  ;;  %v4338_v1 = vshll.u32 %v9640_v45, %v9759_v49 }
 0x76c   : > { %v4893_v61 = vshrl.u32 %v4892_v33, 23  ;;  %v4343_v41 = vshll.u32 %v9823_v28, 23  ;;  %v5450_v53 = vmin.u32 %v4539_v34, %v9826_v21  ;;  %v4843_v50 = vadd.s32 1, %v9858_v12 }
 0x76d   : > { %vm5448_vm7 = vcmp.lt.s32.totalorder %v5447_v25, 0  ;;  %v4643_v43 = vsub.s32 0, %v9862_v54  ;;  %v4747_v15 = vsub.s32 0, %v9864_v35  ;;  %v4840_v23 = vmul.u32 %v4833_v29, %v4824_v51 }
 0x76e   : > { %v5465_v46 = vadd.s32 4294967169, %v4893_v61  ;;  %vm4842_vm4 = vc.u32 %v9869_v0, %v9857_v44  ;;  %v4997_v47 = vshrl.u32 %v4996_v26, 23  ;;  %v9885_v56 = vor.u32 %v4339_v60, %v4338_v1 }
 0x76f   : > { %v4844_v45 = vsel %vm4842_vm4, %v4843_v50, %v9858_v12  ;;  %v9888_v28 = vor.u32 4788187, %v4343_v41  ;;  %v9890_v34 = vsel %vm5448_vm7, 0, %v5447_v25  ;;  %v4541_v13 = vclz %v5450_v53 }
 0x770   : > { %v4899_v49 = vadd.s32 1, %v5465_v46  ;;  %v4845_v58 = vadd.s32 %v4844_v45, %v4840_v23  ;;  %v5454_v4 = vmin.u32 %v4643_v43, %v9862_v54  ;;  %v5458_v3 = vmin.u32 %v4747_v15, %v9864_v35 }
 0x771   : > { %v10405_v29 = vand.u32 2147483647, %v9846_v30  ;;  %v5469_v32 = vadd.s32 4294967169, %v4997_v47  ;;  %v9898_v12 = vadd.s32 %v9586_v42, %v9584_v63  ;;  %v9902_v60 = vadd.s32 4294967294, %v4541_v13 }
 0x772   : > { %vm4900_vm0 = vcmp.gt.s32.totalorder %v4899_v49, 0  ;;  %v4846_v38 = vadd.s32 536870912, %v4845_v58  ;;  %v4645_v61 = vclz %v5454_v4  ;;  %v4749_v26 = vclz %v5458_v3 }
 0x773   : > { %v4901_v62 = vsel %vm4900_vm0, %v4899_v49, 0  ;;  %v4896_v1 = vand.u32 8388607, %v10405_v29  ;;  %v5003_v50 = vadd.s32 1, %v5469_v32  ;;  %v10410_v33 = vand.u32 2147483647, %v9855_v48 }
 0x774   : > { %v4903_v25 = vand.u32 31, %v4901_v62  ;;  %v9904_v51 = vshrl.u32 %v4846_v38, 30  ;;  %v4902_v45 = vshrl.u32 %v4901_v62, 5  ;;  %v5455_v4 = vadd.s32 4294967294, %v4645_v61 }
 0x775   : > { %v4897_v8 = vor.u32 8388608, %v4896_v1  ;;  %v5459_v39 = vadd.s32 4294967294, %v4749_v26  ;;  %vm5004_vm10 = vcmp.gt.s32.totalorder %v5003_v50, 0  ;;  %vm5452_vm3 = vcmp.lt.s32.totalorder %v9902_v60, 0 }
 0x776   : > { %v4904_v41 = vsub.s32 32, %v4903_v25  ;;  %v4848_v53 = vshll.u32 %v9904_v51, 30  ;;  %v4906_v63 = vshll.u32 %v10581_v5, %v4903_v25  ;;  %v4909_v42 = vshll.u32 %v10582_v14, %v4903_v25 }
 0x777   : > { %v4912_v46 = vshll.u32 %v10583_v55, %v4903_v25  ;;  %v4915_v49 = vshll.u32 %v10584_v57, %v4903_v25  ;;  %v4918_v19 = vshll.u32 %v10585_v52, %v4903_v25  ;;  %vm4921_vm2 = vcmp.lt.s32.totalorder %v4902_v45, 1 }
 0x778   : > { %v4907_v43 = vshrl.u32 %v10582_v14, %v4904_v41  ;;  %v4910_v15 = vshrl.u32 %v10583_v55, %v4904_v41  ;;  %v4913_v23 = vshrl.u32 %v10584_v57, %v4904_v41  ;;  %v9915_v47 = vsub.s32 %v4845_v58, %v4848_v53 }
 0x779   : > { %v4916_v13 = vshrl.u32 %v10585_v52, %v4904_v41  ;;  %v4919_v58 = vshrl.u32 %v10586_v36, %v4904_v41  ;;  %vm4923_vm14 = vcmp.lt.s32.totalorder %v4902_v45, 3  ;;  %vm4924_vm11 = vcmp.lt.s32.totalorder %v4902_v45, 4 }
 0x77a   : > { %v4908_v3 = vor.u32 %v4907_v43, %v4906_v63  ;;  %v4911_v38 = vor.u32 %v4910_v15, %v4909_v42  ;;  %v4914_v29 = vor.u32 %v4913_v23, %v4912_v46  ;;  %v4851_v32 = vsub.s32 0, %v9915_v47 }
 0x77b   : > { %v4917_v16 = vor.u32 %v4916_v13, %v4915_v49  ;;  %v4920_v61 = vor.u32 %v4919_v58, %v4918_v19  ;;  %v4905_v43 = vshrl.u32 %v10581_v5, %v4904_v41  ;;  %vm4922_vm9 = vcmp.lt.s32.totalorder %v4902_v45, 2 }
 0x77c   : > { %v5462_v62 = vmin.u32 %v4851_v32, %v9915_v47  ;;  %v4926_v53 = vsel %vm4924_vm11, %v4914_v29, 2102212464  ;;  %v4929_v63 = vsel %vm4921_vm2, %v4908_v3, %v4911_v38  ;;  %v4933_v15 = vsel %vm4921_vm2, %v4911_v38, %v4914_v29 }
 0x77d   : > { %v4930_v42 = vsel %vm4924_vm11, %v4917_v16, 920167782  ;;  %v4934_v46 = vsel %vm4924_vm11, %v4920_v61, 1326507024  ;;  %v4937_v23 = vshll.u32 %v4897_v8, 8  ;;  %vm5460_vm15 = vcmp.lt.s32.totalorder %v5459_v39, 0 }
 0x77e   : > { %v4853_v1 = vclz %v5462_v62  ;;  %v4931_v26 = vsel %vm4923_vm14, %v4914_v29, %v4930_v42  ;;  %v4925_v49 = vsel %vm4921_vm2, %v4905_v43, %v4908_v3  ;;  %v4927_v19 = vsel %vm4923_vm14, %v4911_v38, %v4926_v53 }
 0x77f   : > { %v4932_v25 = vsel %vm4922_vm9, %v4929_v63, %v4931_v26  ;;  %v4935_v13 = vsel %vm4923_vm14, %v4917_v16, %v4934_v46  ;;  %v5005_v62 = vsel %vm5004_vm10, %v5003_v50, 0  ;;  %vm5456_vm5 = vcmp.lt.s32.totalorder %v5455_v4, 0 }
 0x780   : > { %v4936_v32 = vsel %vm4922_vm9, %v4933_v15, %v4935_v13  ;;  %v9933_v58 = vmul.u32.u64.low %v4937_v23, %v4932_v25  ;;  %v9934_v41 = vmul.u32.u64.high %v4937_v23, %v4932_v25, %v9933_v58  ;;  %v5463_v29 = vadd.s32 4294967294, %v4853_v1 }
 0x781   : > { %v9939_v61 = vmul.u32.u64.low %v4937_v23, %v4936_v32  ;;  %v9940_v8 = vmul.u32.u64.high %v4937_v23, %v4936_v32, %v9939_v61  ;;  %v4928_v3 = vsel %vm4922_vm9, %v4925_v49, %v4927_v19  ;;  %v5000_v16 = vand.u32 8388607, %v10410_v33 }
 0x782   : > { %v5007_v38 = vand.u32 31, %v5005_v62  ;;  %v10589_v53 = vand.u32 2147483647, %v9888_v28  ;;  %v10590_v63 = vcvt.s32.f32 %v9885_v56  ;;  %v9954_v1 = vadd.s32 %v9664_v20, %v9692_v2 }
 0x783   : > { %v9957_v43 = vsel %vm5460_vm15, 0, %v5459_v39  ;;  %v10591_v45 = vsub.s32 4294967266, %v9890_v34  ;;  %v9964_v25 = vsel %vm5452_vm3, 0, %v9902_v60  ;;  %v4947_v56 = vadd.s32 1, %v9934_v41 }
 0x784   : > { %v9949_v42 = vmul.f32 %v10590_v63, %v10589_v53  ;;  %v5008_v28 = vsub.s32 32, %v5007_v38  ;;  %v9967_v15 = vsel %vm5456_vm5, 0, %v5455_v4  ;;  %vm5464_vm8 = vcmp.lt.s32.totalorder %v5463_v29, 0 }
 0x785   : > { %v9961_v26 = vadd.s32 127, %v10591_v45  ;;  %v4944_v46 = vmul.u32 %v4937_v23, %v4928_v3  ;;  %vm4946_vm12 = vc.u32 %v9940_v8, %v9933_v58  ;;  %v4757_v39 = vsub.s32 4294967266, %v9957_v43 }
 0x786   : > { %v4948_v20 = vsel %vm4946_vm12, %v4947_v56, %v9934_v41  ;;  %v5001_v2 = vor.u32 8388608, %v5000_v16  ;;  %v5011_v49 = vshrl.u32 %v10582_v14, %v5008_v28  ;;  %v5010_v60 = vshll.u32 %v10581_v5, %v5007_v38 }
 0x787   : > { %v4949_v19 = vadd.s32 %v4948_v20, %v4944_v46  ;;  %v5013_v13 = vshll.u32 %v10582_v14, %v5007_v38  ;;  %v5014_v4 = vshrl.u32 %v10583_v55, %v5008_v28  ;;  %v9977_v32 = vsel %vm5464_vm8, 0, %v5463_v29 }
 0x788   : > { %v5006_v23 = vshrl.u32 %v5005_v62, 5  ;;  %v5016_v61 = vshll.u32 %v10583_v55, %v5007_v38  ;;  %v5017_v3 = vshrl.u32 %v10584_v57, %v5008_v28  ;;  %v5012_v63 = vor.u32 %v5011_v49, %v5010_v60 }
 0x789   : > { %v4950_v53 = vadd.s32 536870912, %v4949_v19  ;;  %v5015_v41 = vor.u32 %v5014_v4, %v5013_v13  ;;  %v5019_v16 = vshll.u32 %v10584_v57, %v5007_v38  ;;  %v5020_v56 = vshrl.u32 %v10585_v52, %v5008_v28 }
 0x78a   : > { %v5018_v45 = vor.u32 %v5017_v3, %v5016_v61  ;;  %v5022_v46 = vshll.u32 %v10585_v52, %v5007_v38  ;;  %v5023_v14 = vshrl.u32 %v10586_v36, %v5008_v28  ;;  %v4653_v29 = vsub.s32 4294967266, %v9967_v15 }
 0x78b   : > { %v4737_v62 = vadd.s32 %v9811_v7, %v9808_v40  ;;  %v9988_v55 = vshrl.u32 %v4950_v53, 30  ;;  %v5041_v20 = vshll.u32 %v5001_v2, 8  ;;  %v4758_v33 = vadd.s32 127, %v4757_v39 }
 0x78c   : > { %v4861_v49 = vsub.s32 4294967266, %v9977_v32  ;;  %v5021_v60 = vor.u32 %v5020_v56, %v5019_v16  ;;  %v5024_v57 = vor.u32 %v5023_v14, %v5022_v46  ;;  %v5009_v4 = vshrl.u32 %v10581_v5, %v5008_v28 }
 0x78d   : > { %v4952_v13 = vshll.u32 %v9988_v55, 30  ;;  %vm5025_vm6 = vcmp.lt.s32.totalorder %v5006_v23, 1  ;;  %vm5028_vm1 = vcmp.lt.s32.totalorder %v5006_v23, 4  ;;  %vm5027_vm7 = vcmp.lt.s32.totalorder %v5006_v23, 3 }
 0x78e   : > { %v5030_v52 = vsel %vm5028_vm1, %v5018_v45, 2102212464  ;;  %v5033_v36 = vsel %vm5025_vm6, %v5012_v63, %v5015_v41  ;;  %v5034_v38 = vsel %vm5028_vm1, %v5021_v60, 920167782  ;;  %vm5026_vm4 = vcmp.lt.s32.totalorder %v5006_v23, 2 }
 0x78f   : > { %v9993_v61 = vsub.s32 %v4949_v19, %v4952_v13  ;;  %v5035_v40 = vsel %vm5027_vm7, %v5018_v45, %v5034_v38  ;;  %v5037_v7 = vsel %vm5025_vm6, %v5015_v41, %v5018_v45  ;;  %v4753_v39 = vsub.s32 32, %v9957_v43 }
 0x790   : > { %v4759_v2 = vshll.u32 %v4758_v33, 23  ;;  %v5036_v3 = vsel %vm5026_vm4, %v5033_v36, %v5035_v40  ;;  %v5038_v53 = vsel %vm5028_vm1, %v5024_v57, 1326507024  ;;  %v5029_v5 = vsel %vm5025_vm6, %v5009_v4, %v5012_v63 }
 0x791   : > { %v4955_v16 = vsub.s32 0, %v9993_v61  ;;  %v5031_v28 = vsel %vm5027_vm7, %v5015_v41, %v5030_v52  ;;  %v5039_v56 = vsel %vm5027_vm7, %v5021_v60, %v5038_v53  ;;  %v4862_v46 = vadd.s32 127, %v4861_v49 }
 0x792   : > { %v5040_v14 = vsel %vm5026_vm4, %v5037_v7, %v5039_v56  ;;  %v9999_v50 = vmul.u32.u64.low %v5041_v20, %v5036_v3  ;;  %v10000_v19 = vmul.u32.u64.high %v5041_v20, %v5036_v3, %v9999_v50  ;;  %v4549_v45 = vsub.s32 4294967266, %v9964_v25 }
 0x793   : > { %v5466_v13 = vmin.u32 %v4955_v16, %v9993_v61  ;;  %v10005_v33 = vmul.u32.u64.low %v5041_v20, %v5040_v14  ;;  %v10006_v38 = vmul.u32.u64.high %v5041_v20, %v5040_v14, %v10005_v33  ;;  %v4447_v57 = vshll.u32 %v9961_v26, 23 }
 0x794   : > { %v4755_v36 = vshrl.u32 %v4737_v62, %v4753_v39  ;;  %v4857_v63 = vsub.s32 32, %v9977_v32  ;;  %v5032_v41 = vsel %vm5026_vm4, %v5029_v5, %v5031_v28  ;;  %v4633_v49 = vadd.s32 %v9740_v59, %v9747_v22 }
 0x795   : > { %v4654_v60 = vadd.s32 127, %v4653_v29  ;;  %v4841_v4 = vadd.s32 %v9857_v44, %v9869_v0  ;;  %v4957_v52 = vclz %v5466_v13  ;;  %v4754_v40 = vshll.u32 %v9864_v35, %v9957_v43 }
 0x796   : > { %v4760_v7 = vor.u32 4788187, %v4759_v2  ;;  %v4863_v3 = vshll.u32 %v4862_v46, 23  ;;  %v5051_v53 = vadd.s32 1, %v10000_v19  ;;  %v4550_v62 = vadd.s32 127, %v4549_v45 }
 0x797   : > { %v5467_v39 = vadd.s32 4294967294, %v4957_v52  ;;  %v5048_v16 = vmul.u32 %v5041_v20, %v5032_v41  ;;  %vm5050_vm0 = vc.u32 %v10006_v38, %v9999_v50  ;;  %v4649_v59 = vsub.s32 32, %v9967_v15 }
 0x798   : > { %v4756_v22 = vor.u32 %v4755_v36, %v4754_v40  ;;  %v4859_v23 = vshrl.u32 %v4841_v4, %v4857_v63  ;;  %v5052_v44 = vsel %vm5050_vm0, %v5051_v53, %v10000_v19  ;;  %v4545_v0 = vsub.s32 32, %v9964_v25 }
 0x799   : > { %v4655_v29 = vshll.u32 %v4654_v60, 23  ;;  %vm5468_vm10 = vcmp.lt.s32.totalorder %v5467_v39, 0  ;;  %v5053_v35 = vadd.s32 %v5052_v44, %v5048_v16  ;;  %v4761_v43 = vand.u32 2147483647, %v4760_v7 }
 0x79a   : > { %v4858_v2 = vshll.u32 %v9915_v47, %v9977_v32  ;;  %v4864_v5 = vor.u32 4788187, %v4863_v3  ;;  %v4960_v20 = vsel %vm5468_vm10, 0, %v5467_v39  ;;  %vm4267_vm2 = vcmp.lt.s32.totalorder %v9467_v27, 0 }
 0x79b   : > { %v4551_v28 = vshll.u32 %v4550_v62, 23  ;;  %v4961_v56 = vsub.s32 32, %v4960_v20  ;;  %v4965_v46 = vsub.s32 4294967266, %v4960_v20  ;;  %v5054_v14 = vadd.s32 536870912, %v5053_v35 }
 0x79c   : > { %v4651_v45 = vshrl.u32 %v4633_v49, %v4649_v59  ;;  %v4763_v13 = vcvt.s32.f32 %v4756_v22  ;;  %v4860_v19 = vor.u32 %v4859_v23, %v4858_v2  ;;  %v4945_v33 = vadd.s32 %v9933_v58, %v9940_v8 }
 0x79d   : > { %v4547_v36 = vshrl.u32 %v9954_v1, %v4545_v0  ;;  %v4650_v63 = vshll.u32 %v9862_v54, %v9967_v15  ;;  %v4966_v47 = vadd.s32 127, %v4965_v46  ;;  %v10031_v32 = vshrl.u32 %v5054_v14, 30 }
 0x79e   : > { %v4656_v41 = vor.u32 4788187, %v4655_v29  ;;  %v4764_v60 = vmul.f32 %v4763_v13, %v4761_v43  ;;  %v4865_v4 = vand.u32 2147483647, %v4864_v5  ;;  %v4963_v52 = vshrl.u32 %v4945_v33, %v4961_v56 }
 0x79f   : > { %v4546_v49 = vshll.u32 %v9826_v21, %v9964_v25  ;;  %v4552_v40 = vor.u32 4788187, %v4551_v28  ;;  %v4967_v7 = vshll.u32 %v4966_v47, 23  ;;  %v5056_v3 = vshll.u32 %v10031_v32, 30 }
 0x7a0   : > { %v4349_v58 = vxor.u32 2147483648, %v9949_v42  ;;  %v4652_v8 = vor.u32 %v4651_v45, %v4650_v63  ;;  %v4867_v1 = vcvt.s32.f32 %v4860_v19  ;;  %v4962_v54 = vshll.u32 %v9993_v61, %v4960_v20 }
 0x7a1   : > { %v10592_v15 = vsub.s32 32, %v9890_v34  ;;  %v4548_v62 = vor.u32 %v4547_v36, %v4546_v49  ;;  %v4968_v39 = vor.u32 4788187, %v4967_v7  ;;  %v10041_v16 = vsub.s32 %v5053_v35, %v5056_v3 }
 0x7a2   : > { %v4657_v59 = vand.u32 2147483647, %v4656_v41  ;;  %v4765_v21 = vxor.u32 2147483648, %v4764_v60  ;;  %v4868_v25 = vmul.f32 %v4867_v1, %v4865_v4  ;;  %v4964_v22 = vor.u32 %v4963_v52, %v4962_v54 }
 0x7a3   : > { %v4443_v53 = vshrl.u32 %v9898_v12, %v10592_v15  ;;  %v4442_v23 = vshll.u32 %v9752_v18, %v9890_v34  ;;  %v4448_v44 = vor.u32 4788187, %v4447_v57  ;;  %v4553_v0 = vand.u32 2147483647, %v4552_v40 }
 0x7a4   : > { %v5059_v61 = vsub.s32 0, %v10041_v16  ;;  %v10593_v29 = vand.u32 2147483647, %v9467_v27  ;;  %v4350_v35 = vsel %vm4267_vm2, %v4349_v58, %v9949_v42  ;;  %v4659_v43 = vcvt.s32.f32 %v4652_v8 }
 0x7a5   : > { %v4969_v2 = vand.u32 2147483647, %v4968_v39  ;;  %v4444_v5 = vor.u32 %v4443_v53, %v4442_v23  ;;  %v4555_v18 = vcvt.s32.f32 %v4548_v62  ;;  %vm4683_vm11 = vcmp.lt.s32.totalorder %v9683_v6, 0 }
 0x7a6   : > { %vm10050_vm14 = vcmp.le.f32.partialorder %v10593_v29, 0.7853982  ;;  %v5470_v34 = vmin.u32 %v5059_v61, %v10041_v16  ;;  %v4660_v26 = vmul.f32 %v4659_v43, %v4657_v59  ;;  %v4766_v57 = vsel %vm4683_vm11, %v4765_v21, %v4764_v60 }
 0x7a7   : > { %v4869_v20 = vxor.u32 2147483648, %v4868_v25  ;;  %v4971_v28 = vcvt.s32.f32 %v4964_v22  ;;  %v4353_v56 = vsel %vm10050_vm14, %v9467_v27, %v4350_v35  ;;  %v4449_v46 = vand.u32 2147483647, %v4448_v44 }
 0x7a8   : > { %v4556_v42 = vmul.f32 %v4555_v18, %v4553_v0  ;;  %v5061_v14 = vclz %v5470_v34  ;;  %vm4475_vm9 = vcmp.lt.s32.totalorder %v9478_v17, 0  ;;  %v10596_v45 = vand.u32 2147483647, %v9683_v6 }
 0x7a9   : > { %v4972_v19 = vmul.f32 %v4971_v28, %v4969_v2  ;;  %v4451_v33 = vcvt.s32.f32 %v4444_v5  ;;  %vm4787_vm3 = vcmp.lt.s32.totalorder %v9736_v31, 0  ;;  %5824 = vcosq.f32 %v4353_v56 }
 0x7aa   : > { %vm10067_vm15 = vcmp.le.f32.partialorder %v10596_v45, 0.7853982  ;;  %v5471_v63 = vadd.s32 4294967294, %v5061_v14  ;;  %vm4579_vm5 = vcmp.lt.s32.totalorder %v9532_v9, 0  ;;  %v4661_v47 = vxor.u32 2147483648, %v4660_v26 }
 0x7ab   : > { %v4769_v36 = vsel %vm10067_vm15, %v9683_v6, %v4766_v57  ;;  %v4870_v41 = vsel %vm4787_vm3, %v4869_v20, %v4868_v25  ;;  %vm4371_vm8 = vcmp.lt.s32.totalorder %v9470_v10, 0  ;;  %v4452_v60 = vmul.f32 %v4451_v33, %v4449_v46 }
 0x7ac   : > { %v10599_v4 = vand.u32 2147483647, %v9478_v17  ;;  %v4557_v49 = vxor.u32 2147483648, %v4556_v42  ;;  %vm4891_vm6 = vcmp.lt.s32.totalorder %v9846_v30, 0  ;;  %vm5472_vm1 = vcmp.lt.s32.totalorder %v5471_v63, 0 }
 0x7ad   : > { %5826 = vcosq.f32 %v4769_v36  ;;  %v4973_v40 = vxor.u32 2147483648, %v4972_v19  ;;  %v5064_v7 = vsel %vm5472_vm1, 0, %v5471_v63  ;;  %v10602_v3 = vand.u32 2147483647, %v9736_v31 }
 0x7ae   : > { %vm10081_vm12 = vcmp.le.f32.partialorder %v10599_v4, 0.7853982  ;;  %v5049_v8 = vadd.s32 %v9999_v50, %v10006_v38  ;;  %v5065_v1 = vsub.s32 32, %v5064_v7  ;;  %v5069_v54 = vsub.s32 4294967266, %v5064_v7 }
 0x7af   : > { %vm10088_vm7 = vcmp.le.f32.partialorder %v10602_v3, 0.7853982  ;;  %v4662_v53 = vsel %vm4579_vm5, %v4661_v47, %v4660_v26  ;;  %5828 = vsinq.f32 %v4769_v36  ;;  %v4975_v62 = vsub.s32 4, %v9988_v55 }
 0x7b0   : > { %v4873_v15 = vsel %vm10088_vm7, %v9736_v31, %v4870_v41  ;;  %v4767_v39 = vsub.s32 4, %v9849_v11  ;;  %v5066_v59 = vshll.u32 %v10041_v16, %v5064_v7  ;;  %v5067_v21 = vshrl.u32 %v5049_v8, %v5065_v1 }
 0x7b1   : > { %v5070_v25 = vadd.s32 127, %v5069_v54  ;;  %v4871_v50 = vsub.s32 4, %v9904_v51  ;;  %v4453_v38 = vxor.u32 2147483648, %v4452_v60  ;;  %v4558_v22 = vsel %vm4475_vm9, %v4557_v49, %v4556_v42 }
 0x7b2   : > { %v4974_v23 = vsel %vm4891_vm6, %v4973_v40, %v4972_v19  ;;  %5830 = vcosq.f32 %v4873_v15  ;;  %v5068_v44 = vor.u32 %v5067_v21, %v5066_v59  ;;  %v10605_v61 = vand.u32 2147483647, %v9532_v9  ;;  %v10618_v59 = vld [vmem:[#allocation11_spill] sm:$0xff] }
 0x7b3   : > { %v5071_v0 = vshll.u32 %v5070_v25, 23  ;;  %5832 = vsinq.f32 %v4873_v15  ;;  %v10608_v16 = vand.u32 2147483647, %v9846_v30  ;;  %v4976_v43 = vsel %vm4891_vm6, %v4975_v62, %v9988_v55  ;;  %v10617_v15 = vld [vmem:[#allocation13_spill] sm:$0xff] }
 0x7b4   : > { %vm10109_vm4 = vcmp.le.f32.partialorder %v10605_v61, 0.7853982  ;;  %5834 = vsinq.f32 %v4353_v56  ;;  %v4872_v34 = vsel %vm4787_vm3, %v4871_v50, %v9904_v51  ;;  %v4768_v26 = vsel %vm4683_vm11, %v4767_v39, %v9849_v11 }
 0x7b5   : > { %vm10115_vm0 = vcmp.le.f32.partialorder %v10608_v16, 0.7853982  ;;  %v4665_v2 = vsel %vm10109_vm4, %v9532_v9, %v4662_v53  ;;  %v5072_v18 = vor.u32 4788187, %v5071_v0  ;;  %v4454_v55 = vsel %vm4371_vm8, %v4453_v38, %v4452_v60 }
 0x7b6   : > { %v4977_v5 = vsel %vm10115_vm0, %v9846_v30, %v4974_v23  ;;  %v4561_v57 = vsel %vm10081_vm12, %v9478_v17, %v4558_v22  ;;  %vm4995_vm10 = vcmp.lt.s32.totalorder %v9855_v48, 0  ;;  %v5079_v20 = vsub.s32 4, %v10031_v32  ;;  %v10148_v14 = vpop.eup %5824 }
 0x7b7   : > { %v5073_v28 = vand.u32 2147483647, %v5072_v18  ;;  %v5075_v56 = vcvt.s32.f32 %v5068_v44  ;;  %v4978_v51 = vsel %vm10115_vm0, 0, %v4976_v43  ;;  %5836 = vcosq.f32 %v4665_v2 }
 0x7b8   : > { %5838 = vcosq.f32 %v4977_v5  ;;  %v4874_v11 = vsel %vm10088_vm7, 0, %v4872_v34  ;;  %v4770_v46 = vsel %vm10067_vm15, 0, %v4768_v26  ;;  %v4663_v42 = vsub.s32 4, %v9830_v24 }
 0x7b9   : > { %5840 = vsinq.f32 %v4977_v5  ;;  %v5076_v45 = vmul.f32 %v5075_v56, %v5073_v28  ;;  %v4559_v19 = vsub.s32 4, %v9786_v37  ;;  %v10611_v33 = vand.u32 2147483647, %v9470_v10 }
 0x7ba   : > { %5842 = vsinq.f32 %v4561_v57  ;;  %v5080_v13 = vsel %vm4995_vm10, %v5079_v20, %v10031_v32  ;;  %v5827_v47 = vpop.eup %5826  ;;  %v10614_v60 = vand.u32 2147483647, %v9855_v48  ;;  %v4982_v49 = vadd.s32 3, %v4978_v51 }
 0x7bb   : > { %vm10153_vm11 = vcmp.le.f32.partialorder %v10611_v33, 0.7853982  ;;  %5844 = vcosq.f32 %v4561_v57  ;;  %v5077_v41 = vxor.u32 2147483648, %v5076_v45  ;;  %v4878_v40 = vadd.s32 3, %v4874_v11 }
 0x7bc   : > { %v4457_v63 = vsel %vm10153_vm11, %v9470_v10, %v4454_v55  ;;  %vm10165_vm15 = vcmp.le.f32.partialorder %v10614_v60, 0.7853982  ;;  %v4774_v7 = vadd.s32 3, %v4770_v46  ;;  %v4664_v32 = vsel %vm4579_vm5, %v4663_v42, %v9830_v24  ;;  %v5829_v3 = vpop.eup %5828 }
 0x7bd   : > { %5846 = vsinq.f32 %v4665_v2  ;;  %v5078_v58 = vsel %vm4995_vm10, %v5077_v41, %v5076_v45  ;;  %v5082_v8 = vsel %vm10165_vm15, 0, %v5080_v13  ;;  %v4560_v1 = vsel %vm4475_vm9, %v4559_v19, %v9786_v37 }
 0x7be   : > { %5848 = vcosq.f32 %v4457_v63  ;;  %v5081_v54 = vsel %vm10165_vm15, %v9855_v48, %v5078_v58  ;;  %v4455_v53 = vsub.s32 4, %v10617_v15  ;;  %v10183_v62 = vand.u32 3, %v4982_v49 }
 0x7bf   : > { %5850 = vsinq.f32 %v4457_v63  ;;  %v5831_v24 = vpop.eup %5830  ;;  %v4666_v39 = vsel %vm10109_vm4, 0, %v4664_v32  ;;  %v4351_v21 = vsub.s32 4, %v10618_v59  ;;  %v5086_v37 = vadd.s32 3, %v5082_v8 }
 0x7c0   : > { %5852 = vcosq.f32 %v5081_v54  ;;  %v5833_v25 = vpop.eup %5832  ;;  %v4775_v50 = vand.u32 3, %v4774_v7  ;;  %v4562_v38 = vsel %vm10081_vm12, 0, %v4560_v1  ;;  %v4879_v23 = vand.u32 3, %v4878_v40 }
 0x7c1   : > { %5854 = vsinq.f32 %v5081_v54  ;;  %v10190_v22 = vpop.eup %5834  ;;  %v4778_v44 = vxor.u32 2147483648, %v5829_v3  ;;  %v4781_v0 = vxor.u32 2147483648, %v5827_v47  ;;  %v4670_v61 = vadd.s32 3, %v4666_v39 }
 0x7c2   : > { %v4456_v29 = vsel %vm4371_vm8, %v4455_v53, %v10617_v15  ;;  %v4882_v16 = vxor.u32 2147483648, %v5833_v25  ;;  %v4885_v35 = vxor.u32 2147483648, %v5831_v24  ;;  %v4566_v43 = vadd.s32 3, %v4562_v38 }
 0x7c3   : > { %v4352_v2 = vsel %vm4267_vm2, %v4351_v21, %v10618_v59  ;;  %v10200_v52 = vand.u32 3, %v5086_v37  ;;  %vm4985_vm9 = vcmp.eq.s32.totalorder %v10183_v62, 0  ;;  %vm4988_vm3 = vcmp.eq.s32.totalorder %v10183_v62, 2 }
 0x7c4   : > { %v10198_v5 = vpop.eup %5836  ;;  %vm4777_vm5 = vcmp.eq.s32.totalorder %v4775_v50, 0  ;;  %vm4780_vm12 = vcmp.eq.s32.totalorder %v4775_v50, 2  ;;  %vm4880_vm6 = vcmp.lt.s32.totalorder %v4879_v23, 2  ;;  %v4458_v55 = vsel %vm10153_vm11, 0, %v4456_v29 }
 0x7c5   : > { %v5839_v18 = vpop.eup %5838  ;;  %v4779_v34 = vsel %vm4777_vm5, %v5827_v47, %v4778_v44  ;;  %v4782_v26 = vsel %vm4780_vm12, %v4781_v0, %v5829_v3  ;;  %vm4881_vm8 = vcmp.eq.s32.totalorder %v4879_v23, 0  ;;  %vm4884_vm2 = vcmp.eq.s32.totalorder %v4879_v23, 2 }
 0x7c6   : > { %v5841_v57 = vpop.eup %5840  ;;  %v10206_v20 = vand.u32 3, %v4670_v61  ;;  %v4354_v28 = vsel %vm10050_vm14, 0, %v4352_v2  ;;  %vm4984_vm1 = vcmp.lt.s32.totalorder %v10183_v62, 2  ;;  %v4883_v51 = vsel %vm4881_vm8, %v5831_v24, %v4882_v16 }
 0x7c7   : > { %v5843_v56 = vpop.eup %5842  ;;  %v4886_v11 = vsel %vm4884_vm2, %v4885_v35, %v5833_v25  ;;  %vm4776_vm7 = vcmp.lt.s32.totalorder %v4775_v50, 2  ;;  %v10211_v46 = vand.u32 3, %v4566_v43  ;;  %vm5088_vm4 = vcmp.lt.s32.totalorder %v10200_v52, 2 }
 0x7c8   : > { %v5845_v42 = vpop.eup %5844  ;;  %v4783_v45 = vsel %vm4776_vm7, %v4779_v34, %v4782_v26  ;;  %v4677_v19 = vxor.u32 2147483648, %v10198_v5  ;;  %v4462_v33 = vadd.s32 3, %v4458_v55  ;;  %vm5085_vm0 = vweird.f32 %v9855_v48 }
 0x7c9   : > { %vm5089_vm14 = vcmp.eq.s32.totalorder %v10200_v52, 0  ;;  %v4986_v12 = vxor.u32 2147483648, %v5841_v57  ;;  %v4989_v13 = vxor.u32 2147483648, %v5839_v18  ;;  %v4358_v63 = vadd.s32 3, %v4354_v28 }
 0x7ca   : > { %v5847_v36 = vpop.eup %5846  ;;  %vm5092_vm10 = vcmp.eq.s32.totalorder %v10200_v52, 2  ;;  %vm4981_vm11 = vweird.f32 %v9846_v30  ;;  %v4887_v41 = vsel %vm4880_vm6, %v4883_v51, %v4886_v11  ;;  %vm4672_vm15 = vcmp.lt.s32.totalorder %v10206_v20, 2 }
 0x7cb   : > { %v5849_v47 = vpop.eup %5848  ;;  %v4570_v60 = vxor.u32 2147483648, %v5843_v56  ;;  %vm4877_vm5 = vweird.f32 %v9736_v31  ;;  %vm4673_vm12 = vcmp.eq.s32.totalorder %v10206_v20, 0  ;;  %vm4676_vm8 = vcmp.eq.s32.totalorder %v10206_v20, 2 }
 0x7cc   : > { %v5851_v4 = vpop.eup %5850  ;;  %vm4568_vm2 = vcmp.lt.s32.totalorder %v10211_v46, 2  ;;  %v4573_v49 = vxor.u32 2147483648, %v5845_v42  ;;  %v4674_v7 = vxor.u32 2147483648, %v5847_v36  ;;  %v4678_v32 = vsel %vm4676_vm8, %v4677_v19, %v5847_v36 }
 0x7cd   : > { %v5853_v40 = vpop.eup %5852  ;;  %vm4569_vm7 = vcmp.eq.s32.totalorder %v10211_v46, 0  ;;  %v4463_v3 = vand.u32 3, %v4462_v33  ;;  %v4987_v1 = vsel %vm4985_vm9, %v5839_v18, %v4986_v12  ;;  %v4990_v54 = vsel %vm4988_vm3, %v4989_v13, %v5841_v57 }
 0x7ce   : > { %v5855_v58 = vpop.eup %5854  ;;  %v5093_v8 = vxor.u32 2147483648, %v5853_v40  ;;  %v4359_v15 = vand.u32 3, %v4358_v63  ;;  %v4571_v24 = vsel %vm4569_vm7, %v5845_v42, %v4570_v60  ;;  %v4466_v39 = vxor.u32 2147483648, %v5851_v4 }
 0x7cf   : > { %v5090_v53 = vxor.u32 2147483648, %v5855_v58  ;;  %v4469_v59 = vxor.u32 2147483648, %v5849_v47  ;;  %vm4572_vm6 = vcmp.eq.s32.totalorder %v10211_v46, 2  ;;  %v4362_v25 = vxor.u32 2147483648, %v10190_v22 }
 0x7d0   : > { %v5094_v21 = vsel %vm5092_vm10, %v5093_v8, %v5855_v58  ;;  %v4365_v37 = vxor.u32 2147483648, %v10148_v14  ;;  %v4991_v38 = vsel %vm4984_vm1, %v4987_v1, %v4990_v54  ;;  %v4675_v23 = vsel %vm4673_vm12, %v10198_v5, %v4674_v7 }
 0x7d1   : > { %v5091_v50 = vsel %vm5089_vm14, %v5853_v40, %v5090_v53  ;;  %v4574_v44 = vsel %vm4572_vm6, %v4573_v49, %v5843_v56  ;;  %vm4465_vm9 = vcmp.eq.s32.totalorder %v4463_v3, 0  ;;  %vm4468_vm3 = vcmp.eq.s32.totalorder %v4463_v3, 2 }
 0x7d2   : > { %v5095_v0 = vsel %vm5088_vm4, %v5091_v50, %v5094_v21  ;;  %vm4361_vm10 = vcmp.eq.s32.totalorder %v4359_v15, 0  ;;  %v4467_v29 = vsel %vm4465_vm9, %v5849_v47, %v4466_v39  ;;  %v4470_v16 = vsel %vm4468_vm3, %v4469_v59, %v5851_v4 }
 0x7d3   : > { %v5096_v61 = vsel %vm5085_vm0, nan, %v5095_v0  ;;  %vm4364_vm14 = vcmp.eq.s32.totalorder %v4359_v15, 2  ;;  %v4992_v62 = vsel %vm4981_vm11, nan, %v4991_v38  ;;  %v4679_v35 = vsel %vm4672_vm15, %v4675_v23, %v4678_v32 }
 0x7d4   : > { %5131 = vmatprep.subr.mxu0 %v5096_v61  ;;  %v4363_v43 = vsel %vm4361_vm10, %v10148_v14, %v4362_v25  ;;  %v4366_v2 = vsel %vm4364_vm14, %v4365_v37, %v10190_v22  ;;  %v4888_v5 = vsel %vm4877_vm5, nan, %v4887_v41  ;;  %vm4773_vm1 = vweird.f32 %v9683_v6 }
 0x7d5   : > { %5132 = vmatpush1.msra.mxu0 %v4992_v62  ;;  %v4575_v48 = vsel %vm4568_vm2, %v4571_v24, %v4574_v44  ;;  %vm4464_vm4 = vcmp.lt.s32.totalorder %v4463_v3, 2  ;;  %v4784_v30 = vsel %vm4773_vm1, nan, %v4783_v45  ;;  %vm4669_vm0 = vweird.f32 %v9532_v9  ;;  %v5097_v9 = vld [vmem:[%s10304_s5] sm:$0x3] }
 0x7d6   : > { %5133 = vmatprep.subr.mxu0 %v4888_v5  ;;  %v4471_v52 = vsel %vm4464_vm4, %v4467_v29, %v4470_v16  ;;  %vm4360_vm11 = vcmp.lt.s32.totalorder %v4359_v15, 2  ;;  %v4680_v14 = vsel %vm4669_vm0, nan, %v4679_v35  ;;  %vm4565_vm15 = vweird.f32 %v9478_v17  ;;  %v5102_v17 = vpop.permute.xlu0 %5101 }
 0x7d7   : > { %5134 = vmatpush1.msra.mxu0 %v4784_v30  ;;  %v4367_v22 = vsel %vm4360_vm11, %v4363_v43, %v4366_v2  ;;  %v4576_v31 = vsel %vm4565_vm15, nan, %v4575_v48  ;;  %vm4461_vm5 = vweird.f32 %v9470_v10  ;;  %vm4357_vm12 = vweird.f32 %v9467_v27 }
 0x7d8   : > { %5135 = vmatprep.subr.mxu0 %v4680_v14  ;;  %v4472_v6 = vsel %vm4461_vm5, nan, %v4471_v52  ;;  %v4368_v18 = vsel %vm4357_vm12, nan, %v4367_v22 }
 0x7d9   : > { %5136 = vmatpush1.msra.mxu0 %v4576_v31 }
 0x7da   : > { %5137 = vmatprep.subr.mxu0 %v4472_v6 }
 0x7db   : > { %5138 = vmatpush1.msra.mxu0 %v4368_v18 }
 0x7dc   : > { %5473 = vmatmul.mubr.msk.f32.vlgmr.msra.gmra.mxu0 %vm1274_vm13, %v5097_v9 }
 0x89c   : > { %v5173_v34 = vpop.f32.mrf.mxu0 }
 0x89d   : > { %v5174_v26 = vadd.f32 %v5173_v34, %v5102_v17 }
 0x89e   : > { %v5175_v55 = vpop.f32.mrf.mxu0 }
 0x89f   : > { %v5176_v10 = vadd.f32 %v5175_v55, %v5102_v17  ;;  %5856 = vtanh.f32 %v5174_v26 }
 0x8a1   : > { %5858 = vtanh.f32 %v5176_v10 }
 0x8ac   : > { %v5857_v27 = vpop.eup %5856 }
 0x8ae   : > { %v5859_v57 = vpop.eup %5858 }
 0x8af   : > { %v5182_v20 = vcombine.low %v5857_v27, %v5859_v57 }
 0x8b1   : > { %5474 = vst.sshfl [vmem:[%s272_s21] sm:$0x33 pattern:$0x76325410] %v5182_v20 }
 0x8b2   : > { %5873 = shalt.err (!%p5870_p3)
}
 0x8b3   : > { %s5874_s16 = scalar_lea.hbm %s5205_s8, 64  ;;  %s5878_s19 = scalar_lea.hbm %s10306_s7, 128 }
 0x8b4   : > { %p5875_p4 = scmp.ne.s32.totalorder %s5205_s8, %s5874_s16  ;;  %p5879_p9 = scmp.lt.s32.totalorder %s5205_s8, %s10306_s7 }
 0x8b5   : > { %p5880_p10 = scmp.lt.s32.totalorder %s5878_s19, %s5874_s16 }
 0x8b6   : > { %p5876_p7 = pnand %p5875_p4, %p6010_p5 }
 0x8b7   : > { %p5881_p11 = por %p5880_p10, %p5879_p9 }
 0x8b8   : > { %p5877_p8 = pneg %p5876_p7 }
 0x8ba   : > { %p5882_p12 = pnand %p5881_p11, %p5877_p8 }
 0x8bc   : > { %5885 = shalt.err (!%p5882_p12)
}
 0x8bd   : > { %5641 = dma.vmem_to_hbm [thread:$0]  (%p6010_p5), %s5208_s22, 64, %s5205_s8, %s5193_s9  }
 0x8be PF: > { %p5647_p13 = scmp.ge.s32.totalorder %s5920_s27, 2  ;;  %s5219_s23 = sand.u32 1, %s5908_s24  }
 0x8bf   : > { %s5220_s29 = scalar_lea.sflag [#allocation3], %s5219_s23 }
 0x8c0   : > { %p5644_p0 = pnand %p5647_p13, %p6014_p6 }
 0x8c2   : > { %p5645_p1 = pneg %p5644_p0 }
 0x8c4   : > { %5903 = dma.done.wait (%p5645_p1), %s5220_s29, 64  }
 0x8c5   : > { %5905 = vsyncadd (%p5645_p1), %s5220_s29, 4294967232  ;;  %p17_p2 = scmp.ge.s32.totalorder %s5997_s30, 4   ;;  %s10619_s24 = smov %s5912_s25 }
 0x8c6   : > { %s10620_s25 = smov %s5916_s26  ;;  %s10621_s26 = smov %s6008_s10 }
 0x8c7   : > { %s10622_s27 = smov %s5997_s30  ;;  %19 = sbr.rel (!%p17_p2) target bundleno = 3 (0x3), region = 89 }
 0x8cc   :  { %5225 = vsyncpa [#allocation3], 1 }
 0x8cd   :  { %5227 = vsyncpa [#allocation3 + $0x1], 1 }

</bundles_post_ra>
